<compile_context>
chip_gen: v6e
topology: v6e:2x2x1
jax: 0.10.0
libtpu: 0.0.40
codegen_flags: <defaults>
</compile_context>

<pallas_src>
import functools

import jax
import jax.numpy as jnp
from jax.experimental import pallas as pl
from jax.experimental.pallas import tpu as pltpu


# ---------------------------------------------------------------------------
# CNN branch kernel
# ---------------------------------------------------------------------------
def _cnn_branch_kernel(x_ref, w1_ref, s1_ref, t1_ref, w2_ref, s2_ref, t2_ref,
                       out_ref, *, L, K1, K2, C1):
    """Conv1d+BN+ReLU+MaxPool(2) + Conv1d+BN+ReLU+GlobalMax for a batch block.

    x_ref   : (Bb, L, Cin)        bf16 (unpadded)
    w1_ref  : (K1*Cin, C1)        bf16   (rows ordered k*Cin + cin)
    s1/t1   : (1, C1)             f32    folded BatchNorm scale / shift
    w2_ref  : (K2*C1, C2)         bf16
    s2/t2   : (1, C2)             f32
    out_ref : (Bb, C2)            f32
    """
    Bb, _, Cin = x_ref.shape
    C2 = w2_ref.shape[1]
    L2 = L // 2
    pad1 = (K1 - 1) // 2
    pad2 = (K2 - 1) // 2

    # ---- Conv #1: in-kernel zero pad + im2col -> ONE matmul, M = Bb*L. ----
    x = x_ref[...]                                               # (Bb, L, Cin)
    z1 = jnp.zeros((Bb, pad1, Cin), x.dtype)
    xp = jnp.concatenate([z1, x, z1], axis=1)                    # (Bb, L+K1-1, Cin)
    p1 = jnp.concatenate([xp[:, k:k + L, :] for k in range(K1)],
                         axis=-1)                                # (Bb, L, K1*Cin)
    y1 = jnp.dot(p1.reshape(Bb * L, K1 * Cin), w1_ref[...],
                 preferred_element_type=jnp.float32)             # (Bb*L, C1)
    y1 = jnp.maximum(y1 * s1_ref[...] + t1_ref[...], 0.0)        # BN(eval)+ReLU

    # ---- MaxPool1d(2), floor semantics. ----
    if L % 2:                                                    # drop trailing step
        y1 = y1.reshape(Bb, L, C1)[:, :2 * L2, :].reshape(Bb * 2 * L2, C1)
    y1 = jnp.max(y1.reshape(Bb * L2, 2, C1), axis=1)             # (Bb*L2, C1)
    y1 = y1.reshape(Bb, L2, C1).astype(jnp.bfloat16)             # cast once for MXU

    # ---- Conv #2: in-kernel zero pad + im2col -> ONE matmul, M = Bb*L2. ----
    z2 = jnp.zeros((Bb, pad2, C1), jnp.bfloat16)
    xp2 = jnp.concatenate([z2, y1, z2], axis=1)                  # (Bb, L2+K2-1, C1)
    p2 = jnp.concatenate([xp2[:, k:k + L2, :] for k in range(K2)],
                         axis=-1)                                # (Bb, L2, K2*C1)
    y2 = jnp.dot(p2.reshape(Bb * L2, K2 * C1), w2_ref[...],
                 preferred_element_type=jnp.float32)             # (Bb*L2, C2)
    y2 = jnp.maximum(y2 * s2_ref[...] + t2_ref[...], 0.0)        # BN(eval)+ReLU

    # ---- AdaptiveMaxPool1d(1): global max over time, one lane-dense store. ----
    out_ref[...] = jnp.max(y2.reshape(Bb, L2, C2), axis=1)       # (Bb, C2)


def cnn_branch(x_blc, p, batch_block=None):
    """x_blc: (B, L, Cin) bf16 -> (B, C2) f32 via one fused Pallas kernel."""
    B, L, Cin = x_blc.shape
    K1, _, C1 = p['w1'].shape
    K2, _, C2 = p['w2'].shape
    L2 = L // 2
    if batch_block is None:
        Bblk = B if (B <= 8 or B % 8) else 8
    else:
        Bblk = batch_block
    assert B % Bblk == 0

    w1 = p['w1'].reshape(K1 * Cin, C1)                           # row = k*Cin+cin
    w2 = p['w2'].reshape(K2 * C1, C2)

    flops = 2 * B * (L * K1 * Cin * C1 + L2 * K2 * C1 * C2)
    bytes_accessed = (B * L * Cin * 2 + (w1.size + w2.size) * 2
                      + (C1 + C2) * 2 * 4 + B * C2 * 4)
    kernel = functools.partial(_cnn_branch_kernel, L=L, K1=K1, K2=K2, C1=C1)
    return pl.pallas_call(
        kernel,
        out_shape=jax.ShapeDtypeStruct((B, C2), jnp.float32),
        grid=(B // Bblk,),
        in_specs=[
            pl.BlockSpec((Bblk, L, Cin), lambda b: (b, 0, 0)),
            pl.BlockSpec((K1 * Cin, C1), lambda b: (0, 0)),
            pl.BlockSpec((1, C1), lambda b: (0, 0)),
            pl.BlockSpec((1, C1), lambda b: (0, 0)),
            pl.BlockSpec((K2 * C1, C2), lambda b: (0, 0)),
            pl.BlockSpec((1, C2), lambda b: (0, 0)),
            pl.BlockSpec((1, C2), lambda b: (0, 0)),
        ],
        out_specs=pl.BlockSpec((Bblk, C2), lambda b: (b, 0)),
        compiler_params=pltpu.CompilerParams(
            dimension_semantics=("parallel",),
            vmem_limit_bytes=32 * 1024 * 1024),
        cost_estimate=pl.CostEstimate(flops=flops, transcendentals=0,
                                      bytes_accessed=bytes_accessed),
    )(x_blc, w1, p['scale1'], p['shift1'], w2, p['scale2'], p['shift2'])


# ---------------------------------------------------------------------------
# Fused two-layer bidirectional LSTM kernel (last-timestep output only)
# ---------------------------------------------------------------------------
def _fused_bilstm2_kernel(xx_ref, wih1_ref, whh1_ref, b1_ref,
                          wih2_ref, whh2_ref, b2_ref, out_ref, xx2_ref,
                          *, T, G, H):
    """Both bidirectional LSTM layers, fused.  Directions ride the lane dim:
    hidden/cell state is (Bb, G) with G = 2H = [h_fwd | h_bwd]; gate columns
    are interleaved [i_f,i_b,f_f,f_b,g_f,g_b,o_f,o_b] so every fused gate
    slice is 128-lane aligned.

    xx_ref  : (Bb, T, 2*Din)  bf16, xx[b, t] = [x[b, t] | x[b, T-1-t]]
    wih1    : (2*Din, 4G) bf16   whh1 : (G, 4G) bf16   b1 : (1, 4G) f32
    wih2    : (2G, 4G)    bf16 (row blocks pre-permuted for the fused layout)
    whh2    : (G, 4G)     bf16   b2 : (1, 4G) f32
    out_ref : (Bb, G)     f32,  out = lstm_out[:, -1, :] = [h2_fwd(T-1)|h2_bwd(T-1)]
    xx2_ref : (Bb, T, 2G) bf16 VMEM scratch, layer-2 packed input
    """
    Bb = xx_ref.shape[0]
    Din2 = xx_ref.shape[2]

    def cell(gates, c):
        i = jax.nn.sigmoid(gates[:, 0 * G:1 * G])                # 128-aligned slices
        f = jax.nn.sigmoid(gates[:, 1 * G:2 * G])
        g = jnp.tanh(gates[:, 2 * G:3 * G])
        o = jax.nn.sigmoid(gates[:, 3 * G:4 * G])
        c = f * c + i * g
        return o * jnp.tanh(c), c

    # ---- Layer 1: hoisted input projection (one MXU matmul), value-sliced. ----
    gx1 = (jnp.dot(xx_ref[...].reshape(Bb * T, Din2), wih1_ref[...],
                   preferred_element_type=jnp.float32)
           + b1_ref[...]).reshape(Bb, T, 4 * G)

    h = jnp.zeros((Bb, G), jnp.bfloat16)                         # bf16 carry
    c = jnp.zeros((Bb, G), jnp.float32)
    for t in range(T):                                           # static unroll
        gates = gx1[:, t, :] + jnp.dot(h, whh1_ref[...],
                                       preferred_element_type=jnp.float32)
        h_f32, c = cell(gates, c)
        h = h_f32.astype(jnp.bfloat16)
        # Write straight into layer-2's packed [y1[t] | y1[T-1-t]] layout.
        # h = [h1_fwd(t) | h1_bwd(T-1-t)]  (lane-dense 128-wide stores).
        xx2_ref[:, t, 0:G] = h
        xx2_ref[:, T - 1 - t, G:2 * G] = h

    # ---- Layer 2: hoisted input projection over the packed scratch. ----
    gx2 = (jnp.dot(xx2_ref[...].reshape(Bb * T, 2 * G), wih2_ref[...],
                   preferred_element_type=jnp.float32)
           + b2_ref[...]).reshape(Bb, T, 4 * G)

    h2 = jnp.zeros((Bb, G), jnp.bfloat16)
    c2 = jnp.zeros((Bb, G), jnp.float32)
    out_bwd = jnp.zeros((Bb, H), jnp.float32)
    h2_f32 = jnp.zeros((Bb, G), jnp.float32)
    for t in range(T):
        gates = gx2[:, t, :] + jnp.dot(h2, whh2_ref[...],
                                       preferred_element_type=jnp.float32)
        h2_f32, c2 = cell(gates, c2)
        h2 = h2_f32.astype(jnp.bfloat16)
        if t == 0:
            out_bwd = h2_f32[:, H:]                              # = h2_bwd(T-1)
    out_fwd = h2_f32[:, :H]                                      # = h2_fwd(T-1)
    out_ref[...] = jnp.concatenate([out_fwd, out_bwd], axis=-1)  # (Bb, G) lane-dense


def bilstm_two_layer_last(x_bld, lstm_params, batch_block=None):
    """x_bld: (B, T, Din) bf16 batch-major.  Returns lstm_out[:, -1, :] (B, 2H) f32.

    batch_block: on v7x with B >= 2 set batch_block=B//2 so the two grid steps
    (marked "parallel") land on both TensorCores; on v5e/v6e keep the default
    single block (the recurrence is serial, so splitting only adds latency).
    """
    B, T, Din = x_bld.shape
    (wih1, whh1, b1), (wih2, whh2, b2) = lstm_params
    G = whh1.shape[0]                                            # 2H
    H = G // 2
    Bblk = B if batch_block is None else batch_block
    assert B % Bblk == 0

    # Packed bidirectional input: xx[b, t] = [x[b, t] | x[b, T-1-t]].
    xx = jnp.concatenate([x_bld, jnp.flip(x_bld, axis=1)], axis=-1)   # (B, T, 2*Din)

    flops = (2 * T * B * (2 * Din) * 4 * G + 2 * T * B * G * 4 * G        # layer 1
             + 2 * T * B * (2 * G) * 4 * G + 2 * T * B * G * 4 * G)       # layer 2
    transcendentals = 2 * T * B * 5 * G
    bytes_accessed = (xx.size * 2
                      + (wih1.size + whh1.size + wih2.size + whh2.size) * 2
                      + (b1.size + b2.size) * 4 + B * G * 4)
    kernel = functools.partial(_fused_bilstm2_kernel, T=T, G=G, H=H)
    return pl.pallas_call(
        kernel,
        out_shape=jax.ShapeDtypeStruct((B, G), jnp.float32),
        grid=(B // Bblk,),
        in_specs=[
            pl.BlockSpec((Bblk, T, 2 * Din), lambda b: (b, 0, 0)),
            pl.BlockSpec(wih1.shape, lambda b: (0, 0)),
            pl.BlockSpec(whh1.shape, lambda b: (0, 0)),
            pl.BlockSpec(b1.shape, lambda b: (0, 0)),
            pl.BlockSpec(wih2.shape, lambda b: (0, 0)),
            pl.BlockSpec(whh2.shape, lambda b: (0, 0)),
            pl.BlockSpec(b2.shape, lambda b: (0, 0)),
        ],
        out_specs=pl.BlockSpec((Bblk, G), lambda b: (b, 0)),
        scratch_shapes=[pltpu.VMEM((Bblk, T, 2 * G), jnp.bfloat16)],
        compiler_params=pltpu.CompilerParams(
            dimension_semantics=("parallel",),
            vmem_limit_bytes=32 * 1024 * 1024),
        cost_estimate=pl.CostEstimate(flops=flops,
                                      transcendentals=transcendentals,
                                      bytes_accessed=bytes_accessed),
    )(xx, wih1, whh1, b1, wih2, whh2, b2)


# ---------------------------------------------------------------------------
# Parameter construction (plain JAX, done once)
# ---------------------------------------------------------------------------
def _gate_interleave_blockdiag(w_f, w_b, H):
    """(R_f,4H)+(R_b,4H) -> (R_f+R_b, 8H) block-diag, gate-interleaved columns
    [i_f,i_b,f_f,f_b,g_f,g_b,o_f,o_b] so fused gate slices are 2H-lane aligned."""
    z_f = jnp.zeros((w_f.shape[0], H), w_f.dtype)
    z_b = jnp.zeros((w_b.shape[0], H), w_b.dtype)
    cols = []
    for k in range(4):
        cols.append(jnp.concatenate([w_f[:, k * H:(k + 1) * H], z_b], axis=0))
        cols.append(jnp.concatenate([z_f, w_b[:, k * H:(k + 1) * H]], axis=0))
    return jnp.concatenate(cols, axis=1)


def _gate_interleave_bias(b_f, b_b, H):
    parts = []
    for k in range(4):
        parts.append(b_f[:, k * H:(k + 1) * H])
        parts.append(b_b[:, k * H:(k + 1) * H])
    return jnp.concatenate(parts, axis=1)


def _permute_layer2_rows(wih_big, H):
    """The fused kernel feeds layer-2 rows as [h_f(t), h_b(T-1-t), h_f(T-1-t), h_b(t)]
    while the block-diagonal weight expects [h_f(t), h_b(t), h_f(T-1-t), h_b(T-1-t)];
    swapping row blocks 1 and 3 (size H) makes the fed layout multiply the right rows."""
    return jnp.concatenate([wih_big[0:H], wih_big[3 * H:4 * H],
                            wih_big[2 * H:3 * H], wih_big[H:2 * H]], axis=0)


def init_params(key):
    eps = 1e-5
    keys = jax.random.split(key, 6)
    p = {}

    def bn_fold(k, c):
        kg, kb, km, kv = jax.random.split(k, 4)
        gamma = 1.0 + 0.1 * jax.random.normal(kg, (c,), jnp.float32)
        beta = 0.1 * jax.random.normal(kb, (c,), jnp.float32)
        mean = 0.1 * jax.random.normal(km, (c,), jnp.float32)
        var = 0.5 + jnp.abs(jax.random.normal(kv, (c,), jnp.float32))
        scale = gamma / jnp.sqrt(var + eps)
        return scale.reshape(1, c), (beta - mean * scale).reshape(1, c)

    # Conv1d(8,32,5,p=2)+BN(32) ; Conv1d(32,64,3,p=1)+BN(64).
    # Weight layout (K, Cin, Cout) == torch weight (Cout, Cin, K) transposed to (2,1,0).
    p['w1'] = (0.1 * jax.random.normal(keys[0], (5, 8, 32), jnp.float32)
               ).astype(jnp.bfloat16)
    p['scale1'], p['shift1'] = bn_fold(keys[1], 32)
    p['w2'] = (0.05 * jax.random.normal(keys[2], (3, 32, 64), jnp.float32)
               ).astype(jnp.bfloat16)
    p['scale2'], p['shift2'] = bn_fold(keys[3], 64)

    # LSTM(input=8, hidden=64, bidirectional, 2 layers), gate order (i, f, g, o).
    # TODO(synk): when loading a real PyTorch checkpoint, bias = b_ih + b_hh.
    H = 64
    p['lstm'] = []
    for layer in range(2):
        din = 8 if layer == 0 else 2 * H
        kf, kb = jax.random.split(keys[4 + layer], 2)

        def direction(k, din):
            k1, k2, k3 = jax.random.split(k, 3)
            wih = 0.1 * jax.random.normal(k1, (din, 4 * H), jnp.float32)
            whh = 0.1 * jax.random.normal(k2, (H, 4 * H), jnp.float32)
            bias = 0.1 * jax.random.normal(k3, (1, 4 * H), jnp.float32)
            return wih, whh, bias

        wih_f, whh_f, b_f = direction(kf, din)
        wih_b, whh_b, b_b = direction(kb, din)
        wih_big = _gate_interleave_blockdiag(wih_f, wih_b, H)
        whh_big = _gate_interleave_blockdiag(whh_f, whh_b, H).astype(jnp.bfloat16)
        b_big = _gate_interleave_bias(b_f, b_b, H)
        if layer == 1:
            wih_big = _permute_layer2_rows(wih_big, H)
        p['lstm'].append((wih_big.astype(jnp.bfloat16), whh_big, b_big))
    return p


# ---------------------------------------------------------------------------
# Forward pass
# ---------------------------------------------------------------------------
def pretrained_bio_encoder(x_ncl, params):
    """x_ncl: (B, 8, L) f32 -> (B, 192) = concat(cnn_feat[64], lstm_feat[128])."""
    # One bf16 (B, L, C) copy feeds both branches (MXU operands are bf16 anyway).
    x_blc = jnp.transpose(x_ncl, (0, 2, 1)).astype(jnp.bfloat16)     # (B, L, 8)
    cnn_feat = cnn_branch(x_blc, params)                             # (B, 64)
    lstm_feat = bilstm_two_layer_last(x_blc, params['lstm'])         # (B, 128)
    return jnp.concatenate([cnn_feat, lstm_feat], axis=1)            # (B, 192)


if __name__ == "__main__":
    B, C, L = 2, 8, 16
    key = jax.random.PRNGKey(0)
    kx, kp = jax.random.split(key)
    x = jax.random.normal(kx, (B, C, L), jnp.float32)                # torch NCL input
    params = init_params(kp)

    fwd = jax.jit(pretrained_bio_encoder)
    out = jax.block_until_ready(fwd(x, params))
    assert out.shape == (B, 192), out.shape
    assert bool(jnp.all(jnp.isfinite(out)))
    print("KERNEL_OK")
</pallas_src>

<mosaic_0001>
module attributes {stable_mosaic.version = 11 : i64} {
  func.func @_cnn_branch_kernel(%arg0: i32, %arg1: memref<2x16x8xbf16, #tpu.memory_space<vmem>>, %arg2: memref<40x32xbf16, #tpu.memory_space<vmem>>, %arg3: memref<1x32xf32, #tpu.memory_space<vmem>>, %arg4: memref<1x32xf32, #tpu.memory_space<vmem>>, %arg5: memref<96x64xbf16, #tpu.memory_space<vmem>>, %arg6: memref<1x64xf32, #tpu.memory_space<vmem>>, %arg7: memref<1x64xf32, #tpu.memory_space<vmem>>, %arg8: memref<2x64xf32, #tpu.memory_space<vmem>>) attributes {dimension_semantics = [#tpu.dimension_semantics<parallel>], iteration_bounds = array<i64: 1>, scalar_prefetch = 0 : i64, scratch_operands = 0 : i64, tpu.core_type = #tpu.core_type<tc>, window_params = [{transform_indices = @transform_0, window_bounds = array<i64: 2, 16, 8>}, {pipeline_mode = #tpu.pipeline_mode<synchronous>, transform_indices = @transform_1, window_bounds = array<i64: 40, 32>}, {pipeline_mode = #tpu.pipeline_mode<synchronous>, transform_indices = @transform_2, window_bounds = array<i64: 1, 32>}, {pipeline_mode = #tpu.pipeline_mode<synchronous>, transform_indices = @transform_3, window_bounds = array<i64: 1, 32>}, {pipeline_mode = #tpu.pipeline_mode<synchronous>, transform_indices = @transform_4, window_bounds = array<i64: 96, 64>}, {pipeline_mode = #tpu.pipeline_mode<synchronous>, transform_indices = @transform_5, window_bounds = array<i64: 1, 64>}, {pipeline_mode = #tpu.pipeline_mode<synchronous>, transform_indices = @transform_6, window_bounds = array<i64: 1, 64>}, {transform_indices = @transform_7, window_bounds = array<i64: 2, 64>}]} {
    %c0 = arith.constant 0 : index
    %c0_0 = arith.constant 0 : index
    %c0_1 = arith.constant 0 : index
    %0 = vector.load %arg1[%c0, %c0_0, %c0_1] : memref<2x16x8xbf16, #tpu.memory_space<vmem>>, vector<2x16x8xbf16>
    %cst = arith.constant 0.000000e+00 : bf16
    %1 = vector.broadcast %cst : bf16 to vector<2x2x8xbf16>
    %2 = tpu.concatenate %1, %0, %1 in 1 : vector<2x2x8xbf16>, vector<2x16x8xbf16>, vector<2x2x8xbf16> -> vector<2x20x8xbf16>
    %3 = vector.extract_strided_slice %2 {offsets = [0, 0, 0], sizes = [2, 16, 8], strides = [1, 1, 1]} : vector<2x20x8xbf16> to vector<2x16x8xbf16>
    %4 = vector.extract_strided_slice %2 {offsets = [0, 1, 0], sizes = [2, 16, 8], strides = [1, 1, 1]} : vector<2x20x8xbf16> to vector<2x16x8xbf16>
    %5 = vector.extract_strided_slice %2 {offsets = [0, 2, 0], sizes = [2, 16, 8], strides = [1, 1, 1]} : vector<2x20x8xbf16> to vector<2x16x8xbf16>
    %6 = vector.extract_strided_slice %2 {offsets = [0, 3, 0], sizes = [2, 16, 8], strides = [1, 1, 1]} : vector<2x20x8xbf16> to vector<2x16x8xbf16>
    %7 = vector.extract_strided_slice %2 {offsets = [0, 4, 0], sizes = [2, 16, 8], strides = [1, 1, 1]} : vector<2x20x8xbf16> to vector<2x16x8xbf16>
    %8 = tpu.concatenate %3, %4, %5, %6, %7 in 2 : vector<2x16x8xbf16>, vector<2x16x8xbf16>, vector<2x16x8xbf16>, vector<2x16x8xbf16>, vector<2x16x8xbf16> -> vector<2x16x40xbf16>
    %9 = vector.shape_cast %8 : vector<2x16x40xbf16> to vector<32x40xbf16>
    %c0_2 = arith.constant 0 : index
    %c0_3 = arith.constant 0 : index
    %10 = vector.load %arg2[%c0_2, %c0_3] : memref<40x32xbf16, #tpu.memory_space<vmem>>, vector<40x32xbf16>
    %cst_4 = arith.constant dense<0.000000e+00> : vector<32x32xf32>
    %11 = tpu.matmul %9, %10, %cst_4 {dimension_numbers = #tpu.dot_dimension_numbers<[1], [0], [0], [1], [0, 0, 1, 1], [], []>} : vector<32x40xbf16>, vector<40x32xbf16>, vector<32x32xf32> -> vector<32x32xf32>
    %c0_5 = arith.constant 0 : index
    %c0_6 = arith.constant 0 : index
    %12 = vector.load %arg3[%c0_5, %c0_6] : memref<1x32xf32, #tpu.memory_space<vmem>>, vector<1x32xf32>
    %13 = vector.broadcast %12 : vector<1x32xf32> to vector<32x32xf32>
    %14 = arith.mulf %11, %13 : vector<32x32xf32>
    %c0_7 = arith.constant 0 : index
    %c0_8 = arith.constant 0 : index
    %15 = vector.load %arg4[%c0_7, %c0_8] : memref<1x32xf32, #tpu.memory_space<vmem>>, vector<1x32xf32>
    %16 = vector.broadcast %15 : vector<1x32xf32> to vector<32x32xf32>
    %17 = arith.addf %14, %16 : vector<32x32xf32>
    %cst_9 = arith.constant 0.000000e+00 : f32
    %18 = vector.broadcast %cst_9 : f32 to vector<32x32xf32>
    %19 = arith.maximumf %17, %18 : vector<32x32xf32>
    %20 = vector.shape_cast %19 : vector<32x32xf32> to vector<16x2x32xf32>
    %cst_10 = arith.constant dense<0xFF800000> : vector<16x32xf32>
    %21 = vector.multi_reduction <maximumf>, %20, %cst_10 [1] : vector<16x2x32xf32> to vector<16x32xf32>
    %22 = vector.shape_cast %21 : vector<16x32xf32> to vector<2x8x32xf32>
    %23 = arith.truncf %22 : vector<2x8x32xf32> to vector<2x8x32xbf16>
    %cst_11 = arith.constant 0.000000e+00 : bf16
    %24 = vector.broadcast %cst_11 : bf16 to vector<2x1x32xbf16>
    %25 = tpu.concatenate %24, %23, %24 in 1 : vector<2x1x32xbf16>, vector<2x8x32xbf16>, vector<2x1x32xbf16> -> vector<2x10x32xbf16>
    %26 = vector.extract_strided_slice %25 {offsets = [0, 0, 0], sizes = [2, 8, 32], strides = [1, 1, 1]} : vector<2x10x32xbf16> to vector<2x8x32xbf16>
    %27 = vector.extract_strided_slice %25 {offsets = [0, 1, 0], sizes = [2, 8, 32], strides = [1, 1, 1]} : vector<2x10x32xbf16> to vector<2x8x32xbf16>
    %28 = vector.extract_strided_slice %25 {offsets = [0, 2, 0], sizes = [2, 8, 32], strides = [1, 1, 1]} : vector<2x10x32xbf16> to vector<2x8x32xbf16>
    %29 = tpu.concatenate %26, %27, %28 in 2 : vector<2x8x32xbf16>, vector<2x8x32xbf16>, vector<2x8x32xbf16> -> vector<2x8x96xbf16>
    %30 = vector.shape_cast %29 : vector<2x8x96xbf16> to vector<16x96xbf16>
    %c0_12 = arith.constant 0 : index
    %c0_13 = arith.constant 0 : index
    %31 = vector.load %arg5[%c0_12, %c0_13] : memref<96x64xbf16, #tpu.memory_space<vmem>>, vector<96x64xbf16>
    %cst_14 = arith.constant dense<0.000000e+00> : vector<16x64xf32>
    %32 = tpu.matmul %30, %31, %cst_14 {dimension_numbers = #tpu.dot_dimension_numbers<[1], [0], [0], [1], [0, 0, 1, 1], [], []>} : vector<16x96xbf16>, vector<96x64xbf16>, vector<16x64xf32> -> vector<16x64xf32>
    %c0_15 = arith.constant 0 : index
    %c0_16 = arith.constant 0 : index
    %33 = vector.load %arg6[%c0_15, %c0_16] : memref<1x64xf32, #tpu.memory_space<vmem>>, vector<1x64xf32>
    %34 = vector.broadcast %33 : vector<1x64xf32> to vector<16x64xf32>
    %35 = arith.mulf %32, %34 : vector<16x64xf32>
    %c0_17 = arith.constant 0 : index
    %c0_18 = arith.constant 0 : index
    %36 = vector.load %arg7[%c0_17, %c0_18] : memref<1x64xf32, #tpu.memory_space<vmem>>, vector<1x64xf32>
    %37 = vector.broadcast %36 : vector<1x64xf32> to vector<16x64xf32>
    %38 = arith.addf %35, %37 : vector<16x64xf32>
    %cst_19 = arith.constant 0.000000e+00 : f32
    %39 = vector.broadcast %cst_19 : f32 to vector<16x64xf32>
    %40 = arith.maximumf %38, %39 : vector<16x64xf32>
    %41 = vector.shape_cast %40 : vector<16x64xf32> to vector<2x8x64xf32>
    %cst_20 = arith.constant dense<0xFF800000> : vector<2x64xf32>
    %42 = vector.multi_reduction <maximumf>, %41, %cst_20 [1] : vector<2x8x64xf32> to vector<2x64xf32>
    %c0_21 = arith.constant 0 : index
    %c0_22 = arith.constant 0 : index
    %43 = vector.load %arg8[%c0_21, %c0_22] : memref<2x64xf32, #tpu.memory_space<vmem>>, vector<2x64xf32>
    tpu.vector_store %arg8[%c0_21, %c0_22], %42 {strides = array<i32>} : memref<2x64xf32, #tpu.memory_space<vmem>>, vector<2x64xf32>,
    return
  }
  func.func @transform_0(%arg0: i32) -> (i32, i32, i32) {
    %c0_i32 = arith.constant 0 : i32
    %c0_i32_0 = arith.constant 0 : i32
    %c0_i32_1 = arith.constant 0 : i32
    return %arg0, %c0_i32, %c0_i32_0 : i32, i32, i32
  }
  func.func @transform_1(%arg0: i32) -> (i32, i32) {
    %c0_i32 = arith.constant 0 : i32
    %c0_i32_0 = arith.constant 0 : i32
    %c0_i32_1 = arith.constant 0 : i32
    return %c0_i32, %c0_i32_0 : i32, i32
  }
  func.func @transform_2(%arg0: i32) -> (i32, i32) {
    %c0_i32 = arith.constant 0 : i32
    %c0_i32_0 = arith.constant 0 : i32
    %c0_i32_1 = arith.constant 0 : i32
    return %c0_i32, %c0_i32_0 : i32, i32
  }
  func.func @transform_3(%arg0: i32) -> (i32, i32) {
    %c0_i32 = arith.constant 0 : i32
    %c0_i32_0 = arith.constant 0 : i32
    %c0_i32_1 = arith.constant 0 : i32
    return %c0_i32, %c0_i32_0 : i32, i32
  }
  func.func @transform_4(%arg0: i32) -> (i32, i32) {
    %c0_i32 = arith.constant 0 : i32
    %c0_i32_0 = arith.constant 0 : i32
    %c0_i32_1 = arith.constant 0 : i32
    return %c0_i32, %c0_i32_0 : i32, i32
  }
  func.func @transform_5(%arg0: i32) -> (i32, i32) {
    %c0_i32 = arith.constant 0 : i32
    %c0_i32_0 = arith.constant 0 : i32
    %c0_i32_1 = arith.constant 0 : i32
    return %c0_i32, %c0_i32_0 : i32, i32
  }
  func.func @transform_6(%arg0: i32) -> (i32, i32) {
    %c0_i32 = arith.constant 0 : i32
    %c0_i32_0 = arith.constant 0 : i32
    %c0_i32_1 = arith.constant 0 : i32
    return %c0_i32, %c0_i32_0 : i32, i32
  }
  func.func @transform_7(%arg0: i32) -> (i32, i32) {
    %c0_i32 = arith.constant 0 : i32
    %c0_i32_0 = arith.constant 0 : i32
    return %arg0, %c0_i32 : i32, i32
  }
}

module attributes {stable_mosaic.version = 11 : i64} {
  func.func @_fused_bilstm2_kernel(%arg0: i32, %arg1: memref<2x16x16xbf16, #tpu.memory_space<vmem>>, %arg2: memref<16x512xbf16, #tpu.memory_space<vmem>>, %arg3: memref<128x512xbf16, #tpu.memory_space<vmem>>, %arg4: memref<1x512xf32, #tpu.memory_space<vmem>>, %arg5: memref<256x512xbf16, #tpu.memory_space<vmem>>, %arg6: memref<128x512xbf16, #tpu.memory_space<vmem>>, %arg7: memref<1x512xf32, #tpu.memory_space<vmem>>, %arg8: memref<2x128xf32, #tpu.memory_space<vmem>>, %arg9: memref<2x16x256xbf16, #tpu.memory_space<vmem>>) attributes {dimension_semantics = [#tpu.dimension_semantics<parallel>], iteration_bounds = array<i64: 1>, scalar_prefetch = 0 : i64, scratch_operands = 1 : i64, tpu.core_type = #tpu.core_type<tc>, window_params = [{transform_indices = @transform_0, window_bounds = array<i64: 2, 16, 16>}, {pipeline_mode = #tpu.pipeline_mode<synchronous>, transform_indices = @transform_1, window_bounds = array<i64: 16, 512>}, {pipeline_mode = #tpu.pipeline_mode<synchronous>, transform_indices = @transform_2, window_bounds = array<i64: 128, 512>}, {pipeline_mode = #tpu.pipeline_mode<synchronous>, transform_indices = @transform_3, window_bounds = array<i64: 1, 512>}, {pipeline_mode = #tpu.pipeline_mode<synchronous>, transform_indices = @transform_4, window_bounds = array<i64: 256, 512>}, {pipeline_mode = #tpu.pipeline_mode<synchronous>, transform_indices = @transform_5, window_bounds = array<i64: 128, 512>}, {pipeline_mode = #tpu.pipeline_mode<synchronous>, transform_indices = @transform_6, window_bounds = array<i64: 1, 512>}, {transform_indices = @transform_7, window_bounds = array<i64: 2, 128>}]} {
    %c0 = arith.constant 0 : index
    %c0_0 = arith.constant 0 : index
    %c0_1 = arith.constant 0 : index
    %0 = vector.load %arg1[%c0, %c0_0, %c0_1] : memref<2x16x16xbf16, #tpu.memory_space<vmem>>, vector<2x16x16xbf16>
    %1 = vector.shape_cast %0 : vector<2x16x16xbf16> to vector<32x16xbf16>
    %c0_2 = arith.constant 0 : index
    %c0_3 = arith.constant 0 : index
    %2 = vector.load %arg2[%c0_2, %c0_3] : memref<16x512xbf16, #tpu.memory_space<vmem>>, vector<16x512xbf16>
    %cst = arith.constant dense<0.000000e+00> : vector<32x512xf32>
    %3 = tpu.matmul %1, %2, %cst {dimension_numbers = #tpu.dot_dimension_numbers<[1], [0], [0], [1], [0, 0, 1, 1], [], []>} : vector<32x16xbf16>, vector<16x512xbf16>, vector<32x512xf32> -> vector<32x512xf32>
    %c0_4 = arith.constant 0 : index
    %c0_5 = arith.constant 0 : index
    %4 = vector.load %arg4[%c0_4, %c0_5] : memref<1x512xf32, #tpu.memory_space<vmem>>, vector<1x512xf32>
    %5 = vector.broadcast %4 : vector<1x512xf32> to vector<32x512xf32>
    %6 = arith.addf %3, %5 : vector<32x512xf32>
    %7 = vector.shape_cast %6 : vector<32x512xf32> to vector<2x16x512xf32>
    %cst_6 = arith.constant 0.000000e+00 : bf16
    %8 = vector.broadcast %cst_6 : bf16 to vector<2x128xbf16>
    %cst_7 = arith.constant 0.000000e+00 : f32
    %9 = vector.broadcast %cst_7 : f32 to vector<2x128xf32>
    %10 = vector.extract_strided_slice %7 {offsets = [0, 0, 0], sizes = [2, 1, 512], strides = [1, 1, 1]} : vector<2x16x512xf32> to vector<2x1x512xf32>
    %11 = vector.shape_cast %10 : vector<2x1x512xf32> to vector<2x512xf32>
    %c0_8 = arith.constant 0 : index
    %c0_9 = arith.constant 0 : index
    %12 = vector.load %arg3[%c0_8, %c0_9] : memref<128x512xbf16, #tpu.memory_space<vmem>>, vector<128x512xbf16>
    %cst_10 = arith.constant dense<0.000000e+00> : vector<2x512xf32>
    %13 = tpu.matmul %8, %12, %cst_10 {dimension_numbers = #tpu.dot_dimension_numbers<[1], [0], [0], [1], [0, 0, 1, 1], [], []>} : vector<2x128xbf16>, vector<128x512xbf16>, vector<2x512xf32> -> vector<2x512xf32>
    %14 = arith.addf %11, %13 : vector<2x512xf32>
    %15 = vector.extract_strided_slice %14 {offsets = [0, 0], sizes = [2, 128], strides = [1, 1]} : vector<2x512xf32> to vector<2x128xf32>
    %16 = arith.negf %15 : vector<2x128xf32>
    %17 = math.exp %16 : vector<2x128xf32>
    %cst_11 = arith.constant 1.000000e+00 : f32
    %18 = vector.broadcast %cst_11 : f32 to vector<2x128xf32>
    %19 = arith.addf %18, %17 : vector<2x128xf32>
    %20 = arith.divf %18, %19 : vector<2x128xf32>
    %21 = vector.extract_strided_slice %14 {offsets = [0, 128], sizes = [2, 128], strides = [1, 1]} : vector<2x512xf32> to vector<2x128xf32>
    %22 = arith.negf %21 : vector<2x128xf32>
    %23 = math.exp %22 : vector<2x128xf32>
    %cst_12 = arith.constant 1.000000e+00 : f32
    %24 = vector.broadcast %cst_12 : f32 to vector<2x128xf32>
    %25 = arith.addf %24, %23 : vector<2x128xf32>
    %26 = arith.divf %24, %25 : vector<2x128xf32>
    %27 = vector.extract_strided_slice %14 {offsets = [0, 256], sizes = [2, 128], strides = [1, 1]} : vector<2x512xf32> to vector<2x128xf32>
    %28 = math.tanh %27 : vector<2x128xf32>
    %29 = vector.extract_strided_slice %14 {offsets = [0, 384], sizes = [2, 128], strides = [1, 1]} : vector<2x512xf32> to vector<2x128xf32>
    %30 = arith.negf %29 : vector<2x128xf32>
    %31 = math.exp %30 : vector<2x128xf32>
    %cst_13 = arith.constant 1.000000e+00 : f32
    %32 = vector.broadcast %cst_13 : f32 to vector<2x128xf32>
    %33 = arith.addf %32, %31 : vector<2x128xf32>
    %34 = arith.divf %32, %33 : vector<2x128xf32>
    %35 = arith.mulf %26, %9 : vector<2x128xf32>
    %36 = arith.mulf %20, %28 : vector<2x128xf32>
    %37 = arith.addf %35, %36 : vector<2x128xf32>
    %38 = math.tanh %37 : vector<2x128xf32>
    %39 = arith.mulf %34, %38 : vector<2x128xf32>
    %40 = arith.truncf %39 : vector<2x128xf32> to vector<2x128xbf16>
    %c0_14 = arith.constant 0 : index
    %c0_15 = arith.constant 0 : index
    %c0_16 = arith.constant 0 : index
    %41 = vector.load %arg9[%c0_14, %c0_15, %c0_16] : memref<2x16x256xbf16, #tpu.memory_space<vmem>>, vector<2x1x128xbf16>
    %42 = vector.shape_cast %41 : vector<2x1x128xbf16> to vector<2x128xbf16>
    %43 = vector.shape_cast %40 : vector<2x128xbf16> to vector<2x1x128xbf16>
    tpu.vector_store %arg9[%c0_14, %c0_15, %c0_16], %43 {strides = array<i32>} : memref<2x16x256xbf16, #tpu.memory_space<vmem>>, vector<2x1x128xbf16>,
    %c0_17 = arith.constant 0 : index
    %c15 = arith.constant 15 : index
    %c128 = arith.constant 128 : index
    %44 = vector.load %arg9[%c0_17, %c15, %c128] : memref<2x16x256xbf16, #tpu.memory_space<vmem>>, vector<2x1x128xbf16>
    %45 = vector.shape_cast %44 : vector<2x1x128xbf16> to vector<2x128xbf16>
    %46 = vector.shape_cast %40 : vector<2x128xbf16> to vector<2x1x128xbf16>
    tpu.vector_store %arg9[%c0_17, %c15, %c128], %46 {strides = array<i32>} : memref<2x16x256xbf16, #tpu.memory_space<vmem>>, vector<2x1x128xbf16>,
    %47 = vector.extract_strided_slice %7 {offsets = [0, 1, 0], sizes = [2, 1, 512], strides = [1, 1, 1]} : vector<2x16x512xf32> to vector<2x1x512xf32>
    %48 = vector.shape_cast %47 : vector<2x1x512xf32> to vector<2x512xf32>
    %c0_18 = arith.constant 0 : index
    %c0_19 = arith.constant 0 : index
    %49 = vector.load %arg3[%c0_18, %c0_19] : memref<128x512xbf16, #tpu.memory_space<vmem>>, vector<128x512xbf16>
    %cst_20 = arith.constant dense<0.000000e+00> : vector<2x512xf32>
    %50 = tpu.matmul %40, %49, %cst_20 {dimension_numbers = #tpu.dot_dimension_numbers<[1], [0], [0], [1], [0, 0, 1, 1], [], []>} : vector<2x128xbf16>, vector<128x512xbf16>, vector<2x512xf32> -> vector<2x512xf32>
    %51 = arith.addf %48, %50 : vector<2x512xf32>
    %52 = vector.extract_strided_slice %51 {offsets = [0, 0], sizes = [2, 128], strides = [1, 1]} : vector<2x512xf32> to vector<2x128xf32>
    %53 = arith.negf %52 : vector<2x128xf32>
    %54 = math.exp %53 : vector<2x128xf32>
    %cst_21 = arith.constant 1.000000e+00 : f32
    %55 = vector.broadcast %cst_21 : f32 to vector<2x128xf32>
    %56 = arith.addf %55, %54 : vector<2x128xf32>
    %57 = arith.divf %55, %56 : vector<2x128xf32>
    %58 = vector.extract_strided_slice %51 {offsets = [0, 128], sizes = [2, 128], strides = [1, 1]} : vector<2x512xf32> to vector<2x128xf32>
    %59 = arith.negf %58 : vector<2x128xf32>
    %60 = math.exp %59 : vector<2x128xf32>
    %cst_22 = arith.constant 1.000000e+00 : f32
    %61 = vector.broadcast %cst_22 : f32 to vector<2x128xf32>
    %62 = arith.addf %61, %60 : vector<2x128xf32>
    %63 = arith.divf %61, %62 : vector<2x128xf32>
    %64 = vector.extract_strided_slice %51 {offsets = [0, 256], sizes = [2, 128], strides = [1, 1]} : vector<2x512xf32> to vector<2x128xf32>
    %65 = math.tanh %64 : vector<2x128xf32>
    %66 = vector.extract_strided_slice %51 {offsets = [0, 384], sizes = [2, 128], strides = [1, 1]} : vector<2x512xf32> to vector<2x128xf32>
    %67 = arith.negf %66 : vector<2x128xf32>
    %68 = math.exp %67 : vector<2x128xf32>
    %cst_23 = arith.constant 1.000000e+00 : f32
    %69 = vector.broadcast %cst_23 : f32 to vector<2x128xf32>
    %70 = arith.addf %69, %68 : vector<2x128xf32>
    %71 = arith.divf %69, %70 : vector<2x128xf32>
    %72 = arith.mulf %63, %37 : vector<2x128xf32>
    %73 = arith.mulf %57, %65 : vector<2x128xf32>
    %74 = arith.addf %72, %73 : vector<2x128xf32>
    %75 = math.tanh %74 : vector<2x128xf32>
    %76 = arith.mulf %71, %75 : vector<2x128xf32>
    %77 = arith.truncf %76 : vector<2x128xf32> to vector<2x128xbf16>
    %c0_24 = arith.constant 0 : index
    %c1 = arith.constant 1 : index
    %c0_25 = arith.constant 0 : index
    %78 = vector.load %arg9[%c0_24, %c1, %c0_25] : memref<2x16x256xbf16, #tpu.memory_space<vmem>>, vector<2x1x128xbf16>
    %79 = vector.shape_cast %78 : vector<2x1x128xbf16> to vector<2x128xbf16>
    %80 = vector.shape_cast %77 : vector<2x128xbf16> to vector<2x1x128xbf16>
    tpu.vector_store %arg9[%c0_24, %c1, %c0_25], %80 {strides = array<i32>} : memref<2x16x256xbf16, #tpu.memory_space<vmem>>, vector<2x1x128xbf16>,
    %c0_26 = arith.constant 0 : index
    %c14 = arith.constant 14 : index
    %c128_27 = arith.constant 128 : index
    %81 = vector.load %arg9[%c0_26, %c14, %c128_27] : memref<2x16x256xbf16, #tpu.memory_space<vmem>>, vector<2x1x128xbf16>
    %82 = vector.shape_cast %81 : vector<2x1x128xbf16> to vector<2x128xbf16>
    %83 = vector.shape_cast %77 : vector<2x128xbf16> to vector<2x1x128xbf16>
    tpu.vector_store %arg9[%c0_26, %c14, %c128_27], %83 {strides = array<i32>} : memref<2x16x256xbf16, #tpu.memory_space<vmem>>, vector<2x1x128xbf16>,
    %84 = vector.extract_strided_slice %7 {offsets = [0, 2, 0], sizes = [2, 1, 512], strides = [1, 1, 1]} : vector<2x16x512xf32> to vector<2x1x512xf32>
    %85 = vector.shape_cast %84 : vector<2x1x512xf32> to vector<2x512xf32>
    %c0_28 = arith.constant 0 : index
    %c0_29 = arith.constant 0 : index
    %86 = vector.load %arg3[%c0_28, %c0_29] : memref<128x512xbf16, #tpu.memory_space<vmem>>, vector<128x512xbf16>
    %cst_30 = arith.constant dense<0.000000e+00> : vector<2x512xf32>
    %87 = tpu.matmul %77, %86, %cst_30 {dimension_numbers = #tpu.dot_dimension_numbers<[1], [0], [0], [1], [0, 0, 1, 1], [], []>} : vector<2x128xbf16>, vector<128x512xbf16>, vector<2x512xf32> -> vector<2x512xf32>
    %88 = arith.addf %85, %87 : vector<2x512xf32>
    %89 = vector.extract_strided_slice %88 {offsets = [0, 0], sizes = [2, 128], strides = [1, 1]} : vector<2x512xf32> to vector<2x128xf32>
    %90 = arith.negf %89 : vector<2x128xf32>
    %91 = math.exp %90 : vector<2x128xf32>
    %cst_31 = arith.constant 1.000000e+00 : f32
    %92 = vector.broadcast %cst_31 : f32 to vector<2x128xf32>
    %93 = arith.addf %92, %91 : vector<2x128xf32>
    %94 = arith.divf %92, %93 : vector<2x128xf32>
    %95 = vector.extract_strided_slice %88 {offsets = [0, 128], sizes = [2, 128], strides = [1, 1]} : vector<2x512xf32> to vector<2x128xf32>
    %96 = arith.negf %95 : vector<2x128xf32>
    %97 = math.exp %96 : vector<2x128xf32>
    %cst_32 = arith.constant 1.000000e+00 : f32
    %98 = vector.broadcast %cst_32 : f32 to vector<2x128xf32>
    %99 = arith.addf %98, %97 : vector<2x128xf32>
    %100 = arith.divf %98, %99 : vector<2x128xf32>
    %101 = vector.extract_strided_slice %88 {offsets = [0, 256], sizes = [2, 128], strides = [1, 1]} : vector<2x512xf32> to vector<2x128xf32>
    %102 = math.tanh %101 : vector<2x128xf32>
    %103 = vector.extract_strided_slice %88 {offsets = [0, 384], sizes = [2, 128], strides = [1, 1]} : vector<2x512xf32> to vector<2x128xf32>
    %104 = arith.negf %103 : vector<2x128xf32>
    %105 = math.exp %104 : vector<2x128xf32>
    %cst_33 = arith.constant 1.000000e+00 : f32
    %106 = vector.broadcast %cst_33 : f32 to vector<2x128xf32>
    %107 = arith.addf %106, %105 : vector<2x128xf32>
    %108 = arith.divf %106, %107 : vector<2x128xf32>
    %109 = arith.mulf %100, %74 : vector<2x128xf32>
    %110 = arith.mulf %94, %102 : vector<2x128xf32>
    %111 = arith.addf %109, %110 : vector<2x128xf32>
    %112 = math.tanh %111 : vector<2x128xf32>
    %113 = arith.mulf %108, %112 : vector<2x128xf32>
    %114 = arith.truncf %113 : vector<2x128xf32> to vector<2x128xbf16>
    %c0_34 = arith.constant 0 : index
    %c2 = arith.constant 2 : index
    %c0_35 = arith.constant 0 : index
    %115 = vector.load %arg9[%c0_34, %c2, %c0_35] : memref<2x16x256xbf16, #tpu.memory_space<vmem>>, vector<2x1x128xbf16>
    %116 = vector.shape_cast %115 : vector<2x1x128xbf16> to vector<2x128xbf16>
    %117 = vector.shape_cast %114 : vector<2x128xbf16> to vector<2x1x128xbf16>
    tpu.vector_store %arg9[%c0_34, %c2, %c0_35], %117 {strides = array<i32>} : memref<2x16x256xbf16, #tpu.memory_space<vmem>>, vector<2x1x128xbf16>,
    %c0_36 = arith.constant 0 : index
    %c13 = arith.constant 13 : index
    %c128_37 = arith.constant 128 : index
    %118 = vector.load %arg9[%c0_36, %c13, %c128_37] : memref<2x16x256xbf16, #tpu.memory_space<vmem>>, vector<2x1x128xbf16>
    %119 = vector.shape_cast %118 : vector<2x1x128xbf16> to vector<2x128xbf16>
    %120 = vector.shape_cast %114 : vector<2x128xbf16> to vector<2x1x128xbf16>
    tpu.vector_store %arg9[%c0_36, %c13, %c128_37], %120 {strides = array<i32>} : memref<2x16x256xbf16, #tpu.memory_space<vmem>>, vector<2x1x128xbf16>,
    %121 = vector.extract_strided_slice %7 {offsets = [0, 3, 0], sizes = [2, 1, 512], strides = [1, 1, 1]} : vector<2x16x512xf32> to vector<2x1x512xf32>
    %122 = vector.shape_cast %121 : vector<2x1x512xf32> to vector<2x512xf32>
    %c0_38 = arith.constant 0 : index
    %c0_39 = arith.constant 0 : index
    %123 = vector.load %arg3[%c0_38, %c0_39] : memref<128x512xbf16, #tpu.memory_space<vmem>>, vector<128x512xbf16>
    %cst_40 = arith.constant dense<0.000000e+00> : vector<2x512xf32>
    %124 = tpu.matmul %114, %123, %cst_40 {dimension_numbers = #tpu.dot_dimension_numbers<[1], [0], [0], [1], [0, 0, 1, 1], [], []>} : vector<2x128xbf16>, vector<128x512xbf16>, vector<2x512xf32> -> vector<2x512xf32>
    %125 = arith.addf %122, %124 : vector<2x512xf32>
    %126 = vector.extract_strided_slice %125 {offsets = [0, 0], sizes = [2, 128], strides = [1, 1]} : vector<2x512xf32> to vector<2x128xf32>
    %127 = arith.negf %126 : vector<2x128xf32>
    %128 = math.exp %127 : vector<2x128xf32>
    %cst_41 = arith.constant 1.000000e+00 : f32
    %129 = vector.broadcast %cst_41 : f32 to vector<2x128xf32>
    %130 = arith.addf %129, %128 : vector<2x128xf32>
    %131 = arith.divf %129, %130 : vector<2x128xf32>
    %132 = vector.extract_strided_slice %125 {offsets = [0, 128], sizes = [2, 128], strides = [1, 1]} : vector<2x512xf32> to vector<2x128xf32>
    %133 = arith.negf %132 : vector<2x128xf32>
    %134 = math.exp %133 : vector<2x128xf32>
    %cst_42 = arith.constant 1.000000e+00 : f32
    %135 = vector.broadcast %cst_42 : f32 to vector<2x128xf32>
    %136 = arith.addf %135, %134 : vector<2x128xf32>
    %137 = arith.divf %135, %136 : vector<2x128xf32>
    %138 = vector.extract_strided_slice %125 {offsets = [0, 256], sizes = [2, 128], strides = [1, 1]} : vector<2x512xf32> to vector<2x128xf32>
    %139 = math.tanh %138 : vector<2x128xf32>
    %140 = vector.extract_strided_slice %125 {offsets = [0, 384], sizes = [2, 128], strides = [1, 1]} : vector<2x512xf32> to vector<2x128xf32>
    %141 = arith.negf %140 : vector<2x128xf32>
    %142 = math.exp %141 : vector<2x128xf32>
    %cst_43 = arith.constant 1.000000e+00 : f32
    %143 = vector.broadcast %cst_43 : f32 to vector<2x128xf32>
    %144 = arith.addf %143, %142 : vector<2x128xf32>
    %145 = arith.divf %143, %144 : vector<2x128xf32>
    %146 = arith.mulf %137, %111 : vector<2x128xf32>
    %147 = arith.mulf %131, %139 : vector<2x128xf32>
    %148 = arith.addf %146, %147 : vector<2x128xf32>
    %149 = math.tanh %148 : vector<2x128xf32>
    %150 = arith.mulf %145, %149 : vector<2x128xf32>
    %151 = arith.truncf %150 : vector<2x128xf32> to vector<2x128xbf16>
    %c0_44 = arith.constant 0 : index
    %c3 = arith.constant 3 : index
    %c0_45 = arith.constant 0 : index
    %152 = vector.load %arg9[%c0_44, %c3, %c0_45] : memref<2x16x256xbf16, #tpu.memory_space<vmem>>, vector<2x1x128xbf16>
    %153 = vector.shape_cast %152 : vector<2x1x128xbf16> to vector<2x128xbf16>
    %154 = vector.shape_cast %151 : vector<2x128xbf16> to vector<2x1x128xbf16>
    tpu.vector_store %arg9[%c0_44, %c3, %c0_45], %154 {strides = array<i32>} : memref<2x16x256xbf16, #tpu.memory_space<vmem>>, vector<2x1x128xbf16>,
    %c0_46 = arith.constant 0 : index
    %c12 = arith.constant 12 : index
    %c128_47 = arith.constant 128 : index
    %155 = vector.load %arg9[%c0_46, %c12, %c128_47] : memref<2x16x256xbf16, #tpu.memory_space<vmem>>, vector<2x1x128xbf16>
    %156 = vector.shape_cast %155 : vector<2x1x128xbf16> to vector<2x128xbf16>
    %157 = vector.shape_cast %151 : vector<2x128xbf16> to vector<2x1x128xbf16>
    tpu.vector_store %arg9[%c0_46, %c12, %c128_47], %157 {strides = array<i32>} : memref<2x16x256xbf16, #tpu.memory_space<vmem>>, vector<2x1x128xbf16>,
    %158 = vector.extract_strided_slice %7 {offsets = [0, 4, 0], sizes = [2, 1, 512], strides = [1, 1, 1]} : vector<2x16x512xf32> to vector<2x1x512xf32>
    %159 = vector.shape_cast %158 : vector<2x1x512xf32> to vector<2x512xf32>
    %c0_48 = arith.constant 0 : index
    %c0_49 = arith.constant 0 : index
    %160 = vector.load %arg3[%c0_48, %c0_49] : memref<128x512xbf16, #tpu.memory_space<vmem>>, vector<128x512xbf16>
    %cst_50 = arith.constant dense<0.000000e+00> : vector<2x512xf32>
    %161 = tpu.matmul %151, %160, %cst_50 {dimension_numbers = #tpu.dot_dimension_numbers<[1], [0], [0], [1], [0, 0, 1, 1], [], []>} : vector<2x128xbf16>, vector<128x512xbf16>, vector<2x512xf32> -> vector<2x512xf32>
    %162 = arith.addf %159, %161 : vector<2x512xf32>
    %163 = vector.extract_strided_slice %162 {offsets = [0, 0], sizes = [2, 128], strides = [1, 1]} : vector<2x512xf32> to vector<2x128xf32>
    %164 = arith.negf %163 : vector<2x128xf32>
    %165 = math.exp %164 : vector<2x128xf32>
    %cst_51 = arith.constant 1.000000e+00 : f32
    %166 = vector.broadcast %cst_51 : f32 to vector<2x128xf32>
    %167 = arith.addf %166, %165 : vector<2x128xf32>
    %168 = arith.divf %166, %167 : vector<2x128xf32>
    %169 = vector.extract_strided_slice %162 {offsets = [0, 128], sizes = [2, 128], strides = [1, 1]} : vector<2x512xf32> to vector<2x128xf32>
    %170 = arith.negf %169 : vector<2x128xf32>
    %171 = math.exp %170 : vector<2x128xf32>
    %cst_52 = arith.constant 1.000000e+00 : f32
    %172 = vector.broadcast %cst_52 : f32 to vector<2x128xf32>
    %173 = arith.addf %172, %171 : vector<2x128xf32>
    %174 = arith.divf %172, %173 : vector<2x128xf32>
    %175 = vector.extract_strided_slice %162 {offsets = [0, 256], sizes = [2, 128], strides = [1, 1]} : vector<2x512xf32> to vector<2x128xf32>
    %176 = math.tanh %175 : vector<2x128xf32>
    %177 = vector.extract_strided_slice %162 {offsets = [0, 384], sizes = [2, 128], strides = [1, 1]} : vector<2x512xf32> to vector<2x128xf32>
    %178 = arith.negf %177 : vector<2x128xf32>
    %179 = math.exp %178 : vector<2x128xf32>
    %cst_53 = arith.constant 1.000000e+00 : f32
    %180 = vector.broadcast %cst_53 : f32 to vector<2x128xf32>
    %181 = arith.addf %180, %179 : vector<2x128xf32>
    %182 = arith.divf %180, %181 : vector<2x128xf32>
    %183 = arith.mulf %174, %148 : vector<2x128xf32>
    %184 = arith.mulf %168, %176 : vector<2x128xf32>
    %185 = arith.addf %183, %184 : vector<2x128xf32>
    %186 = math.tanh %185 : vector<2x128xf32>
    %187 = arith.mulf %182, %186 : vector<2x128xf32>
    %188 = arith.truncf %187 : vector<2x128xf32> to vector<2x128xbf16>
    %c0_54 = arith.constant 0 : index
    %c4 = arith.constant 4 : index
    %c0_55 = arith.constant 0 : index
    %189 = vector.load %arg9[%c0_54, %c4, %c0_55] : memref<2x16x256xbf16, #tpu.memory_space<vmem>>, vector<2x1x128xbf16>
    %190 = vector.shape_cast %189 : vector<2x1x128xbf16> to vector<2x128xbf16>
    %191 = vector.shape_cast %188 : vector<2x128xbf16> to vector<2x1x128xbf16>
    tpu.vector_store %arg9[%c0_54, %c4, %c0_55], %191 {strides = array<i32>} : memref<2x16x256xbf16, #tpu.memory_space<vmem>>, vector<2x1x128xbf16>,
    %c0_56 = arith.constant 0 : index
    %c11 = arith.constant 11 : index
    %c128_57 = arith.constant 128 : index
    %192 = vector.load %arg9[%c0_56, %c11, %c128_57] : memref<2x16x256xbf16, #tpu.memory_space<vmem>>, vector<2x1x128xbf16>
    %193 = vector.shape_cast %192 : vector<2x1x128xbf16> to vector<2x128xbf16>
    %194 = vector.shape_cast %188 : vector<2x128xbf16> to vector<2x1x128xbf16>
    tpu.vector_store %arg9[%c0_56, %c11, %c128_57], %194 {strides = array<i32>} : memref<2x16x256xbf16, #tpu.memory_space<vmem>>, vector<2x1x128xbf16>,
    %195 = vector.extract_strided_slice %7 {offsets = [0, 5, 0], sizes = [2, 1, 512], strides = [1, 1, 1]} : vector<2x16x512xf32> to vector<2x1x512xf32>
    %196 = vector.shape_cast %195 : vector<2x1x512xf32> to vector<2x512xf32>
    %c0_58 = arith.constant 0 : index
    %c0_59 = arith.constant 0 : index
    %197 = vector.load %arg3[%c0_58, %c0_59] : memref<128x512xbf16, #tpu.memory_space<vmem>>, vector<128x512xbf16>
    %cst_60 = arith.constant dense<0.000000e+00> : vector<2x512xf32>
    %198 = tpu.matmul %188, %197, %cst_60 {dimension_numbers = #tpu.dot_dimension_numbers<[1], [0], [0], [1], [0, 0, 1, 1], [], []>} : vector<2x128xbf16>, vector<128x512xbf16>, vector<2x512xf32> -> vector<2x512xf32>
    %199 = arith.addf %196, %198 : vector<2x512xf32>
    %200 = vector.extract_strided_slice %199 {offsets = [0, 0], sizes = [2, 128], strides = [1, 1]} : vector<2x512xf32> to vector<2x128xf32>
    %201 = arith.negf %200 : vector<2x128xf32>
    %202 = math.exp %201 : vector<2x128xf32>
    %cst_61 = arith.constant 1.000000e+00 : f32
    %203 = vector.broadcast %cst_61 : f32 to vector<2x128xf32>
    %204 = arith.addf %203, %202 : vector<2x128xf32>
    %205 = arith.divf %203, %204 : vector<2x128xf32>
    %206 = vector.extract_strided_slice %199 {offsets = [0, 128], sizes = [2, 128], strides = [1, 1]} : vector<2x512xf32> to vector<2x128xf32>
    %207 = arith.negf %206 : vector<2x128xf32>
    %208 = math.exp %207 : vector<2x128xf32>
    %cst_62 = arith.constant 1.000000e+00 : f32
    %209 = vector.broadcast %cst_62 : f32 to vector<2x128xf32>
    %210 = arith.addf %209, %208 : vector<2x128xf32>
    %211 = arith.divf %209, %210 : vector<2x128xf32>
    %212 = vector.extract_strided_slice %199 {offsets = [0, 256], sizes = [2, 128], strides = [1, 1]} : vector<2x512xf32> to vector<2x128xf32>
    %213 = math.tanh %212 : vector<2x128xf32>
    %214 = vector.extract_strided_slice %199 {offsets = [0, 384], sizes = [2, 128], strides = [1, 1]} : vector<2x512xf32> to vector<2x128xf32>
    %215 = arith.negf %214 : vector<2x128xf32>
    %216 = math.exp %215 : vector<2x128xf32>
    %cst_63 = arith.constant 1.000000e+00 : f32
    %217 = vector.broadcast %cst_63 : f32 to vector<2x128xf32>
    %218 = arith.addf %217, %216 : vector<2x128xf32>
    %219 = arith.divf %217, %218 : vector<2x128xf32>
    %220 = arith.mulf %211, %185 : vector<2x128xf32>
    %221 = arith.mulf %205, %213 : vector<2x128xf32>
    %222 = arith.addf %220, %221 : vector<2x128xf32>
    %223 = math.tanh %222 : vector<2x128xf32>
    %224 = arith.mulf %219, %223 : vector<2x128xf32>
    %225 = arith.truncf %224 : vector<2x128xf32> to vector<2x128xbf16>
    %c0_64 = arith.constant 0 : index
    %c5 = arith.constant 5 : index
    %c0_65 = arith.constant 0 : index
    %226 = vector.load %arg9[%c0_64, %c5, %c0_65] : memref<2x16x256xbf16, #tpu.memory_space<vmem>>, vector<2x1x128xbf16>
    %227 = vector.shape_cast %226 : vector<2x1x128xbf16> to vector<2x128xbf16>
    %228 = vector.shape_cast %225 : vector<2x128xbf16> to vector<2x1x128xbf16>
    tpu.vector_store %arg9[%c0_64, %c5, %c0_65], %228 {strides = array<i32>} : memref<2x16x256xbf16, #tpu.memory_space<vmem>>, vector<2x1x128xbf16>,
    %c0_66 = arith.constant 0 : index
    %c10 = arith.constant 10 : index
    %c128_67 = arith.constant 128 : index
    %229 = vector.load %arg9[%c0_66, %c10, %c128_67] : memref<2x16x256xbf16, #tpu.memory_space<vmem>>, vector<2x1x128xbf16>
    %230 = vector.shape_cast %229 : vector<2x1x128xbf16> to vector<2x128xbf16>
    %231 = vector.shape_cast %225 : vector<2x128xbf16> to vector<2x1x128xbf16>
    tpu.vector_store %arg9[%c0_66, %c10, %c128_67], %231 {strides = array<i32>} : memref<2x16x256xbf16, #tpu.memory_space<vmem>>, vector<2x1x128xbf16>,
    %232 = vector.extract_strided_slice %7 {offsets = [0, 6, 0], sizes = [2, 1, 512], strides = [1, 1, 1]} : vector<2x16x512xf32> to vector<2x1x512xf32>
    %233 = vector.shape_cast %232 : vector<2x1x512xf32> to vector<2x512xf32>
    %c0_68 = arith.constant 0 : index
    %c0_69 = arith.constant 0 : index
    %234 = vector.load %arg3[%c0_68, %c0_69] : memref<128x512xbf16, #tpu.memory_space<vmem>>, vector<128x512xbf16>
    %cst_70 = arith.constant dense<0.000000e+00> : vector<2x512xf32>
    %235 = tpu.matmul %225, %234, %cst_70 {dimension_numbers = #tpu.dot_dimension_numbers<[1], [0], [0], [1], [0, 0, 1, 1], [], []>} : vector<2x128xbf16>, vector<128x512xbf16>, vector<2x512xf32> -> vector<2x512xf32>
    %236 = arith.addf %233, %235 : vector<2x512xf32>
    %237 = vector.extract_strided_slice %236 {offsets = [0, 0], sizes = [2, 128], strides = [1, 1]} : vector<2x512xf32> to vector<2x128xf32>
    %238 = arith.negf %237 : vector<2x128xf32>
    %239 = math.exp %238 : vector<2x128xf32>
    %cst_71 = arith.constant 1.000000e+00 : f32
    %240 = vector.broadcast %cst_71 : f32 to vector<2x128xf32>
    %241 = arith.addf %240, %239 : vector<2x128xf32>
    %242 = arith.divf %240, %241 : vector<2x128xf32>
    %243 = vector.extract_strided_slice %236 {offsets = [0, 128], sizes = [2, 128], strides = [1, 1]} : vector<2x512xf32> to vector<2x128xf32>
    %244 = arith.negf %243 : vector<2x128xf32>
    %245 = math.exp %244 : vector<2x128xf32>
    %cst_72 = arith.constant 1.000000e+00 : f32
    %246 = vector.broadcast %cst_72 : f32 to vector<2x128xf32>
    %247 = arith.addf %246, %245 : vector<2x128xf32>
    %248 = arith.divf %246, %247 : vector<2x128xf32>
    %249 = vector.extract_strided_slice %236 {offsets = [0, 256], sizes = [2, 128], strides = [1, 1]} : vector<2x512xf32> to vector<2x128xf32>
    %250 = math.tanh %249 : vector<2x128xf32>
    %251 = vector.extract_strided_slice %236 {offsets = [0, 384], sizes = [2, 128], strides = [1, 1]} : vector<2x512xf32> to vector<2x128xf32>
    %252 = arith.negf %251 : vector<2x128xf32>
    %253 = math.exp %252 : vector<2x128xf32>
    %cst_73 = arith.constant 1.000000e+00 : f32
    %254 = vector.broadcast %cst_73 : f32 to vector<2x128xf32>
    %255 = arith.addf %254, %253 : vector<2x128xf32>
    %256 = arith.divf %254, %255 : vector<2x128xf32>
    %257 = arith.mulf %248, %222 : vector<2x128xf32>
    %258 = arith.mulf %242, %250 : vector<2x128xf32>
    %259 = arith.addf %257, %258 : vector<2x128xf32>
    %260 = math.tanh %259 : vector<2x128xf32>
    %261 = arith.mulf %256, %260 : vector<2x128xf32>
    %262 = arith.truncf %261 : vector<2x128xf32> to vector<2x128xbf16>
    %c0_74 = arith.constant 0 : index
    %c6 = arith.constant 6 : index
    %c0_75 = arith.constant 0 : index
    %263 = vector.load %arg9[%c0_74, %c6, %c0_75] : memref<2x16x256xbf16, #tpu.memory_space<vmem>>, vector<2x1x128xbf16>
    %264 = vector.shape_cast %263 : vector<2x1x128xbf16> to vector<2x128xbf16>
    %265 = vector.shape_cast %262 : vector<2x128xbf16> to vector<2x1x128xbf16>
    tpu.vector_store %arg9[%c0_74, %c6, %c0_75], %265 {strides = array<i32>} : memref<2x16x256xbf16, #tpu.memory_space<vmem>>, vector<2x1x128xbf16>,
    %c0_76 = arith.constant 0 : index
    %c9 = arith.constant 9 : index
    %c128_77 = arith.constant 128 : index
    %266 = vector.load %arg9[%c0_76, %c9, %c128_77] : memref<2x16x256xbf16, #tpu.memory_space<vmem>>, vector<2x1x128xbf16>
    %267 = vector.shape_cast %266 : vector<2x1x128xbf16> to vector<2x128xbf16>
    %268 = vector.shape_cast %262 : vector<2x128xbf16> to vector<2x1x128xbf16>
    tpu.vector_store %arg9[%c0_76, %c9, %c128_77], %268 {strides = array<i32>} : memref<2x16x256xbf16, #tpu.memory_space<vmem>>, vector<2x1x128xbf16>,
    %269 = vector.extract_strided_slice %7 {offsets = [0, 7, 0], sizes = [2, 1, 512], strides = [1, 1, 1]} : vector<2x16x512xf32> to vector<2x1x512xf32>
    %270 = vector.shape_cast %269 : vector<2x1x512xf32> to vector<2x512xf32>
    %c0_78 = arith.constant 0 : index
    %c0_79 = arith.constant 0 : index
    %271 = vector.load %arg3[%c0_78, %c0_79] : memref<128x512xbf16, #tpu.memory_space<vmem>>, vector<128x512xbf16>
    %cst_80 = arith.constant dense<0.000000e+00> : vector<2x512xf32>
    %272 = tpu.matmul %262, %271, %cst_80 {dimension_numbers = #tpu.dot_dimension_numbers<[1], [0], [0], [1], [0, 0, 1, 1], [], []>} : vector<2x128xbf16>, vector<128x512xbf16>, vector<2x512xf32> -> vector<2x512xf32>
    %273 = arith.addf %270, %272 : vector<2x512xf32>
    %274 = vector.extract_strided_slice %273 {offsets = [0, 0], sizes = [2, 128], strides = [1, 1]} : vector<2x512xf32> to vector<2x128xf32>
    %275 = arith.negf %274 : vector<2x128xf32>
    %276 = math.exp %275 : vector<2x128xf32>
    %cst_81 = arith.constant 1.000000e+00 : f32
    %277 = vector.broadcast %cst_81 : f32 to vector<2x128xf32>
    %278 = arith.addf %277, %276 : vector<2x128xf32>
    %279 = arith.divf %277, %278 : vector<2x128xf32>
    %280 = vector.extract_strided_slice %273 {offsets = [0, 128], sizes = [2, 128], strides = [1, 1]} : vector<2x512xf32> to vector<2x128xf32>
    %281 = arith.negf %280 : vector<2x128xf32>
    %282 = math.exp %281 : vector<2x128xf32>
    %cst_82 = arith.constant 1.000000e+00 : f32
    %283 = vector.broadcast %cst_82 : f32 to vector<2x128xf32>
    %284 = arith.addf %283, %282 : vector<2x128xf32>
    %285 = arith.divf %283, %284 : vector<2x128xf32>
    %286 = vector.extract_strided_slice %273 {offsets = [0, 256], sizes = [2, 128], strides = [1, 1]} : vector<2x512xf32> to vector<2x128xf32>
    %287 = math.tanh %286 : vector<2x128xf32>
    %288 = vector.extract_strided_slice %273 {offsets = [0, 384], sizes = [2, 128], strides = [1, 1]} : vector<2x512xf32> to vector<2x128xf32>
    %289 = arith.negf %288 : vector<2x128xf32>
    %290 = math.exp %289 : vector<2x128xf32>
    %cst_83 = arith.constant 1.000000e+00 : f32
    %291 = vector.broadcast %cst_83 : f32 to vector<2x128xf32>
    %292 = arith.addf %291, %290 : vector<2x128xf32>
    %293 = arith.divf %291, %292 : vector<2x128xf32>
    %294 = arith.mulf %285, %259 : vector<2x128xf32>
    %295 = arith.mulf %279, %287 : vector<2x128xf32>
    %296 = arith.addf %294, %295 : vector<2x128xf32>
    %297 = math.tanh %296 : vector<2x128xf32>
    %298 = arith.mulf %293, %297 : vector<2x128xf32>
    %299 = arith.truncf %298 : vector<2x128xf32> to vector<2x128xbf16>
    %c0_84 = arith.constant 0 : index
    %c7 = arith.constant 7 : index
    %c0_85 = arith.constant 0 : index
    %300 = vector.load %arg9[%c0_84, %c7, %c0_85] : memref<2x16x256xbf16, #tpu.memory_space<vmem>>, vector<2x1x128xbf16>
    %301 = vector.shape_cast %300 : vector<2x1x128xbf16> to vector<2x128xbf16>
    %302 = vector.shape_cast %299 : vector<2x128xbf16> to vector<2x1x128xbf16>
    tpu.vector_store %arg9[%c0_84, %c7, %c0_85], %302 {strides = array<i32>} : memref<2x16x256xbf16, #tpu.memory_space<vmem>>, vector<2x1x128xbf16>,
    %c0_86 = arith.constant 0 : index
    %c8 = arith.constant 8 : index
    %c128_87 = arith.constant 128 : index
    %303 = vector.load %arg9[%c0_86, %c8, %c128_87] : memref<2x16x256xbf16, #tpu.memory_space<vmem>>, vector<2x1x128xbf16>
    %304 = vector.shape_cast %303 : vector<2x1x128xbf16> to vector<2x128xbf16>
    %305 = vector.shape_cast %299 : vector<2x128xbf16> to vector<2x1x128xbf16>
    tpu.vector_store %arg9[%c0_86, %c8, %c128_87], %305 {strides = array<i32>} : memref<2x16x256xbf16, #tpu.memory_space<vmem>>, vector<2x1x128xbf16>,
    %306 = vector.extract_strided_slice %7 {offsets = [0, 8, 0], sizes = [2, 1, 512], strides = [1, 1, 1]} : vector<2x16x512xf32> to vector<2x1x512xf32>
    %307 = vector.shape_cast %306 : vector<2x1x512xf32> to vector<2x512xf32>
    %c0_88 = arith.constant 0 : index
    %c0_89 = arith.constant 0 : index
    %308 = vector.load %arg3[%c0_88, %c0_89] : memref<128x512xbf16, #tpu.memory_space<vmem>>, vector<128x512xbf16>
    %cst_90 = arith.constant dense<0.000000e+00> : vector<2x512xf32>
    %309 = tpu.matmul %299, %308, %cst_90 {dimension_numbers = #tpu.dot_dimension_numbers<[1], [0], [0], [1], [0, 0, 1, 1], [], []>} : vector<2x128xbf16>, vector<128x512xbf16>, vector<2x512xf32> -> vector<2x512xf32>
    %310 = arith.addf %307, %309 : vector<2x512xf32>
    %311 = vector.extract_strided_slice %310 {offsets = [0, 0], sizes = [2, 128], strides = [1, 1]} : vector<2x512xf32> to vector<2x128xf32>
    %312 = arith.negf %311 : vector<2x128xf32>
    %313 = math.exp %312 : vector<2x128xf32>
    %cst_91 = arith.constant 1.000000e+00 : f32
    %314 = vector.broadcast %cst_91 : f32 to vector<2x128xf32>
    %315 = arith.addf %314, %313 : vector<2x128xf32>
    %316 = arith.divf %314, %315 : vector<2x128xf32>
    %317 = vector.extract_strided_slice %310 {offsets = [0, 128], sizes = [2, 128], strides = [1, 1]} : vector<2x512xf32> to vector<2x128xf32>
    %318 = arith.negf %317 : vector<2x128xf32>
    %319 = math.exp %318 : vector<2x128xf32>
    %cst_92 = arith.constant 1.000000e+00 : f32
    %320 = vector.broadcast %cst_92 : f32 to vector<2x128xf32>
    %321 = arith.addf %320, %319 : vector<2x128xf32>
    %322 = arith.divf %320, %321 : vector<2x128xf32>
    %323 = vector.extract_strided_slice %310 {offsets = [0, 256], sizes = [2, 128], strides = [1, 1]} : vector<2x512xf32> to vector<2x128xf32>
    %324 = math.tanh %323 : vector<2x128xf32>
    %325 = vector.extract_strided_slice %310 {offsets = [0, 384], sizes = [2, 128], strides = [1, 1]} : vector<2x512xf32> to vector<2x128xf32>
    %326 = arith.negf %325 : vector<2x128xf32>
    %327 = math.exp %326 : vector<2x128xf32>
    %cst_93 = arith.constant 1.000000e+00 : f32
    %328 = vector.broadcast %cst_93 : f32 to vector<2x128xf32>
    %329 = arith.addf %328, %327 : vector<2x128xf32>
    %330 = arith.divf %328, %329 : vector<2x128xf32>
    %331 = arith.mulf %322, %296 : vector<2x128xf32>
    %332 = arith.mulf %316, %324 : vector<2x128xf32>
    %333 = arith.addf %331, %332 : vector<2x128xf32>
    %334 = math.tanh %333 : vector<2x128xf32>
    %335 = arith.mulf %330, %334 : vector<2x128xf32>
    %336 = arith.truncf %335 : vector<2x128xf32> to vector<2x128xbf16>
    %c0_94 = arith.constant 0 : index
    %c8_95 = arith.constant 8 : index
    %c0_96 = arith.constant 0 : index
    %337 = vector.load %arg9[%c0_94, %c8_95, %c0_96] : memref<2x16x256xbf16, #tpu.memory_space<vmem>>, vector<2x1x128xbf16>
    %338 = vector.shape_cast %337 : vector<2x1x128xbf16> to vector<2x128xbf16>
    %339 = vector.shape_cast %336 : vector<2x128xbf16> to vector<2x1x128xbf16>
    tpu.vector_store %arg9[%c0_94, %c8_95, %c0_96], %339 {strides = array<i32>} : memref<2x16x256xbf16, #tpu.memory_space<vmem>>, vector<2x1x128xbf16>,
    %c0_97 = arith.constant 0 : index
    %c7_98 = arith.constant 7 : index
    %c128_99 = arith.constant 128 : index
    %340 = vector.load %arg9[%c0_97, %c7_98, %c128_99] : memref<2x16x256xbf16, #tpu.memory_space<vmem>>, vector<2x1x128xbf16>
    %341 = vector.shape_cast %340 : vector<2x1x128xbf16> to vector<2x128xbf16>
    %342 = vector.shape_cast %336 : vector<2x128xbf16> to vector<2x1x128xbf16>
    tpu.vector_store %arg9[%c0_97, %c7_98, %c128_99], %342 {strides = array<i32>} : memref<2x16x256xbf16, #tpu.memory_space<vmem>>, vector<2x1x128xbf16>,
    %343 = vector.extract_strided_slice %7 {offsets = [0, 9, 0], sizes = [2, 1, 512], strides = [1, 1, 1]} : vector<2x16x512xf32> to vector<2x1x512xf32>
    %344 = vector.shape_cast %343 : vector<2x1x512xf32> to vector<2x512xf32>
    %c0_100 = arith.constant 0 : index
    %c0_101 = arith.constant 0 : index
    %345 = vector.load %arg3[%c0_100, %c0_101] : memref<128x512xbf16, #tpu.memory_space<vmem>>, vector<128x512xbf16>
    %cst_102 = arith.constant dense<0.000000e+00> : vector<2x512xf32>
    %346 = tpu.matmul %336, %345, %cst_102 {dimension_numbers = #tpu.dot_dimension_numbers<[1], [0], [0], [1], [0, 0, 1, 1], [], []>} : vector<2x128xbf16>, vector<128x512xbf16>, vector<2x512xf32> -> vector<2x512xf32>
    %347 = arith.addf %344, %346 : vector<2x512xf32>
    %348 = vector.extract_strided_slice %347 {offsets = [0, 0], sizes = [2, 128], strides = [1, 1]} : vector<2x512xf32> to vector<2x128xf32>
    %349 = arith.negf %348 : vector<2x128xf32>
    %350 = math.exp %349 : vector<2x128xf32>
    %cst_103 = arith.constant 1.000000e+00 : f32
    %351 = vector.broadcast %cst_103 : f32 to vector<2x128xf32>
    %352 = arith.addf %351, %350 : vector<2x128xf32>
    %353 = arith.divf %351, %352 : vector<2x128xf32>
    %354 = vector.extract_strided_slice %347 {offsets = [0, 128], sizes = [2, 128], strides = [1, 1]} : vector<2x512xf32> to vector<2x128xf32>
    %355 = arith.negf %354 : vector<2x128xf32>
    %356 = math.exp %355 : vector<2x128xf32>
    %cst_104 = arith.constant 1.000000e+00 : f32
    %357 = vector.broadcast %cst_104 : f32 to vector<2x128xf32>
    %358 = arith.addf %357, %356 : vector<2x128xf32>
    %359 = arith.divf %357, %358 : vector<2x128xf32>
    %360 = vector.extract_strided_slice %347 {offsets = [0, 256], sizes = [2, 128], strides = [1, 1]} : vector<2x512xf32> to vector<2x128xf32>
    %361 = math.tanh %360 : vector<2x128xf32>
    %362 = vector.extract_strided_slice %347 {offsets = [0, 384], sizes = [2, 128], strides = [1, 1]} : vector<2x512xf32> to vector<2x128xf32>
    %363 = arith.negf %362 : vector<2x128xf32>
    %364 = math.exp %363 : vector<2x128xf32>
    %cst_105 = arith.constant 1.000000e+00 : f32
    %365 = vector.broadcast %cst_105 : f32 to vector<2x128xf32>
    %366 = arith.addf %365, %364 : vector<2x128xf32>
    %367 = arith.divf %365, %366 : vector<2x128xf32>
    %368 = arith.mulf %359, %333 : vector<2x128xf32>
    %369 = arith.mulf %353, %361 : vector<2x128xf32>
    %370 = arith.addf %368, %369 : vector<2x128xf32>
    %371 = math.tanh %370 : vector<2x128xf32>
    %372 = arith.mulf %367, %371 : vector<2x128xf32>
    %373 = arith.truncf %372 : vector<2x128xf32> to vector<2x128xbf16>
    %c0_106 = arith.constant 0 : index
    %c9_107 = arith.constant 9 : index
    %c0_108 = arith.constant 0 : index
    %374 = vector.load %arg9[%c0_106, %c9_107, %c0_108] : memref<2x16x256xbf16, #tpu.memory_space<vmem>>, vector<2x1x128xbf16>
    %375 = vector.shape_cast %374 : vector<2x1x128xbf16> to vector<2x128xbf16>
    %376 = vector.shape_cast %373 : vector<2x128xbf16> to vector<2x1x128xbf16>
    tpu.vector_store %arg9[%c0_106, %c9_107, %c0_108], %376 {strides = array<i32>} : memref<2x16x256xbf16, #tpu.memory_space<vmem>>, vector<2x1x128xbf16>,
    %c0_109 = arith.constant 0 : index
    %c6_110 = arith.constant 6 : index
    %c128_111 = arith.constant 128 : index
    %377 = vector.load %arg9[%c0_109, %c6_110, %c128_111] : memref<2x16x256xbf16, #tpu.memory_space<vmem>>, vector<2x1x128xbf16>
    %378 = vector.shape_cast %377 : vector<2x1x128xbf16> to vector<2x128xbf16>
    %379 = vector.shape_cast %373 : vector<2x128xbf16> to vector<2x1x128xbf16>
    tpu.vector_store %arg9[%c0_109, %c6_110, %c128_111], %379 {strides = array<i32>} : memref<2x16x256xbf16, #tpu.memory_space<vmem>>, vector<2x1x128xbf16>,
    %380 = vector.extract_strided_slice %7 {offsets = [0, 10, 0], sizes = [2, 1, 512], strides = [1, 1, 1]} : vector<2x16x512xf32> to vector<2x1x512xf32>
    %381 = vector.shape_cast %380 : vector<2x1x512xf32> to vector<2x512xf32>
    %c0_112 = arith.constant 0 : index
    %c0_113 = arith.constant 0 : index
    %382 = vector.load %arg3[%c0_112, %c0_113] : memref<128x512xbf16, #tpu.memory_space<vmem>>, vector<128x512xbf16>
    %cst_114 = arith.constant dense<0.000000e+00> : vector<2x512xf32>
    %383 = tpu.matmul %373, %382, %cst_114 {dimension_numbers = #tpu.dot_dimension_numbers<[1], [0], [0], [1], [0, 0, 1, 1], [], []>} : vector<2x128xbf16>, vector<128x512xbf16>, vector<2x512xf32> -> vector<2x512xf32>
    %384 = arith.addf %381, %383 : vector<2x512xf32>
    %385 = vector.extract_strided_slice %384 {offsets = [0, 0], sizes = [2, 128], strides = [1, 1]} : vector<2x512xf32> to vector<2x128xf32>
    %386 = arith.negf %385 : vector<2x128xf32>
    %387 = math.exp %386 : vector<2x128xf32>
    %cst_115 = arith.constant 1.000000e+00 : f32
    %388 = vector.broadcast %cst_115 : f32 to vector<2x128xf32>
    %389 = arith.addf %388, %387 : vector<2x128xf32>
    %390 = arith.divf %388, %389 : vector<2x128xf32>
    %391 = vector.extract_strided_slice %384 {offsets = [0, 128], sizes = [2, 128], strides = [1, 1]} : vector<2x512xf32> to vector<2x128xf32>
    %392 = arith.negf %391 : vector<2x128xf32>
    %393 = math.exp %392 : vector<2x128xf32>
    %cst_116 = arith.constant 1.000000e+00 : f32
    %394 = vector.broadcast %cst_116 : f32 to vector<2x128xf32>
    %395 = arith.addf %394, %393 : vector<2x128xf32>
    %396 = arith.divf %394, %395 : vector<2x128xf32>
    %397 = vector.extract_strided_slice %384 {offsets = [0, 256], sizes = [2, 128], strides = [1, 1]} : vector<2x512xf32> to vector<2x128xf32>
    %398 = math.tanh %397 : vector<2x128xf32>
    %399 = vector.extract_strided_slice %384 {offsets = [0, 384], sizes = [2, 128], strides = [1, 1]} : vector<2x512xf32> to vector<2x128xf32>
    %400 = arith.negf %399 : vector<2x128xf32>
    %401 = math.exp %400 : vector<2x128xf32>
    %cst_117 = arith.constant 1.000000e+00 : f32
    %402 = vector.broadcast %cst_117 : f32 to vector<2x128xf32>
    %403 = arith.addf %402, %401 : vector<2x128xf32>
    %404 = arith.divf %402, %403 : vector<2x128xf32>
    %405 = arith.mulf %396, %370 : vector<2x128xf32>
    %406 = arith.mulf %390, %398 : vector<2x128xf32>
    %407 = arith.addf %405, %406 : vector<2x128xf32>
    %408 = math.tanh %407 : vector<2x128xf32>
    %409 = arith.mulf %404, %408 : vector<2x128xf32>
    %410 = arith.truncf %409 : vector<2x128xf32> to vector<2x128xbf16>
    %c0_118 = arith.constant 0 : index
    %c10_119 = arith.constant 10 : index
    %c0_120 = arith.constant 0 : index
    %411 = vector.load %arg9[%c0_118, %c10_119, %c0_120] : memref<2x16x256xbf16, #tpu.memory_space<vmem>>, vector<2x1x128xbf16>
    %412 = vector.shape_cast %411 : vector<2x1x128xbf16> to vector<2x128xbf16>
    %413 = vector.shape_cast %410 : vector<2x128xbf16> to vector<2x1x128xbf16>
    tpu.vector_store %arg9[%c0_118, %c10_119, %c0_120], %413 {strides = array<i32>} : memref<2x16x256xbf16, #tpu.memory_space<vmem>>, vector<2x1x128xbf16>,
    %c0_121 = arith.constant 0 : index
    %c5_122 = arith.constant 5 : index
    %c128_123 = arith.constant 128 : index
    %414 = vector.load %arg9[%c0_121, %c5_122, %c128_123] : memref<2x16x256xbf16, #tpu.memory_space<vmem>>, vector<2x1x128xbf16>
    %415 = vector.shape_cast %414 : vector<2x1x128xbf16> to vector<2x128xbf16>
    %416 = vector.shape_cast %410 : vector<2x128xbf16> to vector<2x1x128xbf16>
    tpu.vector_store %arg9[%c0_121, %c5_122, %c128_123], %416 {strides = array<i32>} : memref<2x16x256xbf16, #tpu.memory_space<vmem>>, vector<2x1x128xbf16>,
    %417 = vector.extract_strided_slice %7 {offsets = [0, 11, 0], sizes = [2, 1, 512], strides = [1, 1, 1]} : vector<2x16x512xf32> to vector<2x1x512xf32>
    %418 = vector.shape_cast %417 : vector<2x1x512xf32> to vector<2x512xf32>
    %c0_124 = arith.constant 0 : index
    %c0_125 = arith.constant 0 : index
    %419 = vector.load %arg3[%c0_124, %c0_125] : memref<128x512xbf16, #tpu.memory_space<vmem>>, vector<128x512xbf16>
    %cst_126 = arith.constant dense<0.000000e+00> : vector<2x512xf32>
    %420 = tpu.matmul %410, %419, %cst_126 {dimension_numbers = #tpu.dot_dimension_numbers<[1], [0], [0], [1], [0, 0, 1, 1], [], []>} : vector<2x128xbf16>, vector<128x512xbf16>, vector<2x512xf32> -> vector<2x512xf32>
    %421 = arith.addf %418, %420 : vector<2x512xf32>
    %422 = vector.extract_strided_slice %421 {offsets = [0, 0], sizes = [2, 128], strides = [1, 1]} : vector<2x512xf32> to vector<2x128xf32>
    %423 = arith.negf %422 : vector<2x128xf32>
    %424 = math.exp %423 : vector<2x128xf32>
    %cst_127 = arith.constant 1.000000e+00 : f32
    %425 = vector.broadcast %cst_127 : f32 to vector<2x128xf32>
    %426 = arith.addf %425, %424 : vector<2x128xf32>
    %427 = arith.divf %425, %426 : vector<2x128xf32>
    %428 = vector.extract_strided_slice %421 {offsets = [0, 128], sizes = [2, 128], strides = [1, 1]} : vector<2x512xf32> to vector<2x128xf32>
    %429 = arith.negf %428 : vector<2x128xf32>
    %430 = math.exp %429 : vector<2x128xf32>
    %cst_128 = arith.constant 1.000000e+00 : f32
    %431 = vector.broadcast %cst_128 : f32 to vector<2x128xf32>
    %432 = arith.addf %431, %430 : vector<2x128xf32>
    %433 = arith.divf %431, %432 : vector<2x128xf32>
    %434 = vector.extract_strided_slice %421 {offsets = [0, 256], sizes = [2, 128], strides = [1, 1]} : vector<2x512xf32> to vector<2x128xf32>
    %435 = math.tanh %434 : vector<2x128xf32>
    %436 = vector.extract_strided_slice %421 {offsets = [0, 384], sizes = [2, 128], strides = [1, 1]} : vector<2x512xf32> to vector<2x128xf32>
    %437 = arith.negf %436 : vector<2x128xf32>
    %438 = math.exp %437 : vector<2x128xf32>
    %cst_129 = arith.constant 1.000000e+00 : f32
    %439 = vector.broadcast %cst_129 : f32 to vector<2x128xf32>
    %440 = arith.addf %439, %438 : vector<2x128xf32>
    %441 = arith.divf %439, %440 : vector<2x128xf32>
    %442 = arith.mulf %433, %407 : vector<2x128xf32>
    %443 = arith.mulf %427, %435 : vector<2x128xf32>
    %444 = arith.addf %442, %443 : vector<2x128xf32>
    %445 = math.tanh %444 : vector<2x128xf32>
    %446 = arith.mulf %441, %445 : vector<2x128xf32>
    %447 = arith.truncf %446 : vector<2x128xf32> to vector<2x128xbf16>
    %c0_130 = arith.constant 0 : index
    %c11_131 = arith.constant 11 : index
    %c0_132 = arith.constant 0 : index
    %448 = vector.load %arg9[%c0_130, %c11_131, %c0_132] : memref<2x16x256xbf16, #tpu.memory_space<vmem>>, vector<2x1x128xbf16>
    %449 = vector.shape_cast %448 : vector<2x1x128xbf16> to vector<2x128xbf16>
    %450 = vector.shape_cast %447 : vector<2x128xbf16> to vector<2x1x128xbf16>
    tpu.vector_store %arg9[%c0_130, %c11_131, %c0_132], %450 {strides = array<i32>} : memref<2x16x256xbf16, #tpu.memory_space<vmem>>, vector<2x1x128xbf16>,
    %c0_133 = arith.constant 0 : index
    %c4_134 = arith.constant 4 : index
    %c128_135 = arith.constant 128 : index
    %451 = vector.load %arg9[%c0_133, %c4_134, %c128_135] : memref<2x16x256xbf16, #tpu.memory_space<vmem>>, vector<2x1x128xbf16>
    %452 = vector.shape_cast %451 : vector<2x1x128xbf16> to vector<2x128xbf16>
    %453 = vector.shape_cast %447 : vector<2x128xbf16> to vector<2x1x128xbf16>
    tpu.vector_store %arg9[%c0_133, %c4_134, %c128_135], %453 {strides = array<i32>} : memref<2x16x256xbf16, #tpu.memory_space<vmem>>, vector<2x1x128xbf16>,
    %454 = vector.extract_strided_slice %7 {offsets = [0, 12, 0], sizes = [2, 1, 512], strides = [1, 1, 1]} : vector<2x16x512xf32> to vector<2x1x512xf32>
    %455 = vector.shape_cast %454 : vector<2x1x512xf32> to vector<2x512xf32>
    %c0_136 = arith.constant 0 : index
    %c0_137 = arith.constant 0 : index
    %456 = vector.load %arg3[%c0_136, %c0_137] : memref<128x512xbf16, #tpu.memory_space<vmem>>, vector<128x512xbf16>
    %cst_138 = arith.constant dense<0.000000e+00> : vector<2x512xf32>
    %457 = tpu.matmul %447, %456, %cst_138 {dimension_numbers = #tpu.dot_dimension_numbers<[1], [0], [0], [1], [0, 0, 1, 1], [], []>} : vector<2x128xbf16>, vector<128x512xbf16>, vector<2x512xf32> -> vector<2x512xf32>
    %458 = arith.addf %455, %457 : vector<2x512xf32>
    %459 = vector.extract_strided_slice %458 {offsets = [0, 0], sizes = [2, 128], strides = [1, 1]} : vector<2x512xf32> to vector<2x128xf32>
    %460 = arith.negf %459 : vector<2x128xf32>
    %461 = math.exp %460 : vector<2x128xf32>
    %cst_139 = arith.constant 1.000000e+00 : f32
    %462 = vector.broadcast %cst_139 : f32 to vector<2x128xf32>
    %463 = arith.addf %462, %461 : vector<2x128xf32>
    %464 = arith.divf %462, %463 : vector<2x128xf32>
    %465 = vector.extract_strided_slice %458 {offsets = [0, 128], sizes = [2, 128], strides = [1, 1]} : vector<2x512xf32> to vector<2x128xf32>
    %466 = arith.negf %465 : vector<2x128xf32>
    %467 = math.exp %466 : vector<2x128xf32>
    %cst_140 = arith.constant 1.000000e+00 : f32
    %468 = vector.broadcast %cst_140 : f32 to vector<2x128xf32>
    %469 = arith.addf %468, %467 : vector<2x128xf32>
    %470 = arith.divf %468, %469 : vector<2x128xf32>
    %471 = vector.extract_strided_slice %458 {offsets = [0, 256], sizes = [2, 128], strides = [1, 1]} : vector<2x512xf32> to vector<2x128xf32>
    %472 = math.tanh %471 : vector<2x128xf32>
    %473 = vector.extract_strided_slice %458 {offsets = [0, 384], sizes = [2, 128], strides = [1, 1]} : vector<2x512xf32> to vector<2x128xf32>
    %474 = arith.negf %473 : vector<2x128xf32>
    %475 = math.exp %474 : vector<2x128xf32>
    %cst_141 = arith.constant 1.000000e+00 : f32
    %476 = vector.broadcast %cst_141 : f32 to vector<2x128xf32>
    %477 = arith.addf %476, %475 : vector<2x128xf32>
    %478 = arith.divf %476, %477 : vector<2x128xf32>
    %479 = arith.mulf %470, %444 : vector<2x128xf32>
    %480 = arith.mulf %464, %472 : vector<2x128xf32>
    %481 = arith.addf %479, %480 : vector<2x128xf32>
    %482 = math.tanh %481 : vector<2x128xf32>
    %483 = arith.mulf %478, %482 : vector<2x128xf32>
    %484 = arith.truncf %483 : vector<2x128xf32> to vector<2x128xbf16>
    %c0_142 = arith.constant 0 : index
    %c12_143 = arith.constant 12 : index
    %c0_144 = arith.constant 0 : index
    %485 = vector.load %arg9[%c0_142, %c12_143, %c0_144] : memref<2x16x256xbf16, #tpu.memory_space<vmem>>, vector<2x1x128xbf16>
    %486 = vector.shape_cast %485 : vector<2x1x128xbf16> to vector<2x128xbf16>
    %487 = vector.shape_cast %484 : vector<2x128xbf16> to vector<2x1x128xbf16>
    tpu.vector_store %arg9[%c0_142, %c12_143, %c0_144], %487 {strides = array<i32>} : memref<2x16x256xbf16, #tpu.memory_space<vmem>>, vector<2x1x128xbf16>,
    %c0_145 = arith.constant 0 : index
    %c3_146 = arith.constant 3 : index
    %c128_147 = arith.constant 128 : index
    %488 = vector.load %arg9[%c0_145, %c3_146, %c128_147] : memref<2x16x256xbf16, #tpu.memory_space<vmem>>, vector<2x1x128xbf16>
    %489 = vector.shape_cast %488 : vector<2x1x128xbf16> to vector<2x128xbf16>
    %490 = vector.shape_cast %484 : vector<2x128xbf16> to vector<2x1x128xbf16>
    tpu.vector_store %arg9[%c0_145, %c3_146, %c128_147], %490 {strides = array<i32>} : memref<2x16x256xbf16, #tpu.memory_space<vmem>>, vector<2x1x128xbf16>,
    %491 = vector.extract_strided_slice %7 {offsets = [0, 13, 0], sizes = [2, 1, 512], strides = [1, 1, 1]} : vector<2x16x512xf32> to vector<2x1x512xf32>
    %492 = vector.shape_cast %491 : vector<2x1x512xf32> to vector<2x512xf32>
    %c0_148 = arith.constant 0 : index
    %c0_149 = arith.constant 0 : index
    %493 = vector.load %arg3[%c0_148, %c0_149] : memref<128x512xbf16, #tpu.memory_space<vmem>>, vector<128x512xbf16>
    %cst_150 = arith.constant dense<0.000000e+00> : vector<2x512xf32>
    %494 = tpu.matmul %484, %493, %cst_150 {dimension_numbers = #tpu.dot_dimension_numbers<[1], [0], [0], [1], [0, 0, 1, 1], [], []>} : vector<2x128xbf16>, vector<128x512xbf16>, vector<2x512xf32> -> vector<2x512xf32>
    %495 = arith.addf %492, %494 : vector<2x512xf32>
    %496 = vector.extract_strided_slice %495 {offsets = [0, 0], sizes = [2, 128], strides = [1, 1]} : vector<2x512xf32> to vector<2x128xf32>
    %497 = arith.negf %496 : vector<2x128xf32>
    %498 = math.exp %497 : vector<2x128xf32>
    %cst_151 = arith.constant 1.000000e+00 : f32
    %499 = vector.broadcast %cst_151 : f32 to vector<2x128xf32>
    %500 = arith.addf %499, %498 : vector<2x128xf32>
    %501 = arith.divf %499, %500 : vector<2x128xf32>
    %502 = vector.extract_strided_slice %495 {offsets = [0, 128], sizes = [2, 128], strides = [1, 1]} : vector<2x512xf32> to vector<2x128xf32>
    %503 = arith.negf %502 : vector<2x128xf32>
    %504 = math.exp %503 : vector<2x128xf32>
    %cst_152 = arith.constant 1.000000e+00 : f32
    %505 = vector.broadcast %cst_152 : f32 to vector<2x128xf32>
    %506 = arith.addf %505, %504 : vector<2x128xf32>
    %507 = arith.divf %505, %506 : vector<2x128xf32>
    %508 = vector.extract_strided_slice %495 {offsets = [0, 256], sizes = [2, 128], strides = [1, 1]} : vector<2x512xf32> to vector<2x128xf32>
    %509 = math.tanh %508 : vector<2x128xf32>
    %510 = vector.extract_strided_slice %495 {offsets = [0, 384], sizes = [2, 128], strides = [1, 1]} : vector<2x512xf32> to vector<2x128xf32>
    %511 = arith.negf %510 : vector<2x128xf32>
    %512 = math.exp %511 : vector<2x128xf32>
    %cst_153 = arith.constant 1.000000e+00 : f32
    %513 = vector.broadcast %cst_153 : f32 to vector<2x128xf32>
    %514 = arith.addf %513, %512 : vector<2x128xf32>
    %515 = arith.divf %513, %514 : vector<2x128xf32>
    %516 = arith.mulf %507, %481 : vector<2x128xf32>
    %517 = arith.mulf %501, %509 : vector<2x128xf32>
    %518 = arith.addf %516, %517 : vector<2x128xf32>
    %519 = math.tanh %518 : vector<2x128xf32>
    %520 = arith.mulf %515, %519 : vector<2x128xf32>
    %521 = arith.truncf %520 : vector<2x128xf32> to vector<2x128xbf16>
    %c0_154 = arith.constant 0 : index
    %c13_155 = arith.constant 13 : index
    %c0_156 = arith.constant 0 : index
    %522 = vector.load %arg9[%c0_154, %c13_155, %c0_156] : memref<2x16x256xbf16, #tpu.memory_space<vmem>>, vector<2x1x128xbf16>
    %523 = vector.shape_cast %522 : vector<2x1x128xbf16> to vector<2x128xbf16>
    %524 = vector.shape_cast %521 : vector<2x128xbf16> to vector<2x1x128xbf16>
    tpu.vector_store %arg9[%c0_154, %c13_155, %c0_156], %524 {strides = array<i32>} : memref<2x16x256xbf16, #tpu.memory_space<vmem>>, vector<2x1x128xbf16>,
    %c0_157 = arith.constant 0 : index
    %c2_158 = arith.constant 2 : index
    %c128_159 = arith.constant 128 : index
    %525 = vector.load %arg9[%c0_157, %c2_158, %c128_159] : memref<2x16x256xbf16, #tpu.memory_space<vmem>>, vector<2x1x128xbf16>
    %526 = vector.shape_cast %525 : vector<2x1x128xbf16> to vector<2x128xbf16>
    %527 = vector.shape_cast %521 : vector<2x128xbf16> to vector<2x1x128xbf16>
    tpu.vector_store %arg9[%c0_157, %c2_158, %c128_159], %527 {strides = array<i32>} : memref<2x16x256xbf16, #tpu.memory_space<vmem>>, vector<2x1x128xbf16>,
    %528 = vector.extract_strided_slice %7 {offsets = [0, 14, 0], sizes = [2, 1, 512], strides = [1, 1, 1]} : vector<2x16x512xf32> to vector<2x1x512xf32>
    %529 = vector.shape_cast %528 : vector<2x1x512xf32> to vector<2x512xf32>
    %c0_160 = arith.constant 0 : index
    %c0_161 = arith.constant 0 : index
    %530 = vector.load %arg3[%c0_160, %c0_161] : memref<128x512xbf16, #tpu.memory_space<vmem>>, vector<128x512xbf16>
    %cst_162 = arith.constant dense<0.000000e+00> : vector<2x512xf32>
    %531 = tpu.matmul %521, %530, %cst_162 {dimension_numbers = #tpu.dot_dimension_numbers<[1], [0], [0], [1], [0, 0, 1, 1], [], []>} : vector<2x128xbf16>, vector<128x512xbf16>, vector<2x512xf32> -> vector<2x512xf32>
    %532 = arith.addf %529, %531 : vector<2x512xf32>
    %533 = vector.extract_strided_slice %532 {offsets = [0, 0], sizes = [2, 128], strides = [1, 1]} : vector<2x512xf32> to vector<2x128xf32>
    %534 = arith.negf %533 : vector<2x128xf32>
    %535 = math.exp %534 : vector<2x128xf32>
    %cst_163 = arith.constant 1.000000e+00 : f32
    %536 = vector.broadcast %cst_163 : f32 to vector<2x128xf32>
    %537 = arith.addf %536, %535 : vector<2x128xf32>
    %538 = arith.divf %536, %537 : vector<2x128xf32>
    %539 = vector.extract_strided_slice %532 {offsets = [0, 128], sizes = [2, 128], strides = [1, 1]} : vector<2x512xf32> to vector<2x128xf32>
    %540 = arith.negf %539 : vector<2x128xf32>
    %541 = math.exp %540 : vector<2x128xf32>
    %cst_164 = arith.constant 1.000000e+00 : f32
    %542 = vector.broadcast %cst_164 : f32 to vector<2x128xf32>
    %543 = arith.addf %542, %541 : vector<2x128xf32>
    %544 = arith.divf %542, %543 : vector<2x128xf32>
    %545 = vector.extract_strided_slice %532 {offsets = [0, 256], sizes = [2, 128], strides = [1, 1]} : vector<2x512xf32> to vector<2x128xf32>
    %546 = math.tanh %545 : vector<2x128xf32>
    %547 = vector.extract_strided_slice %532 {offsets = [0, 384], sizes = [2, 128], strides = [1, 1]} : vector<2x512xf32> to vector<2x128xf32>
    %548 = arith.negf %547 : vector<2x128xf32>
    %549 = math.exp %548 : vector<2x128xf32>
    %cst_165 = arith.constant 1.000000e+00 : f32
    %550 = vector.broadcast %cst_165 : f32 to vector<2x128xf32>
    %551 = arith.addf %550, %549 : vector<2x128xf32>
    %552 = arith.divf %550, %551 : vector<2x128xf32>
    %553 = arith.mulf %544, %518 : vector<2x128xf32>
    %554 = arith.mulf %538, %546 : vector<2x128xf32>
    %555 = arith.addf %553, %554 : vector<2x128xf32>
    %556 = math.tanh %555 : vector<2x128xf32>
    %557 = arith.mulf %552, %556 : vector<2x128xf32>
    %558 = arith.truncf %557 : vector<2x128xf32> to vector<2x128xbf16>
    %c0_166 = arith.constant 0 : index
    %c14_167 = arith.constant 14 : index
    %c0_168 = arith.constant 0 : index
    %559 = vector.load %arg9[%c0_166, %c14_167, %c0_168] : memref<2x16x256xbf16, #tpu.memory_space<vmem>>, vector<2x1x128xbf16>
    %560 = vector.shape_cast %559 : vector<2x1x128xbf16> to vector<2x128xbf16>
    %561 = vector.shape_cast %558 : vector<2x128xbf16> to vector<2x1x128xbf16>
    tpu.vector_store %arg9[%c0_166, %c14_167, %c0_168], %561 {strides = array<i32>} : memref<2x16x256xbf16, #tpu.memory_space<vmem>>, vector<2x1x128xbf16>,
    %c0_169 = arith.constant 0 : index
    %c1_170 = arith.constant 1 : index
    %c128_171 = arith.constant 128 : index
    %562 = vector.load %arg9[%c0_169, %c1_170, %c128_171] : memref<2x16x256xbf16, #tpu.memory_space<vmem>>, vector<2x1x128xbf16>
    %563 = vector.shape_cast %562 : vector<2x1x128xbf16> to vector<2x128xbf16>
    %564 = vector.shape_cast %558 : vector<2x128xbf16> to vector<2x1x128xbf16>
    tpu.vector_store %arg9[%c0_169, %c1_170, %c128_171], %564 {strides = array<i32>} : memref<2x16x256xbf16, #tpu.memory_space<vmem>>, vector<2x1x128xbf16>,
    %565 = vector.extract_strided_slice %7 {offsets = [0, 15, 0], sizes = [2, 1, 512], strides = [1, 1, 1]} : vector<2x16x512xf32> to vector<2x1x512xf32>
    %566 = vector.shape_cast %565 : vector<2x1x512xf32> to vector<2x512xf32>
    %c0_172 = arith.constant 0 : index
    %c0_173 = arith.constant 0 : index
    %567 = vector.load %arg3[%c0_172, %c0_173] : memref<128x512xbf16, #tpu.memory_space<vmem>>, vector<128x512xbf16>
    %cst_174 = arith.constant dense<0.000000e+00> : vector<2x512xf32>
    %568 = tpu.matmul %558, %567, %cst_174 {dimension_numbers = #tpu.dot_dimension_numbers<[1], [0], [0], [1], [0, 0, 1, 1], [], []>} : vector<2x128xbf16>, vector<128x512xbf16>, vector<2x512xf32> -> vector<2x512xf32>
    %569 = arith.addf %566, %568 : vector<2x512xf32>
    %570 = vector.extract_strided_slice %569 {offsets = [0, 0], sizes = [2, 128], strides = [1, 1]} : vector<2x512xf32> to vector<2x128xf32>
    %571 = arith.negf %570 : vector<2x128xf32>
    %572 = math.exp %571 : vector<2x128xf32>
    %cst_175 = arith.constant 1.000000e+00 : f32
    %573 = vector.broadcast %cst_175 : f32 to vector<2x128xf32>
    %574 = arith.addf %573, %572 : vector<2x128xf32>
    %575 = arith.divf %573, %574 : vector<2x128xf32>
    %576 = vector.extract_strided_slice %569 {offsets = [0, 128], sizes = [2, 128], strides = [1, 1]} : vector<2x512xf32> to vector<2x128xf32>
    %577 = arith.negf %576 : vector<2x128xf32>
    %578 = math.exp %577 : vector<2x128xf32>
    %cst_176 = arith.constant 1.000000e+00 : f32
    %579 = vector.broadcast %cst_176 : f32 to vector<2x128xf32>
    %580 = arith.addf %579, %578 : vector<2x128xf32>
    %581 = arith.divf %579, %580 : vector<2x128xf32>
    %582 = vector.extract_strided_slice %569 {offsets = [0, 256], sizes = [2, 128], strides = [1, 1]} : vector<2x512xf32> to vector<2x128xf32>
    %583 = math.tanh %582 : vector<2x128xf32>
    %584 = vector.extract_strided_slice %569 {offsets = [0, 384], sizes = [2, 128], strides = [1, 1]} : vector<2x512xf32> to vector<2x128xf32>
    %585 = arith.negf %584 : vector<2x128xf32>
    %586 = math.exp %585 : vector<2x128xf32>
    %cst_177 = arith.constant 1.000000e+00 : f32
    %587 = vector.broadcast %cst_177 : f32 to vector<2x128xf32>
    %588 = arith.addf %587, %586 : vector<2x128xf32>
    %589 = arith.divf %587, %588 : vector<2x128xf32>
    %590 = arith.mulf %581, %555 : vector<2x128xf32>
    %591 = arith.mulf %575, %583 : vector<2x128xf32>
    %592 = arith.addf %590, %591 : vector<2x128xf32>
    %593 = math.tanh %592 : vector<2x128xf32>
    %594 = arith.mulf %589, %593 : vector<2x128xf32>
    %595 = arith.truncf %594 : vector<2x128xf32> to vector<2x128xbf16>
    %c0_178 = arith.constant 0 : index
    %c15_179 = arith.constant 15 : index
    %c0_180 = arith.constant 0 : index
    %596 = vector.load %arg9[%c0_178, %c15_179, %c0_180] : memref<2x16x256xbf16, #tpu.memory_space<vmem>>, vector<2x1x128xbf16>
    %597 = vector.shape_cast %596 : vector<2x1x128xbf16> to vector<2x128xbf16>
    %598 = vector.shape_cast %595 : vector<2x128xbf16> to vector<2x1x128xbf16>
    tpu.vector_store %arg9[%c0_178, %c15_179, %c0_180], %598 {strides = array<i32>} : memref<2x16x256xbf16, #tpu.memory_space<vmem>>, vector<2x1x128xbf16>,
    %c0_181 = arith.constant 0 : index
    %c0_182 = arith.constant 0 : index
    %c128_183 = arith.constant 128 : index
    %599 = vector.load %arg9[%c0_181, %c0_182, %c128_183] : memref<2x16x256xbf16, #tpu.memory_space<vmem>>, vector<2x1x128xbf16>
    %600 = vector.shape_cast %599 : vector<2x1x128xbf16> to vector<2x128xbf16>
    %601 = vector.shape_cast %595 : vector<2x128xbf16> to vector<2x1x128xbf16>
    tpu.vector_store %arg9[%c0_181, %c0_182, %c128_183], %601 {strides = array<i32>} : memref<2x16x256xbf16, #tpu.memory_space<vmem>>, vector<2x1x128xbf16>,
    %c0_184 = arith.constant 0 : index
    %c0_185 = arith.constant 0 : index
    %c0_186 = arith.constant 0 : index
    %602 = vector.load %arg9[%c0_184, %c0_185, %c0_186] : memref<2x16x256xbf16, #tpu.memory_space<vmem>>, vector<2x16x256xbf16>
    %603 = vector.shape_cast %602 : vector<2x16x256xbf16> to vector<32x256xbf16>
    %c0_187 = arith.constant 0 : index
    %c0_188 = arith.constant 0 : index
    %604 = vector.load %arg5[%c0_187, %c0_188] : memref<256x512xbf16, #tpu.memory_space<vmem>>, vector<256x512xbf16>
    %cst_189 = arith.constant dense<0.000000e+00> : vector<32x512xf32>
    %605 = tpu.matmul %603, %604, %cst_189 {dimension_numbers = #tpu.dot_dimension_numbers<[1], [0], [0], [1], [0, 0, 1, 1], [], []>} : vector<32x256xbf16>, vector<256x512xbf16>, vector<32x512xf32> -> vector<32x512xf32>
    %c0_190 = arith.constant 0 : index
    %c0_191 = arith.constant 0 : index
    %606 = vector.load %arg7[%c0_190, %c0_191] : memref<1x512xf32, #tpu.memory_space<vmem>>, vector<1x512xf32>
    %607 = vector.broadcast %606 : vector<1x512xf32> to vector<32x512xf32>
    %608 = arith.addf %605, %607 : vector<32x512xf32>
    %609 = vector.shape_cast %608 : vector<32x512xf32> to vector<2x16x512xf32>
    %cst_192 = arith.constant 0.000000e+00 : bf16
    %610 = vector.broadcast %cst_192 : bf16 to vector<2x128xbf16>
    %cst_193 = arith.constant 0.000000e+00 : f32
    %611 = vector.broadcast %cst_193 : f32 to vector<2x128xf32>
    %612 = vector.extract_strided_slice %609 {offsets = [0, 0, 0], sizes = [2, 1, 512], strides = [1, 1, 1]} : vector<2x16x512xf32> to vector<2x1x512xf32>
    %613 = vector.shape_cast %612 : vector<2x1x512xf32> to vector<2x512xf32>
    %c0_194 = arith.constant 0 : index
    %c0_195 = arith.constant 0 : index
    %614 = vector.load %arg6[%c0_194, %c0_195] : memref<128x512xbf16, #tpu.memory_space<vmem>>, vector<128x512xbf16>
    %cst_196 = arith.constant dense<0.000000e+00> : vector<2x512xf32>
    %615 = tpu.matmul %610, %614, %cst_196 {dimension_numbers = #tpu.dot_dimension_numbers<[1], [0], [0], [1], [0, 0, 1, 1], [], []>} : vector<2x128xbf16>, vector<128x512xbf16>, vector<2x512xf32> -> vector<2x512xf32>
    %616 = arith.addf %613, %615 : vector<2x512xf32>
    %617 = vector.extract_strided_slice %616 {offsets = [0, 0], sizes = [2, 128], strides = [1, 1]} : vector<2x512xf32> to vector<2x128xf32>
    %618 = arith.negf %617 : vector<2x128xf32>
    %619 = math.exp %618 : vector<2x128xf32>
    %cst_197 = arith.constant 1.000000e+00 : f32
    %620 = vector.broadcast %cst_197 : f32 to vector<2x128xf32>
    %621 = arith.addf %620, %619 : vector<2x128xf32>
    %622 = arith.divf %620, %621 : vector<2x128xf32>
    %623 = vector.extract_strided_slice %616 {offsets = [0, 128], sizes = [2, 128], strides = [1, 1]} : vector<2x512xf32> to vector<2x128xf32>
    %624 = arith.negf %623 : vector<2x128xf32>
    %625 = math.exp %624 : vector<2x128xf32>
    %cst_198 = arith.constant 1.000000e+00 : f32
    %626 = vector.broadcast %cst_198 : f32 to vector<2x128xf32>
    %627 = arith.addf %626, %625 : vector<2x128xf32>
    %628 = arith.divf %626, %627 : vector<2x128xf32>
    %629 = vector.extract_strided_slice %616 {offsets = [0, 256], sizes = [2, 128], strides = [1, 1]} : vector<2x512xf32> to vector<2x128xf32>
    %630 = math.tanh %629 : vector<2x128xf32>
    %631 = vector.extract_strided_slice %616 {offsets = [0, 384], sizes = [2, 128], strides = [1, 1]} : vector<2x512xf32> to vector<2x128xf32>
    %632 = arith.negf %631 : vector<2x128xf32>
    %633 = math.exp %632 : vector<2x128xf32>
    %cst_199 = arith.constant 1.000000e+00 : f32
    %634 = vector.broadcast %cst_199 : f32 to vector<2x128xf32>
    %635 = arith.addf %634, %633 : vector<2x128xf32>
    %636 = arith.divf %634, %635 : vector<2x128xf32>
    %637 = arith.mulf %628, %611 : vector<2x128xf32>
    %638 = arith.mulf %622, %630 : vector<2x128xf32>
    %639 = arith.addf %637, %638 : vector<2x128xf32>
    %640 = math.tanh %639 : vector<2x128xf32>
    %641 = arith.mulf %636, %640 : vector<2x128xf32>
    %642 = arith.truncf %641 : vector<2x128xf32> to vector<2x128xbf16>
    %643 = vector.extract_strided_slice %641 {offsets = [0, 64], sizes = [2, 64], strides = [1, 1]} : vector<2x128xf32> to vector<2x64xf32>
    %644 = vector.extract_strided_slice %609 {offsets = [0, 1, 0], sizes = [2, 1, 512], strides = [1, 1, 1]} : vector<2x16x512xf32> to vector<2x1x512xf32>
    %645 = vector.shape_cast %644 : vector<2x1x512xf32> to vector<2x512xf32>
    %c0_200 = arith.constant 0 : index
    %c0_201 = arith.constant 0 : index
    %646 = vector.load %arg6[%c0_200, %c0_201] : memref<128x512xbf16, #tpu.memory_space<vmem>>, vector<128x512xbf16>
    %cst_202 = arith.constant dense<0.000000e+00> : vector<2x512xf32>
    %647 = tpu.matmul %642, %646, %cst_202 {dimension_numbers = #tpu.dot_dimension_numbers<[1], [0], [0], [1], [0, 0, 1, 1], [], []>} : vector<2x128xbf16>, vector<128x512xbf16>, vector<2x512xf32> -> vector<2x512xf32>
    %648 = arith.addf %645, %647 : vector<2x512xf32>
    %649 = vector.extract_strided_slice %648 {offsets = [0, 0], sizes = [2, 128], strides = [1, 1]} : vector<2x512xf32> to vector<2x128xf32>
    %650 = arith.negf %649 : vector<2x128xf32>
    %651 = math.exp %650 : vector<2x128xf32>
    %cst_203 = arith.constant 1.000000e+00 : f32
    %652 = vector.broadcast %cst_203 : f32 to vector<2x128xf32>
    %653 = arith.addf %652, %651 : vector<2x128xf32>
    %654 = arith.divf %652, %653 : vector<2x128xf32>
    %655 = vector.extract_strided_slice %648 {offsets = [0, 128], sizes = [2, 128], strides = [1, 1]} : vector<2x512xf32> to vector<2x128xf32>
    %656 = arith.negf %655 : vector<2x128xf32>
    %657 = math.exp %656 : vector<2x128xf32>
    %cst_204 = arith.constant 1.000000e+00 : f32
    %658 = vector.broadcast %cst_204 : f32 to vector<2x128xf32>
    %659 = arith.addf %658, %657 : vector<2x128xf32>
    %660 = arith.divf %658, %659 : vector<2x128xf32>
    %661 = vector.extract_strided_slice %648 {offsets = [0, 256], sizes = [2, 128], strides = [1, 1]} : vector<2x512xf32> to vector<2x128xf32>
    %662 = math.tanh %661 : vector<2x128xf32>
    %663 = vector.extract_strided_slice %648 {offsets = [0, 384], sizes = [2, 128], strides = [1, 1]} : vector<2x512xf32> to vector<2x128xf32>
    %664 = arith.negf %663 : vector<2x128xf32>
    %665 = math.exp %664 : vector<2x128xf32>
    %cst_205 = arith.constant 1.000000e+00 : f32
    %666 = vector.broadcast %cst_205 : f32 to vector<2x128xf32>
    %667 = arith.addf %666, %665 : vector<2x128xf32>
    %668 = arith.divf %666, %667 : vector<2x128xf32>
    %669 = arith.mulf %660, %639 : vector<2x128xf32>
    %670 = arith.mulf %654, %662 : vector<2x128xf32>
    %671 = arith.addf %669, %670 : vector<2x128xf32>
    %672 = math.tanh %671 : vector<2x128xf32>
    %673 = arith.mulf %668, %672 : vector<2x128xf32>
    %674 = arith.truncf %673 : vector<2x128xf32> to vector<2x128xbf16>
    %675 = vector.extract_strided_slice %609 {offsets = [0, 2, 0], sizes = [2, 1, 512], strides = [1, 1, 1]} : vector<2x16x512xf32> to vector<2x1x512xf32>
    %676 = vector.shape_cast %675 : vector<2x1x512xf32> to vector<2x512xf32>
    %c0_206 = arith.constant 0 : index
    %c0_207 = arith.constant 0 : index
    %677 = vector.load %arg6[%c0_206, %c0_207] : memref<128x512xbf16, #tpu.memory_space<vmem>>, vector<128x512xbf16>
    %cst_208 = arith.constant dense<0.000000e+00> : vector<2x512xf32>
    %678 = tpu.matmul %674, %677, %cst_208 {dimension_numbers = #tpu.dot_dimension_numbers<[1], [0], [0], [1], [0, 0, 1, 1], [], []>} : vector<2x128xbf16>, vector<128x512xbf16>, vector<2x512xf32> -> vector<2x512xf32>
    %679 = arith.addf %676, %678 : vector<2x512xf32>
    %680 = vector.extract_strided_slice %679 {offsets = [0, 0], sizes = [2, 128], strides = [1, 1]} : vector<2x512xf32> to vector<2x128xf32>
    %681 = arith.negf %680 : vector<2x128xf32>
    %682 = math.exp %681 : vector<2x128xf32>
    %cst_209 = arith.constant 1.000000e+00 : f32
    %683 = vector.broadcast %cst_209 : f32 to vector<2x128xf32>
    %684 = arith.addf %683, %682 : vector<2x128xf32>
    %685 = arith.divf %683, %684 : vector<2x128xf32>
    %686 = vector.extract_strided_slice %679 {offsets = [0, 128], sizes = [2, 128], strides = [1, 1]} : vector<2x512xf32> to vector<2x128xf32>
    %687 = arith.negf %686 : vector<2x128xf32>
    %688 = math.exp %687 : vector<2x128xf32>
    %cst_210 = arith.constant 1.000000e+00 : f32
    %689 = vector.broadcast %cst_210 : f32 to vector<2x128xf32>
    %690 = arith.addf %689, %688 : vector<2x128xf32>
    %691 = arith.divf %689, %690 : vector<2x128xf32>
    %692 = vector.extract_strided_slice %679 {offsets = [0, 256], sizes = [2, 128], strides = [1, 1]} : vector<2x512xf32> to vector<2x128xf32>
    %693 = math.tanh %692 : vector<2x128xf32>
    %694 = vector.extract_strided_slice %679 {offsets = [0, 384], sizes = [2, 128], strides = [1, 1]} : vector<2x512xf32> to vector<2x128xf32>
    %695 = arith.negf %694 : vector<2x128xf32>
    %696 = math.exp %695 : vector<2x128xf32>
    %cst_211 = arith.constant 1.000000e+00 : f32
    %697 = vector.broadcast %cst_211 : f32 to vector<2x128xf32>
    %698 = arith.addf %697, %696 : vector<2x128xf32>
    %699 = arith.divf %697, %698 : vector<2x128xf32>
    %700 = arith.mulf %691, %671 : vector<2x128xf32>
    %701 = arith.mulf %685, %693 : vector<2x128xf32>
    %702 = arith.addf %700, %701 : vector<2x128xf32>
    %703 = math.tanh %702 : vector<2x128xf32>
    %704 = arith.mulf %699, %703 : vector<2x128xf32>
    %705 = arith.truncf %704 : vector<2x128xf32> to vector<2x128xbf16>
    %706 = vector.extract_strided_slice %609 {offsets = [0, 3, 0], sizes = [2, 1, 512], strides = [1, 1, 1]} : vector<2x16x512xf32> to vector<2x1x512xf32>
    %707 = vector.shape_cast %706 : vector<2x1x512xf32> to vector<2x512xf32>
    %c0_212 = arith.constant 0 : index
    %c0_213 = arith.constant 0 : index
    %708 = vector.load %arg6[%c0_212, %c0_213] : memref<128x512xbf16, #tpu.memory_space<vmem>>, vector<128x512xbf16>
    %cst_214 = arith.constant dense<0.000000e+00> : vector<2x512xf32>
    %709 = tpu.matmul %705, %708, %cst_214 {dimension_numbers = #tpu.dot_dimension_numbers<[1], [0], [0], [1], [0, 0, 1, 1], [], []>} : vector<2x128xbf16>, vector<128x512xbf16>, vector<2x512xf32> -> vector<2x512xf32>
    %710 = arith.addf %707, %709 : vector<2x512xf32>
    %711 = vector.extract_strided_slice %710 {offsets = [0, 0], sizes = [2, 128], strides = [1, 1]} : vector<2x512xf32> to vector<2x128xf32>
    %712 = arith.negf %711 : vector<2x128xf32>
    %713 = math.exp %712 : vector<2x128xf32>
    %cst_215 = arith.constant 1.000000e+00 : f32
    %714 = vector.broadcast %cst_215 : f32 to vector<2x128xf32>
    %715 = arith.addf %714, %713 : vector<2x128xf32>
    %716 = arith.divf %714, %715 : vector<2x128xf32>
    %717 = vector.extract_strided_slice %710 {offsets = [0, 128], sizes = [2, 128], strides = [1, 1]} : vector<2x512xf32> to vector<2x128xf32>
    %718 = arith.negf %717 : vector<2x128xf32>
    %719 = math.exp %718 : vector<2x128xf32>
    %cst_216 = arith.constant 1.000000e+00 : f32
    %720 = vector.broadcast %cst_216 : f32 to vector<2x128xf32>
    %721 = arith.addf %720, %719 : vector<2x128xf32>
    %722 = arith.divf %720, %721 : vector<2x128xf32>
    %723 = vector.extract_strided_slice %710 {offsets = [0, 256], sizes = [2, 128], strides = [1, 1]} : vector<2x512xf32> to vector<2x128xf32>
    %724 = math.tanh %723 : vector<2x128xf32>
    %725 = vector.extract_strided_slice %710 {offsets = [0, 384], sizes = [2, 128], strides = [1, 1]} : vector<2x512xf32> to vector<2x128xf32>
    %726 = arith.negf %725 : vector<2x128xf32>
    %727 = math.exp %726 : vector<2x128xf32>
    %cst_217 = arith.constant 1.000000e+00 : f32
    %728 = vector.broadcast %cst_217 : f32 to vector<2x128xf32>
    %729 = arith.addf %728, %727 : vector<2x128xf32>
    %730 = arith.divf %728, %729 : vector<2x128xf32>
    %731 = arith.mulf %722, %702 : vector<2x128xf32>
    %732 = arith.mulf %716, %724 : vector<2x128xf32>
    %733 = arith.addf %731, %732 : vector<2x128xf32>
    %734 = math.tanh %733 : vector<2x128xf32>
    %735 = arith.mulf %730, %734 : vector<2x128xf32>
    %736 = arith.truncf %735 : vector<2x128xf32> to vector<2x128xbf16>
    %737 = vector.extract_strided_slice %609 {offsets = [0, 4, 0], sizes = [2, 1, 512], strides = [1, 1, 1]} : vector<2x16x512xf32> to vector<2x1x512xf32>
    %738 = vector.shape_cast %737 : vector<2x1x512xf32> to vector<2x512xf32>
    %c0_218 = arith.constant 0 : index
    %c0_219 = arith.constant 0 : index
    %739 = vector.load %arg6[%c0_218, %c0_219] : memref<128x512xbf16, #tpu.memory_space<vmem>>, vector<128x512xbf16>
    %cst_220 = arith.constant dense<0.000000e+00> : vector<2x512xf32>
    %740 = tpu.matmul %736, %739, %cst_220 {dimension_numbers = #tpu.dot_dimension_numbers<[1], [0], [0], [1], [0, 0, 1, 1], [], []>} : vector<2x128xbf16>, vector<128x512xbf16>, vector<2x512xf32> -> vector<2x512xf32>
    %741 = arith.addf %738, %740 : vector<2x512xf32>
    %742 = vector.extract_strided_slice %741 {offsets = [0, 0], sizes = [2, 128], strides = [1, 1]} : vector<2x512xf32> to vector<2x128xf32>
    %743 = arith.negf %742 : vector<2x128xf32>
    %744 = math.exp %743 : vector<2x128xf32>
    %cst_221 = arith.constant 1.000000e+00 : f32
    %745 = vector.broadcast %cst_221 : f32 to vector<2x128xf32>
    %746 = arith.addf %745, %744 : vector<2x128xf32>
    %747 = arith.divf %745, %746 : vector<2x128xf32>
    %748 = vector.extract_strided_slice %741 {offsets = [0, 128], sizes = [2, 128], strides = [1, 1]} : vector<2x512xf32> to vector<2x128xf32>
    %749 = arith.negf %748 : vector<2x128xf32>
    %750 = math.exp %749 : vector<2x128xf32>
    %cst_222 = arith.constant 1.000000e+00 : f32
    %751 = vector.broadcast %cst_222 : f32 to vector<2x128xf32>
    %752 = arith.addf %751, %750 : vector<2x128xf32>
    %753 = arith.divf %751, %752 : vector<2x128xf32>
    %754 = vector.extract_strided_slice %741 {offsets = [0, 256], sizes = [2, 128], strides = [1, 1]} : vector<2x512xf32> to vector<2x128xf32>
    %755 = math.tanh %754 : vector<2x128xf32>
    %756 = vector.extract_strided_slice %741 {offsets = [0, 384], sizes = [2, 128], strides = [1, 1]} : vector<2x512xf32> to vector<2x128xf32>
    %757 = arith.negf %756 : vector<2x128xf32>
    %758 = math.exp %757 : vector<2x128xf32>
    %cst_223 = arith.constant 1.000000e+00 : f32
    %759 = vector.broadcast %cst_223 : f32 to vector<2x128xf32>
    %760 = arith.addf %759, %758 : vector<2x128xf32>
    %761 = arith.divf %759, %760 : vector<2x128xf32>
    %762 = arith.mulf %753, %733 : vector<2x128xf32>
    %763 = arith.mulf %747, %755 : vector<2x128xf32>
    %764 = arith.addf %762, %763 : vector<2x128xf32>
    %765 = math.tanh %764 : vector<2x128xf32>
    %766 = arith.mulf %761, %765 : vector<2x128xf32>
    %767 = arith.truncf %766 : vector<2x128xf32> to vector<2x128xbf16>
    %768 = vector.extract_strided_slice %609 {offsets = [0, 5, 0], sizes = [2, 1, 512], strides = [1, 1, 1]} : vector<2x16x512xf32> to vector<2x1x512xf32>
    %769 = vector.shape_cast %768 : vector<2x1x512xf32> to vector<2x512xf32>
    %c0_224 = arith.constant 0 : index
    %c0_225 = arith.constant 0 : index
    %770 = vector.load %arg6[%c0_224, %c0_225] : memref<128x512xbf16, #tpu.memory_space<vmem>>, vector<128x512xbf16>
    %cst_226 = arith.constant dense<0.000000e+00> : vector<2x512xf32>
    %771 = tpu.matmul %767, %770, %cst_226 {dimension_numbers = #tpu.dot_dimension_numbers<[1], [0], [0], [1], [0, 0, 1, 1], [], []>} : vector<2x128xbf16>, vector<128x512xbf16>, vector<2x512xf32> -> vector<2x512xf32>
    %772 = arith.addf %769, %771 : vector<2x512xf32>
    %773 = vector.extract_strided_slice %772 {offsets = [0, 0], sizes = [2, 128], strides = [1, 1]} : vector<2x512xf32> to vector<2x128xf32>
    %774 = arith.negf %773 : vector<2x128xf32>
    %775 = math.exp %774 : vector<2x128xf32>
    %cst_227 = arith.constant 1.000000e+00 : f32
    %776 = vector.broadcast %cst_227 : f32 to vector<2x128xf32>
    %777 = arith.addf %776, %775 : vector<2x128xf32>
    %778 = arith.divf %776, %777 : vector<2x128xf32>
    %779 = vector.extract_strided_slice %772 {offsets = [0, 128], sizes = [2, 128], strides = [1, 1]} : vector<2x512xf32> to vector<2x128xf32>
    %780 = arith.negf %779 : vector<2x128xf32>
    %781 = math.exp %780 : vector<2x128xf32>
    %cst_228 = arith.constant 1.000000e+00 : f32
    %782 = vector.broadcast %cst_228 : f32 to vector<2x128xf32>
    %783 = arith.addf %782, %781 : vector<2x128xf32>
    %784 = arith.divf %782, %783 : vector<2x128xf32>
    %785 = vector.extract_strided_slice %772 {offsets = [0, 256], sizes = [2, 128], strides = [1, 1]} : vector<2x512xf32> to vector<2x128xf32>
    %786 = math.tanh %785 : vector<2x128xf32>
    %787 = vector.extract_strided_slice %772 {offsets = [0, 384], sizes = [2, 128], strides = [1, 1]} : vector<2x512xf32> to vector<2x128xf32>
    %788 = arith.negf %787 : vector<2x128xf32>
    %789 = math.exp %788 : vector<2x128xf32>
    %cst_229 = arith.constant 1.000000e+00 : f32
    %790 = vector.broadcast %cst_229 : f32 to vector<2x128xf32>
    %791 = arith.addf %790, %789 : vector<2x128xf32>
    %792 = arith.divf %790, %791 : vector<2x128xf32>
    %793 = arith.mulf %784, %764 : vector<2x128xf32>
    %794 = arith.mulf %778, %786 : vector<2x128xf32>
    %795 = arith.addf %793, %794 : vector<2x128xf32>
    %796 = math.tanh %795 : vector<2x128xf32>
    %797 = arith.mulf %792, %796 : vector<2x128xf32>
    %798 = arith.truncf %797 : vector<2x128xf32> to vector<2x128xbf16>
    %799 = vector.extract_strided_slice %609 {offsets = [0, 6, 0], sizes = [2, 1, 512], strides = [1, 1, 1]} : vector<2x16x512xf32> to vector<2x1x512xf32>
    %800 = vector.shape_cast %799 : vector<2x1x512xf32> to vector<2x512xf32>
    %c0_230 = arith.constant 0 : index
    %c0_231 = arith.constant 0 : index
    %801 = vector.load %arg6[%c0_230, %c0_231] : memref<128x512xbf16, #tpu.memory_space<vmem>>, vector<128x512xbf16>
    %cst_232 = arith.constant dense<0.000000e+00> : vector<2x512xf32>
    %802 = tpu.matmul %798, %801, %cst_232 {dimension_numbers = #tpu.dot_dimension_numbers<[1], [0], [0], [1], [0, 0, 1, 1], [], []>} : vector<2x128xbf16>, vector<128x512xbf16>, vector<2x512xf32> -> vector<2x512xf32>
    %803 = arith.addf %800, %802 : vector<2x512xf32>
    %804 = vector.extract_strided_slice %803 {offsets = [0, 0], sizes = [2, 128], strides = [1, 1]} : vector<2x512xf32> to vector<2x128xf32>
    %805 = arith.negf %804 : vector<2x128xf32>
    %806 = math.exp %805 : vector<2x128xf32>
    %cst_233 = arith.constant 1.000000e+00 : f32
    %807 = vector.broadcast %cst_233 : f32 to vector<2x128xf32>
    %808 = arith.addf %807, %806 : vector<2x128xf32>
    %809 = arith.divf %807, %808 : vector<2x128xf32>
    %810 = vector.extract_strided_slice %803 {offsets = [0, 128], sizes = [2, 128], strides = [1, 1]} : vector<2x512xf32> to vector<2x128xf32>
    %811 = arith.negf %810 : vector<2x128xf32>
    %812 = math.exp %811 : vector<2x128xf32>
    %cst_234 = arith.constant 1.000000e+00 : f32
    %813 = vector.broadcast %cst_234 : f32 to vector<2x128xf32>
    %814 = arith.addf %813, %812 : vector<2x128xf32>
    %815 = arith.divf %813, %814 : vector<2x128xf32>
    %816 = vector.extract_strided_slice %803 {offsets = [0, 256], sizes = [2, 128], strides = [1, 1]} : vector<2x512xf32> to vector<2x128xf32>
    %817 = math.tanh %816 : vector<2x128xf32>
    %818 = vector.extract_strided_slice %803 {offsets = [0, 384], sizes = [2, 128], strides = [1, 1]} : vector<2x512xf32> to vector<2x128xf32>
    %819 = arith.negf %818 : vector<2x128xf32>
    %820 = math.exp %819 : vector<2x128xf32>
    %cst_235 = arith.constant 1.000000e+00 : f32
    %821 = vector.broadcast %cst_235 : f32 to vector<2x128xf32>
    %822 = arith.addf %821, %820 : vector<2x128xf32>
    %823 = arith.divf %821, %822 : vector<2x128xf32>
    %824 = arith.mulf %815, %795 : vector<2x128xf32>
    %825 = arith.mulf %809, %817 : vector<2x128xf32>
    %826 = arith.addf %824, %825 : vector<2x128xf32>
    %827 = math.tanh %826 : vector<2x128xf32>
    %828 = arith.mulf %823, %827 : vector<2x128xf32>
    %829 = arith.truncf %828 : vector<2x128xf32> to vector<2x128xbf16>
    %830 = vector.extract_strided_slice %609 {offsets = [0, 7, 0], sizes = [2, 1, 512], strides = [1, 1, 1]} : vector<2x16x512xf32> to vector<2x1x512xf32>
    %831 = vector.shape_cast %830 : vector<2x1x512xf32> to vector<2x512xf32>
    %c0_236 = arith.constant 0 : index
    %c0_237 = arith.constant 0 : index
    %832 = vector.load %arg6[%c0_236, %c0_237] : memref<128x512xbf16, #tpu.memory_space<vmem>>, vector<128x512xbf16>
    %cst_238 = arith.constant dense<0.000000e+00> : vector<2x512xf32>
    %833 = tpu.matmul %829, %832, %cst_238 {dimension_numbers = #tpu.dot_dimension_numbers<[1], [0], [0], [1], [0, 0, 1, 1], [], []>} : vector<2x128xbf16>, vector<128x512xbf16>, vector<2x512xf32> -> vector<2x512xf32>
    %834 = arith.addf %831, %833 : vector<2x512xf32>
    %835 = vector.extract_strided_slice %834 {offsets = [0, 0], sizes = [2, 128], strides = [1, 1]} : vector<2x512xf32> to vector<2x128xf32>
    %836 = arith.negf %835 : vector<2x128xf32>
    %837 = math.exp %836 : vector<2x128xf32>
    %cst_239 = arith.constant 1.000000e+00 : f32
    %838 = vector.broadcast %cst_239 : f32 to vector<2x128xf32>
    %839 = arith.addf %838, %837 : vector<2x128xf32>
    %840 = arith.divf %838, %839 : vector<2x128xf32>
    %841 = vector.extract_strided_slice %834 {offsets = [0, 128], sizes = [2, 128], strides = [1, 1]} : vector<2x512xf32> to vector<2x128xf32>
    %842 = arith.negf %841 : vector<2x128xf32>
    %843 = math.exp %842 : vector<2x128xf32>
    %cst_240 = arith.constant 1.000000e+00 : f32
    %844 = vector.broadcast %cst_240 : f32 to vector<2x128xf32>
    %845 = arith.addf %844, %843 : vector<2x128xf32>
    %846 = arith.divf %844, %845 : vector<2x128xf32>
    %847 = vector.extract_strided_slice %834 {offsets = [0, 256], sizes = [2, 128], strides = [1, 1]} : vector<2x512xf32> to vector<2x128xf32>
    %848 = math.tanh %847 : vector<2x128xf32>
    %849 = vector.extract_strided_slice %834 {offsets = [0, 384], sizes = [2, 128], strides = [1, 1]} : vector<2x512xf32> to vector<2x128xf32>
    %850 = arith.negf %849 : vector<2x128xf32>
    %851 = math.exp %850 : vector<2x128xf32>
    %cst_241 = arith.constant 1.000000e+00 : f32
    %852 = vector.broadcast %cst_241 : f32 to vector<2x128xf32>
    %853 = arith.addf %852, %851 : vector<2x128xf32>
    %854 = arith.divf %852, %853 : vector<2x128xf32>
    %855 = arith.mulf %846, %826 : vector<2x128xf32>
    %856 = arith.mulf %840, %848 : vector<2x128xf32>
    %857 = arith.addf %855, %856 : vector<2x128xf32>
    %858 = math.tanh %857 : vector<2x128xf32>
    %859 = arith.mulf %854, %858 : vector<2x128xf32>
    %860 = arith.truncf %859 : vector<2x128xf32> to vector<2x128xbf16>
    %861 = vector.extract_strided_slice %609 {offsets = [0, 8, 0], sizes = [2, 1, 512], strides = [1, 1, 1]} : vector<2x16x512xf32> to vector<2x1x512xf32>
    %862 = vector.shape_cast %861 : vector<2x1x512xf32> to vector<2x512xf32>
    %c0_242 = arith.constant 0 : index
    %c0_243 = arith.constant 0 : index
    %863 = vector.load %arg6[%c0_242, %c0_243] : memref<128x512xbf16, #tpu.memory_space<vmem>>, vector<128x512xbf16>
    %cst_244 = arith.constant dense<0.000000e+00> : vector<2x512xf32>
    %864 = tpu.matmul %860, %863, %cst_244 {dimension_numbers = #tpu.dot_dimension_numbers<[1], [0], [0], [1], [0, 0, 1, 1], [], []>} : vector<2x128xbf16>, vector<128x512xbf16>, vector<2x512xf32> -> vector<2x512xf32>
    %865 = arith.addf %862, %864 : vector<2x512xf32>
    %866 = vector.extract_strided_slice %865 {offsets = [0, 0], sizes = [2, 128], strides = [1, 1]} : vector<2x512xf32> to vector<2x128xf32>
    %867 = arith.negf %866 : vector<2x128xf32>
    %868 = math.exp %867 : vector<2x128xf32>
    %cst_245 = arith.constant 1.000000e+00 : f32
    %869 = vector.broadcast %cst_245 : f32 to vector<2x128xf32>
    %870 = arith.addf %869, %868 : vector<2x128xf32>
    %871 = arith.divf %869, %870 : vector<2x128xf32>
    %872 = vector.extract_strided_slice %865 {offsets = [0, 128], sizes = [2, 128], strides = [1, 1]} : vector<2x512xf32> to vector<2x128xf32>
    %873 = arith.negf %872 : vector<2x128xf32>
    %874 = math.exp %873 : vector<2x128xf32>
    %cst_246 = arith.constant 1.000000e+00 : f32
    %875 = vector.broadcast %cst_246 : f32 to vector<2x128xf32>
    %876 = arith.addf %875, %874 : vector<2x128xf32>
    %877 = arith.divf %875, %876 : vector<2x128xf32>
    %878 = vector.extract_strided_slice %865 {offsets = [0, 256], sizes = [2, 128], strides = [1, 1]} : vector<2x512xf32> to vector<2x128xf32>
    %879 = math.tanh %878 : vector<2x128xf32>
    %880 = vector.extract_strided_slice %865 {offsets = [0, 384], sizes = [2, 128], strides = [1, 1]} : vector<2x512xf32> to vector<2x128xf32>
    %881 = arith.negf %880 : vector<2x128xf32>
    %882 = math.exp %881 : vector<2x128xf32>
    %cst_247 = arith.constant 1.000000e+00 : f32
    %883 = vector.broadcast %cst_247 : f32 to vector<2x128xf32>
    %884 = arith.addf %883, %882 : vector<2x128xf32>
    %885 = arith.divf %883, %884 : vector<2x128xf32>
    %886 = arith.mulf %877, %857 : vector<2x128xf32>
    %887 = arith.mulf %871, %879 : vector<2x128xf32>
    %888 = arith.addf %886, %887 : vector<2x128xf32>
    %889 = math.tanh %888 : vector<2x128xf32>
    %890 = arith.mulf %885, %889 : vector<2x128xf32>
    %891 = arith.truncf %890 : vector<2x128xf32> to vector<2x128xbf16>
    %892 = vector.extract_strided_slice %609 {offsets = [0, 9, 0], sizes = [2, 1, 512], strides = [1, 1, 1]} : vector<2x16x512xf32> to vector<2x1x512xf32>
    %893 = vector.shape_cast %892 : vector<2x1x512xf32> to vector<2x512xf32>
    %c0_248 = arith.constant 0 : index
    %c0_249 = arith.constant 0 : index
    %894 = vector.load %arg6[%c0_248, %c0_249] : memref<128x512xbf16, #tpu.memory_space<vmem>>, vector<128x512xbf16>
    %cst_250 = arith.constant dense<0.000000e+00> : vector<2x512xf32>
    %895 = tpu.matmul %891, %894, %cst_250 {dimension_numbers = #tpu.dot_dimension_numbers<[1], [0], [0], [1], [0, 0, 1, 1], [], []>} : vector<2x128xbf16>, vector<128x512xbf16>, vector<2x512xf32> -> vector<2x512xf32>
    %896 = arith.addf %893, %895 : vector<2x512xf32>
    %897 = vector.extract_strided_slice %896 {offsets = [0, 0], sizes = [2, 128], strides = [1, 1]} : vector<2x512xf32> to vector<2x128xf32>
    %898 = arith.negf %897 : vector<2x128xf32>
    %899 = math.exp %898 : vector<2x128xf32>
    %cst_251 = arith.constant 1.000000e+00 : f32
    %900 = vector.broadcast %cst_251 : f32 to vector<2x128xf32>
    %901 = arith.addf %900, %899 : vector<2x128xf32>
    %902 = arith.divf %900, %901 : vector<2x128xf32>
    %903 = vector.extract_strided_slice %896 {offsets = [0, 128], sizes = [2, 128], strides = [1, 1]} : vector<2x512xf32> to vector<2x128xf32>
    %904 = arith.negf %903 : vector<2x128xf32>
    %905 = math.exp %904 : vector<2x128xf32>
    %cst_252 = arith.constant 1.000000e+00 : f32
    %906 = vector.broadcast %cst_252 : f32 to vector<2x128xf32>
    %907 = arith.addf %906, %905 : vector<2x128xf32>
    %908 = arith.divf %906, %907 : vector<2x128xf32>
    %909 = vector.extract_strided_slice %896 {offsets = [0, 256], sizes = [2, 128], strides = [1, 1]} : vector<2x512xf32> to vector<2x128xf32>
    %910 = math.tanh %909 : vector<2x128xf32>
    %911 = vector.extract_strided_slice %896 {offsets = [0, 384], sizes = [2, 128], strides = [1, 1]} : vector<2x512xf32> to vector<2x128xf32>
    %912 = arith.negf %911 : vector<2x128xf32>
    %913 = math.exp %912 : vector<2x128xf32>
    %cst_253 = arith.constant 1.000000e+00 : f32
    %914 = vector.broadcast %cst_253 : f32 to vector<2x128xf32>
    %915 = arith.addf %914, %913 : vector<2x128xf32>
    %916 = arith.divf %914, %915 : vector<2x128xf32>
    %917 = arith.mulf %908, %888 : vector<2x128xf32>
    %918 = arith.mulf %902, %910 : vector<2x128xf32>
    %919 = arith.addf %917, %918 : vector<2x128xf32>
    %920 = math.tanh %919 : vector<2x128xf32>
    %921 = arith.mulf %916, %920 : vector<2x128xf32>
    %922 = arith.truncf %921 : vector<2x128xf32> to vector<2x128xbf16>
    %923 = vector.extract_strided_slice %609 {offsets = [0, 10, 0], sizes = [2, 1, 512], strides = [1, 1, 1]} : vector<2x16x512xf32> to vector<2x1x512xf32>
    %924 = vector.shape_cast %923 : vector<2x1x512xf32> to vector<2x512xf32>
    %c0_254 = arith.constant 0 : index
    %c0_255 = arith.constant 0 : index
    %925 = vector.load %arg6[%c0_254, %c0_255] : memref<128x512xbf16, #tpu.memory_space<vmem>>, vector<128x512xbf16>
    %cst_256 = arith.constant dense<0.000000e+00> : vector<2x512xf32>
    %926 = tpu.matmul %922, %925, %cst_256 {dimension_numbers = #tpu.dot_dimension_numbers<[1], [0], [0], [1], [0, 0, 1, 1], [], []>} : vector<2x128xbf16>, vector<128x512xbf16>, vector<2x512xf32> -> vector<2x512xf32>
    %927 = arith.addf %924, %926 : vector<2x512xf32>
    %928 = vector.extract_strided_slice %927 {offsets = [0, 0], sizes = [2, 128], strides = [1, 1]} : vector<2x512xf32> to vector<2x128xf32>
    %929 = arith.negf %928 : vector<2x128xf32>
    %930 = math.exp %929 : vector<2x128xf32>
    %cst_257 = arith.constant 1.000000e+00 : f32
    %931 = vector.broadcast %cst_257 : f32 to vector<2x128xf32>
    %932 = arith.addf %931, %930 : vector<2x128xf32>
    %933 = arith.divf %931, %932 : vector<2x128xf32>
    %934 = vector.extract_strided_slice %927 {offsets = [0, 128], sizes = [2, 128], strides = [1, 1]} : vector<2x512xf32> to vector<2x128xf32>
    %935 = arith.negf %934 : vector<2x128xf32>
    %936 = math.exp %935 : vector<2x128xf32>
    %cst_258 = arith.constant 1.000000e+00 : f32
    %937 = vector.broadcast %cst_258 : f32 to vector<2x128xf32>
    %938 = arith.addf %937, %936 : vector<2x128xf32>
    %939 = arith.divf %937, %938 : vector<2x128xf32>
    %940 = vector.extract_strided_slice %927 {offsets = [0, 256], sizes = [2, 128], strides = [1, 1]} : vector<2x512xf32> to vector<2x128xf32>
    %941 = math.tanh %940 : vector<2x128xf32>
    %942 = vector.extract_strided_slice %927 {offsets = [0, 384], sizes = [2, 128], strides = [1, 1]} : vector<2x512xf32> to vector<2x128xf32>
    %943 = arith.negf %942 : vector<2x128xf32>
    %944 = math.exp %943 : vector<2x128xf32>
    %cst_259 = arith.constant 1.000000e+00 : f32
    %945 = vector.broadcast %cst_259 : f32 to vector<2x128xf32>
    %946 = arith.addf %945, %944 : vector<2x128xf32>
    %947 = arith.divf %945, %946 : vector<2x128xf32>
    %948 = arith.mulf %939, %919 : vector<2x128xf32>
    %949 = arith.mulf %933, %941 : vector<2x128xf32>
    %950 = arith.addf %948, %949 : vector<2x128xf32>
    %951 = math.tanh %950 : vector<2x128xf32>
    %952 = arith.mulf %947, %951 : vector<2x128xf32>
    %953 = arith.truncf %952 : vector<2x128xf32> to vector<2x128xbf16>
    %954 = vector.extract_strided_slice %609 {offsets = [0, 11, 0], sizes = [2, 1, 512], strides = [1, 1, 1]} : vector<2x16x512xf32> to vector<2x1x512xf32>
    %955 = vector.shape_cast %954 : vector<2x1x512xf32> to vector<2x512xf32>
    %c0_260 = arith.constant 0 : index
    %c0_261 = arith.constant 0 : index
    %956 = vector.load %arg6[%c0_260, %c0_261] : memref<128x512xbf16, #tpu.memory_space<vmem>>, vector<128x512xbf16>
    %cst_262 = arith.constant dense<0.000000e+00> : vector<2x512xf32>
    %957 = tpu.matmul %953, %956, %cst_262 {dimension_numbers = #tpu.dot_dimension_numbers<[1], [0], [0], [1], [0, 0, 1, 1], [], []>} : vector<2x128xbf16>, vector<128x512xbf16>, vector<2x512xf32> -> vector<2x512xf32>
    %958 = arith.addf %955, %957 : vector<2x512xf32>
    %959 = vector.extract_strided_slice %958 {offsets = [0, 0], sizes = [2, 128], strides = [1, 1]} : vector<2x512xf32> to vector<2x128xf32>
    %960 = arith.negf %959 : vector<2x128xf32>
    %961 = math.exp %960 : vector<2x128xf32>
    %cst_263 = arith.constant 1.000000e+00 : f32
    %962 = vector.broadcast %cst_263 : f32 to vector<2x128xf32>
    %963 = arith.addf %962, %961 : vector<2x128xf32>
    %964 = arith.divf %962, %963 : vector<2x128xf32>
    %965 = vector.extract_strided_slice %958 {offsets = [0, 128], sizes = [2, 128], strides = [1, 1]} : vector<2x512xf32> to vector<2x128xf32>
    %966 = arith.negf %965 : vector<2x128xf32>
    %967 = math.exp %966 : vector<2x128xf32>
    %cst_264 = arith.constant 1.000000e+00 : f32
    %968 = vector.broadcast %cst_264 : f32 to vector<2x128xf32>
    %969 = arith.addf %968, %967 : vector<2x128xf32>
    %970 = arith.divf %968, %969 : vector<2x128xf32>
    %971 = vector.extract_strided_slice %958 {offsets = [0, 256], sizes = [2, 128], strides = [1, 1]} : vector<2x512xf32> to vector<2x128xf32>
    %972 = math.tanh %971 : vector<2x128xf32>
    %973 = vector.extract_strided_slice %958 {offsets = [0, 384], sizes = [2, 128], strides = [1, 1]} : vector<2x512xf32> to vector<2x128xf32>
    %974 = arith.negf %973 : vector<2x128xf32>
    %975 = math.exp %974 : vector<2x128xf32>
    %cst_265 = arith.constant 1.000000e+00 : f32
    %976 = vector.broadcast %cst_265 : f32 to vector<2x128xf32>
    %977 = arith.addf %976, %975 : vector<2x128xf32>
    %978 = arith.divf %976, %977 : vector<2x128xf32>
    %979 = arith.mulf %970, %950 : vector<2x128xf32>
    %980 = arith.mulf %964, %972 : vector<2x128xf32>
    %981 = arith.addf %979, %980 : vector<2x128xf32>
    %982 = math.tanh %981 : vector<2x128xf32>
    %983 = arith.mulf %978, %982 : vector<2x128xf32>
    %984 = arith.truncf %983 : vector<2x128xf32> to vector<2x128xbf16>
    %985 = vector.extract_strided_slice %609 {offsets = [0, 12, 0], sizes = [2, 1, 512], strides = [1, 1, 1]} : vector<2x16x512xf32> to vector<2x1x512xf32>
    %986 = vector.shape_cast %985 : vector<2x1x512xf32> to vector<2x512xf32>
    %c0_266 = arith.constant 0 : index
    %c0_267 = arith.constant 0 : index
    %987 = vector.load %arg6[%c0_266, %c0_267] : memref<128x512xbf16, #tpu.memory_space<vmem>>, vector<128x512xbf16>
    %cst_268 = arith.constant dense<0.000000e+00> : vector<2x512xf32>
    %988 = tpu.matmul %984, %987, %cst_268 {dimension_numbers = #tpu.dot_dimension_numbers<[1], [0], [0], [1], [0, 0, 1, 1], [], []>} : vector<2x128xbf16>, vector<128x512xbf16>, vector<2x512xf32> -> vector<2x512xf32>
    %989 = arith.addf %986, %988 : vector<2x512xf32>
    %990 = vector.extract_strided_slice %989 {offsets = [0, 0], sizes = [2, 128], strides = [1, 1]} : vector<2x512xf32> to vector<2x128xf32>
    %991 = arith.negf %990 : vector<2x128xf32>
    %992 = math.exp %991 : vector<2x128xf32>
    %cst_269 = arith.constant 1.000000e+00 : f32
    %993 = vector.broadcast %cst_269 : f32 to vector<2x128xf32>
    %994 = arith.addf %993, %992 : vector<2x128xf32>
    %995 = arith.divf %993, %994 : vector<2x128xf32>
    %996 = vector.extract_strided_slice %989 {offsets = [0, 128], sizes = [2, 128], strides = [1, 1]} : vector<2x512xf32> to vector<2x128xf32>
    %997 = arith.negf %996 : vector<2x128xf32>
    %998 = math.exp %997 : vector<2x128xf32>
    %cst_270 = arith.constant 1.000000e+00 : f32
    %999 = vector.broadcast %cst_270 : f32 to vector<2x128xf32>
    %1000 = arith.addf %999, %998 : vector<2x128xf32>
    %1001 = arith.divf %999, %1000 : vector<2x128xf32>
    %1002 = vector.extract_strided_slice %989 {offsets = [0, 256], sizes = [2, 128], strides = [1, 1]} : vector<2x512xf32> to vector<2x128xf32>
    %1003 = math.tanh %1002 : vector<2x128xf32>
    %1004 = vector.extract_strided_slice %989 {offsets = [0, 384], sizes = [2, 128], strides = [1, 1]} : vector<2x512xf32> to vector<2x128xf32>
    %1005 = arith.negf %1004 : vector<2x128xf32>
    %1006 = math.exp %1005 : vector<2x128xf32>
    %cst_271 = arith.constant 1.000000e+00 : f32
    %1007 = vector.broadcast %cst_271 : f32 to vector<2x128xf32>
    %1008 = arith.addf %1007, %1006 : vector<2x128xf32>
    %1009 = arith.divf %1007, %1008 : vector<2x128xf32>
    %1010 = arith.mulf %1001, %981 : vector<2x128xf32>
    %1011 = arith.mulf %995, %1003 : vector<2x128xf32>
    %1012 = arith.addf %1010, %1011 : vector<2x128xf32>
    %1013 = math.tanh %1012 : vector<2x128xf32>
    %1014 = arith.mulf %1009, %1013 : vector<2x128xf32>
    %1015 = arith.truncf %1014 : vector<2x128xf32> to vector<2x128xbf16>
    %1016 = vector.extract_strided_slice %609 {offsets = [0, 13, 0], sizes = [2, 1, 512], strides = [1, 1, 1]} : vector<2x16x512xf32> to vector<2x1x512xf32>
    %1017 = vector.shape_cast %1016 : vector<2x1x512xf32> to vector<2x512xf32>
    %c0_272 = arith.constant 0 : index
    %c0_273 = arith.constant 0 : index
    %1018 = vector.load %arg6[%c0_272, %c0_273] : memref<128x512xbf16, #tpu.memory_space<vmem>>, vector<128x512xbf16>
    %cst_274 = arith.constant dense<0.000000e+00> : vector<2x512xf32>
    %1019 = tpu.matmul %1015, %1018, %cst_274 {dimension_numbers = #tpu.dot_dimension_numbers<[1], [0], [0], [1], [0, 0, 1, 1], [], []>} : vector<2x128xbf16>, vector<128x512xbf16>, vector<2x512xf32> -> vector<2x512xf32>
    %1020 = arith.addf %1017, %1019 : vector<2x512xf32>
    %1021 = vector.extract_strided_slice %1020 {offsets = [0, 0], sizes = [2, 128], strides = [1, 1]} : vector<2x512xf32> to vector<2x128xf32>
    %1022 = arith.negf %1021 : vector<2x128xf32>
    %1023 = math.exp %1022 : vector<2x128xf32>
    %cst_275 = arith.constant 1.000000e+00 : f32
    %1024 = vector.broadcast %cst_275 : f32 to vector<2x128xf32>
    %1025 = arith.addf %1024, %1023 : vector<2x128xf32>
    %1026 = arith.divf %1024, %1025 : vector<2x128xf32>
    %1027 = vector.extract_strided_slice %1020 {offsets = [0, 128], sizes = [2, 128], strides = [1, 1]} : vector<2x512xf32> to vector<2x128xf32>
    %1028 = arith.negf %1027 : vector<2x128xf32>
    %1029 = math.exp %1028 : vector<2x128xf32>
    %cst_276 = arith.constant 1.000000e+00 : f32
    %1030 = vector.broadcast %cst_276 : f32 to vector<2x128xf32>
    %1031 = arith.addf %1030, %1029 : vector<2x128xf32>
    %1032 = arith.divf %1030, %1031 : vector<2x128xf32>
    %1033 = vector.extract_strided_slice %1020 {offsets = [0, 256], sizes = [2, 128], strides = [1, 1]} : vector<2x512xf32> to vector<2x128xf32>
    %1034 = math.tanh %1033 : vector<2x128xf32>
    %1035 = vector.extract_strided_slice %1020 {offsets = [0, 384], sizes = [2, 128], strides = [1, 1]} : vector<2x512xf32> to vector<2x128xf32>
    %1036 = arith.negf %1035 : vector<2x128xf32>
    %1037 = math.exp %1036 : vector<2x128xf32>
    %cst_277 = arith.constant 1.000000e+00 : f32
    %1038 = vector.broadcast %cst_277 : f32 to vector<2x128xf32>
    %1039 = arith.addf %1038, %1037 : vector<2x128xf32>
    %1040 = arith.divf %1038, %1039 : vector<2x128xf32>
    %1041 = arith.mulf %1032, %1012 : vector<2x128xf32>
    %1042 = arith.mulf %1026, %1034 : vector<2x128xf32>
    %1043 = arith.addf %1041, %1042 : vector<2x128xf32>
    %1044 = math.tanh %1043 : vector<2x128xf32>
    %1045 = arith.mulf %1040, %1044 : vector<2x128xf32>
    %1046 = arith.truncf %1045 : vector<2x128xf32> to vector<2x128xbf16>
    %1047 = vector.extract_strided_slice %609 {offsets = [0, 14, 0], sizes = [2, 1, 512], strides = [1, 1, 1]} : vector<2x16x512xf32> to vector<2x1x512xf32>
    %1048 = vector.shape_cast %1047 : vector<2x1x512xf32> to vector<2x512xf32>
    %c0_278 = arith.constant 0 : index
    %c0_279 = arith.constant 0 : index
    %1049 = vector.load %arg6[%c0_278, %c0_279] : memref<128x512xbf16, #tpu.memory_space<vmem>>, vector<128x512xbf16>
    %cst_280 = arith.constant dense<0.000000e+00> : vector<2x512xf32>
    %1050 = tpu.matmul %1046, %1049, %cst_280 {dimension_numbers = #tpu.dot_dimension_numbers<[1], [0], [0], [1], [0, 0, 1, 1], [], []>} : vector<2x128xbf16>, vector<128x512xbf16>, vector<2x512xf32> -> vector<2x512xf32>
    %1051 = arith.addf %1048, %1050 : vector<2x512xf32>
    %1052 = vector.extract_strided_slice %1051 {offsets = [0, 0], sizes = [2, 128], strides = [1, 1]} : vector<2x512xf32> to vector<2x128xf32>
    %1053 = arith.negf %1052 : vector<2x128xf32>
    %1054 = math.exp %1053 : vector<2x128xf32>
    %cst_281 = arith.constant 1.000000e+00 : f32
    %1055 = vector.broadcast %cst_281 : f32 to vector<2x128xf32>
    %1056 = arith.addf %1055, %1054 : vector<2x128xf32>
    %1057 = arith.divf %1055, %1056 : vector<2x128xf32>
    %1058 = vector.extract_strided_slice %1051 {offsets = [0, 128], sizes = [2, 128], strides = [1, 1]} : vector<2x512xf32> to vector<2x128xf32>
    %1059 = arith.negf %1058 : vector<2x128xf32>
    %1060 = math.exp %1059 : vector<2x128xf32>
    %cst_282 = arith.constant 1.000000e+00 : f32
    %1061 = vector.broadcast %cst_282 : f32 to vector<2x128xf32>
    %1062 = arith.addf %1061, %1060 : vector<2x128xf32>
    %1063 = arith.divf %1061, %1062 : vector<2x128xf32>
    %1064 = vector.extract_strided_slice %1051 {offsets = [0, 256], sizes = [2, 128], strides = [1, 1]} : vector<2x512xf32> to vector<2x128xf32>
    %1065 = math.tanh %1064 : vector<2x128xf32>
    %1066 = vector.extract_strided_slice %1051 {offsets = [0, 384], sizes = [2, 128], strides = [1, 1]} : vector<2x512xf32> to vector<2x128xf32>
    %1067 = arith.negf %1066 : vector<2x128xf32>
    %1068 = math.exp %1067 : vector<2x128xf32>
    %cst_283 = arith.constant 1.000000e+00 : f32
    %1069 = vector.broadcast %cst_283 : f32 to vector<2x128xf32>
    %1070 = arith.addf %1069, %1068 : vector<2x128xf32>
    %1071 = arith.divf %1069, %1070 : vector<2x128xf32>
    %1072 = arith.mulf %1063, %1043 : vector<2x128xf32>
    %1073 = arith.mulf %1057, %1065 : vector<2x128xf32>
    %1074 = arith.addf %1072, %1073 : vector<2x128xf32>
    %1075 = math.tanh %1074 : vector<2x128xf32>
    %1076 = arith.mulf %1071, %1075 : vector<2x128xf32>
    %1077 = arith.truncf %1076 : vector<2x128xf32> to vector<2x128xbf16>
    %1078 = vector.extract_strided_slice %609 {offsets = [0, 15, 0], sizes = [2, 1, 512], strides = [1, 1, 1]} : vector<2x16x512xf32> to vector<2x1x512xf32>
    %1079 = vector.shape_cast %1078 : vector<2x1x512xf32> to vector<2x512xf32>
    %c0_284 = arith.constant 0 : index
    %c0_285 = arith.constant 0 : index
    %1080 = vector.load %arg6[%c0_284, %c0_285] : memref<128x512xbf16, #tpu.memory_space<vmem>>, vector<128x512xbf16>
    %cst_286 = arith.constant dense<0.000000e+00> : vector<2x512xf32>
    %1081 = tpu.matmul %1077, %1080, %cst_286 {dimension_numbers = #tpu.dot_dimension_numbers<[1], [0], [0], [1], [0, 0, 1, 1], [], []>} : vector<2x128xbf16>, vector<128x512xbf16>, vector<2x512xf32> -> vector<2x512xf32>
    %1082 = arith.addf %1079, %1081 : vector<2x512xf32>
    %1083 = vector.extract_strided_slice %1082 {offsets = [0, 0], sizes = [2, 128], strides = [1, 1]} : vector<2x512xf32> to vector<2x128xf32>
    %1084 = arith.negf %1083 : vector<2x128xf32>
    %1085 = math.exp %1084 : vector<2x128xf32>
    %cst_287 = arith.constant 1.000000e+00 : f32
    %1086 = vector.broadcast %cst_287 : f32 to vector<2x128xf32>
    %1087 = arith.addf %1086, %1085 : vector<2x128xf32>
    %1088 = arith.divf %1086, %1087 : vector<2x128xf32>
    %1089 = vector.extract_strided_slice %1082 {offsets = [0, 128], sizes = [2, 128], strides = [1, 1]} : vector<2x512xf32> to vector<2x128xf32>
    %1090 = arith.negf %1089 : vector<2x128xf32>
    %1091 = math.exp %1090 : vector<2x128xf32>
    %cst_288 = arith.constant 1.000000e+00 : f32
    %1092 = vector.broadcast %cst_288 : f32 to vector<2x128xf32>
    %1093 = arith.addf %1092, %1091 : vector<2x128xf32>
    %1094 = arith.divf %1092, %1093 : vector<2x128xf32>
    %1095 = vector.extract_strided_slice %1082 {offsets = [0, 256], sizes = [2, 128], strides = [1, 1]} : vector<2x512xf32> to vector<2x128xf32>
    %1096 = math.tanh %1095 : vector<2x128xf32>
    %1097 = vector.extract_strided_slice %1082 {offsets = [0, 384], sizes = [2, 128], strides = [1, 1]} : vector<2x512xf32> to vector<2x128xf32>
    %1098 = arith.negf %1097 : vector<2x128xf32>
    %1099 = math.exp %1098 : vector<2x128xf32>
    %cst_289 = arith.constant 1.000000e+00 : f32
    %1100 = vector.broadcast %cst_289 : f32 to vector<2x128xf32>
    %1101 = arith.addf %1100, %1099 : vector<2x128xf32>
    %1102 = arith.divf %1100, %1101 : vector<2x128xf32>
    %1103 = arith.mulf %1094, %1074 : vector<2x128xf32>
    %1104 = arith.mulf %1088, %1096 : vector<2x128xf32>
    %1105 = arith.addf %1103, %1104 : vector<2x128xf32>
    %1106 = math.tanh %1105 : vector<2x128xf32>
    %1107 = arith.mulf %1102, %1106 : vector<2x128xf32>
    %1108 = vector.extract_strided_slice %1107 {offsets = [0, 0], sizes = [2, 64], strides = [1, 1]} : vector<2x128xf32> to vector<2x64xf32>
    %1109 = tpu.concatenate %1108, %643 in 1 : vector<2x64xf32>, vector<2x64xf32> -> vector<2x128xf32>
    %c0_290 = arith.constant 0 : index
    %c0_291 = arith.constant 0 : index
    %1110 = vector.load %arg8[%c0_290, %c0_291] : memref<2x128xf32, #tpu.memory_space<vmem>>, vector<2x128xf32>
    tpu.vector_store %arg8[%c0_290, %c0_291], %1109 {strides = array<i32>} : memref<2x128xf32, #tpu.memory_space<vmem>>, vector<2x128xf32>,
    return
  }
  func.func @transform_0(%arg0: i32) -> (i32, i32, i32) {
    %c0_i32 = arith.constant 0 : i32
    %c0_i32_0 = arith.constant 0 : i32
    %c0_i32_1 = arith.constant 0 : i32
    return %arg0, %c0_i32, %c0_i32_0 : i32, i32, i32
  }
  func.func @transform_1(%arg0: i32) -> (i32, i32) {
    %c0_i32 = arith.constant 0 : i32
    %c0_i32_0 = arith.constant 0 : i32
    %c0_i32_1 = arith.constant 0 : i32
    return %c0_i32, %c0_i32_0 : i32, i32
  }
  func.func @transform_2(%arg0: i32) -> (i32, i32) {
    %c0_i32 = arith.constant 0 : i32
    %c0_i32_0 = arith.constant 0 : i32
    %c0_i32_1 = arith.constant 0 : i32
    return %c0_i32, %c0_i32_0 : i32, i32
  }
  func.func @transform_3(%arg0: i32) -> (i32, i32) {
    %c0_i32 = arith.constant 0 : i32
    %c0_i32_0 = arith.constant 0 : i32
    %c0_i32_1 = arith.constant 0 : i32
    return %c0_i32, %c0_i32_0 : i32, i32
  }
  func.func @transform_4(%arg0: i32) -> (i32, i32) {
    %c0_i32 = arith.constant 0 : i32
    %c0_i32_0 = arith.constant 0 : i32
    %c0_i32_1 = arith.constant 0 : i32
    return %c0_i32, %c0_i32_0 : i32, i32
  }
  func.func @transform_5(%arg0: i32) -> (i32, i32) {
    %c0_i32 = arith.constant 0 : i32
    %c0_i32_0 = arith.constant 0 : i32
    %c0_i32_1 = arith.constant 0 : i32
    return %c0_i32, %c0_i32_0 : i32, i32
  }
  func.func @transform_6(%arg0: i32) -> (i32, i32) {
    %c0_i32 = arith.constant 0 : i32
    %c0_i32_0 = arith.constant 0 : i32
    %c0_i32_1 = arith.constant 0 : i32
    return %c0_i32, %c0_i32_0 : i32, i32
  }
  func.func @transform_7(%arg0: i32) -> (i32, i32) {
    %c0_i32 = arith.constant 0 : i32
    %c0_i32_0 = arith.constant 0 : i32
    return %arg0, %c0_i32 : i32, i32
  }
}

</mosaic_0001>

<bundles_post_ra>
// kernel: pretrained_bio_encoder.2
= control target key start
LH: loop header
LB: loop body
LE: loop exit
PB: predicated region body
PF: predicated region fallthrough
CT: control target
= control target key end

     0   :  { %vm43_vm0 = vcmask 1040384   ;;  %vm51_vm1 = vsmask.f32 7424  ;;  %vm170_vm2 = vcmask 1043456   ;;  %vm80_vm3 = vcmask 1046528   ;;  %s786_s30 = smov 8   ;;  %s1016_s0 = inlined_call_operand.vmem [shape: bf16[2,16,8], index: 0, kind: input, shape index: {}]   ;;  %s1017_s1 = inlined_call_operand.vmem [shape: bf16[40,32], index: 1, kind: input, shape index: {}]   ;;  %s1018_s4 = inlined_call_operand.vmem [shape: bf16[96,64], index: 4, kind: input, shape index: {}]   ;;  %s1019_s2 = inlined_call_operand.vmem [shape: f32[1,32], index: 2, kind: input, shape index: {}]   ;;  %s1020_s3 = inlined_call_operand.vmem [shape: f32[1,32], index: 3, kind: input, shape index: {}]   ;;  %s1021_s5 = inlined_call_operand.vmem [shape: f32[1,64], index: 5, kind: input, shape index: {}]   ;;  %s1022_s6 = inlined_call_operand.vmem [shape: f32[1,64], index: 6, kind: input, shape index: {}]   ;;  %s1023_s7 = inlined_call_operand.vmem [shape: f32[2,64], index: 7, kind: output, shape index: {}]  }
   0x1   :  { %v774_v0 = vld [vmem:[%s1016_s0] sm:$0xff]   ;;  %v775_v1 = vld [vmem:[%s1016_s0 + $0x8] sm:$0xff]   ;;  %v776_v4 = vld [vmem:[%s1017_s1 + $0x10] ss:$0 sps:$4 sm:$0xff]   ;;  %s785_s0 = smov 16   ;;  %vm114_vm5 = vcmask 1045504  }
   0x2   :  { %v41_v2 = vrot.slane %v774_v0, 7  ;;  %v42_v3 = vrot.slane %v775_v1, 7  ;;  %765 = vmatprep.subr.msk.bf16.mxu0 %vm170_vm2, %v776_v4  ;;  %vm91_vm4 = vsmask.f32 6400  ;;  %v777_v41 = vld [vmem:[%s1017_s1 + $0x8] sm:$0xff]   ;;  %v172_v46 = vsel %vm170_vm2, %v776_v4, 0 }
   0x3   :  { %s787_s10 = smov 24   ;;  %740 = vmatpush3.bf16.msra.mxu0 %v172_v46  ;;  %v778_v49 = vld [vmem:[%s1017_s1] sm:$0xff]   ;;  %s788_s13 = smov 32   ;;  %vm125_vm6 = vcmask 64512   ;;  %vm130_vm7 = vcmask 130048   ;;  %vm135_vm8 = vcmask 195584  }
   0x4   :  { %v843_v5 = vsel %vm43_vm0, 0, %v41_v2  ;;  %v846_v6 = vsel %vm43_vm0, %v41_v2, 0  ;;  %v851_v9 = vsel %vm43_vm0, 0, %v42_v3  ;;  %v50_v10 = vsel %vm43_vm0, %v42_v3, 0  ;;  %741 = vmatprep.subr.bf16.mxu0 %v777_v41  ;;  %s792_s27 = smov 64  }
   0x5   :  { %v81_v7 = vrot.slane %v843_v5, 1  ;;  %v82_v8 = vrot.slane %v846_v6, 1  ;;  %v84_v11 = vrot.slane %v851_v9, 1  ;;  %v85_v12 = vrot.slane %v50_v10, 1 }
   0x6   :  { %v52_v13 = vshrl.u32 %v843_v5, 16  ;;  %v54_v14 = vshll.u32 %v843_v5, 16  ;;  %v58_v16 = vshll.u32 %v846_v6, 16  ;;  %v62_v17 = vshrl.u32 %v851_v9, 16 }
   0x7   :  { %v83_v15 = vsel %vm80_vm3, %v81_v7, %v82_v8  ;;  %v64_v18 = vshll.u32 %v851_v9, 16  ;;  %v86_v19 = vsel %vm80_vm3, %v84_v11, %v85_v12  ;;  %v68_v21 = vshll.u32 %v50_v10, 16  ;;  %742 = vmatpush3.bf16.msra.mxu0 %v777_v41  ;;  %v780_v8 = vld [vmem:[%s1018_s4 + $0x20] sm:$0xff]  }
   0x8   :  { %87 = vrot.lane.b32.xlu1 %v83_v15, %s785_s0  ;;  %v56_v20 = vrot.slane %v54_v14, 1  ;;  %v104_v22 = vshrl.u32 %v50_v10, 16  ;;  %v60_v23 = vrot.slane %v58_v16, 1  ;;  %v101_v24 = vrot.slane %v62_v17, 1  ;;  %743 = vmatprep.subr.bf16.mxu0 %v778_v49 }
   0x9   :  { %v102_v25 = vrot.slane %v64_v18, 2  ;;  %v66_v26 = vrot.slane %v64_v18, 1  ;;  %v107_v29 = vrot.slane %v68_v21, 2  ;;  %v70_v30 = vrot.slane %v68_v21, 1  ;;  %v911_v18 = vld [vmem:[%s1020_s3] ss:$0 sm:$0xff] }
   0xa   :  { %v57_v27 = vor.u32 %v56_v20, %v52_v13  ;;  %v106_v28 = vrot.slane %v104_v22, 1  ;;  %v92_v35 = vrot.slane %v52_v13, 1  ;;  %v93_v36 = vrot.slane %v54_v14, 2  ;;  %v906_v14 = vld [vmem:[%s1019_s2] ss:$0 sm:$0xff] }
   0xb   :  { %v103_v31 = vor.u32 %v102_v25, %v101_v24  ;;  %v67_v32 = vor.u32 %v66_v26, %v62_v17  ;;  %v118_v37 = vrot.slane %v851_v9, 2  ;;  %v119_v38 = vrot.slane %v50_v10, 2  ;;  %744 = vmatpush3.bf16.msra.mxu0 %v778_v49  ;;  %v782_v10 = vld [vmem:[%s1018_s4 + $0x10] sm:$0xff]  }
   0xc   :  { %89 = vrot.lane.b32.xlu1 %v86_v19, %s785_s0  ;;  %v61_v33 = vsel %vm51_vm1, %v57_v27, %v60_v23  ;;  %v108_v34 = vor.u32 %v107_v29, %v106_v28  ;;  %v95_v39 = vshrl.u32 %v846_v6, 16  ;;  %v98_v40 = vrot.slane %v58_v16, 2 }
   0xd   :  { %72 = vrot.lane.b32.xlu0 %v61_v33, %s786_s30  ;;  %v71_v43 = vsel %vm51_vm1, %v67_v32, %v70_v30  ;;  %v94_v44 = vor.u32 %v93_v36, %v92_v35  ;;  %v120_v47 = vsel %vm114_vm5, %v118_v37, %v119_v38  ;;  %v115_v50 = vrot.slane %v843_v5, 2 }
   0xe   :  { %v109_v42 = vsel %vm91_vm4, %v103_v31, %v108_v34  ;;  %v97_v45 = vrot.slane %v95_v39, 1  ;;  %v116_v51 = vrot.slane %v846_v6, 2  ;;  %vm140_vm9 = vcmask 261120  }
   0xf   :  { %vm165_vm10 = vcmask 326656   ;;  %v789_v7 = vmov 0.0   ;;  %v790_v11 = vmov 1983009808   ;;  %v257_v13 = vlaneseq }
  0x10   :  { %112 = vrot.lane.b32.xlu1 %v109_v42, %s787_s10  ;;  %v99_v48 = vor.u32 %v98_v40, %v97_v45  ;;  %v117_v53 = vsel %vm114_vm5, %v115_v50, %v116_v51  ;;  %749 = vmatprep.subr.bf16.mxu1 %v789_v7  ;;  %v255_v12 = vunpack.c.l.s4 %v790_v11  ;;  %vm337_vm11 = vcmask 254976  }
  0x11   :  { %74 = vrot.lane.b32.xlu0 %v71_v43, %s786_s30  ;;  %v258_v16 = vshrl.u32 %v257_v13, 7  ;;  %vm498_vm12 = vcmask 1042434   ;;  %vm500_vm13 = vcmask 1043459   ;;  %vm502_vm14 = vcmask 1044484  }
  0x12   :  { %v100_v52 = vsel %vm91_vm4, %v94_v44, %v99_v48  ;;  %v256_v15 = vunpack.c.0.s8 %v255_v12  ;;  %vm504_vm15 = vcmask 1045509   ;;  %vm506_vm1 = vcmask 1046534  }
  0x13   :  { %vm508_vm2 = vcmask 1047559   ;;  %vm521_vm3 = vsmask.f32 256  ;;  %vm525_vm4 = vcmask 1044480   ;;  %vm526_vm5 = vsmask.f32 4352 }
  0x14   :  { %123 = vrot.lane.b32.xlu1 %v120_v47, %s788_s13  ;;  %v915_v22 = vsub.s32 %v256_v15, %v258_v16 }
  0x15   :  { %110 = vrot.lane.b32.xlu0 %v100_v52, %s787_s10 }
  0x19   :  { %121 = vrot.lane.b32.xlu0 %v117_v53, %s788_s13 }
  0x7a   :  { %v88_v54 = vpop.permute.xlu1 %87 }
  0x7e   :  { %v90_v55 = vpop.permute.xlu1 %89 }
  0x7f   :  { %v73_v56 = vpop.permute.xlu0 %72 }
  0x80   :  { %v127_v60 = vsel %vm125_vm6, %v843_v5, %v73_v56  ;;  %v779_v5 = vld [vmem:[%s1018_s4 + $0x28] sm:$0xff]  }
  0x81   :  { %v132_v1 = vsel %vm130_vm7, %v127_v60, %v88_v54  ;;  %750 = vmatpush3.bf16.msra.mxu1 %v779_v5 }
  0x82   :  { %v113_v58 = vpop.permute.xlu1 %112  ;;  %751 = vmatprep.subr.bf16.mxu1 %v789_v7 }
  0x83   :  { %v75_v57 = vpop.permute.xlu0 %74 }
  0x84   :  { %v129_v59 = vsel %vm125_vm6, %v851_v9, %v75_v57  ;;  %v781_v9 = vld [vmem:[%s1018_s4 + $0x18] sm:$0xff]   ;;  %vm969_vm6 = vmand %vm43_vm0, %vm521_vm3  ;;  %vm791_vm0 = vmmov 0  }
  0x85   :  { %v134_v61 = vsel %vm130_vm7, %v129_v59, %v90_v55  ;;  %752 = vmatpush3.bf16.msra.mxu1 %v780_v8  ;;  %vm975_vm7 = vmand %vm525_vm4, %vm526_vm5  ;;  %761 = vmatprep.mubr.msk.bf16.mxu1 %vm791_vm0, %v789_v7 }
  0x86   :  { %v124_v63 = vpop.permute.xlu1 %123  ;;  %v139_v0 = vsel %vm135_vm8, %v134_v61, %v113_v58  ;;  %753 = vmatprep.subr.bf16.mxu1 %v789_v7 }
  0x87   :  { %v111_v62 = vpop.permute.xlu0 %110  ;;  %v144_v6 = vsel %vm140_vm9, %v139_v0, %v124_v63 }
  0x88   :  { %v137_v2 = vsel %vm135_vm8, %v132_v1, %v111_v62  ;;  %vm560_vm8 = vcmask 523264  }
  0x89   :  { %754 = vmatpush3.bf16.msra.mxu1 %v781_v9 }
  0x8a   :  { %755 = vmatprep.subr.bf16.mxu1 %v789_v7 }
  0x8b   :  { %v122_v3 = vpop.permute.xlu0 %121 }
  0x8c   :  { %v142_v4 = vsel %vm140_vm9, %v137_v2, %v122_v3 }
  0x8d   :  { %745 = vmatprep.mubr.msk.bf16.mxu0 %vm165_vm10, %v142_v4  ;;  %756 = vmatpush3.bf16.msra.mxu1 %v782_v10 }
  0x8e   :  { %746 = vmatmul.mubr.msk.bf16.vlgmr.msra.gmra.mxu0 %vm165_vm10, %v144_v6  ;;  %757 = vmatprep.subr.bf16.mxu1 %v789_v7  ;;  %vm618_vm10 = vcmask 785408  }
 0x14e   :  { %v747_v17 = vpop.f32.mrf.mxu0 }
 0x14f   :  { %v232_v19 = vmul.f32 %v747_v17, %v906_v14 }
 0x150   :  { %v208_v20 = vpop.f32.mrf.mxu0 }
 0x151   :  { %v243_v21 = vadd.f32 %v911_v18, %v232_v19  ;;  %v230_v23 = vmul.f32 %v906_v14, %v208_v20 }
 0x152   :  { %v748_v24 = vpop.f32.mrf.mxu0 }
 0x153   :  { %v247_v25 = vmax.f32 %v243_v21, 0.0  ;;  %v241_v26 = vadd.f32 %v911_v18, %v230_v23  ;;  %v233_v27 = vmul.f32 %v748_v24, %v906_v14 }
 0x155   :  { %v287_v28 = vcombine.high %v247_v25, %v247_v25  ;;  %v294_v29 = vrot.slane %v247_v25, %v915_v22  ;;  %v245_v30 = vmax.f32 %v241_v26, 0.0  ;;  %v244_v31 = vadd.f32 %v911_v18, %v233_v27  ;;  %v211_v27 = vpop.f32.mrf.mxu0 }
 0x157   :  { %v301_v32 = vrot.slane %v287_v28, %v915_v22  ;;  %v302_v33 = vcombine.high %v294_v29, %v294_v29  ;;  %v394_v34 = vsel %vm337_vm11, %v294_v29, -inf  ;;  %v253_v35 = vcombine.high %v245_v30, %v245_v30 }
 0x158   :  { %v395_v36 = vrot.slane %v394_v34, 4  ;;  %v260_v37 = vrot.slane %v245_v30, %v915_v22  ;;  %v925_v38 = vmax.f32 %v244_v31, 0.0 }
 0x159   :  { %v303_v39 = vcombine.high %v301_v32, %v301_v32  ;;  %v401_v40 = vsel %vm337_vm11, %v302_v33, -inf  ;;  %v408_v41 = vsel %vm337_vm11, %v301_v32, -inf  ;;  %v267_v42 = vrot.slane %v253_v35, %v915_v22 }
 0x15a   :  { %v396_v43 = vmax.f32 %v394_v34, %v395_v36  ;;  %v402_v44 = vrot.slane %v401_v40, 4  ;;  %v409_v45 = vrot.slane %v408_v41, 4  ;;  %v268_v46 = vcombine.high %v260_v37, %v260_v37 }
 0x15b   :  { %v415_v47 = vsel %vm337_vm11, %v303_v39, -inf  ;;  %v269_v48 = vcombine.high %v267_v42, %v267_v42  ;;  %v338_v49 = vsel %vm337_vm11, %v260_v37, -inf  ;;  %v352_v50 = vsel %vm337_vm11, %v267_v42, -inf }
 0x15c   :  { %v397_v51 = vrot.slane %v396_v43, 2  ;;  %v403_v52 = vmax.f32 %v401_v40, %v402_v44  ;;  %v410_v53 = vmax.f32 %v408_v41, %v409_v45  ;;  %v416_v54 = vrot.slane %v415_v47, 4 }
 0x15d   :  { %v339_v55 = vrot.slane %v338_v49, 4  ;;  %v345_v56 = vsel %vm337_vm11, %v268_v46, -inf  ;;  %v353_v57 = vrot.slane %v352_v50, 4  ;;  %v359_v58 = vsel %vm337_vm11, %v269_v48, -inf }
 0x15e   :  { %v398_v59 = vmax.f32 %v396_v43, %v397_v51  ;;  %v404_v60 = vrot.slane %v403_v52, 2  ;;  %v411_v61 = vrot.slane %v410_v53, 2  ;;  %v417_v62 = vmax.f32 %v415_v47, %v416_v54 }
 0x15f   :  { %v340_v63 = vmax.f32 %v338_v49, %v339_v55  ;;  %v346_v0 = vrot.slane %v345_v56, 4  ;;  %v354_v1 = vmax.f32 %v352_v50, %v353_v57  ;;  %v360_v2 = vrot.slane %v359_v58, 4 }
 0x160   :  { %v399_v3 = vrot.slane %v398_v59, 1  ;;  %v405_v4 = vmax.f32 %v403_v52, %v404_v60  ;;  %v412_v6 = vmax.f32 %v410_v53, %v411_v61  ;;  %v418_v5 = vrot.slane %v417_v62, 2 }
 0x161   :  { %v341_v8 = vrot.slane %v340_v63, 2  ;;  %v347_v9 = vmax.f32 %v345_v56, %v346_v0  ;;  %v355_v10 = vrot.slane %v354_v1, 2  ;;  %v361_v11 = vmax.f32 %v359_v58, %v360_v2 }
 0x162   :  { %v400_v12 = vmax.f32 %v398_v59, %v399_v3  ;;  %v406_v13 = vrot.slane %v405_v4, 1  ;;  %v413_v15 = vrot.slane %v412_v6, 1  ;;  %v419_v16 = vmax.f32 %v417_v62, %v418_v5 }
 0x163   :  { %v342_v17 = vmax.f32 %v340_v63, %v341_v8  ;;  %v348_v19 = vrot.slane %v347_v9, 2  ;;  %v356_v20 = vmax.f32 %v354_v1, %v355_v10  ;;  %v362_v21 = vrot.slane %v361_v11, 2 }
 0x164   :  { %v407_v23 = vmax.f32 %v405_v4, %v406_v13  ;;  %v414_v24 = vmax.f32 %v412_v6, %v413_v15  ;;  %v420_v25 = vrot.slane %v419_v16, 1  ;;  %v458_v26 = vpack.c.bf16 %v400_v12, %v400_v12 }
 0x165   :  { %v343_v28 = vrot.slane %v342_v17, 1  ;;  %v349_v29 = vmax.f32 %v347_v9, %v348_v19  ;;  %v357_v30 = vrot.slane %v356_v20, 1  ;;  %v363_v31 = vmax.f32 %v361_v11, %v362_v21 }
 0x166   :  { %v421_v32 = vmax.f32 %v419_v16, %v420_v25  ;;  %v459_v33 = vpack.c.bf16 %v407_v23, %v407_v23  ;;  %v460_v34 = vpack.c.bf16 %v414_v24, %v414_v24  ;;  %v231_v37 = vmul.f32 %v906_v14, %v211_v27 }
 0x167   :  { %v350_v35 = vrot.slane %v349_v29, 1  ;;  %v364_v36 = vrot.slane %v363_v31, 1  ;;  %v344_v40 = vmax.f32 %v342_v17, %v343_v28  ;;  %v304_v41 = vcombine.high %v925_v38, %v925_v38 }
 0x168   :  { %v491_v39 = vunpack.c.l.b16 %v459_v33  ;;  %v461_v42 = vpack.c.bf16 %v421_v32, %v421_v32  ;;  %v490_v43 = vunpack.c.l.b16 %v458_v26  ;;  %v358_v45 = vmax.f32 %v356_v20, %v357_v30 }
 0x169   :  { %v351_v44 = vmax.f32 %v349_v29, %v350_v35  ;;  %v492_v46 = vunpack.c.l.b16 %v460_v34  ;;  %v311_v47 = vrot.slane %v925_v38, %v915_v22  ;;  %v318_v48 = vrot.slane %v304_v41, %v915_v22 }
 0x16a   :  { %v510_v49 = vsel %vm498_vm12, %v491_v39, %v490_v43  ;;  %v942_v14 = vmax.f32 %v363_v31, %v364_v36  ;;  %v242_v51 = vadd.f32 %v911_v18, %v231_v37  ;;  %v450_v52 = vpack.c.bf16 %v344_v40, %v344_v40 }
 0x16b   :  { %v451_v50 = vpack.c.bf16 %v351_v44, %v351_v44  ;;  %v319_v53 = vcombine.high %v311_v47, %v311_v47  ;;  %v320_v54 = vcombine.high %v318_v48, %v318_v48  ;;  %v422_v55 = vsel %vm337_vm11, %v311_v47, -inf }
 0x16c   :  { %v493_v56 = vunpack.c.l.b16 %v461_v42  ;;  %v452_v57 = vpack.c.bf16 %v358_v45, %v358_v45  ;;  %v423_v58 = vrot.slane %v422_v55, 4  ;;  %v436_v38 = vsel %vm337_vm11, %v318_v48, -inf }
 0x16d   :  { %v511_v59 = vsel %vm500_vm13, %v492_v46, %v510_v49  ;;  %v429_v60 = vsel %vm337_vm11, %v319_v53, -inf  ;;  %v437_v61 = vrot.slane %v436_v38, 4  ;;  %v443_v62 = vsel %vm337_vm11, %v320_v54, -inf }
 0x16e   :  { %v483_v63 = vunpack.c.l.b16 %v451_v50  ;;  %v424_v0 = vmax.f32 %v422_v55, %v423_v58  ;;  %v430_v18 = vrot.slane %v429_v60, 4  ;;  %v444_v1 = vrot.slane %v443_v62, 4 }
 0x16f   :  { %v453_v2 = vpack.c.bf16 %v942_v14, %v942_v14  ;;  %v482_v3 = vunpack.c.l.b16 %v450_v52  ;;  %v438_v4 = vmax.f32 %v436_v38, %v437_v61  ;;  %v246_v6 = vmax.f32 %v242_v51, 0.0 }
 0x170   :  { %v952_v5 = vunpack.c.l.b16 %v452_v57  ;;  %v425_v8 = vrot.slane %v424_v0, 2  ;;  %v431_v9 = vmax.f32 %v429_v60, %v430_v18  ;;  %v445_v10 = vmax.f32 %v443_v62, %v444_v1 }
 0x171   :  { %v439_v11 = vrot.slane %v438_v4, 2  ;;  %v512_v12 = vsel %vm502_vm14, %v493_v56, %v511_v59  ;;  %v270_v13 = vcombine.high %v246_v6, %v246_v6  ;;  %v277_v15 = vrot.slane %v246_v6, %v915_v22 }
 0x172   :  { %v499_v16 = vsel %vm498_vm12, %v483_v63, %v482_v3  ;;  %v426_v17 = vmax.f32 %v424_v0, %v425_v8  ;;  %v432_v19 = vrot.slane %v431_v9, 2  ;;  %v446_v20 = vrot.slane %v445_v10, 2 }
 0x173   :  { %v440_v21 = vmax.f32 %v438_v4, %v439_v11  ;;  %v284_v23 = vrot.slane %v270_v13, %v915_v22  ;;  %v285_v24 = vcombine.high %v277_v15, %v277_v15  ;;  %v366_v25 = vsel %vm337_vm11, %v277_v15, -inf }
 0x174   :  { %v427_v26 = vrot.slane %v426_v17, 1  ;;  %v433_v27 = vmax.f32 %v431_v9, %v432_v19  ;;  %v447_v28 = vmax.f32 %v445_v10, %v446_v20  ;;  %v367_v29 = vrot.slane %v366_v25, 4 }
 0x175   :  { %v441_v30 = vrot.slane %v440_v21, 1  ;;  %v286_v31 = vcombine.high %v284_v23, %v284_v23  ;;  %v373_v32 = vsel %vm337_vm11, %v285_v24, -inf  ;;  %v380_v33 = vsel %vm337_vm11, %v284_v23, -inf }
 0x176   :  { %v428_v34 = vmax.f32 %v426_v17, %v427_v26  ;;  %v434_v22 = vrot.slane %v433_v27, 1  ;;  %v448_v35 = vrot.slane %v447_v28, 1  ;;  %v368_v36 = vmax.f32 %v366_v25, %v367_v29 }
 0x177   :  { %v442_v37 = vmax.f32 %v440_v21, %v441_v30  ;;  %v374_v39 = vrot.slane %v373_v32, 4  ;;  %v381_v40 = vrot.slane %v380_v33, 4  ;;  %v387_v41 = vsel %vm337_vm11, %v286_v31, -inf }
 0x178   :  { %v435_v42 = vmax.f32 %v433_v27, %v434_v22  ;;  %v462_v43 = vpack.c.bf16 %v428_v34, %v428_v34  ;;  %v369_v44 = vrot.slane %v368_v36, 2  ;;  %v388_v45 = vrot.slane %v387_v41, 4  ;;  %v783_v27 = vld [vmem:[%s1018_s4 + $0x8] sm:$0xff]  }
 0x179   :  { %v464_v46 = vpack.c.bf16 %v442_v37, %v442_v37  ;;  %v375_v47 = vmax.f32 %v373_v32, %v374_v39  ;;  %v382_v48 = vmax.f32 %v380_v33, %v381_v40  ;;  %v449_v49 = vmax.f32 %v447_v28, %v448_v35  ;;  %758 = vmatpush3.bf16.msra.mxu1 %v783_v27  ;;  %v784_v35 = vld [vmem:[%s1018_s4] sm:$0xff]  }
 0x17a   :  { %v463_v14 = vpack.c.bf16 %v435_v42, %v435_v42  ;;  %v494_v50 = vunpack.c.l.b16 %v462_v43  ;;  %v370_v51 = vmax.f32 %v368_v36, %v369_v44  ;;  %v389_v52 = vmax.f32 %v387_v41, %v388_v45  ;;  %759 = vmatprep.subr.bf16.mxu1 %v789_v7 }
 0x17b   :  { %v496_v53 = vunpack.c.l.b16 %v464_v46  ;;  %v376_v54 = vrot.slane %v375_v47, 2  ;;  %v383_v55 = vrot.slane %v382_v48, 2  ;;  %v465_v56 = vpack.c.bf16 %v449_v49, %v449_v49 }
 0x17c   :  { %v495_v57 = vunpack.c.l.b16 %v463_v14  ;;  %v513_v58 = vsel %vm504_vm15, %v494_v50, %v512_v12  ;;  %v371_v38 = vrot.slane %v370_v51, 1  ;;  %v390_v59 = vrot.slane %v389_v52, 2 }
 0x17d   :  { %v485_v60 = vunpack.c.l.b16 %v453_v2  ;;  %v377_v61 = vmax.f32 %v375_v47, %v376_v54  ;;  %v384_v62 = vmax.f32 %v382_v48, %v383_v55  ;;  %v497_v63 = vunpack.c.l.b16 %v465_v56  ;;  %760 = vmatpush3.bf16.msra.mxu1 %v784_v35  ;;  %v726_v55 = vld [vmem:[%s1022_s6] ss:$0 sm:$0xff] }
 0x17e   :  { %v501_v0 = vsel %vm500_vm13, %v952_v5, %v499_v16  ;;  %v372_v18 = vmax.f32 %v370_v51, %v371_v38  ;;  %v391_v1 = vmax.f32 %v389_v52, %v390_v59  ;;  %v514_v3 = vsel %vm506_vm1, %v495_v57, %v513_v58 }
 0x17f   :  { %v378_v4 = vrot.slane %v377_v61, 1  ;;  %v385_v6 = vrot.slane %v384_v62, 1  ;;  %v515_v8 = vsel %vm508_vm2, %v496_v53, %v514_v3  ;;  %v503_v15 = vsel %vm502_vm14, %v485_v60, %v501_v0  ;;  %v725_v53 = vld [vmem:[%s1021_s5] ss:$0 sm:$0xff] }
 0x180   :  { %v392_v2 = vrot.slane %v391_v1, 1  ;;  %v454_v10 = vpack.c.bf16 %v372_v18, %v372_v18  ;;  %v517_v11 = vpack.c.b16 %v497_v63, %v515_v8  ;;  %vm702_vm11 = vcmask 517120  }
 0x181   :  { %v379_v12 = vmax.f32 %v377_v61, %v378_v4  ;;  %v386_v13 = vmax.f32 %v384_v62, %v385_v6 }
 0x182   :  { %v486_v16 = vunpack.c.l.b16 %v454_v10  ;;  %v524_v17 = vsel %vm969_vm6, 0, %v517_v11  ;;  %v393_v19 = vmax.f32 %v391_v1, %v392_v2 }
 0x183   :  { %v455_v20 = vpack.c.bf16 %v379_v12, %v379_v12  ;;  %v456_v21 = vpack.c.bf16 %v386_v13, %v386_v13  ;;  %v529_v23 = vsel %vm975_vm7, %v524_v17, 0 }
 0x184   :  { %v505_v24 = vsel %vm504_vm15, %v486_v16, %v503_v15  ;;  %v540_v25 = vshll.u32 %v529_v23, 16  ;;  %v457_v26 = vpack.c.bf16 %v393_v19, %v393_v19  ;;  %v538_v30 = vshrl.u32 %v529_v23, 16 }
 0x185   :  { %v487_v28 = vunpack.c.l.b16 %v455_v20  ;;  %v488_v29 = vunpack.c.l.b16 %v456_v21  ;;  %v551_v40 = vrot.slane %v529_v23, 1 }
 0x186   :  { %v542_v31 = vrot.slane %v540_v25, 1  ;;  %v489_v32 = vunpack.c.l.b16 %v457_v26 }
 0x187   :  { %v507_v33 = vsel %vm506_vm1, %v487_v28, %v505_v24 }
 0x188   :  { %v543_v34 = vor.u32 %v542_v31, %v538_v30  ;;  %v509_v22 = vsel %vm508_vm2, %v488_v29, %v507_v33 }
 0x189   :  { %v516_v36 = vpack.c.b16 %v489_v32, %v509_v22 }
 0x18a   :  { %546 = vrot.lane.b32.xlu1 %v543_v34, %s788_s13 }
 0x18b   :  { %v523_v37 = vsel %vm969_vm6, 0, %v516_v36 }
 0x18c   :  { %v528_v39 = vsel %vm975_vm7, %v523_v37, 0 }
 0x18d   :  { %v533_v41 = vshll.u32 %v528_v39, 16  ;;  %v531_v42 = vshrl.u32 %v528_v39, 16  ;;  %v550_v45 = vrot.slane %v528_v39, 1 }
 0x18e   :  { %554 = vrot.lane.b32.xlu1 %v551_v40, %s792_s27 }
 0x18f   :  { %v535_v43 = vrot.slane %v533_v41, 1 }
 0x191   :  { %v536_v44 = vor.u32 %v535_v43, %v531_v42 }
 0x193   :  { %544 = vrot.lane.b32.xlu0 %v536_v44, %s788_s13 }
 0x197   :  { %552 = vrot.lane.b32.xlu0 %v550_v45, %s792_s27 }
 0x1fc   :  { %v547_v46 = vpop.permute.xlu1 %546 }
 0x1fd   :  { %v559_v49 = vsel %vm140_vm9, %v529_v23, %v547_v46 }
 0x200   :  { %v555_v48 = vpop.permute.xlu1 %554 }
 0x201   :  { %v564_v7 = vsel %vm560_vm8, %v559_v49, %v555_v48 }
 0x205   :  { %v545_v47 = vpop.permute.xlu0 %544 }
 0x206   :  { %v557_v14 = vsel %vm140_vm9, %v528_v39, %v545_v47  ;;  %vm699_vm9 = vcmask 1041409  }
 0x209   :  { %v553_v50 = vpop.permute.xlu0 %552 }
 0x20a   :  { %v562_v51 = vsel %vm560_vm8, %v557_v14, %v553_v50 }
 0x20b   :  { %v717_v52 = vcombine.low %v562_v51, %v564_v7 }
 0x20d   :  { %762 = vmatmul.mubr.msk.bf16.vlgmr.msra.gmra.mxu1 %vm618_vm10, %v717_v52 }
 0x2cd   :  { %v656_v54 = vpop.f32.mrf.mxu1 }
 0x2ce   :  { %v670_v56 = vmul.f32 %v725_v53, %v656_v54 }
 0x2cf   :  { %v763_v57 = vpop.f32.mrf.mxu1 }
 0x2d0   :  { %v679_v58 = vadd.f32 %v726_v55, %v670_v56 }
 0x2d1   :  { %v659_v38 = vpop.f32.mrf.mxu1 }
 0x2d2   :  { %v681_v59 = vmax.f32 %v679_v58, 0.0  ;;  %v671_v60 = vmul.f32 %v725_v53, %v659_v38 }
 0x2d3   :  { %v764_v61 = vpop.f32.mrf.mxu1 }
 0x2d4   :  { %v683_v62 = vsel %vm560_vm8, %v681_v59, -inf  ;;  %v680_v63 = vadd.f32 %v726_v55, %v671_v60 }
 0x2d5   :  { %v684_v0 = vrot.slane %v683_v62, 4 }
 0x2d6   :  { %v682_v18 = vmax.f32 %v680_v63, 0.0 }
 0x2d7   :  { %v685_v1 = vmax.f32 %v683_v62, %v684_v0 }
 0x2d8   :  { %v690_v3 = vsel %vm560_vm8, %v682_v18, -inf }
 0x2d9   :  { %v686_v4 = vrot.slane %v685_v1, 2  ;;  %v691_v6 = vrot.slane %v690_v3, 4 }
 0x2db   :  { %v687_v8 = vmax.f32 %v685_v1, %v686_v4  ;;  %v692_v9 = vmax.f32 %v690_v3, %v691_v6 }
 0x2dd   :  { %v693_v2 = vrot.slane %v692_v9, 2  ;;  %v688_v10 = vrot.slane %v687_v8, 1 }
 0x2df   :  { %v694_v11 = vmax.f32 %v692_v9, %v693_v2  ;;  %v689_v12 = vmax.f32 %v687_v8, %v688_v10 }
 0x2e1   :  { %v695_v5 = vrot.slane %v694_v11, 1 }
 0x2e3   :  { %v696_v13 = vmax.f32 %v694_v11, %v695_v5 }
 0x2e5   :  { %v700_v15 = vsel %vm699_vm9, %v696_v13, %v689_v12 }
 0x2e6   :  { %703 = vst.msk [vmem:[%s1023_s7] sm:$0x3] %vm702_vm11, %v700_v15 }

// kernel: pretrained_bio_encoder.3
= control target key start
LH: loop header
LB: loop body
LE: loop exit
PB: predicated region body
PF: predicated region fallthrough
CT: control target
= control target key end

     0   :  { %12 = vsyncpa [#allocation4], 0  ;;  %s14984_s0 = inlined_call_operand.vmem [shape: bf16[2,16,16], index: 0, kind: input, shape index: {}]   ;;  %s14985_s1 = inlined_call_operand.vmem [shape: bf16[16,512], index: 1, kind: input, shape index: {}]   ;;  %s14986_s2 = inlined_call_operand.hbm [shape: bf16[128,512], index: 2, kind: input, shape index: {}]   ;;  %s14987_s3 = inlined_call_operand.vmem [shape: f32[1,512], index: 3, kind: input, shape index: {}]   ;;  %s14988_s4 = inlined_call_operand.hbm [shape: bf16[256,512], index: 4, kind: input, shape index: {}]   ;;  %s14989_s5 = inlined_call_operand.hbm [shape: bf16[128,512], index: 5, kind: input, shape index: {}]   ;;  %s14990_s6 = inlined_call_operand.vmem [shape: f32[1,512], index: 6, kind: input, shape index: {}]   ;;  %s14991_s7 = inlined_call_operand.vmem [shape: f32[2,128], index: 7, kind: output, shape index: {}]  }
   0x1   :  { %13 = vsyncpa [#allocation6], 0  ;;  %s12558_s24 = smov [#allocation5]   ;;  %s12559_s26 = smov [#allocation3]  }
   0x2   :  { %s37_s25 = sshll.u32 %s12558_s24, 4  ;;  %s23_s27 = sshll.u32 %s12559_s26, 4  ;;  %s38_s25 = int_to_ptr.vmem [resolvable:$true] %s37_s25  ;;  %s24_s27 = int_to_ptr.vmem [resolvable:$true] %s23_s27 }
   0x3   :  { %s12502_s28 = scalar_lea.vmem %s38_s25, 8192  ;;  %p12507_p1 = scmp.lt.s32.totalorder %s38_s25, %s38_s25 }
   0x4   :  { %p12503_p0 = scmp.ne.s32.totalorder %s38_s25, %s12502_s28  ;;  %p12508_p2 = scmp.lt.s32.totalorder %s12502_s28, %s12502_s28 }
   0x6   :  { %p12509_p3 = por %p12508_p2, %p12507_p1 }
   0x8   :  { %p12510_p4 = pnand %p12509_p3, %p12503_p0 }
   0xa   :  { %12513 = shalt.err (!%p12510_p4)
}
   0xb   :  { %s12560_s29 = smov 256   ;;  %s12561_s30 = smov 16  }
   0xc   :  { %43 = dma.hbm_to_vmem [thread:$0]  %s14988_s4, 8192, %s38_s25, [#allocation6], %s12560_s29, %s12560_s29, %s12561_s30  }
   0xd   :  { %s12522_s10 = scalar_lea.vmem %s24_s27, 4096  ;;  %p12527_p6 = scmp.lt.s32.totalorder %s24_s27, %s24_s27 }
   0xe   :  { %p12523_p5 = scmp.ne.s32.totalorder %s24_s27, %s12522_s10  ;;  %p12528_p7 = scmp.lt.s32.totalorder %s12522_s10, %s12522_s10 }
  0x10   :  { %p12529_p8 = por %p12528_p7, %p12527_p6 }
  0x12   :  { %p12530_p9 = pnand %p12529_p8, %p12523_p5 }
  0x14   :  { %12533 = shalt.err (!%p12530_p9)
}
  0x15   :  { %29 = dma.hbm_to_vmem [thread:$0]  %s14986_s2, 4096, %s24_s27, [#allocation4], %s12560_s29, %s12560_s29, %s12561_s30  }
  0x16   :  { %s12562_s13 = smov [#allocation7]  }
  0x17   :  { %s49_s14 = sshll.u32 %s12562_s13, 4  ;;  %s50_s14 = int_to_ptr.vmem [resolvable:$true] %s49_s14 }
  0x18   :  { %s12542_s15 = scalar_lea.vmem %s50_s14, 4096  ;;  %p12547_p11 = scmp.lt.s32.totalorder %s50_s14, %s50_s14 }
  0x19   :  { %p12543_p10 = scmp.ne.s32.totalorder %s50_s14, %s12542_s15  ;;  %p12548_p12 = scmp.lt.s32.totalorder %s12542_s15, %s12542_s15 }
  0x1b   :  { %p12549_p13 = por %p12548_p12, %p12547_p11 }
  0x1d   :  { %p12550_p0 = pnand %p12549_p13, %p12543_p10 }
  0x1f   :  { %12553 = shalt.err (!%p12550_p0)
}
  0x20   :  { %55 = dma.hbm_to_vmem [thread:$0]  %s14989_s5, 4096, %s50_s14, [#allocation6], %s12560_s29, %s12560_s29, %s12561_s30  }
  0x21   :  { %12554 = dma.done.wait [#allocation4], 4096  }
  0x22   :  { %12555 = vsyncadd [#allocation4], 4294963200 }
  0x23   :  { %12556 = dma.done.wait [#allocation6], 12288  }
  0x24   :  { %12557 = vsyncadd [#allocation6], 4294955008  ;;  %v14996_v0 = vmov 0   ;;  %v10915_v1 = vld [vmem:[%s14985_s1 + $0x4] ss:$16 sps:$4 sm:$0xff]   ;;  %vm128_vm0 = vcmask 130048   ;;  %v78_v39 = vlaneseq }
  0x25   :  { %167 = vmatprep.mubr.bf16.mxu0 %v14996_v0  ;;  %220 = vmatprep.mubr.bf16.mxu1 %v14996_v0  ;;  %v10917_v2 = vld [vmem:[%s14985_s1 + $0xc] ss:$16 sps:$4 sm:$0xff]   ;;  %v10919_v3 = vld [vmem:[%s14985_s1] ss:$16 sps:$4 sm:$0xff]   ;;  %v10920_v4 = vld [vmem:[%s14985_s1 + $0x8] ss:$16 sps:$4 sm:$0xff]  }
  0x26   :  { %149 = vmatprep.subr.bf16.mxu0 %v10915_v1  ;;  %202 = vmatprep.subr.bf16.mxu1 %v10917_v2  ;;  %v10921_v5 = vld [vmem:[%s14984_s0] sm:$0xff]   ;;  %v12634_v8 = vld [vmem:[#allocation3 + $0xe8] ss:$16 sps:$4 sm:$0xff]   ;;  %v12637_v9 = vld [vmem:[#allocation3 + $0xec] ss:$16 sps:$4 sm:$0xff]   ;;  %v12767_v40 = vshrl.u32 %v78_v39, 7 }
  0x27   :  { %150 = vmatpush1.bf16.msra.mxu0 %v10919_v3  ;;  %203 = vmatpush1.bf16.msra.mxu1 %v10920_v4  ;;  %v12630_v6 = vld [vmem:[#allocation3 + $0xe0] ss:$16 sps:$4 sm:$0xff]   ;;  %v12632_v7 = vld [vmem:[#allocation3 + $0xe4] ss:$16 sps:$4 sm:$0xff]   ;;  %v12647_v12 = vld [vmem:[#allocation3 + $0xcc] ss:$16 sps:$4 sm:$0xff]  }
  0x28   :  { %433 = vmatprep.subr.bf16.mxu0 %v12632_v7  ;;  %v12641_v10 = vld [vmem:[#allocation3 + $0xc4] ss:$16 sps:$4 sm:$0xff]   ;;  %474 = vmatprep.subr.bf16.mxu1 %v12637_v9  ;;  %v12645_v11 = vld [vmem:[#allocation3 + $0xc0] ss:$16 sps:$4 sm:$0xff]   ;;  %v12651_v13 = vld [vmem:[#allocation3 + $0xc8] ss:$16 sps:$4 sm:$0xff]  }
  0x29   :  { %v12654_v14 = vld [vmem:[#allocation3 + $0xa4] ss:$16 sps:$4 sm:$0xff]   ;;  %v12657_v15 = vld [vmem:[#allocation3 + $0xac] ss:$16 sps:$4 sm:$0xff]   ;;  %v12661_v16 = vld [vmem:[#allocation3 + $0xa0] ss:$16 sps:$4 sm:$0xff]  }
  0x2a   :  { %10021 = vmatmul.mubr.msk.bf16.vlgmr.msra.gmra.mxu0 %vm128_vm0, %v10921_v5  ;;  %10023 = vmatmul.mubr.msk.bf16.vlgmr.msra.gmra.mxu1 %vm128_vm0, %v10921_v5  ;;  %v12663_v17 = vld [vmem:[#allocation3 + $0xa8] ss:$16 sps:$4 sm:$0xff]   ;;  %v12667_v18 = vld [vmem:[#allocation3 + $0x84] ss:$16 sps:$4 sm:$0xff]   ;;  %v10945_v19 = vld [vmem:[#allocation3 + $0x8c] ss:$16 sps:$4 sm:$0xff]  }
  0x2b   :  { %434 = vmatpush1.bf16.msra.mxu0 %v12630_v6  ;;  %475 = vmatpush1.bf16.msra.mxu1 %v12634_v8  ;;  %v10940_v20 = vld [vmem:[#allocation3 + $0x80] ss:$16 sps:$4 sm:$0xff]   ;;  %v12671_v21 = vld [vmem:[#allocation3 + $0x88] ss:$16 sps:$4 sm:$0xff]   ;;  %v12673_v22 = vld [vmem:[#allocation3 + $0x64] ss:$16 sps:$4 sm:$0xff]  }
  0x2c   :  { %435 = vmatprep.subr.bf16.mxu0 %v12641_v10  ;;  %476 = vmatprep.subr.bf16.mxu1 %v12647_v12  ;;  %v10952_v23 = vld [vmem:[%s14984_s0 + $0x8] sm:$0xff]   ;;  %v12684_v25 = vld [vmem:[#allocation3 + $0x60] ss:$16 sps:$4 sm:$0xff]   ;;  %v12691_v27 = vld [vmem:[#allocation3 + $0x44] ss:$16 sps:$4 sm:$0xff]   ;;  %15041 = vst [vmem:[#allocation10_spill] sm:$0xff] %v12767_v40 }
  0x2d   :  { %177 = vmatprep.mubr.bf16.mxu0 %v14996_v0  ;;  %230 = vmatprep.mubr.bf16.mxu1 %v14996_v0  ;;  %v12680_v24 = vld [vmem:[#allocation3 + $0x6c] ss:$16 sps:$4 sm:$0xff]   ;;  %v12689_v26 = vld [vmem:[#allocation3 + $0x68] ss:$16 sps:$4 sm:$0xff]   ;;  %v12698_v29 = vld [vmem:[#allocation3 + $0x40] ss:$16 sps:$4 sm:$0xff]  }
  0x2e   :  { %v12694_v28 = vld [vmem:[#allocation3 + $0x4c] ss:$16 sps:$4 sm:$0xff]   ;;  %v12702_v30 = vld [vmem:[#allocation3 + $0x48] ss:$16 sps:$4 sm:$0xff]   ;;  %v12704_v31 = vld [vmem:[#allocation3 + $0x24] ss:$16 sps:$4 sm:$0xff]  }
  0x2f   :  { %436 = vmatpush1.bf16.msra.mxu0 %v12645_v11  ;;  %477 = vmatpush1.bf16.msra.mxu1 %v12651_v13  ;;  %v12707_v32 = vld [vmem:[#allocation3 + $0x20] ss:$16 sps:$4 sm:$0xff]   ;;  %v12709_v33 = vld [vmem:[#allocation3 + $0x2c] ss:$16 sps:$4 sm:$0xff]   ;;  %v12711_v34 = vld [vmem:[#allocation3 + $0x28] ss:$16 sps:$4 sm:$0xff]  }
  0x30   :  { %437 = vmatprep.subr.bf16.mxu0 %v12654_v14  ;;  %478 = vmatprep.subr.bf16.mxu1 %v12657_v15  ;;  %v12713_v35 = vld [vmem:[#allocation3 + $0x4] ss:$16 sps:$4 sm:$0xff]   ;;  %v12716_v36 = vld [vmem:[#allocation3 + $0xc] ss:$16 sps:$4 sm:$0xff]   ;;  %v12721_v37 = vld [vmem:[#allocation3] ss:$16 sps:$4 sm:$0xff]  }
  0x31   :  { %v12723_v38 = vld [vmem:[#allocation3 + $0x8] ss:$16 sps:$4 sm:$0xff]   ;;  %v14994_v41 = vsub.s32 2, %v12767_v40  ;;  %v14995_v42 = vsub.s32 0, %v12767_v40  ;;  %v76_v43 = vld [vmem:[%s14987_s3] sm:$0xf] }
  0x32   :  { %10022 = vmatmul.mubr.msk.bf16.gmra.mxu0 %vm128_vm0, %v10952_v23  ;;  %10024 = vmatmul.mubr.msk.bf16.gmra.mxu1 %vm128_vm0, %v10952_v23  ;;  %v14993_v1 = vsub.s32 1, %v12767_v40  ;;  %vm589_vm1 = vcmask 1040384   ;;  %vm590_vm2 = vsmask.f32 256  ;;  %vm614_vm4 = vcmask 1043459  }
  0x33   :  { %438 = vmatpush1.bf16.msra.mxu0 %v12661_v16  ;;  %479 = vmatpush1.bf16.msra.mxu1 %v12663_v17  ;;  %v89_v46 = vrot.slane %v76_v43, %v14994_v41  ;;  %v81_v49 = vrot.slane %v76_v43, %v14995_v42  ;;  %vm12839_vm3 = vmand %vm589_vm1, %vm590_vm2  ;;  %vm615_vm5 = vsmask.f32 7950  ;;  %vm656_vm7 = vcmask 1041409  }
  0x34   :  { %439 = vmatprep.subr.bf16.mxu0 %v12667_v18  ;;  %480 = vmatprep.subr.bf16.mxu1 %v10945_v19  ;;  %v12793_v2 = vrot.slane %v76_v43, %v14993_v1  ;;  %vm12848_vm6 = vmand %vm614_vm4, %vm615_vm5  ;;  %vm982_vm8 = vsmask.f32 7938  ;;  %vm1006_vm10 = vsmask.f32 3328  ;;  %vm1377_vm12 = vsmask.f32 1280 }
  0x35   :  { %465 = vmatprep.mubr.bf16.mxu0 %v14996_v0  ;;  %506 = vmatprep.mubr.bf16.mxu1 %v14996_v0  ;;  %vm12893_vm9 = vmand %vm589_vm1, %vm982_vm8  ;;  %vm1401_vm14 = vcmask 1042434   ;;  %vm1402_vm15 = vsmask.f32 7946  ;;  %vm1773_vm1 = vsmask.f32 7942 }
  0x36   :  { %15048 = vst [vmem:[#allocation17_spill] sm:$0xff] %v12793_v2  ;;  %vm12900_vm11 = vmand %vm614_vm4, %vm1006_vm10  ;;  %vm1797_vm4 = vsmask.f32 2304 }
  0x37   :  { %440 = vmatpush1.bf16.msra.mxu0 %v10940_v20  ;;  %481 = vmatpush1.bf16.msra.mxu1 %v12671_v21  ;;  %vm13028_vm13 = vmand %vm656_vm7, %vm1377_vm12 }
  0x38   :  { %441 = vmatprep.subr.bf16.mxu0 %v12673_v22  ;;  %482 = vmatprep.subr.bf16.mxu1 %v12680_v24  ;;  %vm13037_vm0 = vmand %vm1401_vm14, %vm1402_vm15 }
  0x39   :  { %vm13097_vm2 = vmand %vm656_vm7, %vm1773_vm1 }
  0x3a   :  { %vm13106_vm5 = vmand %vm1401_vm14, %vm1797_vm4 }
  0x3b   :  { %442 = vmatpush1.bf16.msra.mxu0 %v12684_v25  ;;  %483 = vmatpush1.bf16.msra.mxu1 %v12689_v26 }
  0x3c   :  { %443 = vmatprep.subr.bf16.mxu0 %v12691_v27  ;;  %484 = vmatprep.subr.bf16.mxu1 %v12694_v28 }
  0x3f   :  { %444 = vmatpush1.bf16.msra.mxu0 %v12698_v29  ;;  %485 = vmatpush1.bf16.msra.mxu1 %v12702_v30 }
  0x40   :  { %445 = vmatprep.subr.bf16.mxu0 %v12704_v31  ;;  %486 = vmatprep.subr.bf16.mxu1 %v12709_v33 }
  0x43   :  { %446 = vmatpush1.bf16.msra.mxu0 %v12707_v32  ;;  %487 = vmatpush1.bf16.msra.mxu1 %v12711_v34 }
  0x44   :  { %447 = vmatprep.subr.bf16.mxu0 %v12713_v35  ;;  %488 = vmatprep.subr.bf16.mxu1 %v12716_v36 }
  0x47   :  { %448 = vmatpush1.bf16.msra.mxu0 %v12721_v37  ;;  %489 = vmatpush1.bf16.msra.mxu1 %v12723_v38 }
  0x48   :  { %820 = vmatprep.subr.bf16.mxu0 %v12632_v7  ;;  %861 = vmatprep.subr.bf16.mxu1 %v12637_v9 }
  0x4a   :  { %466 = vmatmul.mubr.bf16.vlgmr.msra.gmra.mxu0 %v14996_v0  ;;  %507 = vmatmul.mubr.bf16.vlgmr.msra.gmra.mxu1 %v14996_v0 }
  0x4b   :  { %821 = vmatpush1.bf16.msra.mxu0 %v12630_v6  ;;  %862 = vmatpush1.bf16.msra.mxu1 %v12634_v8 }
  0x4c   :  { %822 = vmatprep.subr.bf16.mxu0 %v12641_v10  ;;  %863 = vmatprep.subr.bf16.mxu1 %v12647_v12  ;;  %v14992_v12 = vsub.s32 3, %v12767_v40 }
  0x4d   :  { %852 = vmatprep.mubr.bf16.mxu0 %v14996_v0  ;;  %893 = vmatprep.mubr.bf16.mxu1 %v14996_v0 }
  0x4f   :  { %823 = vmatpush1.bf16.msra.mxu0 %v12645_v11  ;;  %864 = vmatpush1.bf16.msra.mxu1 %v12651_v13 }
  0x50   :  { %824 = vmatprep.subr.bf16.mxu0 %v12654_v14  ;;  %865 = vmatprep.subr.bf16.mxu1 %v12657_v15 }
  0x53   :  { %825 = vmatpush1.bf16.msra.mxu0 %v12661_v16  ;;  %866 = vmatpush1.bf16.msra.mxu1 %v12663_v17 }
  0x54   :  { %826 = vmatprep.subr.bf16.mxu0 %v12667_v18  ;;  %867 = vmatprep.subr.bf16.mxu1 %v10945_v19 }
  0x57   :  { %827 = vmatpush1.bf16.msra.mxu0 %v10940_v20  ;;  %868 = vmatpush1.bf16.msra.mxu1 %v12671_v21 }
  0x58   :  { %828 = vmatprep.subr.bf16.mxu0 %v12673_v22  ;;  %869 = vmatprep.subr.bf16.mxu1 %v12680_v24 }
  0x5b   :  { %829 = vmatpush1.bf16.msra.mxu0 %v12684_v25  ;;  %870 = vmatpush1.bf16.msra.mxu1 %v12689_v26 }
  0x5c   :  { %830 = vmatprep.subr.bf16.mxu0 %v12691_v27  ;;  %871 = vmatprep.subr.bf16.mxu1 %v12694_v28 }
  0x5f   :  { %831 = vmatpush1.bf16.msra.mxu0 %v12698_v29  ;;  %872 = vmatpush1.bf16.msra.mxu1 %v12702_v30 }
  0x60   :  { %832 = vmatprep.subr.bf16.mxu0 %v12704_v31  ;;  %873 = vmatprep.subr.bf16.mxu1 %v12709_v33 }
  0x63   :  { %833 = vmatpush1.bf16.msra.mxu0 %v12707_v32  ;;  %874 = vmatpush1.bf16.msra.mxu1 %v12711_v34 }
  0x64   :  { %834 = vmatprep.subr.bf16.mxu0 %v12713_v35  ;;  %875 = vmatprep.subr.bf16.mxu1 %v12716_v36 }
  0x67   :  { %835 = vmatpush1.bf16.msra.mxu0 %v12721_v37  ;;  %876 = vmatpush1.bf16.msra.mxu1 %v12723_v38 }
  0x68   :  { %1210 = vmatprep.subr.bf16.mxu0 %v12632_v7  ;;  %1251 = vmatprep.subr.bf16.mxu1 %v12637_v9 }
  0xea   :  { %v169_v44 = vpop.f32.mrf.mxu0  ;;  %v222_v45 = vpop.f32.mrf.mxu1 }
  0xeb   :  { %v12799_v5 = vadd.f32 %v169_v44, %v81_v49 }
  0xec   :  { %v171_v47 = vpop.f32.mrf.mxu0  ;;  %v224_v48 = vpop.f32.mrf.mxu1 }
  0xed   :  { %v12802_v7 = vadd.f32 %v171_v47, %v12793_v2 }
  0xee   :  { %v173_v50 = vpop.f32.mrf.mxu0  ;;  %v226_v51 = vpop.f32.mrf.mxu1 }
  0xef   :  { %v12778_v52 = vadd.f32 %v173_v50, %v81_v49  ;;  %v12780_v53 = vadd.f32 %v226_v51, %v89_v46 }
  0xf0   :  { %v12782_v54 = vpop.f32.mrf.mxu0  ;;  %v12784_v55 = vpop.f32.mrf.mxu1 }
  0xf1   :  { %15042 = vst [vmem:[#allocation11_spill] sm:$0xff] %v12778_v52  ;;  %15043 = vst [vmem:[#allocation12_spill] sm:$0xff] %v12780_v53 }
  0xf2   :  { %15044 = vst [vmem:[#allocation13_spill] sm:$0xff] %v12782_v54  ;;  %15045 = vst [vmem:[#allocation14_spill] sm:$0xff] %v12784_v55  ;;  %v179_v56 = vpop.f32.mrf.mxu0  ;;  %v232_v57 = vpop.f32.mrf.mxu1 }
  0xf3   :  { %v12804_v8 = vadd.f32 %v179_v56, %v81_v49 }
  0xf4   :  { %v181_v58 = vpop.f32.mrf.mxu0  ;;  %v234_v59 = vpop.f32.mrf.mxu1 }
  0xf5   :  { %15051 = vst [vmem:[#allocation20_spill] sm:$0xff] %v12804_v8  ;;  %v12809_v13 = vadd.f32 %v181_v58, %v12793_v2 }
  0xf6   :  { %v183_v60 = vpop.f32.mrf.mxu0  ;;  %v236_v61 = vpop.f32.mrf.mxu1 }
  0xf7   :  { %v12786_v62 = vadd.f32 %v183_v60, %v81_v49  ;;  %v12788_v63 = vadd.f32 %v236_v61, %v89_v46  ;;  %v12816_v49 = vrot.slane %v76_v43, %v14992_v12 }
  0xf8   :  { %v12795_v3 = vpop.f32.mrf.mxu1  ;;  %v12797_v4 = vpop.f32.mrf.mxu0 }
  0xf9   :  { %15046 = vst [vmem:[#allocation15_spill] sm:$0xff] %v12786_v62  ;;  %15047 = vst [vmem:[#allocation16_spill] sm:$0xff] %v12788_v63  ;;  %v12819_v58 = vadd.f32 %v234_v59, %v12816_v49  ;;  %v12822_v61 = vadd.f32 %v224_v48, %v12816_v49 }
  0xfa   :  { %15049 = vst [vmem:[#allocation18_spill] sm:$0xff] %v12795_v3  ;;  %15050 = vst [vmem:[#allocation19_spill] sm:$0xff] %v12797_v4 }
  0xfb   :  { %15052 = vst [vmem:[#allocation21_spill] sm:$0xff] %v12816_v49 }
 0x10a   :  { %v467_v6 = vpop.f32.mrf.mxu0  ;;  %v508_v11 = vpop.f32.mrf.mxu1 }
 0x10b   :  { %v519_v9 = vrot.slane %v467_v6, 1  ;;  %v531_v10 = vadd.f32 %v467_v6, %v12799_v5  ;;  %v12824_v6 = vadd.f32 %v232_v57, %v89_v46 }
 0x10c   :  { %v469_v14 = vpop.f32.mrf.mxu0  ;;  %v510_v19 = vpop.f32.mrf.mxu1 }
 0x10d   :  { %v535_v15 = vadd.f32 %v519_v9, %v12804_v8  ;;  %v10057_v16 = vmul.f32 -1.442695, %v531_v10  ;;  %v520_v17 = vrot.slane %v469_v14, 1  ;;  %v532_v18 = vadd.f32 %v469_v14, %v12802_v7 }
 0x10e   :  { %v471_v20 = vpop.f32.mrf.mxu0  ;;  %v512_v47 = vpop.f32.mrf.mxu1  ;;  %v522_v60 = vrot.slane %v510_v19, 1  ;;  %v521_v9 = vrot.slane %v508_v11, 1  ;;  %v12826_v10 = vadd.f32 %v222_v45, %v89_v46  ;;  %v534_v43 = vadd.f32 %v510_v19, %v12822_v61 }
 0x10f   :  { %11361 = vpow2.f32 %v10057_v16  ;;  %v10058_v23 = vmul.f32 -1.442695, %v535_v15  ;;  %v536_v39 = vadd.f32 %v520_v17, %v12809_v13  ;;  %v10059_v44 = vmul.f32 -1.442695, %v532_v18 }
 0x110   :  { %v472_v50 = vpop.f32.mrf.mxu0  ;;  %v513_v56 = vpop.f32.mrf.mxu1  ;;  %v538_v14 = vadd.f32 %v522_v60, %v12819_v58  ;;  %v533_v15 = vadd.f32 %v508_v11, %v12826_v10  ;;  %v537_v16 = vadd.f32 %v521_v9, %v12824_v6  ;;  %v10061_v59 = vmul.f32 -1.442695, %v534_v43 }
 0x111   :  { %11363 = vpow2.f32 %v10058_v23  ;;  %v10060_v51 = vmul.f32 -1.442695, %v536_v39 }
 0x112   :  { %11365 = vpow2.f32 %v10059_v44  ;;  %v10062_v17 = vmul.f32 -1.442695, %v538_v14 }
 0x113   :  { %11367 = vpow2.f32 %v10060_v51 }
 0x114   :  { %11369 = vtanh.f32 %v533_v15 }
 0x115   :  { %11371 = vtanh.f32 %v537_v16 }
 0x116   :  { %11373 = vpow2.f32 %v10061_v59 }
 0x117   :  { %11375 = vpow2.f32 %v10062_v17 }
 0x11c   :  { %v11362_v18 = vpop.eup %11361 }
 0x11d   :  { %v545_v20 = vadd.f32 1.0, %v11362_v18 }
 0x11e   :  { %v11364_v48 = vpop.eup %11363 }
 0x11f   :  { %v11366_v57 = vpop.eup %11365  ;;  %v546_v23 = vadd.f32 1.0, %v11364_v48  ;;  %11377 = vrcp.f32 %v545_v20 }
 0x120   :  { %v11368_v45 = vpop.eup %11367  ;;  %v557_v46 = vadd.f32 1.0, %v11366_v57 }
 0x121   :  { %11379 = vrcp.f32 %v546_v23  ;;  %v558_v19 = vadd.f32 1.0, %v11368_v45  ;;  %v11370_v11 = vpop.eup %11369 }
 0x122   :  { %11381 = vrcp.f32 %v557_v46  ;;  %v11372_v39 = vpop.eup %11371 }
 0x123   :  { %11383 = vrcp.f32 %v558_v19  ;;  %v11374_v44 = vpop.eup %11373  ;;  %v15053_v19 = vmov 0 }
 0x124   :  { %v11376_v47 = vpop.eup %11375  ;;  %v571_v56 = vadd.f32 1.0, %v11374_v44  ;;  %v15054_v19 = vsel %vm12839_vm3, 4294967295, %v15053_v19  ;;  %v595_v44 = vld [vmem:[#allocation2 + $0x10] sm:$0x1] }
 0x125   :  { %v572_v9 = vadd.f32 1.0, %v11376_v47  ;;  %15055 = vst [vmem:[#allocation22_spill] sm:$0xff] %v15054_v19 }
 0x126   :  { %11385 = vrcp.f32 %v571_v56 }
 0x127   :  { %11387 = vrcp.f32 %v572_v9 }
 0x12c   :  { %v11378_v50 = vpop.eup %11377 }
 0x12d   :  { %v579_v15 = vmul.f32 %v11378_v50, %v11370_v11  ;;  %v592_v11 = vld [vmem:[#allocation2] sm:$0x1] }
 0x12e   :  { %v11380_v51 = vpop.eup %11379 }
 0x12f   :  { %v11382_v60 = vpop.eup %11381  ;;  %v580_v59 = vmul.f32 %v11380_v51, %v11372_v39 }
 0x130   :  { %v11384_v43 = vpop.eup %11383  ;;  %v577_v14 = vmul.f32 0.0, %v11382_v60 }
 0x131   :  { %v578_v16 = vmul.f32 0.0, %v11384_v43  ;;  %v15056_v43 = vmov 0 }
 0x132   :  { %v12832_v17 = vadd.f32 %v579_v15, %v577_v14  ;;  %v15057_v43 = vsel %vm12848_vm6, 4294967295, %v15056_v43  ;;  %v617_v14 = vld [vmem:[#allocation2 + $0xc] sm:$0x8] }
 0x133   :  { %v12834_v18 = vadd.f32 %v580_v59, %v578_v16  ;;  %v11386_v20 = vpop.eup %11385  ;;  %15058 = vst [vmem:[#allocation23_spill] sm:$0xff] %v15057_v43  ;;  %v620_v16 = vld [vmem:[#allocation2 + $0x1c] sm:$0x8] }
 0x134   :  { %11389 = vtanh.f32 %v12832_v17  ;;  %v11388_v48 = vpop.eup %11387 }
 0x135   :  { %11391 = vtanh.f32 %v12834_v18 }
 0x141   :  { %v11390_v57 = vpop.eup %11389 }
 0x142   :  { %v11392_v23 = vpop.eup %11391  ;;  %v585_v45 = vmul.f32 %v11390_v57, %v11386_v20 }
 0x143   :  { %v586_v46 = vmul.f32 %v11392_v23, %v11388_v48 }
 0x144   :  { %v587_v39 = vpack.c.bf16 %v585_v45, %v585_v45 }
 0x145   :  { %v588_v47 = vpack.c.bf16 %v586_v46, %v586_v46 }
 0x146   :  { %v593_v50 = vsel %vm12839_vm3, %v587_v39, %v592_v11  ;;  %v605_v51 = vshll.u32 %v587_v39, 16  ;;  %v600_v59 = vunpack.c.l.b16 %v587_v39  ;;  %v12385_v11 = vld [vmem:[#allocation3 + $0xe0] ss:$16 sps:$4 sm:$0xff]   ;;  %v12387_v39 = vld [vmem:[#allocation3 + $0xc4] ss:$16 sps:$4 sm:$0xff]  }
 0x147   :  { %594 = vst [vmem:[#allocation2] sm:$0x1] %v593_v50  ;;  %v596_v56 = vsel %vm12839_vm3, %v588_v47, %v595_v44  ;;  %v601_v60 = vunpack.c.l.b16 %v588_v47  ;;  %v609_v9 = vshll.u32 %v588_v47, 16  ;;  %v12386_v44 = vld [vmem:[#allocation3 + $0xe8] ss:$16 sps:$4 sm:$0xff]  }
 0x148   :  { %597 = vst [vmem:[#allocation2 + $0x10] sm:$0x1] %v596_v56  ;;  %v607_v15 = vrot.slane %v605_v51, 5  ;;  %v12388_v47 = vld [vmem:[#allocation3 + $0xcc] ss:$16 sps:$4 sm:$0xff]  }
 0x149   :  { %v611_v20 = vrot.slane %v609_v9, 5  ;;  %v655_v48 = vrot.slane %v601_v60, 7  ;;  %v12389_v50 = vld [vmem:[#allocation3 + $0xc0] ss:$16 sps:$4 sm:$0xff]   ;;  %v12390_v51 = vld [vmem:[#allocation3 + $0xc8] ss:$16 sps:$4 sm:$0xff]  }
 0x14a   :  { %v618_v57 = vsel %vm12848_vm6, %v607_v15, %v617_v14  ;;  %v12391_v56 = vld [vmem:[#allocation3 + $0xa4] ss:$16 sps:$4 sm:$0xff]   ;;  %v12392_v60 = vld [vmem:[#allocation3 + $0xac] ss:$16 sps:$4 sm:$0xff]   ;;  %v12393_v9 = vld [vmem:[#allocation3 + $0xa0] ss:$16 sps:$4 sm:$0xff]  }
 0x14b   :  { %619 = vst [vmem:[#allocation2 + $0xc] sm:$0x8] %v618_v57  ;;  %v621_v23 = vsel %vm12848_vm6, %v611_v20, %v620_v16  ;;  %v657_v45 = vsel %vm656_vm7, %v655_v48, %v600_v59  ;;  %v12394_v14 = vld [vmem:[#allocation3 + $0xa8] ss:$16 sps:$4 sm:$0xff]   ;;  %v12395_v15 = vld [vmem:[#allocation3 + $0x84] ss:$16 sps:$4 sm:$0xff]  }
 0x14c   :  { %622 = vst [vmem:[#allocation2 + $0x1c] sm:$0x8] %v621_v23  ;;  %v658_v46 = vpack.c.b16 %v657_v45, %v657_v45  ;;  %v12396_v16 = vld [vmem:[#allocation3 + $0x8c] ss:$16 sps:$4 sm:$0xff]   ;;  %v12397_v59 = vld [vmem:[#allocation3 + $0x80] ss:$16 sps:$4 sm:$0xff]  }
 0x14e   :  { %853 = vmatmul.mubr.bf16.vlgmr.msra.gmra.mxu0 %v658_v46  ;;  %894 = vmatmul.mubr.bf16.vlgmr.msra.gmra.mxu1 %v658_v46 }
 0x14f   :  { %1211 = vmatpush1.bf16.msra.mxu0 %v12385_v11  ;;  %1252 = vmatpush1.bf16.msra.mxu1 %v12386_v44 }
 0x150   :  { %1212 = vmatprep.subr.bf16.mxu0 %v12387_v39  ;;  %1253 = vmatprep.subr.bf16.mxu1 %v12388_v47 }
 0x151   :  { %1242 = vmatprep.mubr.bf16.mxu0 %v14996_v0  ;;  %1283 = vmatprep.mubr.bf16.mxu1 %v14996_v0 }
 0x153   :  { %1213 = vmatpush1.bf16.msra.mxu0 %v12389_v50  ;;  %1254 = vmatpush1.bf16.msra.mxu1 %v12390_v51 }
 0x154   :  { %1214 = vmatprep.subr.bf16.mxu0 %v12391_v56  ;;  %1255 = vmatprep.subr.bf16.mxu1 %v12392_v60 }
 0x157   :  { %1215 = vmatpush1.bf16.msra.mxu0 %v12393_v9  ;;  %1256 = vmatpush1.bf16.msra.mxu1 %v12394_v14 }
 0x158   :  { %1216 = vmatprep.subr.bf16.mxu0 %v12395_v15  ;;  %1257 = vmatprep.subr.bf16.mxu1 %v12396_v16 }
 0x15b   :  { %1217 = vmatpush1.bf16.msra.mxu0 %v12397_v59  ;;  %1258 = vmatpush1.bf16.msra.mxu1 %v12671_v21 }
 0x15c   :  { %1218 = vmatprep.subr.bf16.mxu0 %v12673_v22  ;;  %1259 = vmatprep.subr.bf16.mxu1 %v12680_v24 }
 0x15f   :  { %1219 = vmatpush1.bf16.msra.mxu0 %v12684_v25  ;;  %1260 = vmatpush1.bf16.msra.mxu1 %v12689_v26 }
 0x160   :  { %1220 = vmatprep.subr.bf16.mxu0 %v12691_v27  ;;  %1261 = vmatprep.subr.bf16.mxu1 %v12694_v28 }
 0x163   :  { %1221 = vmatpush1.bf16.msra.mxu0 %v12698_v29  ;;  %1262 = vmatpush1.bf16.msra.mxu1 %v12702_v30 }
 0x164   :  { %1222 = vmatprep.subr.bf16.mxu0 %v12704_v31  ;;  %1263 = vmatprep.subr.bf16.mxu1 %v12709_v33 }
 0x167   :  { %1223 = vmatpush1.bf16.msra.mxu0 %v12707_v32  ;;  %1264 = vmatpush1.bf16.msra.mxu1 %v12711_v34 }
 0x168   :  { %1224 = vmatprep.subr.bf16.mxu0 %v12713_v35  ;;  %1265 = vmatprep.subr.bf16.mxu1 %v12716_v36 }
 0x16b   :  { %1225 = vmatpush1.bf16.msra.mxu0 %v12721_v37  ;;  %1266 = vmatpush1.bf16.msra.mxu1 %v12723_v38 }
 0x20e   :  { %v854_v21 = vpop.f32.mrf.mxu0  ;;  %v895_v22 = vpop.f32.mrf.mxu1 }
 0x20f   :  { %v906_v24 = vrot.slane %v854_v21, 7  ;;  %v922_v25 = vadd.f32 %v854_v21, %v12804_v8  ;;  %v924_v45 = vadd.f32 %v895_v22, %v12824_v6  ;;  %v908_v11 = vrot.slane %v895_v22, 7 }
 0x210   :  { %v856_v26 = vpop.f32.mrf.mxu0  ;;  %v897_v27 = vpop.f32.mrf.mxu1 }
 0x211   :  { %v918_v28 = vadd.f32 %v906_v24, %v12799_v5  ;;  %v10098_v29 = vmul.f32 -1.442695, %v922_v25  ;;  %v907_v30 = vrot.slane %v856_v26, 7  ;;  %v923_v31 = vadd.f32 %v856_v26, %v12809_v13 }
 0x212   :  { %v858_v32 = vpop.f32.mrf.mxu0  ;;  %v899_v33 = vpop.f32.mrf.mxu1  ;;  %v909_v48 = vrot.slane %v897_v27, 7  ;;  %v925_v57 = vadd.f32 %v897_v27, %v12819_v58  ;;  %v920_v60 = vadd.f32 %v908_v11, %v12826_v10  ;;  %v967_v25 = vrot.slane %v12834_v18, 7 }
 0x213   :  { %v10097_v34 = vmul.f32 -1.442695, %v918_v28  ;;  %11393 = vpow2.f32 %v10098_v29  ;;  %v919_v35 = vadd.f32 %v907_v30, %v12802_v7  ;;  %v10100_v36 = vmul.f32 -1.442695, %v923_v31 }
 0x214   :  { %v859_v37 = vpop.f32.mrf.mxu0  ;;  %v900_v38 = vpop.f32.mrf.mxu1  ;;  %v921_v23 = vadd.f32 %v909_v48, %v12822_v61  ;;  %v10102_v46 = vmul.f32 -1.442695, %v925_v57  ;;  %v966_v29 = vrot.slane %v12832_v17, 7  ;;  %v15059_v57 = vmov 0 }
 0x215   :  { %11395 = vpow2.f32 %v10097_v34  ;;  %v10099_v20 = vmul.f32 -1.442695, %v919_v35  ;;  %v15060_v57 = vsel %vm12893_vm9, 4294967295, %v15059_v57 }
 0x216   :  { %11397 = vpow2.f32 %v10100_v36  ;;  %v10101_v44 = vmul.f32 -1.442695, %v921_v23  ;;  %15061 = vst [vmem:[#allocation24_spill] sm:$0xff] %v15060_v57 }
 0x217   :  { %11399 = vpow2.f32 %v10099_v20 }
 0x218   :  { %11401 = vtanh.f32 %v924_v45 }
 0x219   :  { %11403 = vpow2.f32 %v10102_v46  ;;  %v987_v46 = vld [vmem:[#allocation2 + $0x10] sm:$0x1] }
 0x21a   :  { %11405 = vpow2.f32 %v10101_v44 }
 0x220   :  { %v11394_v39 = vpop.eup %11393 }
 0x221   :  { %v933_v47 = vadd.f32 1.0, %v11394_v39 }
 0x222   :  { %v11396_v50 = vpop.eup %11395 }
 0x223   :  { %v11398_v51 = vpop.eup %11397  ;;  %v932_v56 = vadd.f32 1.0, %v11396_v50  ;;  %11407 = vrcp.f32 %v933_v47  ;;  %v984_v47 = vld [vmem:[#allocation2] sm:$0x1]  ;;  %v15062_v50 = vmov 0 }
 0x224   :  { %v945_v9 = vadd.f32 1.0, %v11398_v51  ;;  %v11400_v14 = vpop.eup %11399  ;;  %v15063_v50 = vsel %vm12900_vm11, 4294967295, %v15062_v50 }
 0x225   :  { %11409 = vrcp.f32 %v932_v56  ;;  %v944_v15 = vadd.f32 1.0, %v11400_v14  ;;  %v11402_v16 = vpop.eup %11401  ;;  %15064 = vst [vmem:[#allocation25_spill] sm:$0xff] %v15063_v50  ;;  %v1011_v14 = vld [vmem:[#allocation2 + $0x1c] sm:$0x8] }
 0x226   :  { %11411 = vrcp.f32 %v945_v9  ;;  %v11404_v59 = vpop.eup %11403 }
 0x227   :  { %11413 = vtanh.f32 %v920_v60  ;;  %v11406_v21 = vpop.eup %11405  ;;  %v959_v27 = vadd.f32 1.0, %v11404_v59 }
 0x228   :  { %11415 = vrcp.f32 %v944_v15  ;;  %v958_v33 = vadd.f32 1.0, %v11406_v21 }
 0x229   :  { %11417 = vrcp.f32 %v959_v27  ;;  %v12913_v27 = vld [vmem:[#allocation3 + $0xe4] ss:$16 sps:$4 sm:$0xff]  }
 0x22a   :  { %1607 = vmatprep.subr.bf16.mxu0 %v12913_v27 }
 0x230   :  { %v11408_v22 = vpop.eup %11407 }
 0x231   :  { %v973_v30 = vmul.f32 %v11408_v22, %v11402_v16  ;;  %v1008_v22 = vld [vmem:[#allocation2 + $0xc] sm:$0x8] }
 0x232   :  { %v11410_v24 = vpop.eup %11409 }
 0x233   :  { %v11412_v26 = vpop.eup %11411 }
 0x234   :  { %v11414_v28 = vpop.eup %11413  ;;  %v971_v31 = vmul.f32 %v11412_v26, %v967_v25 }
 0x235   :  { %v11416_v32 = vpop.eup %11415  ;;  %v972_v34 = vmul.f32 %v11414_v28, %v11410_v24  ;;  %v12915_v28 = vld [vmem:[#allocation3 + $0xec] ss:$16 sps:$4 sm:$0xff]  }
 0x236   :  { %v970_v35 = vmul.f32 %v11416_v32, %v966_v29  ;;  %v12886_v36 = vadd.f32 %v973_v30, %v971_v31  ;;  %v11418_v18 = vpop.eup %11417  ;;  %v12917_v29 = vld [vmem:[#allocation3 + $0xe0] ss:$16 sps:$4 sm:$0xff]   ;;  %v12919_v30 = vld [vmem:[#allocation3 + $0xe8] ss:$16 sps:$4 sm:$0xff]   ;;  %1648 = vmatprep.subr.bf16.mxu1 %v12915_v28  ;;  %v12925_v31 = vld [vmem:[#allocation3 + $0xc4] ss:$16 sps:$4 sm:$0xff]  }
 0x237   :  { %v12927_v32 = vld [vmem:[#allocation3 + $0xcc] ss:$16 sps:$4 sm:$0xff]  }
 0x238   :  { %v12888_v37 = vadd.f32 %v972_v34, %v970_v35  ;;  %11419 = vtanh.f32 %v12886_v36  ;;  %v12931_v34 = vld [vmem:[#allocation3 + $0xc8] ss:$16 sps:$4 sm:$0xff]   ;;  %v12937_v35 = vld [vmem:[#allocation3 + $0xa0] ss:$16 sps:$4 sm:$0xff]  }
 0x239   :  { %11421 = vrcp.f32 %v958_v33  ;;  %v12929_v33 = vld [vmem:[#allocation3 + $0xc0] ss:$16 sps:$4 sm:$0xff]  }
 0x23a   :  { %11423 = vtanh.f32 %v12888_v37 }
 0x245   :  { %v11420_v38 = vpop.eup %11419 }
 0x246   :  { %v11422_v17 = vpop.eup %11421  ;;  %v979_v20 = vmul.f32 %v11420_v38, %v11418_v18  ;;  %v12939_v18 = vld [vmem:[#allocation3 + $0xa4] ss:$16 sps:$4 sm:$0xff]   ;;  %v12941_v38 = vld [vmem:[#allocation3 + $0xa8] ss:$16 sps:$4 sm:$0xff]  }
 0x247   :  { %v11424_v48 = vpop.eup %11423 }
 0x248   :  { %v978_v23 = vmul.f32 %v11424_v48, %v11422_v17  ;;  %v981_v45 = vpack.c.bf16 %v979_v20, %v979_v20  ;;  %v12943_v17 = vld [vmem:[#allocation3 + $0xac] ss:$16 sps:$4 sm:$0xff]   ;;  %v12945_v20 = vld [vmem:[#allocation3 + $0x84] ss:$16 sps:$4 sm:$0xff]  }
 0x249   :  { %v12948_v48 = vld [vmem:[#allocation3 + $0x8c] ss:$16 sps:$4 sm:$0xff]  }
 0x24a   :  { %v980_v11 = vpack.c.bf16 %v978_v23, %v978_v23  ;;  %v988_v44 = vsel %vm12893_vm9, %v981_v45, %v987_v46  ;;  %v1001_v39 = vshrl.u32 %v981_v45, 16  ;;  %v993_v15 = vunpack.c.l.b16 %v981_v45  ;;  %v12953_v23 = vld [vmem:[#allocation3 + $0x80] ss:$16 sps:$4 sm:$0xff]   ;;  %v12955_v45 = vld [vmem:[#allocation3 + $0x88] ss:$16 sps:$4 sm:$0xff]  }
 0x24b   :  { %989 = vst [vmem:[#allocation2 + $0x10] sm:$0x1] %v988_v44  ;;  %v12959_v46 = vld [vmem:[#allocation3 + $0x64] ss:$16 sps:$4 sm:$0xff]   ;;  %v12965_v44 = vld [vmem:[#allocation3 + $0x60] ss:$16 sps:$4 sm:$0xff]  }
 0x24c   :  { %v985_v51 = vsel %vm12893_vm9, %v980_v11, %v984_v47  ;;  %v992_v56 = vunpack.c.l.b16 %v980_v11  ;;  %v997_v60 = vshrl.u32 %v980_v11, 16  ;;  %v1003_v9 = vrot.slane %v1001_v39, 5  ;;  %v12961_v11 = vld [vmem:[#allocation3 + $0x6c] ss:$16 sps:$4 sm:$0xff]   ;;  %v12967_v39 = vld [vmem:[#allocation3 + $0x68] ss:$16 sps:$4 sm:$0xff]  }
 0x24d   :  { %986 = vst [vmem:[#allocation2] sm:$0x1] %v985_v51  ;;  %v12971_v47 = vld [vmem:[#allocation3 + $0x44] ss:$16 sps:$4 sm:$0xff]   ;;  %v12973_v51 = vld [vmem:[#allocation3 + $0x4c] ss:$16 sps:$4 sm:$0xff]  }
 0x24e   :  { %v999_v16 = vrot.slane %v997_v60, 5  ;;  %v1012_v59 = vsel %vm12900_vm11, %v1003_v9, %v1011_v14  ;;  %v1046_v21 = vrot.slane %v992_v56, 1  ;;  %v12977_v56 = vld [vmem:[#allocation3 + $0x40] ss:$16 sps:$4 sm:$0xff]   ;;  %v12979_v60 = vld [vmem:[#allocation3 + $0x48] ss:$16 sps:$4 sm:$0xff]  }
 0x24f   :  { %1013 = vst [vmem:[#allocation2 + $0x1c] sm:$0x8] %v1012_v59  ;;  %v12983_v9 = vld [vmem:[#allocation3 + $0x24] ss:$16 sps:$4 sm:$0xff]   ;;  %v12985_v14 = vld [vmem:[#allocation3 + $0x2c] ss:$16 sps:$4 sm:$0xff]  }
 0x250   :  { %v1009_v24 = vsel %vm12900_vm11, %v999_v16, %v1008_v22  ;;  %v1047_v25 = vsel %vm656_vm7, %v993_v15, %v1046_v21  ;;  %v12989_v15 = vld [vmem:[#allocation3 + $0x20] ss:$16 sps:$4 sm:$0xff]   ;;  %v12991_v16 = vld [vmem:[#allocation3 + $0x28] ss:$16 sps:$4 sm:$0xff]   ;;  %v12995_v59 = vld [vmem:[#allocation3 + $0x4] ss:$16 sps:$4 sm:$0xff]  }
 0x251   :  { %1010 = vst [vmem:[#allocation2 + $0xc] sm:$0x8] %v1009_v24  ;;  %v1048_v26 = vpack.c.b16 %v1047_v25, %v1047_v25  ;;  %v12997_v21 = vld [vmem:[#allocation3 + $0xc] ss:$16 sps:$4 sm:$0xff]   ;;  %v13001_v22 = vld [vmem:[#allocation3] ss:$16 sps:$4 sm:$0xff]  }
 0x252   :  { %v13003_v24 = vld [vmem:[#allocation3 + $0x8] ss:$16 sps:$4 sm:$0xff]  }
 0x253   :  { %1243 = vmatmul.mubr.bf16.vlgmr.msra.gmra.mxu0 %v1048_v26  ;;  %1284 = vmatmul.mubr.bf16.vlgmr.msra.gmra.mxu1 %v1048_v26 }
 0x254   :  { %1639 = vmatprep.mubr.bf16.mxu0 %v14996_v0  ;;  %1680 = vmatprep.mubr.bf16.mxu1 %v14996_v0 }
 0x255   :  { %1608 = vmatpush1.bf16.msra.mxu0 %v12917_v29  ;;  %1649 = vmatpush1.bf16.msra.mxu1 %v12919_v30 }
 0x256   :  { %1609 = vmatprep.subr.bf16.mxu0 %v12925_v31  ;;  %1650 = vmatprep.subr.bf16.mxu1 %v12927_v32 }
 0x259   :  { %1610 = vmatpush1.bf16.msra.mxu0 %v12929_v33  ;;  %1651 = vmatpush1.bf16.msra.mxu1 %v12931_v34 }
 0x25a   :  { %1611 = vmatprep.subr.bf16.mxu0 %v12939_v18  ;;  %1652 = vmatprep.subr.bf16.mxu1 %v12943_v17 }
 0x25d   :  { %1612 = vmatpush1.bf16.msra.mxu0 %v12937_v35  ;;  %1653 = vmatpush1.bf16.msra.mxu1 %v12941_v38 }
 0x25e   :  { %1613 = vmatprep.subr.bf16.mxu0 %v12945_v20  ;;  %1654 = vmatprep.subr.bf16.mxu1 %v12948_v48 }
 0x261   :  { %1614 = vmatpush1.bf16.msra.mxu0 %v12953_v23  ;;  %1655 = vmatpush1.bf16.msra.mxu1 %v12955_v45 }
 0x262   :  { %1615 = vmatprep.subr.bf16.mxu0 %v12959_v46  ;;  %1656 = vmatprep.subr.bf16.mxu1 %v12961_v11 }
 0x265   :  { %1616 = vmatpush1.bf16.msra.mxu0 %v12965_v44  ;;  %1657 = vmatpush1.bf16.msra.mxu1 %v12967_v39 }
 0x266   :  { %1617 = vmatprep.subr.bf16.mxu0 %v12971_v47  ;;  %1658 = vmatprep.subr.bf16.mxu1 %v12973_v51 }
 0x269   :  { %1618 = vmatpush1.bf16.msra.mxu0 %v12977_v56  ;;  %1659 = vmatpush1.bf16.msra.mxu1 %v12979_v60 }
 0x26a   :  { %1619 = vmatprep.subr.bf16.mxu0 %v12983_v9  ;;  %1660 = vmatprep.subr.bf16.mxu1 %v12985_v14 }
 0x26d   :  { %1620 = vmatpush1.bf16.msra.mxu0 %v12989_v15  ;;  %1661 = vmatpush1.bf16.msra.mxu1 %v12991_v16 }
 0x26e   :  { %1621 = vmatprep.subr.bf16.mxu0 %v12995_v59  ;;  %1662 = vmatprep.subr.bf16.mxu1 %v12997_v21 }
 0x271   :  { %1622 = vmatpush1.bf16.msra.mxu0 %v13001_v22  ;;  %1663 = vmatpush1.bf16.msra.mxu1 %v13003_v24 }
 0x272   :  { %2002 = vmatprep.subr.bf16.mxu0 %v12913_v27  ;;  %2043 = vmatprep.subr.bf16.mxu1 %v12915_v28 }
 0x313   :  { %v1244_v25 = vpop.f32.mrf.mxu0  ;;  %v1285_v26 = vpop.f32.mrf.mxu1 }
 0x314   :  { %v1296_v12 = vrot.slane %v1244_v25, 6  ;;  %v1300_v1 = vrot.slane %v1244_v25, 7  ;;  %v1298_v43 = vrot.slane %v1285_v26, 6 }
 0x315   :  { %v1246_v41 = vpop.f32.mrf.mxu0  ;;  %v1287_v42 = vpop.f32.mrf.mxu1 }
 0x316   :  { %v1312_v0 = vadd.f32 %v1296_v12, %v12799_v5  ;;  %v1316_v40 = vadd.f32 %v1300_v1, %v12804_v8  ;;  %v1297_v63 = vrot.slane %v1246_v41, 6  ;;  %v1301_v53 = vrot.slane %v1246_v41, 7 }
 0x317   :  { %v1248_v3 = vpop.f32.mrf.mxu0  ;;  %v1289_v55 = vpop.f32.mrf.mxu1  ;;  %v1299_v12 = vrot.slane %v1287_v42, 6  ;;  %v1303_v1 = vrot.slane %v1287_v42, 7  ;;  %v1302_v41 = vrot.slane %v1285_v26, 7 }
 0x318   :  { %v10137_v49 = vmul.f32 -1.442695, %v1312_v0  ;;  %v10138_v4 = vmul.f32 -1.442695, %v1316_v40  ;;  %v1313_v62 = vadd.f32 %v1297_v63, %v12802_v7  ;;  %v1317_v54 = vadd.f32 %v1301_v53, %v12809_v13 }
 0x319   :  { %v1249_v2 = vpop.f32.mrf.mxu0  ;;  %v1290_v52 = vpop.f32.mrf.mxu1  ;;  %v1315_v55 = vadd.f32 %v1299_v12, %v12822_v61  ;;  %v1319_v0 = vadd.f32 %v1303_v1, %v12819_v58  ;;  %v1314_v40 = vadd.f32 %v1298_v43, %v12826_v10  ;;  %v1318_v53 = vadd.f32 %v1302_v41, %v12824_v6 }
 0x31a   :  { %11425 = vpow2.f32 %v10137_v49  ;;  %v10139_v25 = vmul.f32 -1.442695, %v1313_v62  ;;  %v10140_v19 = vmul.f32 -1.442695, %v1317_v54 }
 0x31b   :  { %11427 = vpow2.f32 %v10138_v4  ;;  %v10141_v63 = vmul.f32 -1.442695, %v1315_v55  ;;  %v10142_v52 = vmul.f32 -1.442695, %v1319_v0  ;;  %v1360_v55 = vrot.slane %v12888_v37, 7 }
 0x31c   :  { %11429 = vpow2.f32 %v10139_v25 }
 0x31d   :  { %11431 = vpow2.f32 %v10140_v19 }
 0x31e   :  { %11433 = vtanh.f32 %v1314_v40 }
 0x31f   :  { %11435 = vtanh.f32 %v1318_v53  ;;  %v1361_v53 = vrot.slane %v12886_v36, 7 }
 0x320   :  { %11437 = vpow2.f32 %v10141_v63 }
 0x321   :  { %11439 = vpow2.f32 %v10142_v52 }
 0x327   :  { %v11426_v2 = vpop.eup %11425 }
 0x328   :  { %v11428_v62 = vpop.eup %11427  ;;  %v1326_v54 = vadd.f32 1.0, %v11426_v2 }
 0x329   :  { %v1327_v3 = vadd.f32 1.0, %v11428_v62  ;;  %v11430_v42 = vpop.eup %11429 }
 0x32a   :  { %v11432_v4 = vpop.eup %11431  ;;  %11441 = vrcp.f32 %v1326_v54  ;;  %v1338_v49 = vadd.f32 1.0, %v11430_v42 }
 0x32b   :  { %11443 = vrcp.f32 %v1327_v3  ;;  %v1339_v19 = vadd.f32 1.0, %v11432_v4  ;;  %v11434_v43 = vpop.eup %11433 }
 0x32c   :  { %11445 = vrcp.f32 %v1338_v49  ;;  %v11436_v26 = vpop.eup %11435 }
 0x32d   :  { %11447 = vrcp.f32 %v1339_v19  ;;  %v11438_v25 = vpop.eup %11437 }
 0x32e   :  { %v11440_v12 = vpop.eup %11439  ;;  %v1352_v0 = vadd.f32 1.0, %v11438_v25 }
 0x32f   :  { %v1353_v63 = vadd.f32 1.0, %v11440_v12  ;;  %v1379_v12 = vld [vmem:[#allocation2] sm:$0x2] }
 0x330   :  { %11449 = vrcp.f32 %v1352_v0 }
 0x331   :  { %11451 = vrcp.f32 %v1353_v63 }
 0x337   :  { %v11442_v1 = vpop.eup %11441 }
 0x338   :  { %v11444_v41 = vpop.eup %11443  ;;  %v1366_v2 = vmul.f32 %v11442_v1, %v11434_v43 }
 0x339   :  { %v11446_v40 = vpop.eup %11445  ;;  %v1367_v54 = vmul.f32 %v11444_v41, %v11436_v26  ;;  %v15065_v26 = vmov 0  ;;  %v1382_v41 = vld [vmem:[#allocation2 + $0x10] sm:$0x2] }
 0x33a   :  { %v11448_v52 = vpop.eup %11447  ;;  %v1364_v62 = vmul.f32 %v11446_v40, %v1360_v55  ;;  %v15066_v26 = vsel %vm13028_vm13, 4294967295, %v15065_v26 }
 0x33b   :  { %v1365_v3 = vmul.f32 %v11448_v52, %v1361_v53  ;;  %15067 = vst [vmem:[#allocation26_spill] sm:$0xff] %v15066_v26 }
 0x33c   :  { %v13021_v42 = vadd.f32 %v1366_v2, %v1364_v62  ;;  %v15068_v62 = vmov 0 }
 0x33d   :  { %v13023_v4 = vadd.f32 %v1367_v54, %v1365_v3  ;;  %v11450_v37 = vpop.eup %11449  ;;  %v15069_v62 = vsel %vm13037_vm0, 4294967295, %v15068_v62  ;;  %v1404_v54 = vld [vmem:[#allocation2 + $0xc] sm:$0x4] }
 0x33e   :  { %11453 = vtanh.f32 %v13021_v42  ;;  %v11452_v49 = vpop.eup %11451  ;;  %15070 = vst [vmem:[#allocation27_spill] sm:$0xff] %v15069_v62  ;;  %v15089_v62 = vld [vmem:[#allocation14_spill] sm:$0xff] }
 0x33f   :  { %11455 = vtanh.f32 %v13023_v4 }
 0x34b   :  { %v11454_v36 = vpop.eup %11453 }
 0x34c   :  { %v11456_v19 = vpop.eup %11455  ;;  %v1372_v25 = vmul.f32 %v11454_v36, %v11450_v37  ;;  %v1407_v37 = vld [vmem:[#allocation2 + $0x1c] sm:$0x4] }
 0x34d   :  { %v1373_v43 = vmul.f32 %v11456_v19, %v11452_v49 }
 0x34e   :  { %v1374_v1 = vpack.c.bf16 %v1372_v25, %v1372_v25 }
 0x34f   :  { %v1375_v55 = vpack.c.bf16 %v1373_v43, %v1373_v43 }
 0x350   :  { %v1380_v0 = vsel %vm13028_vm13, %v1374_v1, %v1379_v12  ;;  %v1387_v40 = vunpack.c.l.b16 %v1374_v1  ;;  %v1392_v53 = vshll.u32 %v1374_v1, 16 }
 0x351   :  { %1381 = vst [vmem:[#allocation2] sm:$0x2] %v1380_v0  ;;  %v1383_v63 = vsel %vm13028_vm13, %v1375_v55, %v1382_v41  ;;  %v1388_v52 = vunpack.c.l.b16 %v1375_v55  ;;  %v1396_v2 = vshll.u32 %v1375_v55, 16  ;;  %v15071_v41 = vmov 0  }
 0x352   :  { %1384 = vst [vmem:[#allocation2 + $0x10] sm:$0x2] %v1383_v63  ;;  %v1394_v3 = vrot.slane %v1392_v53, 7  ;;  %v1442_v49 = vrot.slane %v1387_v40, 2 }
 0x353   :  { %v1398_v36 = vrot.slane %v1396_v2, 7  ;;  %v1443_v19 = vrot.slane %v1388_v52, 1 }
 0x354   :  { %v1405_v25 = vsel %vm13037_vm0, %v1394_v3, %v1404_v54 }
 0x355   :  { %1406 = vst [vmem:[#allocation2 + $0xc] sm:$0x4] %v1405_v25  ;;  %v1408_v43 = vsel %vm13037_vm0, %v1398_v36, %v1407_v37  ;;  %v1444_v12 = vsel %vm656_vm7, %v1443_v19, %v1442_v49 }
 0x356   :  { %1409 = vst [vmem:[#allocation2 + $0x1c] sm:$0x4] %v1408_v43  ;;  %v1445_v1 = vpack.c.b16 %v1444_v12, %v1444_v12 }
 0x358   :  { %1640 = vmatmul.mubr.bf16.vlgmr.msra.gmra.mxu0 %v1445_v1  ;;  %1681 = vmatmul.mubr.bf16.vlgmr.msra.gmra.mxu1 %v1445_v1 }
 0x359   :  { %2003 = vmatpush1.bf16.msra.mxu0 %v12917_v29  ;;  %2044 = vmatpush1.bf16.msra.mxu1 %v12919_v30 }
 0x35a   :  { %2004 = vmatprep.subr.bf16.mxu0 %v12925_v31  ;;  %2045 = vmatprep.subr.bf16.mxu1 %v12927_v32 }
 0x35b   :  { %2034 = vmatprep.mubr.bf16.mxu0 %v15071_v41  ;;  %2075 = vmatprep.mubr.bf16.mxu1 %v15071_v41 }
 0x35d   :  { %2005 = vmatpush1.bf16.msra.mxu0 %v12929_v33  ;;  %2046 = vmatpush1.bf16.msra.mxu1 %v12931_v34 }
 0x35e   :  { %2006 = vmatprep.subr.bf16.mxu0 %v12939_v18  ;;  %2047 = vmatprep.subr.bf16.mxu1 %v12943_v17 }
 0x361   :  { %2007 = vmatpush1.bf16.msra.mxu0 %v12937_v35  ;;  %2048 = vmatpush1.bf16.msra.mxu1 %v12941_v38 }
 0x362   :  { %2008 = vmatprep.subr.bf16.mxu0 %v12945_v20  ;;  %2049 = vmatprep.subr.bf16.mxu1 %v12948_v48 }
 0x365   :  { %2009 = vmatpush1.bf16.msra.mxu0 %v12953_v23  ;;  %2050 = vmatpush1.bf16.msra.mxu1 %v12955_v45 }
 0x366   :  { %2010 = vmatprep.subr.bf16.mxu0 %v12959_v46  ;;  %2051 = vmatprep.subr.bf16.mxu1 %v12961_v11 }
 0x369   :  { %2011 = vmatpush1.bf16.msra.mxu0 %v12965_v44  ;;  %2052 = vmatpush1.bf16.msra.mxu1 %v12967_v39 }
 0x36a   :  { %2012 = vmatprep.subr.bf16.mxu0 %v12971_v47  ;;  %2053 = vmatprep.subr.bf16.mxu1 %v12973_v51 }
 0x36d   :  { %2013 = vmatpush1.bf16.msra.mxu0 %v12977_v56  ;;  %2054 = vmatpush1.bf16.msra.mxu1 %v12979_v60 }
 0x36e   :  { %2014 = vmatprep.subr.bf16.mxu0 %v12983_v9  ;;  %2055 = vmatprep.subr.bf16.mxu1 %v12985_v14 }
 0x371   :  { %2015 = vmatpush1.bf16.msra.mxu0 %v12989_v15  ;;  %2056 = vmatpush1.bf16.msra.mxu1 %v12991_v16 }
 0x372   :  { %2016 = vmatprep.subr.bf16.mxu0 %v12995_v59  ;;  %2057 = vmatprep.subr.bf16.mxu1 %v12997_v21 }
 0x375   :  { %2017 = vmatpush1.bf16.msra.mxu0 %v13001_v22  ;;  %2058 = vmatpush1.bf16.msra.mxu1 %v13003_v24 }
 0x376   :  { %2395 = vmatprep.subr.bf16.mxu0 %v12913_v27  ;;  %2436 = vmatprep.subr.bf16.mxu1 %v12915_v28 }
 0x418   :  { %v1641_v55 = vpop.f32.mrf.mxu0  ;;  %v1682_v0 = vpop.f32.mrf.mxu1 }
 0x419   :  { %v1693_v40 = vrot.slane %v1641_v55, 5  ;;  %v1697_v53 = vrot.slane %v1641_v55, 6  ;;  %v1695_v57 = vrot.slane %v1682_v0, 5 }
 0x41a   :  { %v1643_v63 = vpop.f32.mrf.mxu0  ;;  %v1684_v52 = vpop.f32.mrf.mxu1 }
 0x41b   :  { %v1709_v2 = vadd.f32 %v1693_v40, %v12799_v5  ;;  %v1713_v54 = vadd.f32 %v1697_v53, %v12804_v8  ;;  %v1694_v3 = vrot.slane %v1643_v63, 5  ;;  %v1698_v37 = vrot.slane %v1643_v63, 6 }
 0x41c   :  { %v1645_v49 = vpop.f32.mrf.mxu0  ;;  %v1686_v36 = vpop.f32.mrf.mxu1  ;;  %v1696_v40 = vrot.slane %v1684_v52, 5  ;;  %v1700_v53 = vrot.slane %v1684_v52, 6  ;;  %v1699_v63 = vrot.slane %v1682_v0, 6 }
 0x41d   :  { %v10177_v19 = vmul.f32 -1.442695, %v1709_v2  ;;  %v10178_v25 = vmul.f32 -1.442695, %v1713_v54  ;;  %v1710_v27 = vadd.f32 %v1694_v3, %v12802_v7  ;;  %v1714_v28 = vadd.f32 %v1698_v37, %v12809_v13 }
 0x41e   :  { %v1646_v43 = vpop.f32.mrf.mxu0  ;;  %v1687_v12 = vpop.f32.mrf.mxu1  ;;  %v1712_v49 = vadd.f32 %v1696_v40, %v12822_v61  ;;  %v1716_v2 = vadd.f32 %v1700_v53, %v12819_v58  ;;  %v1711_v54 = vadd.f32 %v1695_v57, %v12826_v10  ;;  %v1715_v3 = vadd.f32 %v1699_v63, %v12824_v6 }
 0x41f   :  { %11457 = vpow2.f32 %v10177_v19  ;;  %v10179_v1 = vmul.f32 -1.442695, %v1710_v27  ;;  %v10180_v55 = vmul.f32 -1.442695, %v1714_v28 }
 0x420   :  { %11459 = vpow2.f32 %v10178_v25  ;;  %v10181_v37 = vmul.f32 -1.442695, %v1712_v49  ;;  %v10182_v36 = vmul.f32 -1.442695, %v1716_v2  ;;  %v1757_v49 = vrot.slane %v13021_v42, 7 }
 0x421   :  { %11461 = vpow2.f32 %v10179_v1 }
 0x422   :  { %11463 = vpow2.f32 %v10180_v55 }
 0x423   :  { %11465 = vtanh.f32 %v1711_v54 }
 0x424   :  { %11467 = vtanh.f32 %v1715_v3  ;;  %v1758_v3 = vrot.slane %v13023_v4, 7 }
 0x425   :  { %11469 = vpow2.f32 %v10181_v37 }
 0x426   :  { %11471 = vpow2.f32 %v10182_v36 }
 0x42c   :  { %v11458_v19 = vpop.eup %11457 }
 0x42d   :  { %v11460_v25 = vpop.eup %11459  ;;  %v1723_v27 = vadd.f32 1.0, %v11458_v19 }
 0x42e   :  { %v1724_v28 = vadd.f32 1.0, %v11460_v25  ;;  %v11462_v52 = vpop.eup %11461 }
 0x42f   :  { %v11464_v0 = vpop.eup %11463  ;;  %11473 = vrcp.f32 %v1723_v27  ;;  %v1735_v43 = vadd.f32 1.0, %v11462_v52 }
 0x430   :  { %11475 = vrcp.f32 %v1724_v28  ;;  %v1736_v12 = vadd.f32 1.0, %v11464_v0  ;;  %v11466_v57 = vpop.eup %11465 }
 0x431   :  { %11477 = vrcp.f32 %v1735_v43  ;;  %v11468_v1 = vpop.eup %11467 }
 0x432   :  { %11479 = vrcp.f32 %v1736_v12  ;;  %v11470_v55 = vpop.eup %11469 }
 0x433   :  { %v11472_v40 = vpop.eup %11471  ;;  %v1749_v2 = vadd.f32 1.0, %v11470_v55 }
 0x434   :  { %v1750_v37 = vadd.f32 1.0, %v11472_v40 }
 0x435   :  { %11481 = vrcp.f32 %v1749_v2  ;;  %v1778_v2 = vld [vmem:[#allocation2 + $0x10] sm:$0x2] }
 0x436   :  { %11483 = vrcp.f32 %v1750_v37 }
 0x43c   :  { %v11474_v53 = vpop.eup %11473 }
 0x43d   :  { %v11476_v63 = vpop.eup %11475  ;;  %v1763_v19 = vmul.f32 %v11474_v53, %v11466_v57 }
 0x43e   :  { %v11478_v54 = vpop.eup %11477  ;;  %v1764_v27 = vmul.f32 %v11476_v63, %v11468_v1  ;;  %v15072_v1 = vmov 0  ;;  %v1775_v63 = vld [vmem:[#allocation2] sm:$0x2] }
 0x43f   :  { %v11480_v36 = vpop.eup %11479  ;;  %v1761_v25 = vmul.f32 %v11478_v54, %v1757_v49  ;;  %v15073_v1 = vsel %vm13097_vm2, 4294967295, %v15072_v1 }
 0x440   :  { %v1762_v28 = vmul.f32 %v11480_v36, %v1758_v3  ;;  %15074 = vst [vmem:[#allocation28_spill] sm:$0xff] %v15073_v1 }
 0x441   :  { %v13090_v52 = vadd.f32 %v1763_v19, %v1761_v25  ;;  %v15075_v25 = vmov 0 }
 0x442   :  { %v13092_v0 = vadd.f32 %v1764_v27, %v1762_v28  ;;  %v11482_v42 = vpop.eup %11481  ;;  %v15076_v25 = vsel %vm13106_vm5, 4294967295, %v15075_v25 }
 0x443   :  { %11485 = vtanh.f32 %v13090_v52  ;;  %v11484_v43 = vpop.eup %11483  ;;  %15077 = vst [vmem:[#allocation29_spill] sm:$0xff] %v15076_v25 }
 0x444   :  { %11487 = vtanh.f32 %v13092_v0 }
 0x450   :  { %v11486_v4 = vpop.eup %11485 }
 0x451   :  { %v11488_v12 = vpop.eup %11487  ;;  %v1769_v55 = vmul.f32 %v11486_v4, %v11482_v42 }
 0x452   :  { %v1770_v57 = vmul.f32 %v11488_v12, %v11484_v43  ;;  %v1799_v43 = vld [vmem:[#allocation2 + $0xc] sm:$0x4] }
 0x453   :  { %v1771_v40 = vpack.c.bf16 %v1769_v55, %v1769_v55  ;;  %v1802_v55 = vld [vmem:[#allocation2 + $0x1c] sm:$0x4] }
 0x454   :  { %v1772_v53 = vpack.c.bf16 %v1770_v57, %v1770_v57 }
 0x455   :  { %v1776_v49 = vsel %vm13097_vm2, %v1771_v40, %v1775_v63  ;;  %v1783_v54 = vunpack.c.l.b16 %v1771_v40  ;;  %v1788_v3 = vshrl.u32 %v1771_v40, 16 }
 0x456   :  { %1777 = vst [vmem:[#allocation2] sm:$0x2] %v1776_v49  ;;  %v1779_v37 = vsel %vm13097_vm2, %v1772_v53, %v1778_v2  ;;  %v1784_v36 = vunpack.c.l.b16 %v1772_v53  ;;  %v1792_v19 = vshrl.u32 %v1772_v53, 16 }
 0x457   :  { %1780 = vst [vmem:[#allocation2 + $0x10] sm:$0x2] %v1779_v37  ;;  %v1790_v27 = vrot.slane %v1788_v3, 7  ;;  %v1837_v28 = vrot.slane %v1783_v54, 3 }
 0x458   :  { %v1794_v42 = vrot.slane %v1792_v19, 7  ;;  %v1838_v4 = vrot.slane %v1784_v36, 2 }
 0x459   :  { %v1800_v12 = vsel %vm13106_vm5, %v1790_v27, %v1799_v43 }
 0x45a   :  { %1801 = vst [vmem:[#allocation2 + $0xc] sm:$0x4] %v1800_v12  ;;  %v1803_v57 = vsel %vm13106_vm5, %v1794_v42, %v1802_v55  ;;  %v1839_v40 = vsel %vm656_vm7, %v1838_v4, %v1837_v28  ;;  %v2152_v55 = vrot.slane %v13090_v52, 7 }
 0x45b   :  { %1804 = vst [vmem:[#allocation2 + $0x1c] sm:$0x4] %v1803_v57  ;;  %v1840_v53 = vpack.c.b16 %v1839_v40, %v1839_v40 }
 0x45d   :  { %2035 = vmatmul.mubr.bf16.vlgmr.msra.gmra.mxu0 %v1840_v53  ;;  %2076 = vmatmul.mubr.bf16.vlgmr.msra.gmra.mxu1 %v1840_v53  ;;  %v2153_v53 = vrot.slane %v13092_v0, 7 }
 0x45e   :  { %2396 = vmatpush1.bf16.msra.mxu0 %v12917_v29  ;;  %2437 = vmatpush1.bf16.msra.mxu1 %v12919_v30 }
 0x45f   :  { %2397 = vmatprep.subr.bf16.mxu0 %v12925_v31  ;;  %2438 = vmatprep.subr.bf16.mxu1 %v12927_v32 }
 0x460   :  { %2427 = vmatprep.mubr.bf16.mxu0 %v15071_v41  ;;  %2468 = vmatprep.mubr.bf16.mxu1 %v15071_v41 }
 0x462   :  { %2398 = vmatpush1.bf16.msra.mxu0 %v12929_v33  ;;  %2439 = vmatpush1.bf16.msra.mxu1 %v12931_v34 }
 0x463   :  { %2399 = vmatprep.subr.bf16.mxu0 %v12939_v18  ;;  %2440 = vmatprep.subr.bf16.mxu1 %v12943_v17 }
 0x466   :  { %2400 = vmatpush1.bf16.msra.mxu0 %v12937_v35  ;;  %2441 = vmatpush1.bf16.msra.mxu1 %v12941_v38 }
 0x467   :  { %2401 = vmatprep.subr.bf16.mxu0 %v12945_v20  ;;  %2442 = vmatprep.subr.bf16.mxu1 %v12948_v48 }
 0x46a   :  { %2402 = vmatpush1.bf16.msra.mxu0 %v12953_v23  ;;  %2443 = vmatpush1.bf16.msra.mxu1 %v12955_v45 }
 0x46b   :  { %2403 = vmatprep.subr.bf16.mxu0 %v12959_v46  ;;  %2444 = vmatprep.subr.bf16.mxu1 %v12961_v11 }
 0x46e   :  { %2404 = vmatpush1.bf16.msra.mxu0 %v12965_v44  ;;  %2445 = vmatpush1.bf16.msra.mxu1 %v12967_v39 }
 0x46f   :  { %2405 = vmatprep.subr.bf16.mxu0 %v12971_v47  ;;  %2446 = vmatprep.subr.bf16.mxu1 %v12973_v51 }
 0x472   :  { %2406 = vmatpush1.bf16.msra.mxu0 %v12977_v56  ;;  %2447 = vmatpush1.bf16.msra.mxu1 %v12979_v60 }
 0x473   :  { %2407 = vmatprep.subr.bf16.mxu0 %v12983_v9  ;;  %2448 = vmatprep.subr.bf16.mxu1 %v12985_v14 }
 0x476   :  { %2408 = vmatpush1.bf16.msra.mxu0 %v12989_v15  ;;  %2449 = vmatpush1.bf16.msra.mxu1 %v12991_v16 }
 0x477   :  { %2409 = vmatprep.subr.bf16.mxu0 %v12995_v59  ;;  %2450 = vmatprep.subr.bf16.mxu1 %v12997_v21 }
 0x47a   :  { %2410 = vmatpush1.bf16.msra.mxu0 %v13001_v22  ;;  %2451 = vmatpush1.bf16.msra.mxu1 %v13003_v24 }
 0x51d   :  { %v2036_v29 = vpop.f32.mrf.mxu0  ;;  %v2077_v30 = vpop.f32.mrf.mxu1 }
 0x51e   :  { %v2088_v31 = vrot.slane %v2036_v29, 4  ;;  %v2092_v32 = vrot.slane %v2036_v29, 5  ;;  %v2090_v9 = vrot.slane %v2077_v30, 4  ;;  %v2094_v14 = vrot.slane %v2077_v30, 5 }
 0x51f   :  { %v2038_v33 = vpop.f32.mrf.mxu0  ;;  %v2079_v34 = vpop.f32.mrf.mxu1 }
 0x520   :  { %v2104_v35 = vadd.f32 %v2088_v31, %v12799_v5  ;;  %v2108_v18 = vadd.f32 %v2092_v32, %v12804_v8  ;;  %v2089_v38 = vrot.slane %v2038_v33, 4  ;;  %v2093_v17 = vrot.slane %v2038_v33, 5 }
 0x521   :  { %v2040_v20 = vpop.f32.mrf.mxu0  ;;  %v2081_v48 = vpop.f32.mrf.mxu1  ;;  %v2091_v56 = vrot.slane %v2079_v34, 4  ;;  %v2095_v60 = vrot.slane %v2079_v34, 5  ;;  %v2106_v59 = vadd.f32 %v2090_v9, %v12826_v10  ;;  %v2110_v21 = vadd.f32 %v2094_v14, %v12824_v6  ;;  %v2192_v9 = vld [vmem:[#allocation2 + $0xc] sm:$0x2] }
 0x522   :  { %v10217_v23 = vmul.f32 -1.442695, %v2104_v35  ;;  %v10218_v45 = vmul.f32 -1.442695, %v2108_v18  ;;  %v2105_v46 = vadd.f32 %v2089_v38, %v12802_v7  ;;  %v2109_v11 = vadd.f32 %v2093_v17, %v12809_v13 }
 0x523   :  { %v2041_v44 = vpop.f32.mrf.mxu0  ;;  %v2082_v39 = vpop.f32.mrf.mxu1  ;;  %v2107_v15 = vadd.f32 %v2091_v56, %v12822_v61  ;;  %v2111_v16 = vadd.f32 %v2095_v60, %v12819_v58 }
 0x524   :  { %11489 = vpow2.f32 %v10217_v23  ;;  %v10219_v47 = vmul.f32 -1.442695, %v2105_v46  ;;  %v10220_v51 = vmul.f32 -1.442695, %v2109_v11  ;;  %v2168_v23 = vld [vmem:[#allocation2] sm:$0x4] }
 0x525   :  { %11491 = vpow2.f32 %v10218_v45  ;;  %v10221_v22 = vmul.f32 -1.442695, %v2107_v15  ;;  %v10222_v24 = vmul.f32 -1.442695, %v2111_v16  ;;  %v2171_v46 = vld [vmem:[#allocation2 + $0x10] sm:$0x4] }
 0x526   :  { %11493 = vpow2.f32 %v10219_v47  ;;  %v2195_v15 = vld [vmem:[#allocation2 + $0x1c] sm:$0x2] }
 0x527   :  { %11495 = vpow2.f32 %v10220_v51 }
 0x528   :  { %11497 = vtanh.f32 %v2106_v59 }
 0x529   :  { %11499 = vtanh.f32 %v2110_v21 }
 0x52a   :  { %11501 = vpow2.f32 %v10221_v22 }
 0x52b   :  { %11503 = vpow2.f32 %v10222_v24 }
 0x531   :  { %v11490_v63 = vpop.eup %11489 }
 0x532   :  { %v11492_v49 = vpop.eup %11491  ;;  %v2118_v2 = vadd.f32 1.0, %v11490_v63 }
 0x533   :  { %v2119_v54 = vadd.f32 1.0, %v11492_v49  ;;  %v11494_v3 = vpop.eup %11493 }
 0x534   :  { %v11496_v37 = vpop.eup %11495  ;;  %11505 = vrcp.f32 %v2118_v2  ;;  %v2130_v36 = vadd.f32 1.0, %v11494_v3  ;;  %v13174_v2 = vld [vmem:[#allocation3 + $0xe4] ss:$16 sps:$4 sm:$0xff]   ;;  %v13178_v3 = vld [vmem:[#allocation3 + $0xe0] ss:$16 sps:$4 sm:$0xff]  }
 0x535   :  { %11507 = vrcp.f32 %v2119_v54  ;;  %v2131_v19 = vadd.f32 1.0, %v11496_v37  ;;  %v11498_v27 = vpop.eup %11497  ;;  %v13176_v54 = vld [vmem:[#allocation3 + $0xec] ss:$16 sps:$4 sm:$0xff]   ;;  %v13180_v37 = vld [vmem:[#allocation3 + $0xe8] ss:$16 sps:$4 sm:$0xff]   ;;  %2788 = vmatprep.subr.bf16.mxu0 %v13174_v2 }
 0x536   :  { %11509 = vrcp.f32 %v2130_v36  ;;  %v11500_v28 = vpop.eup %11499  ;;  %2829 = vmatprep.subr.bf16.mxu1 %v13176_v54  ;;  %v13186_v36 = vld [vmem:[#allocation3 + $0xc4] ss:$16 sps:$4 sm:$0xff]  }
 0x537   :  { %11511 = vrcp.f32 %v2131_v19  ;;  %v11502_v42 = vpop.eup %11501  ;;  %v13188_v19 = vld [vmem:[#allocation3 + $0xcc] ss:$16 sps:$4 sm:$0xff]  }
 0x538   :  { %v11504_v43 = vpop.eup %11503  ;;  %v2144_v57 = vadd.f32 1.0, %v11502_v42  ;;  %v13198_v42 = vld [vmem:[#allocation3 + $0xa0] ss:$16 sps:$4 sm:$0xff]  }
 0x539   :  { %v2145_v29 = vadd.f32 1.0, %v11504_v43  ;;  %v13200_v43 = vld [vmem:[#allocation3 + $0xa4] ss:$16 sps:$4 sm:$0xff]  }
 0x53a   :  { %11513 = vrcp.f32 %v2144_v57  ;;  %v13209_v57 = vld [vmem:[#allocation3 + $0x8c] ss:$16 sps:$4 sm:$0xff]  }
 0x53b   :  { %11515 = vrcp.f32 %v2145_v29  ;;  %v13220_v29 = vld [vmem:[#allocation3 + $0x64] ss:$16 sps:$4 sm:$0xff]  }
 0x541   :  { %v11506_v4 = vpop.eup %11505 }
 0x542   :  { %v11508_v12 = vpop.eup %11507  ;;  %v2158_v31 = vmul.f32 %v11506_v4, %v11498_v27  ;;  %v13190_v27 = vld [vmem:[#allocation3 + $0xc0] ss:$16 sps:$4 sm:$0xff]   ;;  %v13202_v4 = vld [vmem:[#allocation3 + $0xa8] ss:$16 sps:$4 sm:$0xff]  }
 0x543   :  { %v11510_v40 = vpop.eup %11509  ;;  %v2159_v33 = vmul.f32 %v11508_v12, %v11500_v28  ;;  %v13192_v28 = vld [vmem:[#allocation3 + $0xc8] ss:$16 sps:$4 sm:$0xff]   ;;  %v13204_v12 = vld [vmem:[#allocation3 + $0xac] ss:$16 sps:$4 sm:$0xff]  }
 0x544   :  { %v11512_v30 = vpop.eup %11511  ;;  %v2156_v32 = vmul.f32 %v11510_v40, %v2152_v55  ;;  %v13206_v55 = vld [vmem:[#allocation3 + $0x84] ss:$16 sps:$4 sm:$0xff]   ;;  %v13214_v40 = vld [vmem:[#allocation3 + $0x80] ss:$16 sps:$4 sm:$0xff]  }
 0x545   :  { %v2157_v34 = vmul.f32 %v11512_v30, %v2153_v53  ;;  %v13216_v53 = vld [vmem:[#allocation3 + $0x88] ss:$16 sps:$4 sm:$0xff]   ;;  %v13222_v30 = vld [vmem:[#allocation3 + $0x6c] ss:$16 sps:$4 sm:$0xff]  }
 0x546   :  { %v13157_v35 = vadd.f32 %v2158_v31, %v2156_v32  ;;  %v13226_v31 = vld [vmem:[#allocation3 + $0x60] ss:$16 sps:$4 sm:$0xff]   ;;  %v13228_v32 = vld [vmem:[#allocation3 + $0x68] ss:$16 sps:$4 sm:$0xff]  }
 0x547   :  { %v13159_v18 = vadd.f32 %v2159_v33, %v2157_v34  ;;  %v11514_v52 = vpop.eup %11513  ;;  %v13232_v33 = vld [vmem:[#allocation3 + $0x44] ss:$16 sps:$4 sm:$0xff]   ;;  %v13234_v34 = vld [vmem:[#allocation3 + $0x4c] ss:$16 sps:$4 sm:$0xff]  }
 0x548   :  { %11517 = vtanh.f32 %v13157_v35  ;;  %v11516_v38 = vpop.eup %11515 }
 0x549   :  { %11519 = vtanh.f32 %v13159_v18 }
 0x555   :  { %v11518_v17 = vpop.eup %11517 }
 0x556   :  { %v11520_v0 = vpop.eup %11519  ;;  %v2164_v20 = vmul.f32 %v11518_v17, %v11514_v52  ;;  %v13238_v52 = vld [vmem:[#allocation3 + $0x40] ss:$16 sps:$4 sm:$0xff]   ;;  %v13244_v17 = vld [vmem:[#allocation3 + $0x24] ss:$16 sps:$4 sm:$0xff]  }
 0x557   :  { %v2165_v48 = vmul.f32 %v11520_v0, %v11516_v38  ;;  %v13240_v38 = vld [vmem:[#allocation3 + $0x48] ss:$16 sps:$4 sm:$0xff]   ;;  %v13246_v0 = vld [vmem:[#allocation3 + $0x2c] ss:$16 sps:$4 sm:$0xff]  }
 0x558   :  { %v2166_v45 = vpack.c.bf16 %v2164_v20, %v2164_v20  ;;  %v13250_v20 = vld [vmem:[#allocation3 + $0x20] ss:$16 sps:$4 sm:$0xff]  }
 0x559   :  { %v2167_v11 = vpack.c.bf16 %v2165_v48, %v2165_v48  ;;  %v13252_v48 = vld [vmem:[#allocation3 + $0x28] ss:$16 sps:$4 sm:$0xff]  }
 0x55a   :  { %v2169_v44 = vsel %vm13106_vm5, %v2166_v45, %v2168_v23  ;;  %v2176_v39 = vunpack.c.l.b16 %v2166_v45  ;;  %v2181_v47 = vshll.u32 %v2166_v45, 16  ;;  %v13256_v23 = vld [vmem:[#allocation3 + $0x4] ss:$16 sps:$4 sm:$0xff]   ;;  %v13258_v45 = vld [vmem:[#allocation3 + $0xc] ss:$16 sps:$4 sm:$0xff]  }
 0x55b   :  { %2170 = vst [vmem:[#allocation2] sm:$0x4] %v2169_v44  ;;  %v2172_v51 = vsel %vm13106_vm5, %v2167_v11, %v2171_v46  ;;  %v2177_v56 = vunpack.c.l.b16 %v2167_v11  ;;  %v2186_v60 = vshll.u32 %v2167_v11, 16  ;;  %v13262_v46 = vld [vmem:[#allocation3] ss:$16 sps:$4 sm:$0xff]  }
 0x55c   :  { %2173 = vst [vmem:[#allocation2 + $0x10] sm:$0x4] %v2172_v51  ;;  %v10225_v14 = vrot.slane %v2181_v47, 9  ;;  %v2230_v16 = vrot.slane %v2176_v39, 4  ;;  %v13264_v11 = vld [vmem:[#allocation3 + $0x8] ss:$16 sps:$4 sm:$0xff]  }
 0x55d   :  { %v10226_v59 = vrot.slane %v2186_v60, 9  ;;  %v2231_v21 = vrot.slane %v2177_v56, 3 }
 0x55e   :  { %v2193_v22 = vsel %vm13097_vm2, %v10225_v14, %v2192_v9 }
 0x55f   :  { %2194 = vst [vmem:[#allocation2 + $0xc] sm:$0x2] %v2193_v22  ;;  %v2196_v24 = vsel %vm13097_vm2, %v10226_v59, %v2195_v15  ;;  %v2232_v63 = vsel %vm656_vm7, %v2231_v21, %v2230_v16 }
 0x560   :  { %2197 = vst [vmem:[#allocation2 + $0x1c] sm:$0x2] %v2196_v24  ;;  %v2233_v49 = vpack.c.b16 %v2232_v63, %v2232_v63 }
 0x562   :  { %2428 = vmatmul.mubr.bf16.vlgmr.msra.gmra.mxu0 %v2233_v49  ;;  %2469 = vmatmul.mubr.bf16.vlgmr.msra.gmra.mxu1 %v2233_v49 }
 0x563   :  { %2820 = vmatprep.mubr.bf16.mxu0 %v15071_v41  ;;  %2861 = vmatprep.mubr.bf16.mxu1 %v15071_v41 }
 0x564   :  { %2789 = vmatpush1.bf16.msra.mxu0 %v13178_v3  ;;  %2830 = vmatpush1.bf16.msra.mxu1 %v13180_v37 }
 0x565   :  { %2790 = vmatprep.subr.bf16.mxu0 %v13186_v36  ;;  %2831 = vmatprep.subr.bf16.mxu1 %v13188_v19 }
 0x568   :  { %2791 = vmatpush1.bf16.msra.mxu0 %v13190_v27  ;;  %2832 = vmatpush1.bf16.msra.mxu1 %v13192_v28 }
 0x569   :  { %2792 = vmatprep.subr.bf16.mxu0 %v13200_v43  ;;  %2833 = vmatprep.subr.bf16.mxu1 %v13204_v12 }
 0x56c   :  { %2793 = vmatpush1.bf16.msra.mxu0 %v13198_v42  ;;  %2834 = vmatpush1.bf16.msra.mxu1 %v13202_v4 }
 0x56d   :  { %2794 = vmatprep.subr.bf16.mxu0 %v13206_v55  ;;  %2835 = vmatprep.subr.bf16.mxu1 %v13209_v57 }
 0x570   :  { %2795 = vmatpush1.bf16.msra.mxu0 %v13214_v40  ;;  %2836 = vmatpush1.bf16.msra.mxu1 %v13216_v53 }
 0x571   :  { %2796 = vmatprep.subr.bf16.mxu0 %v13220_v29  ;;  %2837 = vmatprep.subr.bf16.mxu1 %v13222_v30 }
 0x574   :  { %2797 = vmatpush1.bf16.msra.mxu0 %v13226_v31  ;;  %2838 = vmatpush1.bf16.msra.mxu1 %v13228_v32 }
 0x575   :  { %2798 = vmatprep.subr.bf16.mxu0 %v13232_v33  ;;  %2839 = vmatprep.subr.bf16.mxu1 %v13234_v34 }
 0x578   :  { %2799 = vmatpush1.bf16.msra.mxu0 %v13238_v52  ;;  %2840 = vmatpush1.bf16.msra.mxu1 %v13240_v38 }
 0x579   :  { %2800 = vmatprep.subr.bf16.mxu0 %v13244_v17  ;;  %2841 = vmatprep.subr.bf16.mxu1 %v13246_v0 }
 0x57c   :  { %2801 = vmatpush1.bf16.msra.mxu0 %v13250_v20  ;;  %2842 = vmatpush1.bf16.msra.mxu1 %v13252_v48 }
 0x57d   :  { %2802 = vmatprep.subr.bf16.mxu0 %v13256_v23  ;;  %2843 = vmatprep.subr.bf16.mxu1 %v13258_v45 }
 0x580   :  { %2803 = vmatpush1.bf16.msra.mxu0 %v13262_v46  ;;  %2844 = vmatpush1.bf16.msra.mxu1 %v13264_v11 }
 0x581   :  { %3181 = vmatprep.subr.bf16.mxu0 %v13174_v2  ;;  %3222 = vmatprep.subr.bf16.mxu1 %v13176_v54 }
 0x622   :  { %v2429_v44 = vpop.f32.mrf.mxu0  ;;  %v2470_v39 = vpop.f32.mrf.mxu1 }
 0x623   :  { %v2481_v47 = vrot.slane %v2429_v44, 3  ;;  %v2485_v51 = vrot.slane %v2429_v44, 4 }
 0x624   :  { %v2431_v56 = vpop.f32.mrf.mxu0  ;;  %v2472_v60 = vpop.f32.mrf.mxu1 }
 0x625   :  { %v2497_v9 = vadd.f32 %v2481_v47, %v12799_v5  ;;  %v2501_v14 = vadd.f32 %v2485_v51, %v12804_v8  ;;  %v2482_v15 = vrot.slane %v2431_v56, 3  ;;  %v2486_v16 = vrot.slane %v2431_v56, 4 }
 0x626   :  { %v2433_v59 = vpop.f32.mrf.mxu0  ;;  %v2474_v21 = vpop.f32.mrf.mxu1  ;;  %v2484_v47 = vrot.slane %v2472_v60, 3  ;;  %v2488_v51 = vrot.slane %v2472_v60, 4  ;;  %v2483_v8 = vrot.slane %v2470_v39, 3  ;;  %v2487_v56 = vrot.slane %v2470_v39, 4 }
 0x627   :  { %v10259_v22 = vmul.f32 -1.442695, %v2497_v9  ;;  %v10260_v24 = vmul.f32 -1.442695, %v2501_v14  ;;  %v2498_v63 = vadd.f32 %v2482_v15, %v12802_v7  ;;  %v2502_v49 = vadd.f32 %v2486_v16, %v12809_v13 }
 0x628   :  { %v2434_v25 = vpop.f32.mrf.mxu0  ;;  %v2475_v1 = vpop.f32.mrf.mxu1  ;;  %v2500_v59 = vadd.f32 %v2484_v47, %v12822_v61  ;;  %v2504_v9 = vadd.f32 %v2488_v51, %v12819_v58  ;;  %v2499_v14 = vadd.f32 %v2483_v8, %v12826_v10  ;;  %v2503_v15 = vadd.f32 %v2487_v56, %v12824_v6 }
 0x629   :  { %11521 = vpow2.f32 %v10259_v22  ;;  %v10261_v44 = vmul.f32 -1.442695, %v2498_v63  ;;  %v10262_v50 = vmul.f32 -1.442695, %v2502_v49 }
 0x62a   :  { %11523 = vpow2.f32 %v10260_v24  ;;  %v10263_v25 = vmul.f32 -1.442695, %v2500_v59  ;;  %v10264_v1 = vmul.f32 -1.442695, %v2504_v9  ;;  %v2545_v59 = vrot.slane %v13157_v35, 7 }
 0x62b   :  { %11525 = vpow2.f32 %v10261_v44 }
 0x62c   :  { %11527 = vpow2.f32 %v10262_v50 }
 0x62d   :  { %11529 = vtanh.f32 %v2499_v14 }
 0x62e   :  { %11531 = vtanh.f32 %v2503_v15  ;;  %v2546_v15 = vrot.slane %v13159_v18, 7 }
 0x62f   :  { %11533 = vpow2.f32 %v10263_v25 }
 0x630   :  { %11535 = vpow2.f32 %v10264_v1 }
 0x636   :  { %v11522_v16 = vpop.eup %11521 }
 0x637   :  { %v11524_v21 = vpop.eup %11523  ;;  %v2511_v22 = vadd.f32 1.0, %v11522_v16 }
 0x638   :  { %v2512_v24 = vadd.f32 1.0, %v11524_v21  ;;  %v11526_v50 = vpop.eup %11525 }
 0x639   :  { %v11528_v39 = vpop.eup %11527  ;;  %11537 = vrcp.f32 %v2511_v22  ;;  %v2523_v60 = vadd.f32 1.0, %v11526_v50 }
 0x63a   :  { %11539 = vrcp.f32 %v2512_v24  ;;  %v2524_v63 = vadd.f32 1.0, %v11528_v39  ;;  %v11530_v8 = vpop.eup %11529 }
 0x63b   :  { %11541 = vrcp.f32 %v2523_v60  ;;  %v11532_v49 = vpop.eup %11531 }
 0x63c   :  { %11543 = vrcp.f32 %v2524_v63  ;;  %v11534_v44 = vpop.eup %11533 }
 0x63d   :  { %v11536_v47 = vpop.eup %11535  ;;  %v2537_v9 = vadd.f32 1.0, %v11534_v44 }
 0x63e   :  { %v2538_v25 = vadd.f32 1.0, %v11536_v47 }
 0x63f   :  { %11545 = vrcp.f32 %v2537_v9 }
 0x640   :  { %11547 = vrcp.f32 %v2538_v25 }
 0x646   :  { %v11538_v51 = vpop.eup %11537 }
 0x647   :  { %v11540_v56 = vpop.eup %11539  ;;  %v2551_v16 = vmul.f32 %v11538_v51, %v11530_v8 }
 0x648   :  { %v11542_v14 = vpop.eup %11541  ;;  %v2552_v22 = vmul.f32 %v11540_v56, %v11532_v49  ;;  %v2561_v49 = vld [vmem:[#allocation2] sm:$0x4] }
 0x649   :  { %v11544_v1 = vpop.eup %11543  ;;  %v2549_v21 = vmul.f32 %v11542_v14, %v2545_v59  ;;  %v2564_v59 = vld [vmem:[#allocation2 + $0x10] sm:$0x4] }
 0x64a   :  { %v2550_v24 = vmul.f32 %v11544_v1, %v2546_v15 }
 0x64b   :  { %v13282_v50 = vadd.f32 %v2551_v16, %v2549_v21 }
 0x64c   :  { %v13284_v39 = vadd.f32 %v2552_v22, %v2550_v24  ;;  %v11546_v35 = vpop.eup %11545  ;;  %v2585_v24 = vld [vmem:[#allocation2 + $0xc] sm:$0x2] }
 0x64d   :  { %11549 = vtanh.f32 %v13282_v50  ;;  %v11548_v60 = vpop.eup %11547 }
 0x64e   :  { %11551 = vtanh.f32 %v13284_v39 }
 0x65a   :  { %v11550_v63 = vpop.eup %11549 }
 0x65b   :  { %v11552_v18 = vpop.eup %11551  ;;  %v2557_v44 = vmul.f32 %v11550_v63, %v11546_v35  ;;  %v2588_v63 = vld [vmem:[#allocation2 + $0x1c] sm:$0x2] }
 0x65c   :  { %v2558_v47 = vmul.f32 %v11552_v18, %v11548_v60 }
 0x65d   :  { %v2559_v8 = vpack.c.bf16 %v2557_v44, %v2557_v44 }
 0x65e   :  { %v2560_v51 = vpack.c.bf16 %v2558_v47, %v2558_v47 }
 0x65f   :  { %v2562_v56 = vsel %vm13037_vm0, %v2559_v8, %v2561_v49  ;;  %v2569_v9 = vunpack.c.l.b16 %v2559_v8  ;;  %v2574_v14 = vshrl.u32 %v2559_v8, 16 }
 0x660   :  { %2563 = vst [vmem:[#allocation2] sm:$0x4] %v2562_v56  ;;  %v2565_v15 = vsel %vm13037_vm0, %v2560_v51, %v2564_v59  ;;  %v2570_v25 = vunpack.c.l.b16 %v2560_v51  ;;  %v2579_v1 = vshrl.u32 %v2560_v51, 16 }
 0x661   :  { %2566 = vst [vmem:[#allocation2 + $0x10] sm:$0x4] %v2565_v15  ;;  %v10267_v16 = vrot.slane %v2574_v14, 9  ;;  %v2623_v21 = vrot.slane %v2569_v9, 5  ;;  %v15078_v15 = vld [vmem:[#allocation20_spill] sm:$0xff] }
 0x662   :  { %v10268_v22 = vrot.slane %v2579_v1, 9  ;;  %v2624_v35 = vrot.slane %v2570_v25, 4 }
 0x663   :  { %v2586_v60 = vsel %vm13028_vm13, %v10267_v16, %v2585_v24 }
 0x664   :  { %2587 = vst [vmem:[#allocation2 + $0xc] sm:$0x2] %v2586_v60  ;;  %v2589_v18 = vsel %vm13028_vm13, %v10268_v22, %v2588_v63  ;;  %v2625_v44 = vsel %vm656_vm7, %v2624_v35, %v2623_v21 }
 0x665   :  { %2590 = vst [vmem:[#allocation2 + $0x1c] sm:$0x2] %v2589_v18  ;;  %v2626_v47 = vpack.c.b16 %v2625_v44, %v2625_v44 }
 0x667   :  { %2821 = vmatmul.mubr.bf16.vlgmr.msra.gmra.mxu0 %v2626_v47  ;;  %2862 = vmatmul.mubr.bf16.vlgmr.msra.gmra.mxu1 %v2626_v47 }
 0x668   :  { %3182 = vmatpush1.bf16.msra.mxu0 %v13178_v3  ;;  %3223 = vmatpush1.bf16.msra.mxu1 %v13180_v37 }
 0x669   :  { %3183 = vmatprep.subr.bf16.mxu0 %v13186_v36  ;;  %3224 = vmatprep.subr.bf16.mxu1 %v13188_v19 }
 0x66a   :  { %3213 = vmatprep.mubr.bf16.mxu0 %v15071_v41  ;;  %3254 = vmatprep.mubr.bf16.mxu1 %v15071_v41 }
 0x66c   :  { %3184 = vmatpush1.bf16.msra.mxu0 %v13190_v27  ;;  %3225 = vmatpush1.bf16.msra.mxu1 %v13192_v28 }
 0x66d   :  { %3185 = vmatprep.subr.bf16.mxu0 %v13200_v43  ;;  %3226 = vmatprep.subr.bf16.mxu1 %v13204_v12 }
 0x670   :  { %3186 = vmatpush1.bf16.msra.mxu0 %v13198_v42  ;;  %3227 = vmatpush1.bf16.msra.mxu1 %v13202_v4 }
 0x671   :  { %3187 = vmatprep.subr.bf16.mxu0 %v13206_v55  ;;  %3228 = vmatprep.subr.bf16.mxu1 %v13209_v57 }
 0x674   :  { %3188 = vmatpush1.bf16.msra.mxu0 %v13214_v40  ;;  %3229 = vmatpush1.bf16.msra.mxu1 %v13216_v53 }
 0x675   :  { %3189 = vmatprep.subr.bf16.mxu0 %v13220_v29  ;;  %3230 = vmatprep.subr.bf16.mxu1 %v13222_v30 }
 0x678   :  { %3190 = vmatpush1.bf16.msra.mxu0 %v13226_v31  ;;  %3231 = vmatpush1.bf16.msra.mxu1 %v13228_v32 }
 0x679   :  { %3191 = vmatprep.subr.bf16.mxu0 %v13232_v33  ;;  %3232 = vmatprep.subr.bf16.mxu1 %v13234_v34 }
 0x67c   :  { %3192 = vmatpush1.bf16.msra.mxu0 %v13238_v52  ;;  %3233 = vmatpush1.bf16.msra.mxu1 %v13240_v38 }
 0x67d   :  { %3193 = vmatprep.subr.bf16.mxu0 %v13244_v17  ;;  %3234 = vmatprep.subr.bf16.mxu1 %v13246_v0 }
 0x680   :  { %3194 = vmatpush1.bf16.msra.mxu0 %v13250_v20  ;;  %3235 = vmatpush1.bf16.msra.mxu1 %v13252_v48 }
 0x681   :  { %3195 = vmatprep.subr.bf16.mxu0 %v13256_v23  ;;  %3236 = vmatprep.subr.bf16.mxu1 %v13258_v45 }
 0x684   :  { %3196 = vmatpush1.bf16.msra.mxu0 %v13262_v46  ;;  %3237 = vmatpush1.bf16.msra.mxu1 %v13264_v11 }
 0x685   :  { %3574 = vmatprep.subr.bf16.mxu0 %v13174_v2  ;;  %3615 = vmatprep.subr.bf16.mxu1 %v13176_v54 }
 0x727   :  { %v2822_v8 = vpop.f32.mrf.mxu0  ;;  %v2863_v51 = vpop.f32.mrf.mxu1 }
 0x728   :  { %v2874_v49 = vrot.slane %v2822_v8, 2  ;;  %v2878_v56 = vrot.slane %v2822_v8, 3 }
 0x729   :  { %v2824_v59 = vpop.f32.mrf.mxu0  ;;  %v2865_v9 = vpop.f32.mrf.mxu1 }
 0x72a   :  { %v2890_v14 = vadd.f32 %v2874_v49, %v12799_v5  ;;  %v2894_v25 = vadd.f32 %v2878_v56, %v15078_v15  ;;  %v2875_v1 = vrot.slane %v2824_v59, 2  ;;  %v2879_v16 = vrot.slane %v2824_v59, 3 }
 0x72b   :  { %v2826_v21 = vpop.f32.mrf.mxu0  ;;  %v2867_v22 = vpop.f32.mrf.mxu1  ;;  %v2877_v47 = vrot.slane %v2865_v9, 2  ;;  %v2881_v8 = vrot.slane %v2865_v9, 3  ;;  %v2876_v49 = vrot.slane %v2863_v51, 2  ;;  %v2880_v56 = vrot.slane %v2863_v51, 3 }
 0x72c   :  { %v10301_v24 = vmul.f32 -1.442695, %v2890_v14  ;;  %v10302_v35 = vmul.f32 -1.442695, %v2894_v25  ;;  %v2891_v2 = vadd.f32 %v2875_v1, %v12802_v7  ;;  %v2895_v54 = vadd.f32 %v2879_v16, %v12809_v13 }
 0x72d   :  { %v2827_v60 = vpop.f32.mrf.mxu0  ;;  %v2868_v63 = vpop.f32.mrf.mxu1  ;;  %v2893_v59 = vadd.f32 %v2877_v47, %v12822_v61  ;;  %v2897_v14 = vadd.f32 %v2881_v8, %v12819_v58  ;;  %v2892_v25 = vadd.f32 %v2876_v49, %v12826_v10  ;;  %v2896_v1 = vadd.f32 %v2880_v56, %v12824_v6 }
 0x72e   :  { %11553 = vpow2.f32 %v10301_v24  ;;  %v10303_v18 = vmul.f32 -1.442695, %v2891_v2  ;;  %v10304_v44 = vmul.f32 -1.442695, %v2895_v54  ;;  %v2938_v56 = vrot.slane %v13282_v50, 7 }
 0x72f   :  { %11555 = vpow2.f32 %v10302_v35  ;;  %v10305_v16 = vmul.f32 -1.442695, %v2893_v59  ;;  %v10306_v21 = vmul.f32 -1.442695, %v2897_v14 }
 0x730   :  { %11557 = vpow2.f32 %v10303_v18 }
 0x731   :  { %11559 = vpow2.f32 %v10304_v44 }
 0x732   :  { %11561 = vtanh.f32 %v2892_v25  ;;  %v2939_v25 = vrot.slane %v13284_v39, 7 }
 0x733   :  { %11563 = vtanh.f32 %v2896_v1 }
 0x734   :  { %11565 = vpow2.f32 %v10305_v16 }
 0x735   :  { %11567 = vpow2.f32 %v10306_v21 }
 0x73b   :  { %v11554_v22 = vpop.eup %11553 }
 0x73c   :  { %v11556_v24 = vpop.eup %11555  ;;  %v2904_v35 = vadd.f32 1.0, %v11554_v22 }
 0x73d   :  { %v2905_v2 = vadd.f32 1.0, %v11556_v24  ;;  %v11558_v9 = vpop.eup %11557 }
 0x73e   :  { %v11560_v51 = vpop.eup %11559  ;;  %11569 = vrcp.f32 %v2904_v35  ;;  %v2916_v54 = vadd.f32 1.0, %v11558_v9 }
 0x73f   :  { %11571 = vrcp.f32 %v2905_v2  ;;  %v2917_v60 = vadd.f32 1.0, %v11560_v51  ;;  %v11562_v63 = vpop.eup %11561 }
 0x740   :  { %11573 = vrcp.f32 %v2916_v54  ;;  %v11564_v18 = vpop.eup %11563 }
 0x741   :  { %11575 = vrcp.f32 %v2917_v60  ;;  %v11566_v44 = vpop.eup %11565 }
 0x742   :  { %v11568_v47 = vpop.eup %11567  ;;  %v2930_v59 = vadd.f32 1.0, %v11566_v44 }
 0x743   :  { %v2931_v1 = vadd.f32 1.0, %v11568_v47 }
 0x744   :  { %11577 = vrcp.f32 %v2930_v59 }
 0x745   :  { %11579 = vrcp.f32 %v2931_v1 }
 0x74b   :  { %v11570_v8 = vpop.eup %11569 }
 0x74c   :  { %v11572_v49 = vpop.eup %11571  ;;  %v2944_v21 = vmul.f32 %v11570_v8, %v11562_v63  ;;  %v2954_v63 = vld [vmem:[#allocation2] sm:$0x8] }
 0x74d   :  { %v11574_v14 = vpop.eup %11573  ;;  %v2945_v24 = vmul.f32 %v11572_v49, %v11564_v18  ;;  %v2957_v18 = vld [vmem:[#allocation2 + $0x10] sm:$0x8] }
 0x74e   :  { %v11576_v16 = vpop.eup %11575  ;;  %v2942_v22 = vmul.f32 %v11574_v14, %v2938_v56 }
 0x74f   :  { %v2943_v35 = vmul.f32 %v11576_v16, %v2939_v25 }
 0x750   :  { %v13341_v2 = vadd.f32 %v2944_v21, %v2942_v22  ;;  %v2978_v21 = vld [vmem:[#allocation2 + $0xc] sm:$0x1] }
 0x751   :  { %v13343_v9 = vadd.f32 %v2945_v24, %v2943_v35  ;;  %v11578_v50 = vpop.eup %11577  ;;  %v2981_v24 = vld [vmem:[#allocation2 + $0x1c] sm:$0x1] }
 0x752   :  { %11581 = vtanh.f32 %v13341_v2  ;;  %v11580_v51 = vpop.eup %11579 }
 0x753   :  { %11583 = vtanh.f32 %v13343_v9 }
 0x75f   :  { %v11582_v54 = vpop.eup %11581 }
 0x760   :  { %v11584_v39 = vpop.eup %11583  ;;  %v2950_v60 = vmul.f32 %v11582_v54, %v11578_v50 }
 0x761   :  { %v2951_v44 = vmul.f32 %v11584_v39, %v11580_v51 }
 0x762   :  { %v2952_v47 = vpack.c.bf16 %v2950_v60, %v2950_v60 }
 0x763   :  { %v2953_v8 = vpack.c.bf16 %v2951_v44, %v2951_v44 }
 0x764   :  { %v2955_v56 = vsel %vm12900_vm11, %v2952_v47, %v2954_v63  ;;  %v2962_v59 = vunpack.c.l.b16 %v2952_v47  ;;  %v2967_v14 = vshll.u32 %v2952_v47, 16 }
 0x765   :  { %2956 = vst [vmem:[#allocation2] sm:$0x8] %v2955_v56  ;;  %v2958_v25 = vsel %vm12900_vm11, %v2953_v8, %v2957_v18  ;;  %v2963_v1 = vunpack.c.l.b16 %v2953_v8  ;;  %v2972_v16 = vshll.u32 %v2953_v8, 16 }
 0x766   :  { %2959 = vst [vmem:[#allocation2 + $0x10] sm:$0x8] %v2958_v25  ;;  %v10309_v22 = vrot.slane %v2967_v14, 11  ;;  %v3016_v35 = vrot.slane %v2962_v59, 6  ;;  %v3331_v25 = vrot.slane %v13341_v2, 7 }
 0x767   :  { %v10310_v50 = vrot.slane %v2972_v16, 11  ;;  %v3017_v51 = vrot.slane %v2963_v1, 5 }
 0x768   :  { %v2979_v39 = vsel %vm12893_vm9, %v10309_v22, %v2978_v21  ;;  %v3332_v21 = vrot.slane %v13343_v9, 7 }
 0x769   :  { %2980 = vst [vmem:[#allocation2 + $0xc] sm:$0x1] %v2979_v39  ;;  %v2982_v60 = vsel %vm12893_vm9, %v10310_v50, %v2981_v24  ;;  %v3018_v44 = vsel %vm656_vm7, %v3017_v51, %v3016_v35 }
 0x76a   :  { %2983 = vst [vmem:[#allocation2 + $0x1c] sm:$0x1] %v2982_v60  ;;  %v3019_v63 = vpack.c.b16 %v3018_v44, %v3018_v44 }
 0x76c   :  { %3214 = vmatmul.mubr.bf16.vlgmr.msra.gmra.mxu0 %v3019_v63  ;;  %3255 = vmatmul.mubr.bf16.vlgmr.msra.gmra.mxu1 %v3019_v63 }
 0x76d   :  { %3575 = vmatpush1.bf16.msra.mxu0 %v13178_v3  ;;  %3616 = vmatpush1.bf16.msra.mxu1 %v13180_v37 }
 0x76e   :  { %3576 = vmatprep.subr.bf16.mxu0 %v13186_v36  ;;  %3617 = vmatprep.subr.bf16.mxu1 %v13188_v19 }
 0x76f   :  { %3606 = vmatprep.mubr.bf16.mxu0 %v15071_v41  ;;  %3647 = vmatprep.mubr.bf16.mxu1 %v15071_v41 }
 0x771   :  { %3577 = vmatpush1.bf16.msra.mxu0 %v13190_v27  ;;  %3618 = vmatpush1.bf16.msra.mxu1 %v13192_v28 }
 0x772   :  { %3578 = vmatprep.subr.bf16.mxu0 %v13200_v43  ;;  %3619 = vmatprep.subr.bf16.mxu1 %v13204_v12 }
 0x775   :  { %3579 = vmatpush1.bf16.msra.mxu0 %v13198_v42  ;;  %3620 = vmatpush1.bf16.msra.mxu1 %v13202_v4 }
 0x776   :  { %3580 = vmatprep.subr.bf16.mxu0 %v13206_v55  ;;  %3621 = vmatprep.subr.bf16.mxu1 %v13209_v57 }
 0x779   :  { %3581 = vmatpush1.bf16.msra.mxu0 %v13214_v40  ;;  %3622 = vmatpush1.bf16.msra.mxu1 %v13216_v53 }
 0x77a   :  { %3582 = vmatprep.subr.bf16.mxu0 %v13220_v29  ;;  %3623 = vmatprep.subr.bf16.mxu1 %v13222_v30 }
 0x77d   :  { %3583 = vmatpush1.bf16.msra.mxu0 %v13226_v31  ;;  %3624 = vmatpush1.bf16.msra.mxu1 %v13228_v32 }
 0x77e   :  { %3584 = vmatprep.subr.bf16.mxu0 %v13232_v33  ;;  %3625 = vmatprep.subr.bf16.mxu1 %v13234_v34 }
 0x781   :  { %3585 = vmatpush1.bf16.msra.mxu0 %v13238_v52  ;;  %3626 = vmatpush1.bf16.msra.mxu1 %v13240_v38 }
 0x782   :  { %3586 = vmatprep.subr.bf16.mxu0 %v13244_v17  ;;  %3627 = vmatprep.subr.bf16.mxu1 %v13246_v0 }
 0x785   :  { %3587 = vmatpush1.bf16.msra.mxu0 %v13250_v20  ;;  %3628 = vmatpush1.bf16.msra.mxu1 %v13252_v48 }
 0x786   :  { %3588 = vmatprep.subr.bf16.mxu0 %v13256_v23  ;;  %3629 = vmatprep.subr.bf16.mxu1 %v13258_v45 }
 0x789   :  { %3589 = vmatpush1.bf16.msra.mxu0 %v13262_v46  ;;  %3630 = vmatpush1.bf16.msra.mxu1 %v13264_v11 }
 0x82c   :  { %v3215_v3 = vpop.f32.mrf.mxu0  ;;  %v3256_v37 = vpop.f32.mrf.mxu1 }
 0x82d   :  { %v3267_v36 = vrot.slane %v3215_v3, 1  ;;  %v3271_v19 = vrot.slane %v3215_v3, 2  ;;  %v3269_v38 = vrot.slane %v3256_v37, 1  ;;  %v3273_v17 = vrot.slane %v3256_v37, 2 }
 0x82e   :  { %v3217_v27 = vpop.f32.mrf.mxu0  ;;  %v3258_v28 = vpop.f32.mrf.mxu1 }
 0x82f   :  { %v3283_v42 = vadd.f32 %v3267_v36, %v12799_v5  ;;  %v3287_v43 = vadd.f32 %v3271_v19, %v15078_v15  ;;  %v3268_v4 = vrot.slane %v3217_v27, 1  ;;  %v3272_v12 = vrot.slane %v3217_v27, 2 }
 0x830   :  { %v3219_v55 = vpop.f32.mrf.mxu0  ;;  %v3260_v57 = vpop.f32.mrf.mxu1  ;;  %v3270_v5 = vrot.slane %v3258_v28, 1  ;;  %v3274_v52 = vrot.slane %v3258_v28, 2  ;;  %v3347_v28 = vld [vmem:[#allocation2] sm:$0x8] }
 0x831   :  { %v10343_v40 = vmul.f32 -1.442695, %v3283_v42  ;;  %v10344_v53 = vmul.f32 -1.442695, %v3287_v43  ;;  %v3284_v29 = vadd.f32 %v3268_v4, %v12802_v7  ;;  %v3288_v30 = vadd.f32 %v3272_v12, %v12809_v13  ;;  %v3350_v4 = vld [vmem:[#allocation2 + $0x10] sm:$0x8] }
 0x832   :  { %v3220_v31 = vpop.f32.mrf.mxu0  ;;  %v3261_v32 = vpop.f32.mrf.mxu1  ;;  %v3286_v0 = vadd.f32 %v3270_v5, %v12822_v61  ;;  %v3290_v20 = vadd.f32 %v3274_v52, %v12819_v58  ;;  %v3285_v7 = vadd.f32 %v3269_v38, %v12826_v10  ;;  %v3289_v13 = vadd.f32 %v3273_v17, %v12824_v6  ;;  %v3374_v52 = vld [vmem:[#allocation2 + $0x1c] sm:$0x1] }
 0x833   :  { %11585 = vpow2.f32 %v10343_v40  ;;  %v10345_v33 = vmul.f32 -1.442695, %v3284_v29  ;;  %v10346_v34 = vmul.f32 -1.442695, %v3288_v30  ;;  %v3371_v32 = vld [vmem:[#allocation2 + $0xc] sm:$0x1] }
 0x834   :  { %11587 = vpow2.f32 %v10344_v53  ;;  %v10347_v48 = vmul.f32 -1.442695, %v3286_v0  ;;  %v10348_v23 = vmul.f32 -1.442695, %v3290_v20  ;;  %v13415_v20 = vld [vmem:[#allocation3 + $0xe4] ss:$16 sps:$4 sm:$0xff]  }
 0x835   :  { %11589 = vpow2.f32 %v10345_v33  ;;  %3960 = vmatprep.subr.bf16.mxu0 %v13415_v20 }
 0x836   :  { %11591 = vpow2.f32 %v10346_v34 }
 0x837   :  { %11593 = vtanh.f32 %v3285_v7  ;;  %v13417_v7 = vld [vmem:[#allocation3 + $0xec] ss:$16 sps:$4 sm:$0xff]  }
 0x838   :  { %11595 = vtanh.f32 %v3289_v13  ;;  %v13419_v13 = vld [vmem:[#allocation3 + $0xe0] ss:$16 sps:$4 sm:$0xff]   ;;  %4001 = vmatprep.subr.bf16.mxu1 %v13417_v7 }
 0x839   :  { %11597 = vpow2.f32 %v10347_v48  ;;  %v13421_v48 = vld [vmem:[#allocation3 + $0xe8] ss:$16 sps:$4 sm:$0xff]  }
 0x83a   :  { %11599 = vpow2.f32 %v10348_v23  ;;  %v13427_v23 = vld [vmem:[#allocation3 + $0xc4] ss:$16 sps:$4 sm:$0xff]  }
 0x840   :  { %v11586_v45 = vpop.eup %11585 }
 0x841   :  { %v11588_v46 = vpop.eup %11587  ;;  %v3297_v11 = vadd.f32 1.0, %v11586_v45  ;;  %v13429_v45 = vld [vmem:[#allocation3 + $0xcc] ss:$16 sps:$4 sm:$0xff]  }
 0x842   :  { %v3298_v15 = vadd.f32 1.0, %v11588_v46  ;;  %v11590_v47 = vpop.eup %11589  ;;  %v13431_v46 = vld [vmem:[#allocation3 + $0xc0] ss:$16 sps:$4 sm:$0xff]  }
 0x843   :  { %v11592_v18 = vpop.eup %11591  ;;  %11601 = vrcp.f32 %v3297_v11  ;;  %v3309_v61 = vadd.f32 1.0, %v11590_v47  ;;  %v13433_v11 = vld [vmem:[#allocation3 + $0xc8] ss:$16 sps:$4 sm:$0xff]   ;;  %v13441_v47 = vld [vmem:[#allocation3 + $0xa4] ss:$16 sps:$4 sm:$0xff]  }
 0x844   :  { %11603 = vrcp.f32 %v3298_v15  ;;  %v3310_v58 = vadd.f32 1.0, %v11592_v18  ;;  %v11594_v10 = vpop.eup %11593  ;;  %v13439_v15 = vld [vmem:[#allocation3 + $0xa0] ss:$16 sps:$4 sm:$0xff]   ;;  %v13443_v18 = vld [vmem:[#allocation3 + $0xa8] ss:$16 sps:$4 sm:$0xff]  }
 0x845   :  { %11605 = vrcp.f32 %v3309_v61  ;;  %v11596_v6 = vpop.eup %11595  ;;  %v13445_v61 = vld [vmem:[#allocation3 + $0xac] ss:$16 sps:$4 sm:$0xff]  }
 0x846   :  { %11607 = vrcp.f32 %v3310_v58  ;;  %v11598_v8 = vpop.eup %11597  ;;  %v13447_v58 = vld [vmem:[#allocation3 + $0x84] ss:$16 sps:$4 sm:$0xff]  }
 0x847   :  { %v11600_v56 = vpop.eup %11599  ;;  %v3323_v1 = vadd.f32 1.0, %v11598_v8  ;;  %v13458_v8 = vld [vmem:[#allocation3 + $0x88] ss:$16 sps:$4 sm:$0xff]  }
 0x848   :  { %v3324_v22 = vadd.f32 1.0, %v11600_v56  ;;  %v13460_v56 = vld [vmem:[#allocation3 + $0x64] ss:$16 sps:$4 sm:$0xff]  }
 0x849   :  { %11609 = vrcp.f32 %v3323_v1  ;;  %v13472_v1 = vld [vmem:[#allocation3 + $0x44] ss:$16 sps:$4 sm:$0xff]  }
 0x84a   :  { %11611 = vrcp.f32 %v3324_v22  ;;  %v13482_v22 = vld [vmem:[#allocation3 + $0x48] ss:$16 sps:$4 sm:$0xff]  }
 0x850   :  { %v11602_v59 = vpop.eup %11601 }
 0x851   :  { %v11604_v14 = vpop.eup %11603  ;;  %v3337_v35 = vmul.f32 %v11602_v59, %v11594_v10  ;;  %v13450_v10 = vld [vmem:[#allocation3 + $0x8c] ss:$16 sps:$4 sm:$0xff]  }
 0x852   :  { %v11606_v16 = vpop.eup %11605  ;;  %v3338_v51 = vmul.f32 %v11604_v14, %v11596_v6  ;;  %v13454_v6 = vld [vmem:[#allocation3 + $0x80] ss:$16 sps:$4 sm:$0xff]   ;;  %v13463_v59 = vld [vmem:[#allocation3 + $0x6c] ss:$16 sps:$4 sm:$0xff]  }
 0x853   :  { %v11608_v24 = vpop.eup %11607  ;;  %v3335_v50 = vmul.f32 %v11606_v16, %v3331_v25  ;;  %v13466_v14 = vld [vmem:[#allocation3 + $0x60] ss:$16 sps:$4 sm:$0xff]   ;;  %v13470_v25 = vld [vmem:[#allocation3 + $0x68] ss:$16 sps:$4 sm:$0xff]   ;;  %v13475_v16 = vld [vmem:[#allocation3 + $0x4c] ss:$16 sps:$4 sm:$0xff]  }
 0x854   :  { %v3336_v39 = vmul.f32 %v11608_v24, %v3332_v21  ;;  %v13478_v21 = vld [vmem:[#allocation3 + $0x40] ss:$16 sps:$4 sm:$0xff]   ;;  %v13484_v24 = vld [vmem:[#allocation3 + $0x24] ss:$16 sps:$4 sm:$0xff]  }
 0x855   :  { %v13398_v60 = vadd.f32 %v3337_v35, %v3335_v50  ;;  %v13487_v35 = vld [vmem:[#allocation3 + $0x2c] ss:$16 sps:$4 sm:$0xff]   ;;  %v13490_v50 = vld [vmem:[#allocation3 + $0x20] ss:$16 sps:$4 sm:$0xff]  }
 0x856   :  { %v13400_v44 = vadd.f32 %v3338_v51, %v3336_v39  ;;  %v11610_v2 = vpop.eup %11609  ;;  %v13494_v51 = vld [vmem:[#allocation3 + $0x28] ss:$16 sps:$4 sm:$0xff]   ;;  %v13496_v39 = vld [vmem:[#allocation3 + $0x4] ss:$16 sps:$4 sm:$0xff]  }
 0x857   :  { %11613 = vtanh.f32 %v13398_v60  ;;  %v11612_v63 = vpop.eup %11611 }
 0x858   :  { %11615 = vtanh.f32 %v13400_v44 }
 0x864   :  { %v11614_v3 = vpop.eup %11613 }
 0x865   :  { %v11616_v9 = vpop.eup %11615  ;;  %v3343_v37 = vmul.f32 %v11614_v3, %v11610_v2  ;;  %v13499_v2 = vld [vmem:[#allocation3 + $0xc] ss:$16 sps:$4 sm:$0xff]   ;;  %v13506_v3 = vld [vmem:[#allocation3 + $0x8] ss:$16 sps:$4 sm:$0xff]  }
 0x866   :  { %v3344_v36 = vmul.f32 %v11616_v9, %v11612_v63  ;;  %v13502_v63 = vld [vmem:[#allocation3] ss:$16 sps:$4 sm:$0xff]  }
 0x867   :  { %v3345_v19 = vpack.c.bf16 %v3343_v37, %v3343_v37 }
 0x868   :  { %v3346_v27 = vpack.c.bf16 %v3344_v36, %v3344_v36 }
 0x869   :  { %v3348_v43 = vsel %vm12848_vm6, %v3345_v19, %v3347_v28  ;;  %v3355_v12 = vunpack.c.l.b16 %v3345_v19  ;;  %v3360_v55 = vshrl.u32 %v3345_v19, 16  ;;  %v15083_v19 = vld [vmem:[#allocation11_spill] sm:$0xff]  ;;  %v15084_v28 = vld [vmem:[#allocation17_spill] sm:$0xff] }
 0x86a   :  { %3349 = vst [vmem:[#allocation2] sm:$0x8] %v3348_v43  ;;  %v3351_v57 = vsel %vm12848_vm6, %v3346_v27, %v3350_v4  ;;  %v3356_v40 = vunpack.c.l.b16 %v3346_v27  ;;  %v3365_v53 = vshrl.u32 %v3346_v27, 16  ;;  %v15085_v43 = vld [vmem:[#allocation13_spill] sm:$0xff] }
 0x86b   :  { %3352 = vst [vmem:[#allocation2 + $0x10] sm:$0x8] %v3351_v57  ;;  %v10351_v29 = vrot.slane %v3360_v55, 11  ;;  %v3409_v30 = vrot.slane %v3355_v12, 7  ;;  %v13516_v4 = vadd.f32 %v15085_v43, %v15084_v28  ;;  %v15086_v57 = vld [vmem:[#allocation15_spill] sm:$0xff]  ;;  %v15088_v43 = vld [vmem:[#allocation21_spill] sm:$0xff] }
 0x86c   :  { %v10352_v31 = vrot.slane %v3365_v53, 11  ;;  %v3410_v33 = vrot.slane %v3356_v40, 6 }
 0x86d   :  { %v3372_v5 = vsel %vm12839_vm3, %v10351_v29, %v3371_v32  ;;  %v15087_v29 = vld [vmem:[#allocation19_spill] sm:$0xff] }
 0x86e   :  { %3373 = vst [vmem:[#allocation2 + $0xc] sm:$0x1] %v3372_v5  ;;  %v3375_v38 = vsel %vm12839_vm3, %v10352_v31, %v3374_v52  ;;  %v3411_v17 = vsel %vm656_vm7, %v3410_v33, %v3409_v30  ;;  %v13521_v30 = vadd.f32 %v15087_v29, %v15084_v28  ;;  %v13527_v28 = vadd.f32 %v15089_v62, %v15088_v43 }
 0x86f   :  { %3376 = vst [vmem:[#allocation2 + $0x1c] sm:$0x1] %v3375_v38  ;;  %v3412_v0 = vpack.c.b16 %v3411_v17, %v3411_v17 }
 0x871   :  { %3607 = vmatmul.mubr.bf16.vlgmr.msra.gmra.mxu0 %v3412_v0  ;;  %3648 = vmatmul.mubr.bf16.vlgmr.msra.gmra.mxu1 %v3412_v0 }
 0x872   :  { %3992 = vmatprep.mubr.bf16.mxu0 %v15071_v41  ;;  %4033 = vmatprep.mubr.bf16.mxu1 %v15071_v41 }
 0x873   :  { %3961 = vmatpush1.bf16.msra.mxu0 %v13419_v13  ;;  %4002 = vmatpush1.bf16.msra.mxu1 %v13421_v48 }
 0x874   :  { %3962 = vmatprep.subr.bf16.mxu0 %v13427_v23  ;;  %4003 = vmatprep.subr.bf16.mxu1 %v13429_v45 }
 0x877   :  { %3963 = vmatpush1.bf16.msra.mxu0 %v13431_v46  ;;  %4004 = vmatpush1.bf16.msra.mxu1 %v13433_v11 }
 0x878   :  { %3964 = vmatprep.subr.bf16.mxu0 %v13441_v47  ;;  %4005 = vmatprep.subr.bf16.mxu1 %v13445_v61 }
 0x87b   :  { %3965 = vmatpush1.bf16.msra.mxu0 %v13439_v15  ;;  %4006 = vmatpush1.bf16.msra.mxu1 %v13443_v18 }
 0x87c   :  { %3966 = vmatprep.subr.bf16.mxu0 %v13447_v58  ;;  %4007 = vmatprep.subr.bf16.mxu1 %v13450_v10 }
 0x87f   :  { %3967 = vmatpush1.bf16.msra.mxu0 %v13454_v6  ;;  %4008 = vmatpush1.bf16.msra.mxu1 %v13458_v8 }
 0x880   :  { %3968 = vmatprep.subr.bf16.mxu0 %v13460_v56  ;;  %4009 = vmatprep.subr.bf16.mxu1 %v13463_v59 }
 0x883   :  { %3969 = vmatpush1.bf16.msra.mxu0 %v13466_v14  ;;  %4010 = vmatpush1.bf16.msra.mxu1 %v13470_v25 }
 0x884   :  { %3970 = vmatprep.subr.bf16.mxu0 %v13472_v1  ;;  %4011 = vmatprep.subr.bf16.mxu1 %v13475_v16 }
 0x887   :  { %3971 = vmatpush1.bf16.msra.mxu0 %v13478_v21  ;;  %4012 = vmatpush1.bf16.msra.mxu1 %v13482_v22 }
 0x888   :  { %3972 = vmatprep.subr.bf16.mxu0 %v13484_v24  ;;  %4013 = vmatprep.subr.bf16.mxu1 %v13487_v35 }
 0x88b   :  { %3973 = vmatpush1.bf16.msra.mxu0 %v13490_v50  ;;  %4014 = vmatpush1.bf16.msra.mxu1 %v13494_v51 }
 0x88c   :  { %3974 = vmatprep.subr.bf16.mxu0 %v13496_v39  ;;  %4015 = vmatprep.subr.bf16.mxu1 %v13499_v2 }
 0x88f   :  { %3975 = vmatpush1.bf16.msra.mxu0 %v13502_v63  ;;  %4016 = vmatpush1.bf16.msra.mxu1 %v13506_v3 }
 0x890   :  { %4346 = vmatprep.subr.bf16.mxu0 %v13415_v20  ;;  %4387 = vmatprep.subr.bf16.mxu1 %v13417_v7 }
 0x931   :  { %v3608_v9 = vpop.f32.mrf.mxu0  ;;  %v3649_v37 = vpop.f32.mrf.mxu1 }
 0x932   :  { %v3660_v36 = vrot.slane %v3608_v9, 1  ;;  %v3672_v27 = vadd.f32 %v3608_v9, %v15083_v19 }
 0x933   :  { %v3610_v12 = vpop.f32.mrf.mxu0  ;;  %v3651_v55 = vpop.f32.mrf.mxu1 }
 0x934   :  { %v3676_v40 = vadd.f32 %v3660_v36, %v15086_v57  ;;  %v10385_v53 = vmul.f32 -1.442695, %v3672_v27  ;;  %v3661_v31 = vrot.slane %v3610_v12, 1  ;;  %v3673_v32 = vadd.f32 %v3610_v12, %v13516_v4  ;;  %v15090_v12 = vld [vmem:[#allocation18_spill] sm:$0xff] }
 0x935   :  { %v3612_v33 = vpop.f32.mrf.mxu0  ;;  %v3653_v5 = vpop.f32.mrf.mxu1  ;;  %v3663_v27 = vrot.slane %v3651_v55, 1  ;;  %v13531_v29 = vadd.f32 %v15090_v12, %v15088_v43 }
 0x936   :  { %11617 = vpow2.f32 %v10385_v53  ;;  %v10386_v52 = vmul.f32 -1.442695, %v3676_v40  ;;  %v3677_v38 = vadd.f32 %v3661_v31, %v13521_v30  ;;  %v10387_v17 = vmul.f32 -1.442695, %v3673_v32  ;;  %v15091_v31 = vld [vmem:[#allocation12_spill] sm:$0xff] }
 0x937   :  { %v3613_v0 = vpop.f32.mrf.mxu0  ;;  %v3654_v9 = vpop.f32.mrf.mxu1  ;;  %v3675_v40 = vadd.f32 %v3651_v55, %v13527_v28  ;;  %v3679_v53 = vadd.f32 %v3663_v27, %v13531_v29  ;;  %v3674_v32 = vadd.f32 %v3649_v37, %v15091_v31  ;;  %v3662_v5 = vrot.slane %v3649_v37, 1 }
 0x938   :  { %11619 = vpow2.f32 %v10386_v52  ;;  %v10388_v36 = vmul.f32 -1.442695, %v3677_v38 }
 0x939   :  { %11621 = vpow2.f32 %v10387_v17  ;;  %v10389_v33 = vmul.f32 -1.442695, %v3675_v40  ;;  %v10390_v52 = vmul.f32 -1.442695, %v3679_v53 }
 0x93a   :  { %11623 = vpow2.f32 %v10388_v36  ;;  %v15092_v36 = vld [vmem:[#allocation16_spill] sm:$0xff] }
 0x93b   :  { %11625 = vtanh.f32 %v3674_v32  ;;  %v3678_v26 = vadd.f32 %v3662_v5, %v15092_v36 }
 0x93c   :  { %11627 = vpow2.f32 %v10389_v33  ;;  %v3720_v33 = vrot.slane %v13398_v60, 7 }
 0x93d   :  { %11629 = vpow2.f32 %v10390_v52  ;;  %v3721_v52 = vrot.slane %v13400_v44, 7 }
 0x943   :  { %v11618_v38 = vpop.eup %11617 }
 0x944   :  { %v3686_v17 = vadd.f32 1.0, %v11618_v38 }
 0x945   :  { %v11620_v0 = vpop.eup %11619 }
 0x946   :  { %v11622_v62 = vpop.eup %11621  ;;  %v3687_v9 = vadd.f32 1.0, %v11620_v0  ;;  %11631 = vrcp.f32 %v3686_v17 }
 0x947   :  { %v3698_v43 = vadd.f32 1.0, %v11622_v62  ;;  %v11624_v55 = vpop.eup %11623 }
 0x948   :  { %11633 = vrcp.f32 %v3687_v9  ;;  %v3699_v27 = vadd.f32 1.0, %v11624_v55  ;;  %v11626_v37 = vpop.eup %11625 }
 0x949   :  { %11635 = vrcp.f32 %v3698_v43  ;;  %v11628_v12 = vpop.eup %11627 }
 0x94a   :  { %11637 = vtanh.f32 %v3678_v26  ;;  %v11630_v40 = vpop.eup %11629  ;;  %v3712_v0 = vadd.f32 1.0, %v11628_v12 }
 0x94b   :  { %11639 = vrcp.f32 %v3699_v27  ;;  %v3713_v9 = vadd.f32 1.0, %v11630_v40 }
 0x94c   :  { %11641 = vrcp.f32 %v3712_v0 }
 0x953   :  { %v11632_v53 = vpop.eup %11631 }
 0x954   :  { %v3726_v5 = vmul.f32 %v11632_v53, %v11626_v37 }
 0x955   :  { %v11634_v32 = vpop.eup %11633 }
 0x956   :  { %v11636_v38 = vpop.eup %11635 }
 0x957   :  { %v11638_v49 = vpop.eup %11637  ;;  %v3724_v17 = vmul.f32 %v11636_v38, %v3720_v33  ;;  %v3736_v33 = vld [vmem:[#allocation2 + $0x8] sm:$0x1] }
 0x958   :  { %v11640_v62 = vpop.eup %11639  ;;  %v3727_v55 = vmul.f32 %v11638_v49, %v11634_v32  ;;  %v3739_v49 = vld [vmem:[#allocation2 + $0x18] sm:$0x1] }
 0x959   :  { %v3725_v43 = vmul.f32 %v11640_v62, %v3721_v52  ;;  %v13539_v26 = vadd.f32 %v3726_v5, %v3724_v17  ;;  %v11642_v60 = vpop.eup %11641  ;;  %v3758_v52 = vld [vmem:[#allocation2 + $0x4] sm:$0x8] }
 0x95b   :  { %v13541_v27 = vadd.f32 %v3727_v55, %v3725_v43  ;;  %11643 = vtanh.f32 %v13539_v26  ;;  %v3761_v43 = vld [vmem:[#allocation2 + $0x14] sm:$0x8] }
 0x95c   :  { %11645 = vrcp.f32 %v3713_v9 }
 0x95d   :  { %11647 = vtanh.f32 %v13541_v27 }
 0x968   :  { %v11644_v12 = vpop.eup %11643 }
 0x969   :  { %v11646_v37 = vpop.eup %11645  ;;  %v3732_v53 = vmul.f32 %v11644_v12, %v11642_v60 }
 0x96a   :  { %v11648_v44 = vpop.eup %11647 }
 0x96b   :  { %v3733_v38 = vmul.f32 %v11648_v44, %v11646_v37  ;;  %v3734_v40 = vpack.c.bf16 %v3732_v53, %v3732_v53 }
 0x96d   :  { %v3735_v32 = vpack.c.bf16 %v3733_v38, %v3733_v38  ;;  %v3737_v0 = vsel %vm12839_vm3, %v3734_v40, %v3736_v33  ;;  %v3749_v5 = vshll.u32 %v3734_v40, 16  ;;  %v3744_v60 = vunpack.c.l.b16 %v3734_v40 }
 0x96e   :  { %3738 = vst [vmem:[#allocation2 + $0x8] sm:$0x1] %v3737_v0 }
 0x96f   :  { %v3740_v17 = vsel %vm12839_vm3, %v3735_v32, %v3739_v49  ;;  %v3745_v62 = vunpack.c.l.b16 %v3735_v32  ;;  %v3751_v9 = vrot.slane %v3749_v5, 5  ;;  %v3753_v55 = vshll.u32 %v3735_v32, 16 }
 0x970   :  { %3741 = vst [vmem:[#allocation2 + $0x18] sm:$0x1] %v3740_v17 }
 0x971   :  { %v3755_v12 = vrot.slane %v3753_v55, 5  ;;  %v3759_v37 = vsel %vm12848_vm6, %v3751_v9, %v3758_v52  ;;  %v3796_v53 = vrot.slane %v3745_v62, 7 }
 0x972   :  { %3760 = vst [vmem:[#allocation2 + $0x4] sm:$0x8] %v3759_v37 }
 0x973   :  { %v3762_v44 = vsel %vm12848_vm6, %v3755_v12, %v3761_v43  ;;  %v3797_v33 = vsel %vm656_vm7, %v3796_v53, %v3744_v60 }
 0x974   :  { %3763 = vst [vmem:[#allocation2 + $0x14] sm:$0x8] %v3762_v44  ;;  %v3798_v38 = vpack.c.b16 %v3797_v33, %v3797_v33 }
 0x976   :  { %3993 = vmatmul.mubr.bf16.vlgmr.msra.gmra.mxu0 %v3798_v38  ;;  %4034 = vmatmul.mubr.bf16.vlgmr.msra.gmra.mxu1 %v3798_v38 }
 0x977   :  { %4347 = vmatpush1.bf16.msra.mxu0 %v13419_v13  ;;  %4388 = vmatpush1.bf16.msra.mxu1 %v13421_v48 }
 0x978   :  { %4348 = vmatprep.subr.bf16.mxu0 %v13427_v23  ;;  %4389 = vmatprep.subr.bf16.mxu1 %v13429_v45 }
 0x979   :  { %4378 = vmatprep.mubr.bf16.mxu0 %v15071_v41  ;;  %4419 = vmatprep.mubr.bf16.mxu1 %v15071_v41 }
 0x97b   :  { %4349 = vmatpush1.bf16.msra.mxu0 %v13431_v46  ;;  %4390 = vmatpush1.bf16.msra.mxu1 %v13433_v11 }
 0x97c   :  { %4350 = vmatprep.subr.bf16.mxu0 %v13441_v47  ;;  %4391 = vmatprep.subr.bf16.mxu1 %v13445_v61 }
 0x97f   :  { %4351 = vmatpush1.bf16.msra.mxu0 %v13439_v15  ;;  %4392 = vmatpush1.bf16.msra.mxu1 %v13443_v18 }
 0x980   :  { %4352 = vmatprep.subr.bf16.mxu0 %v13447_v58  ;;  %4393 = vmatprep.subr.bf16.mxu1 %v13450_v10 }
 0x983   :  { %4353 = vmatpush1.bf16.msra.mxu0 %v13454_v6  ;;  %4394 = vmatpush1.bf16.msra.mxu1 %v13458_v8 }
 0x984   :  { %4354 = vmatprep.subr.bf16.mxu0 %v13460_v56  ;;  %4395 = vmatprep.subr.bf16.mxu1 %v13463_v59 }
 0x987   :  { %4355 = vmatpush1.bf16.msra.mxu0 %v13466_v14  ;;  %4396 = vmatpush1.bf16.msra.mxu1 %v13470_v25 }
 0x988   :  { %4356 = vmatprep.subr.bf16.mxu0 %v13472_v1  ;;  %4397 = vmatprep.subr.bf16.mxu1 %v13475_v16 }
 0x98b   :  { %4357 = vmatpush1.bf16.msra.mxu0 %v13478_v21  ;;  %4398 = vmatpush1.bf16.msra.mxu1 %v13482_v22 }
 0x98c   :  { %4358 = vmatprep.subr.bf16.mxu0 %v13484_v24  ;;  %4399 = vmatprep.subr.bf16.mxu1 %v13487_v35 }
 0x98f   :  { %4359 = vmatpush1.bf16.msra.mxu0 %v13490_v50  ;;  %4400 = vmatpush1.bf16.msra.mxu1 %v13494_v51 }
 0x990   :  { %4360 = vmatprep.subr.bf16.mxu0 %v13496_v39  ;;  %4401 = vmatprep.subr.bf16.mxu1 %v13499_v2 }
 0x993   :  { %4361 = vmatpush1.bf16.msra.mxu0 %v13502_v63  ;;  %4402 = vmatpush1.bf16.msra.mxu1 %v13506_v3 }
 0x994   :  { %4737 = vmatprep.subr.bf16.mxu0 %v13415_v20  ;;  %4778 = vmatprep.subr.bf16.mxu1 %v13417_v7 }
 0xa36   :  { %v3994_v40 = vpop.f32.mrf.mxu0  ;;  %v4035_v49 = vpop.f32.mrf.mxu1 }
 0xa37   :  { %v4046_v32 = vrot.slane %v3994_v40, 7  ;;  %v4062_v0 = vadd.f32 %v3994_v40, %v15086_v57 }
 0xa38   :  { %v3996_v5 = vpop.f32.mrf.mxu0  ;;  %v4037_v52 = vpop.f32.mrf.mxu1 }
 0xa39   :  { %v4058_v17 = vadd.f32 %v4046_v32, %v15083_v19  ;;  %v10426_v62 = vmul.f32 -1.442695, %v4062_v0  ;;  %v4047_v9 = vrot.slane %v3996_v5, 7  ;;  %v4063_v55 = vadd.f32 %v3996_v5, %v13521_v30 }
 0xa3a   :  { %v3998_v43 = vpop.f32.mrf.mxu0  ;;  %v4039_v60 = vpop.f32.mrf.mxu1  ;;  %v4049_v33 = vrot.slane %v4037_v52, 7  ;;  %v4065_v38 = vadd.f32 %v4037_v52, %v13531_v29  ;;  %v4064_v32 = vadd.f32 %v4035_v49, %v15092_v36  ;;  %v4048_v5 = vrot.slane %v4035_v49, 7 }
 0xa3b   :  { %v10425_v12 = vmul.f32 -1.442695, %v4058_v17  ;;  %11649 = vpow2.f32 %v10426_v62  ;;  %v4059_v20 = vadd.f32 %v4047_v9, %v13516_v4  ;;  %v10428_v7 = vmul.f32 -1.442695, %v4063_v55 }
 0xa3c   :  { %v3999_v37 = vpop.f32.mrf.mxu0  ;;  %v4040_v53 = vpop.f32.mrf.mxu1  ;;  %v4061_v40 = vadd.f32 %v4049_v33, %v13527_v28  ;;  %v10430_v0 = vmul.f32 -1.442695, %v4065_v38  ;;  %v4107_v38 = vrot.slane %v13541_v27, 7 }
 0xa3d   :  { %11651 = vpow2.f32 %v10425_v12  ;;  %v10427_v44 = vmul.f32 -1.442695, %v4059_v20  ;;  %v4060_v12 = vadd.f32 %v4048_v5, %v15091_v31 }
 0xa3e   :  { %11653 = vpow2.f32 %v10428_v7  ;;  %v10429_v17 = vmul.f32 -1.442695, %v4061_v40 }
 0xa3f   :  { %11655 = vpow2.f32 %v10427_v44 }
 0xa40   :  { %11657 = vtanh.f32 %v4064_v32 }
 0xa41   :  { %11659 = vpow2.f32 %v10430_v0 }
 0xa42   :  { %11661 = vpow2.f32 %v10429_v17  ;;  %v4106_v17 = vrot.slane %v13539_v26, 7 }
 0xa48   :  { %v11650_v62 = vpop.eup %11649 }
 0xa49   :  { %v4073_v43 = vadd.f32 1.0, %v11650_v62 }
 0xa4a   :  { %v11652_v9 = vpop.eup %11651 }
 0xa4b   :  { %v11654_v55 = vpop.eup %11653  ;;  %v4072_v60 = vadd.f32 1.0, %v11652_v9  ;;  %11663 = vrcp.f32 %v4073_v43 }
 0xa4c   :  { %v4085_v20 = vadd.f32 1.0, %v11654_v55  ;;  %v11656_v52 = vpop.eup %11655 }
 0xa4d   :  { %11665 = vrcp.f32 %v4072_v60  ;;  %v4084_v7 = vadd.f32 1.0, %v11656_v52  ;;  %v11658_v49 = vpop.eup %11657 }
 0xa4e   :  { %11667 = vrcp.f32 %v4085_v20  ;;  %v11660_v37 = vpop.eup %11659 }
 0xa4f   :  { %11669 = vtanh.f32 %v4060_v12  ;;  %v11662_v53 = vpop.eup %11661  ;;  %v4099_v32 = vadd.f32 1.0, %v11660_v37 }
 0xa50   :  { %11671 = vrcp.f32 %v4084_v7  ;;  %v4098_v9 = vadd.f32 1.0, %v11662_v53  ;;  %v4125_v53 = vld [vmem:[#allocation2 + $0x18] sm:$0x1] }
 0xa51   :  { %11673 = vrcp.f32 %v4099_v32  ;;  %v4122_v32 = vld [vmem:[#allocation2 + $0x8] sm:$0x1] }
 0xa58   :  { %v11664_v44 = vpop.eup %11663 }
 0xa59   :  { %v4113_v5 = vmul.f32 %v11664_v44, %v11658_v49 }
 0xa5a   :  { %v11666_v33 = vpop.eup %11665 }
 0xa5b   :  { %v11668_v40 = vpop.eup %11667 }
 0xa5c   :  { %v11670_v0 = vpop.eup %11669  ;;  %v4111_v62 = vmul.f32 %v11668_v40, %v4107_v38 }
 0xa5d   :  { %v11672_v43 = vpop.eup %11671  ;;  %v4112_v55 = vmul.f32 %v11670_v0, %v11666_v33 }
 0xa5e   :  { %v4110_v60 = vmul.f32 %v11672_v43, %v4106_v17  ;;  %v13598_v12 = vadd.f32 %v4113_v5, %v4111_v62  ;;  %v11674_v27 = vpop.eup %11673  ;;  %v4147_v43 = vld [vmem:[#allocation2 + $0x14] sm:$0x8] }
 0xa60   :  { %v13600_v20 = vadd.f32 %v4112_v55, %v4110_v60  ;;  %11675 = vtanh.f32 %v13598_v12 }
 0xa61   :  { %11677 = vrcp.f32 %v4098_v9 }
 0xa62   :  { %11679 = vtanh.f32 %v13600_v20 }
 0xa6d   :  { %v11676_v52 = vpop.eup %11675 }
 0xa6e   :  { %v11678_v7 = vpop.eup %11677  ;;  %v4119_v49 = vmul.f32 %v11676_v52, %v11674_v27 }
 0xa6f   :  { %v11680_v26 = vpop.eup %11679 }
 0xa70   :  { %v4118_v37 = vmul.f32 %v11680_v26, %v11678_v7  ;;  %v4121_v44 = vpack.c.bf16 %v4119_v49, %v4119_v49  ;;  %v4144_v7 = vld [vmem:[#allocation2 + $0x4] sm:$0x8] }
 0xa72   :  { %v4120_v33 = vpack.c.bf16 %v4118_v37, %v4118_v37  ;;  %v4126_v38 = vsel %vm12893_vm9, %v4121_v44, %v4125_v53  ;;  %v4139_v40 = vshrl.u32 %v4121_v44, 16  ;;  %v4131_v9 = vunpack.c.l.b16 %v4121_v44 }
 0xa73   :  { %4127 = vst [vmem:[#allocation2 + $0x18] sm:$0x1] %v4126_v38 }
 0xa74   :  { %v4123_v0 = vsel %vm12893_vm9, %v4120_v33, %v4122_v32  ;;  %v4130_v5 = vunpack.c.l.b16 %v4120_v33  ;;  %v4135_v17 = vshrl.u32 %v4120_v33, 16  ;;  %v4141_v62 = vrot.slane %v4139_v40, 5 }
 0xa75   :  { %4124 = vst [vmem:[#allocation2 + $0x8] sm:$0x1] %v4123_v0 }
 0xa76   :  { %v4137_v55 = vrot.slane %v4135_v17, 5  ;;  %v4148_v27 = vsel %vm12900_vm11, %v4141_v62, %v4147_v43  ;;  %v4182_v52 = vrot.slane %v4130_v5, 1 }
 0xa77   :  { %4149 = vst [vmem:[#allocation2 + $0x14] sm:$0x8] %v4148_v27 }
 0xa78   :  { %v4145_v49 = vsel %vm12900_vm11, %v4137_v55, %v4144_v7  ;;  %v4183_v26 = vsel %vm656_vm7, %v4131_v9, %v4182_v52  ;;  %v4496_v52 = vrot.slane %v13600_v20, 7 }
 0xa79   :  { %4146 = vst [vmem:[#allocation2 + $0x4] sm:$0x8] %v4145_v49  ;;  %v4184_v37 = vpack.c.b16 %v4183_v26, %v4183_v26  ;;  %v4497_v26 = vrot.slane %v13598_v12, 7 }
 0xa7b   :  { %4379 = vmatmul.mubr.bf16.vlgmr.msra.gmra.mxu0 %v4184_v37  ;;  %4420 = vmatmul.mubr.bf16.vlgmr.msra.gmra.mxu1 %v4184_v37 }
 0xa7c   :  { %4738 = vmatpush1.bf16.msra.mxu0 %v13419_v13  ;;  %4779 = vmatpush1.bf16.msra.mxu1 %v13421_v48 }
 0xa7d   :  { %4739 = vmatprep.subr.bf16.mxu0 %v13427_v23  ;;  %4780 = vmatprep.subr.bf16.mxu1 %v13429_v45 }
 0xa7e   :  { %4769 = vmatprep.mubr.bf16.mxu0 %v15071_v41  ;;  %4810 = vmatprep.mubr.bf16.mxu1 %v15071_v41 }
 0xa80   :  { %4740 = vmatpush1.bf16.msra.mxu0 %v13431_v46  ;;  %4781 = vmatpush1.bf16.msra.mxu1 %v13433_v11 }
 0xa81   :  { %4741 = vmatprep.subr.bf16.mxu0 %v13441_v47  ;;  %4782 = vmatprep.subr.bf16.mxu1 %v13445_v61 }
 0xa84   :  { %4742 = vmatpush1.bf16.msra.mxu0 %v13439_v15  ;;  %4783 = vmatpush1.bf16.msra.mxu1 %v13443_v18 }
 0xa85   :  { %4743 = vmatprep.subr.bf16.mxu0 %v13447_v58  ;;  %4784 = vmatprep.subr.bf16.mxu1 %v13450_v10 }
 0xa88   :  { %4744 = vmatpush1.bf16.msra.mxu0 %v13454_v6  ;;  %4785 = vmatpush1.bf16.msra.mxu1 %v13458_v8 }
 0xa89   :  { %4745 = vmatprep.subr.bf16.mxu0 %v13460_v56  ;;  %4786 = vmatprep.subr.bf16.mxu1 %v13463_v59 }
 0xa8c   :  { %4746 = vmatpush1.bf16.msra.mxu0 %v13466_v14  ;;  %4787 = vmatpush1.bf16.msra.mxu1 %v13470_v25 }
 0xa8d   :  { %4747 = vmatprep.subr.bf16.mxu0 %v13472_v1  ;;  %4788 = vmatprep.subr.bf16.mxu1 %v13475_v16 }
 0xa90   :  { %4748 = vmatpush1.bf16.msra.mxu0 %v13478_v21  ;;  %4789 = vmatpush1.bf16.msra.mxu1 %v13482_v22 }
 0xa91   :  { %4749 = vmatprep.subr.bf16.mxu0 %v13484_v24  ;;  %4790 = vmatprep.subr.bf16.mxu1 %v13487_v35 }
 0xa94   :  { %4750 = vmatpush1.bf16.msra.mxu0 %v13490_v50  ;;  %4791 = vmatpush1.bf16.msra.mxu1 %v13494_v51 }
 0xa95   :  { %4751 = vmatprep.subr.bf16.mxu0 %v13496_v39  ;;  %4792 = vmatprep.subr.bf16.mxu1 %v13499_v2 }
 0xa98   :  { %4752 = vmatpush1.bf16.msra.mxu0 %v13502_v63  ;;  %4793 = vmatpush1.bf16.msra.mxu1 %v13506_v3 }
 0xb3b   :  { %v4380_v13 = vpop.f32.mrf.mxu0  ;;  %v4421_v48 = vpop.f32.mrf.mxu1 }
 0xb3c   :  { %v4432_v23 = vrot.slane %v4380_v13, 6  ;;  %v4436_v45 = vrot.slane %v4380_v13, 7  ;;  %v4434_v24 = vrot.slane %v4421_v48, 6  ;;  %v4438_v35 = vrot.slane %v4421_v48, 7 }
 0xb3d   :  { %v4382_v46 = vpop.f32.mrf.mxu0  ;;  %v4423_v11 = vpop.f32.mrf.mxu1 }
 0xb3e   :  { %v4448_v15 = vadd.f32 %v4432_v23, %v15083_v19  ;;  %v4452_v47 = vadd.f32 %v4436_v45, %v15086_v57  ;;  %v4433_v18 = vrot.slane %v4382_v46, 6  ;;  %v4437_v61 = vrot.slane %v4382_v46, 7 }
 0xb3f   :  { %v4384_v58 = vpop.f32.mrf.mxu0  ;;  %v4425_v10 = vpop.f32.mrf.mxu1  ;;  %v4435_v21 = vrot.slane %v4423_v11, 6  ;;  %v4439_v22 = vrot.slane %v4423_v11, 7  ;;  %v4450_v39 = vadd.f32 %v4434_v24, %v15091_v31  ;;  %v4454_v2 = vadd.f32 %v4438_v35, %v15092_v36  ;;  %v4534_v24 = vld [vmem:[#allocation2 + $0x4] sm:$0x4] }
 0xb40   :  { %v10465_v6 = vmul.f32 -1.442695, %v4448_v15  ;;  %v10466_v8 = vmul.f32 -1.442695, %v4452_v47  ;;  %v4449_v56 = vadd.f32 %v4433_v18, %v13516_v4  ;;  %v4453_v59 = vadd.f32 %v4437_v61, %v13521_v30  ;;  %v4512_v10 = vld [vmem:[#allocation2 + $0x8] sm:$0x2] }
 0xb41   :  { %v4385_v14 = vpop.f32.mrf.mxu0  ;;  %v4426_v25 = vpop.f32.mrf.mxu1  ;;  %v4451_v50 = vadd.f32 %v4435_v21, %v13527_v28  ;;  %v4455_v51 = vadd.f32 %v4439_v22, %v13531_v29 }
 0xb42   :  { %11681 = vpow2.f32 %v10465_v6  ;;  %v10467_v1 = vmul.f32 -1.442695, %v4449_v56  ;;  %v10468_v16 = vmul.f32 -1.442695, %v4453_v59 }
 0xb43   :  { %11683 = vpow2.f32 %v10466_v8  ;;  %v10469_v63 = vmul.f32 -1.442695, %v4451_v50  ;;  %v10470_v3 = vmul.f32 -1.442695, %v4455_v51  ;;  %v4515_v8 = vld [vmem:[#allocation2 + $0x18] sm:$0x2] }
 0xb44   :  { %11685 = vpow2.f32 %v10467_v1  ;;  %v4537_v50 = vld [vmem:[#allocation2 + $0x14] sm:$0x4] }
 0xb45   :  { %11687 = vpow2.f32 %v10468_v16 }
 0xb46   :  { %11689 = vtanh.f32 %v4450_v39 }
 0xb47   :  { %11691 = vtanh.f32 %v4454_v2 }
 0xb48   :  { %11693 = vpow2.f32 %v10469_v63 }
 0xb49   :  { %11695 = vpow2.f32 %v10470_v3 }
 0xb4f   :  { %v11682_v44 = vpop.eup %11681 }
 0xb50   :  { %v11684_v53 = vpop.eup %11683  ;;  %v4462_v33 = vadd.f32 1.0, %v11682_v44 }
 0xb51   :  { %v4463_v38 = vadd.f32 1.0, %v11684_v53  ;;  %v11686_v40 = vpop.eup %11685 }
 0xb52   :  { %v11688_v32 = vpop.eup %11687  ;;  %11697 = vrcp.f32 %v4462_v33  ;;  %v4474_v0 = vadd.f32 1.0, %v11686_v40  ;;  %v13674_v40 = vld [vmem:[#allocation3 + $0xec] ss:$16 sps:$4 sm:$0xff]  }
 0xb53   :  { %11699 = vrcp.f32 %v4463_v38  ;;  %v4475_v5 = vadd.f32 1.0, %v11688_v32  ;;  %v11690_v17 = vpop.eup %11689  ;;  %v13672_v38 = vld [vmem:[#allocation3 + $0xe4] ss:$16 sps:$4 sm:$0xff]   ;;  %v13676_v32 = vld [vmem:[#allocation3 + $0xe0] ss:$16 sps:$4 sm:$0xff]   ;;  %5169 = vmatprep.subr.bf16.mxu1 %v13674_v40 }
 0xb54   :  { %11701 = vrcp.f32 %v4474_v0  ;;  %v11692_v62 = vpop.eup %11691  ;;  %v13678_v0 = vld [vmem:[#allocation3 + $0xe8] ss:$16 sps:$4 sm:$0xff]   ;;  %5128 = vmatprep.subr.bf16.mxu0 %v13672_v38 }
 0xb55   :  { %11703 = vrcp.f32 %v4475_v5  ;;  %v11694_v43 = vpop.eup %11693  ;;  %v13684_v5 = vld [vmem:[#allocation3 + $0xc4] ss:$16 sps:$4 sm:$0xff]  }
 0xb56   :  { %v11696_v9 = vpop.eup %11695  ;;  %v4488_v7 = vadd.f32 1.0, %v11694_v43  ;;  %v13690_v43 = vld [vmem:[#allocation3 + $0xc8] ss:$16 sps:$4 sm:$0xff]  }
 0xb57   :  { %v4489_v37 = vadd.f32 1.0, %v11696_v9  ;;  %v13696_v9 = vld [vmem:[#allocation3 + $0xa0] ss:$16 sps:$4 sm:$0xff]  }
 0xb58   :  { %11705 = vrcp.f32 %v4488_v7  ;;  %v13704_v7 = vld [vmem:[#allocation3 + $0x84] ss:$16 sps:$4 sm:$0xff]  }
 0xb59   :  { %11707 = vrcp.f32 %v4489_v37  ;;  %v13714_v37 = vld [vmem:[#allocation3 + $0x88] ss:$16 sps:$4 sm:$0xff]  }
 0xb5f   :  { %v11698_v55 = vpop.eup %11697 }
 0xb60   :  { %v11700_v27 = vpop.eup %11699  ;;  %v4502_v48 = vmul.f32 %v11698_v55, %v11690_v17  ;;  %v13686_v17 = vld [vmem:[#allocation3 + $0xcc] ss:$16 sps:$4 sm:$0xff]   ;;  %v13698_v55 = vld [vmem:[#allocation3 + $0xa4] ss:$16 sps:$4 sm:$0xff]  }
 0xb61   :  { %v11702_v49 = vpop.eup %11701  ;;  %v4503_v45 = vmul.f32 %v11700_v27, %v11692_v62  ;;  %v13688_v62 = vld [vmem:[#allocation3 + $0xc0] ss:$16 sps:$4 sm:$0xff]   ;;  %v13700_v27 = vld [vmem:[#allocation3 + $0xa8] ss:$16 sps:$4 sm:$0xff]  }
 0xb62   :  { %v11704_v13 = vpop.eup %11703  ;;  %v4500_v23 = vmul.f32 %v11702_v49, %v4496_v52  ;;  %v13702_v52 = vld [vmem:[#allocation3 + $0xac] ss:$16 sps:$4 sm:$0xff]  }
 0xb63   :  { %v4501_v46 = vmul.f32 %v11704_v13, %v4497_v26  ;;  %v13707_v49 = vld [vmem:[#allocation3 + $0x8c] ss:$16 sps:$4 sm:$0xff]   ;;  %v13712_v26 = vld [vmem:[#allocation3 + $0x80] ss:$16 sps:$4 sm:$0xff]   ;;  %v13718_v13 = vld [vmem:[#allocation3 + $0x64] ss:$16 sps:$4 sm:$0xff]  }
 0xb64   :  { %v13655_v11 = vadd.f32 %v4502_v48, %v4500_v23  ;;  %v13720_v48 = vld [vmem:[#allocation3 + $0x6c] ss:$16 sps:$4 sm:$0xff]   ;;  %v13724_v23 = vld [vmem:[#allocation3 + $0x60] ss:$16 sps:$4 sm:$0xff]  }
 0xb65   :  { %v13657_v15 = vadd.f32 %v4503_v45, %v4501_v46  ;;  %v11706_v20 = vpop.eup %11705  ;;  %v13726_v45 = vld [vmem:[#allocation3 + $0x68] ss:$16 sps:$4 sm:$0xff]   ;;  %v13730_v46 = vld [vmem:[#allocation3 + $0x44] ss:$16 sps:$4 sm:$0xff]  }
 0xb66   :  { %11709 = vtanh.f32 %v13655_v11  ;;  %v11708_v47 = vpop.eup %11707 }
 0xb67   :  { %11711 = vtanh.f32 %v13657_v15 }
 0xb73   :  { %v11710_v18 = vpop.eup %11709 }
 0xb74   :  { %v11712_v12 = vpop.eup %11711  ;;  %v4508_v61 = vmul.f32 %v11710_v18, %v11706_v20  ;;  %v13732_v20 = vld [vmem:[#allocation3 + $0x4c] ss:$16 sps:$4 sm:$0xff]   ;;  %v13738_v18 = vld [vmem:[#allocation3 + $0x48] ss:$16 sps:$4 sm:$0xff]  }
 0xb75   :  { %v4509_v58 = vmul.f32 %v11712_v12, %v11708_v47  ;;  %v13736_v47 = vld [vmem:[#allocation3 + $0x40] ss:$16 sps:$4 sm:$0xff]   ;;  %v13742_v12 = vld [vmem:[#allocation3 + $0x24] ss:$16 sps:$4 sm:$0xff]  }
 0xb76   :  { %v4510_v6 = vpack.c.bf16 %v4508_v61, %v4508_v61  ;;  %v13744_v61 = vld [vmem:[#allocation3 + $0x2c] ss:$16 sps:$4 sm:$0xff]  }
 0xb77   :  { %v4511_v56 = vpack.c.bf16 %v4509_v58, %v4509_v58  ;;  %v13748_v58 = vld [vmem:[#allocation3 + $0x20] ss:$16 sps:$4 sm:$0xff]  }
 0xb78   :  { %v4513_v14 = vsel %vm13028_vm13, %v4510_v6, %v4512_v10  ;;  %v4520_v25 = vunpack.c.l.b16 %v4510_v6  ;;  %v4525_v1 = vshll.u32 %v4510_v6, 16  ;;  %v13750_v10 = vld [vmem:[#allocation3 + $0x28] ss:$16 sps:$4 sm:$0xff]   ;;  %v13754_v6 = vld [vmem:[#allocation3 + $0x4] ss:$16 sps:$4 sm:$0xff]  }
 0xb79   :  { %4514 = vst [vmem:[#allocation2 + $0x8] sm:$0x2] %v4513_v14  ;;  %v4516_v16 = vsel %vm13028_vm13, %v4511_v56, %v4515_v8  ;;  %v4521_v21 = vunpack.c.l.b16 %v4511_v56  ;;  %v4529_v22 = vshll.u32 %v4511_v56, 16  ;;  %v13756_v8 = vld [vmem:[#allocation3 + $0xc] ss:$16 sps:$4 sm:$0xff]  }
 0xb7a   :  { %4517 = vst [vmem:[#allocation2 + $0x18] sm:$0x2] %v4516_v16  ;;  %v4527_v35 = vrot.slane %v4525_v1, 7  ;;  %v4572_v51 = vrot.slane %v4520_v25, 2  ;;  %v13760_v56 = vld [vmem:[#allocation3] ss:$16 sps:$4 sm:$0xff]  }
 0xb7b   :  { %v4531_v39 = vrot.slane %v4529_v22, 7  ;;  %v4573_v2 = vrot.slane %v4521_v21, 1  ;;  %v13762_v14 = vld [vmem:[#allocation3 + $0x8] ss:$16 sps:$4 sm:$0xff]  }
 0xb7c   :  { %v4535_v3 = vsel %vm13037_vm0, %v4527_v35, %v4534_v24 }
 0xb7d   :  { %4536 = vst [vmem:[#allocation2 + $0x4] sm:$0x4] %v4535_v3  ;;  %v4538_v44 = vsel %vm13037_vm0, %v4531_v39, %v4537_v50  ;;  %v4574_v53 = vsel %vm656_vm7, %v4573_v2, %v4572_v51 }
 0xb7e   :  { %4539 = vst [vmem:[#allocation2 + $0x14] sm:$0x4] %v4538_v44  ;;  %v4575_v33 = vpack.c.b16 %v4574_v53, %v4574_v53 }
 0xb80   :  { %4770 = vmatmul.mubr.bf16.vlgmr.msra.gmra.mxu0 %v4575_v33  ;;  %4811 = vmatmul.mubr.bf16.vlgmr.msra.gmra.mxu1 %v4575_v33 }
 0xb81   :  { %5160 = vmatprep.mubr.bf16.mxu0 %v15071_v41  ;;  %5201 = vmatprep.mubr.bf16.mxu1 %v15071_v41 }
 0xb82   :  { %5129 = vmatpush1.bf16.msra.mxu0 %v13676_v32  ;;  %5170 = vmatpush1.bf16.msra.mxu1 %v13678_v0 }
 0xb83   :  { %5130 = vmatprep.subr.bf16.mxu0 %v13684_v5  ;;  %5171 = vmatprep.subr.bf16.mxu1 %v13686_v17 }
 0xb86   :  { %5131 = vmatpush1.bf16.msra.mxu0 %v13688_v62  ;;  %5172 = vmatpush1.bf16.msra.mxu1 %v13690_v43 }
 0xb87   :  { %5132 = vmatprep.subr.bf16.mxu0 %v13698_v55  ;;  %5173 = vmatprep.subr.bf16.mxu1 %v13702_v52 }
 0xb8a   :  { %5133 = vmatpush1.bf16.msra.mxu0 %v13696_v9  ;;  %5174 = vmatpush1.bf16.msra.mxu1 %v13700_v27 }
 0xb8b   :  { %5134 = vmatprep.subr.bf16.mxu0 %v13704_v7  ;;  %5175 = vmatprep.subr.bf16.mxu1 %v13707_v49 }
 0xb8e   :  { %5135 = vmatpush1.bf16.msra.mxu0 %v13712_v26  ;;  %5176 = vmatpush1.bf16.msra.mxu1 %v13714_v37 }
 0xb8f   :  { %5136 = vmatprep.subr.bf16.mxu0 %v13718_v13  ;;  %5177 = vmatprep.subr.bf16.mxu1 %v13720_v48 }
 0xb92   :  { %5137 = vmatpush1.bf16.msra.mxu0 %v13724_v23  ;;  %5178 = vmatpush1.bf16.msra.mxu1 %v13726_v45 }
 0xb93   :  { %5138 = vmatprep.subr.bf16.mxu0 %v13730_v46  ;;  %5179 = vmatprep.subr.bf16.mxu1 %v13732_v20 }
 0xb96   :  { %5139 = vmatpush1.bf16.msra.mxu0 %v13736_v47  ;;  %5180 = vmatpush1.bf16.msra.mxu1 %v13738_v18 }
 0xb97   :  { %5140 = vmatprep.subr.bf16.mxu0 %v13742_v12  ;;  %5181 = vmatprep.subr.bf16.mxu1 %v13744_v61 }
 0xb9a   :  { %5141 = vmatpush1.bf16.msra.mxu0 %v13748_v58  ;;  %5182 = vmatpush1.bf16.msra.mxu1 %v13750_v10 }
 0xb9b   :  { %5142 = vmatprep.subr.bf16.mxu0 %v13754_v6  ;;  %5183 = vmatprep.subr.bf16.mxu1 %v13756_v8 }
 0xb9e   :  { %5143 = vmatpush1.bf16.msra.mxu0 %v13760_v56  ;;  %5184 = vmatpush1.bf16.msra.mxu1 %v13762_v14 }
 0xb9f   :  { %5521 = vmatprep.subr.bf16.mxu0 %v13672_v38  ;;  %5562 = vmatprep.subr.bf16.mxu1 %v13674_v40 }
 0xc40   :  { %v4771_v25 = vpop.f32.mrf.mxu0  ;;  %v4812_v1 = vpop.f32.mrf.mxu1 }
 0xc41   :  { %v4823_v16 = vrot.slane %v4771_v25, 5  ;;  %v4827_v21 = vrot.slane %v4771_v25, 6  ;;  %v4825_v59 = vrot.slane %v4812_v1, 5 }
 0xc42   :  { %v4773_v22 = vpop.f32.mrf.mxu0  ;;  %v4814_v24 = vpop.f32.mrf.mxu1 }
 0xc43   :  { %v4839_v35 = vadd.f32 %v4823_v16, %v15083_v19  ;;  %v4843_v50 = vadd.f32 %v4827_v21, %v15086_v57  ;;  %v4824_v51 = vrot.slane %v4773_v22, 5  ;;  %v4828_v39 = vrot.slane %v4773_v22, 6 }
 0xc44   :  { %v4775_v2 = vpop.f32.mrf.mxu0  ;;  %v4816_v3 = vpop.f32.mrf.mxu1  ;;  %v4826_v16 = vrot.slane %v4814_v24, 5  ;;  %v4830_v21 = vrot.slane %v4814_v24, 6  ;;  %v4829_v22 = vrot.slane %v4812_v1, 6 }
 0xc45   :  { %v10505_v44 = vmul.f32 -1.442695, %v4839_v35  ;;  %v10506_v53 = vmul.f32 -1.442695, %v4843_v50  ;;  %v4840_v33 = vadd.f32 %v4824_v51, %v13516_v4  ;;  %v4844_v34 = vadd.f32 %v4828_v39, %v13521_v30 }
 0xc46   :  { %v4776_v42 = vpop.f32.mrf.mxu0  ;;  %v4817_v54 = vpop.f32.mrf.mxu1  ;;  %v4842_v2 = vadd.f32 %v4826_v16, %v13527_v28  ;;  %v4846_v35 = vadd.f32 %v4830_v21, %v13531_v29  ;;  %v4841_v50 = vadd.f32 %v4825_v59, %v15091_v31  ;;  %v4845_v51 = vadd.f32 %v4829_v22, %v15092_v36 }
 0xc47   :  { %11713 = vpow2.f32 %v10505_v44  ;;  %v10507_v25 = vmul.f32 -1.442695, %v4840_v33  ;;  %v10508_v60 = vmul.f32 -1.442695, %v4844_v34 }
 0xc48   :  { %11715 = vpow2.f32 %v10506_v53  ;;  %v10509_v42 = vmul.f32 -1.442695, %v4842_v2  ;;  %v10510_v54 = vmul.f32 -1.442695, %v4846_v35  ;;  %v4887_v2 = vrot.slane %v13655_v11, 7 }
 0xc49   :  { %11717 = vpow2.f32 %v10507_v25 }
 0xc4a   :  { %11719 = vpow2.f32 %v10508_v60 }
 0xc4b   :  { %11721 = vtanh.f32 %v4841_v50 }
 0xc4c   :  { %11723 = vtanh.f32 %v4845_v51  ;;  %v4888_v51 = vrot.slane %v13657_v15, 7 }
 0xc4d   :  { %11725 = vpow2.f32 %v10509_v42 }
 0xc4e   :  { %11727 = vpow2.f32 %v10510_v54 }
 0xc54   :  { %v11714_v39 = vpop.eup %11713 }
 0xc55   :  { %v11716_v3 = vpop.eup %11715  ;;  %v4853_v34 = vadd.f32 1.0, %v11714_v39 }
 0xc56   :  { %v4854_v44 = vadd.f32 1.0, %v11716_v3  ;;  %v11718_v60 = vpop.eup %11717 }
 0xc57   :  { %v11720_v1 = vpop.eup %11719  ;;  %11729 = vrcp.f32 %v4853_v34  ;;  %v4865_v24 = vadd.f32 1.0, %v11718_v60 }
 0xc58   :  { %11731 = vrcp.f32 %v4854_v44  ;;  %v4866_v53 = vadd.f32 1.0, %v11720_v1  ;;  %v11722_v59 = vpop.eup %11721 }
 0xc59   :  { %11733 = vrcp.f32 %v4865_v24  ;;  %v11724_v33 = vpop.eup %11723 }
 0xc5a   :  { %11735 = vrcp.f32 %v4866_v53  ;;  %v11726_v25 = vpop.eup %11725 }
 0xc5b   :  { %v11728_v16 = vpop.eup %11727  ;;  %v4879_v35 = vadd.f32 1.0, %v11726_v25 }
 0xc5c   :  { %v4880_v42 = vadd.f32 1.0, %v11728_v16 }
 0xc5d   :  { %11737 = vrcp.f32 %v4879_v35  ;;  %v4906_v35 = vld [vmem:[#allocation2 + $0x18] sm:$0x2] }
 0xc5e   :  { %11739 = vrcp.f32 %v4880_v42 }
 0xc64   :  { %v11730_v21 = vpop.eup %11729 }
 0xc65   :  { %v11732_v22 = vpop.eup %11731  ;;  %v4893_v39 = vmul.f32 %v11730_v21, %v11722_v59 }
 0xc66   :  { %v11734_v50 = vpop.eup %11733  ;;  %v4894_v34 = vmul.f32 %v11732_v22, %v11724_v33  ;;  %v4903_v33 = vld [vmem:[#allocation2 + $0x8] sm:$0x2] }
 0xc67   :  { %v11736_v54 = vpop.eup %11735  ;;  %v4891_v3 = vmul.f32 %v11734_v50, %v4887_v2 }
 0xc68   :  { %v4892_v44 = vmul.f32 %v11736_v54, %v4888_v51 }
 0xc69   :  { %v13780_v60 = vadd.f32 %v4893_v39, %v4891_v3 }
 0xc6a   :  { %v13782_v1 = vadd.f32 %v4894_v34, %v4892_v44  ;;  %v11738_v11 = vpop.eup %11737 }
 0xc6b   :  { %11741 = vtanh.f32 %v13780_v60  ;;  %v11740_v24 = vpop.eup %11739 }
 0xc6c   :  { %11743 = vtanh.f32 %v13782_v1 }
 0xc78   :  { %v11742_v53 = vpop.eup %11741 }
 0xc79   :  { %v11744_v15 = vpop.eup %11743  ;;  %v4899_v25 = vmul.f32 %v11742_v53, %v11738_v11  ;;  %v4925_v11 = vld [vmem:[#allocation2 + $0x4] sm:$0x4] }
 0xc7a   :  { %v4900_v16 = vmul.f32 %v11744_v15, %v11740_v24 }
 0xc7b   :  { %v4901_v59 = vpack.c.bf16 %v4899_v25, %v4899_v25  ;;  %v4928_v25 = vld [vmem:[#allocation2 + $0x14] sm:$0x4] }
 0xc7c   :  { %v4902_v21 = vpack.c.bf16 %v4900_v16, %v4900_v16 }
 0xc7d   :  { %v4904_v2 = vsel %vm13097_vm2, %v4901_v59, %v4903_v33  ;;  %v4911_v50 = vunpack.c.l.b16 %v4901_v59  ;;  %v4916_v51 = vshrl.u32 %v4901_v59, 16 }
 0xc7e   :  { %4905 = vst [vmem:[#allocation2 + $0x8] sm:$0x2] %v4904_v2  ;;  %v4907_v42 = vsel %vm13097_vm2, %v4902_v21, %v4906_v35  ;;  %v4912_v54 = vunpack.c.l.b16 %v4902_v21  ;;  %v4920_v39 = vshrl.u32 %v4902_v21, 16 }
 0xc7f   :  { %4908 = vst [vmem:[#allocation2 + $0x18] sm:$0x2] %v4907_v42  ;;  %v4918_v3 = vrot.slane %v4916_v51, 7  ;;  %v4963_v34 = vrot.slane %v4911_v50, 3 }
 0xc80   :  { %v4922_v44 = vrot.slane %v4920_v39, 7  ;;  %v4964_v24 = vrot.slane %v4912_v54, 2 }
 0xc81   :  { %v4926_v15 = vsel %vm13106_vm5, %v4918_v3, %v4925_v11 }
 0xc82   :  { %4927 = vst [vmem:[#allocation2 + $0x4] sm:$0x4] %v4926_v15  ;;  %v4929_v16 = vsel %vm13106_vm5, %v4922_v44, %v4928_v25  ;;  %v4965_v59 = vsel %vm656_vm7, %v4964_v24, %v4963_v34 }
 0xc83   :  { %4930 = vst [vmem:[#allocation2 + $0x14] sm:$0x4] %v4929_v16  ;;  %v4966_v33 = vpack.c.b16 %v4965_v59, %v4965_v59 }
 0xc85   :  { %5161 = vmatmul.mubr.bf16.vlgmr.msra.gmra.mxu0 %v4966_v33  ;;  %5202 = vmatmul.mubr.bf16.vlgmr.msra.gmra.mxu1 %v4966_v33 }
 0xc86   :  { %5522 = vmatpush1.bf16.msra.mxu0 %v13676_v32  ;;  %5563 = vmatpush1.bf16.msra.mxu1 %v13678_v0 }
 0xc87   :  { %5523 = vmatprep.subr.bf16.mxu0 %v13684_v5  ;;  %5564 = vmatprep.subr.bf16.mxu1 %v13686_v17 }
 0xc88   :  { %5553 = vmatprep.mubr.bf16.mxu0 %v15071_v41  ;;  %5594 = vmatprep.mubr.bf16.mxu1 %v15071_v41 }
 0xc8a   :  { %5524 = vmatpush1.bf16.msra.mxu0 %v13688_v62  ;;  %5565 = vmatpush1.bf16.msra.mxu1 %v13690_v43 }
 0xc8b   :  { %5525 = vmatprep.subr.bf16.mxu0 %v13698_v55  ;;  %5566 = vmatprep.subr.bf16.mxu1 %v13702_v52 }
 0xc8e   :  { %5526 = vmatpush1.bf16.msra.mxu0 %v13696_v9  ;;  %5567 = vmatpush1.bf16.msra.mxu1 %v13700_v27 }
 0xc8f   :  { %5527 = vmatprep.subr.bf16.mxu0 %v13704_v7  ;;  %5568 = vmatprep.subr.bf16.mxu1 %v13707_v49 }
 0xc92   :  { %5528 = vmatpush1.bf16.msra.mxu0 %v13712_v26  ;;  %5569 = vmatpush1.bf16.msra.mxu1 %v13714_v37 }
 0xc93   :  { %5529 = vmatprep.subr.bf16.mxu0 %v13718_v13  ;;  %5570 = vmatprep.subr.bf16.mxu1 %v13720_v48 }
 0xc96   :  { %5530 = vmatpush1.bf16.msra.mxu0 %v13724_v23  ;;  %5571 = vmatpush1.bf16.msra.mxu1 %v13726_v45 }
 0xc97   :  { %5531 = vmatprep.subr.bf16.mxu0 %v13730_v46  ;;  %5572 = vmatprep.subr.bf16.mxu1 %v13732_v20 }
 0xc9a   :  { %5532 = vmatpush1.bf16.msra.mxu0 %v13736_v47  ;;  %5573 = vmatpush1.bf16.msra.mxu1 %v13738_v18 }
 0xc9b   :  { %5533 = vmatprep.subr.bf16.mxu0 %v13742_v12  ;;  %5574 = vmatprep.subr.bf16.mxu1 %v13744_v61 }
 0xc9e   :  { %5534 = vmatpush1.bf16.msra.mxu0 %v13748_v58  ;;  %5575 = vmatpush1.bf16.msra.mxu1 %v13750_v10 }
 0xc9f   :  { %5535 = vmatprep.subr.bf16.mxu0 %v13754_v6  ;;  %5576 = vmatprep.subr.bf16.mxu1 %v13756_v8 }
 0xca2   :  { %5536 = vmatpush1.bf16.msra.mxu0 %v13760_v56  ;;  %5577 = vmatpush1.bf16.msra.mxu1 %v13762_v14 }
 0xca3   :  { %5914 = vmatprep.subr.bf16.mxu0 %v13672_v38  ;;  %5955 = vmatprep.subr.bf16.mxu1 %v13674_v40 }
 0xd45   :  { %v5162_v21 = vpop.f32.mrf.mxu0  ;;  %v5203_v2 = vpop.f32.mrf.mxu1 }
 0xd46   :  { %v5214_v35 = vrot.slane %v5162_v21, 4  ;;  %v5218_v50 = vrot.slane %v5162_v21, 5 }
 0xd47   :  { %v5164_v51 = vpop.f32.mrf.mxu0  ;;  %v5205_v42 = vpop.f32.mrf.mxu1 }
 0xd48   :  { %v5230_v54 = vadd.f32 %v5214_v35, %v15083_v19  ;;  %v5234_v39 = vadd.f32 %v5218_v50, %v15086_v57  ;;  %v5215_v3 = vrot.slane %v5164_v51, 4  ;;  %v5219_v34 = vrot.slane %v5164_v51, 5 }
 0xd49   :  { %v5166_v44 = vpop.f32.mrf.mxu0  ;;  %v5207_v11 = vpop.f32.mrf.mxu1  ;;  %v5217_v21 = vrot.slane %v5205_v42, 4  ;;  %v5221_v35 = vrot.slane %v5205_v42, 5  ;;  %v5216_v50 = vrot.slane %v5203_v2, 4  ;;  %v5220_v51 = vrot.slane %v5203_v2, 5 }
 0xd4a   :  { %v10545_v24 = vmul.f32 -1.442695, %v5230_v54  ;;  %v10546_v15 = vmul.f32 -1.442695, %v5234_v39  ;;  %v5231_v38 = vadd.f32 %v5215_v3, %v13516_v4  ;;  %v5235_v40 = vadd.f32 %v5219_v34, %v13521_v30 }
 0xd4b   :  { %v5167_v25 = vpop.f32.mrf.mxu0  ;;  %v5208_v16 = vpop.f32.mrf.mxu1  ;;  %v5233_v44 = vadd.f32 %v5217_v21, %v13527_v28  ;;  %v5237_v54 = vadd.f32 %v5221_v35, %v13531_v29  ;;  %v5232_v39 = vadd.f32 %v5216_v50, %v15091_v31  ;;  %v5236_v3 = vadd.f32 %v5220_v51, %v15092_v36 }
 0xd4c   :  { %11745 = vpow2.f32 %v10545_v24  ;;  %v10547_v59 = vmul.f32 -1.442695, %v5231_v38  ;;  %v10548_v33 = vmul.f32 -1.442695, %v5235_v40 }
 0xd4d   :  { %11747 = vpow2.f32 %v10546_v15  ;;  %v10549_v34 = vmul.f32 -1.442695, %v5233_v44  ;;  %v10550_v11 = vmul.f32 -1.442695, %v5237_v54  ;;  %v5278_v44 = vrot.slane %v13780_v60, 7 }
 0xd4e   :  { %11749 = vpow2.f32 %v10547_v59 }
 0xd4f   :  { %11751 = vpow2.f32 %v10548_v33 }
 0xd50   :  { %11753 = vtanh.f32 %v5232_v39 }
 0xd51   :  { %11755 = vtanh.f32 %v5236_v3  ;;  %v5279_v3 = vrot.slane %v13782_v1, 7 }
 0xd52   :  { %11757 = vpow2.f32 %v10549_v34 }
 0xd53   :  { %11759 = vpow2.f32 %v10550_v11 }
 0xd59   :  { %v11746_v24 = vpop.eup %11745 }
 0xd5a   :  { %v11748_v15 = vpop.eup %11747  ;;  %v5244_v38 = vadd.f32 1.0, %v11746_v24 }
 0xd5b   :  { %v5245_v40 = vadd.f32 1.0, %v11748_v15  ;;  %v11750_v42 = vpop.eup %11749 }
 0xd5c   :  { %v11752_v2 = vpop.eup %11751  ;;  %11761 = vrcp.f32 %v5244_v38  ;;  %v5256_v25 = vadd.f32 1.0, %v11750_v42 }
 0xd5d   :  { %11763 = vrcp.f32 %v5245_v40  ;;  %v5257_v16 = vadd.f32 1.0, %v11752_v2  ;;  %v11754_v59 = vpop.eup %11753 }
 0xd5e   :  { %11765 = vrcp.f32 %v5256_v25  ;;  %v11756_v33 = vpop.eup %11755 }
 0xd5f   :  { %11767 = vrcp.f32 %v5257_v16  ;;  %v11758_v21 = vpop.eup %11757 }
 0xd60   :  { %v11760_v35 = vpop.eup %11759  ;;  %v5270_v54 = vadd.f32 1.0, %v11758_v21 }
 0xd61   :  { %v5271_v34 = vadd.f32 1.0, %v11760_v35 }
 0xd62   :  { %11769 = vrcp.f32 %v5270_v54 }
 0xd63   :  { %11771 = vrcp.f32 %v5271_v34 }
 0xd69   :  { %v11762_v50 = vpop.eup %11761 }
 0xd6a   :  { %v11764_v51 = vpop.eup %11763  ;;  %v5284_v24 = vmul.f32 %v11762_v50, %v11754_v59  ;;  %v5294_v59 = vld [vmem:[#allocation2 + $0x8] sm:$0x4] }
 0xd6b   :  { %v11766_v39 = vpop.eup %11765  ;;  %v5285_v38 = vmul.f32 %v11764_v51, %v11756_v33  ;;  %v5297_v33 = vld [vmem:[#allocation2 + $0x18] sm:$0x4] }
 0xd6c   :  { %v11768_v11 = vpop.eup %11767  ;;  %v5282_v15 = vmul.f32 %v11766_v39, %v5278_v44 }
 0xd6d   :  { %v5283_v40 = vmul.f32 %v11768_v11, %v5279_v3 }
 0xd6e   :  { %v13839_v42 = vadd.f32 %v5284_v24, %v5282_v15  ;;  %v5318_v24 = vld [vmem:[#allocation2 + $0x4] sm:$0x2] }
 0xd6f   :  { %v13841_v2 = vadd.f32 %v5285_v38, %v5283_v40  ;;  %v11770_v60 = vpop.eup %11769  ;;  %v5321_v38 = vld [vmem:[#allocation2 + $0x14] sm:$0x2] }
 0xd70   :  { %11773 = vtanh.f32 %v13839_v42  ;;  %v11772_v25 = vpop.eup %11771 }
 0xd71   :  { %11775 = vtanh.f32 %v13841_v2 }
 0xd7d   :  { %v11774_v16 = vpop.eup %11773 }
 0xd7e   :  { %v11776_v1 = vpop.eup %11775  ;;  %v5290_v21 = vmul.f32 %v11774_v16, %v11770_v60 }
 0xd7f   :  { %v5291_v35 = vmul.f32 %v11776_v1, %v11772_v25 }
 0xd80   :  { %v5292_v50 = vpack.c.bf16 %v5290_v21, %v5290_v21 }
 0xd81   :  { %v5293_v51 = vpack.c.bf16 %v5291_v35, %v5291_v35 }
 0xd82   :  { %v5295_v44 = vsel %vm13106_vm5, %v5292_v50, %v5294_v59  ;;  %v5302_v54 = vunpack.c.l.b16 %v5292_v50  ;;  %v5307_v39 = vshll.u32 %v5292_v50, 16 }
 0xd83   :  { %5296 = vst [vmem:[#allocation2 + $0x8] sm:$0x4] %v5295_v44  ;;  %v5298_v3 = vsel %vm13106_vm5, %v5293_v51, %v5297_v33  ;;  %v5303_v34 = vunpack.c.l.b16 %v5293_v51  ;;  %v5312_v11 = vshll.u32 %v5293_v51, 16 }
 0xd84   :  { %5299 = vst [vmem:[#allocation2 + $0x18] sm:$0x4] %v5298_v3  ;;  %v10553_v15 = vrot.slane %v5307_v39, 9  ;;  %v5356_v40 = vrot.slane %v5302_v54, 4 }
 0xd85   :  { %v10554_v60 = vrot.slane %v5312_v11, 9  ;;  %v5357_v25 = vrot.slane %v5303_v34, 3 }
 0xd86   :  { %v5319_v16 = vsel %vm13097_vm2, %v10553_v15, %v5318_v24 }
 0xd87   :  { %5320 = vst [vmem:[#allocation2 + $0x4] sm:$0x2] %v5319_v16  ;;  %v5322_v1 = vsel %vm13097_vm2, %v10554_v60, %v5321_v38  ;;  %v5358_v21 = vsel %vm656_vm7, %v5357_v25, %v5356_v40  ;;  %v5671_v38 = vrot.slane %v13839_v42, 7  ;;  %v5672_v25 = vrot.slane %v13841_v2, 7 }
 0xd88   :  { %5323 = vst [vmem:[#allocation2 + $0x14] sm:$0x2] %v5322_v1  ;;  %v5359_v53 = vpack.c.b16 %v5358_v21, %v5358_v21 }
 0xd8a   :  { %5554 = vmatmul.mubr.bf16.vlgmr.msra.gmra.mxu0 %v5359_v53  ;;  %5595 = vmatmul.mubr.bf16.vlgmr.msra.gmra.mxu1 %v5359_v53 }
 0xd8b   :  { %5915 = vmatpush1.bf16.msra.mxu0 %v13676_v32  ;;  %5956 = vmatpush1.bf16.msra.mxu1 %v13678_v0 }
 0xd8c   :  { %5916 = vmatprep.subr.bf16.mxu0 %v13684_v5  ;;  %5957 = vmatprep.subr.bf16.mxu1 %v13686_v17 }
 0xd8d   :  { %5946 = vmatprep.mubr.bf16.mxu0 %v15071_v41  ;;  %5987 = vmatprep.mubr.bf16.mxu1 %v15071_v41 }
 0xd8f   :  { %5917 = vmatpush1.bf16.msra.mxu0 %v13688_v62  ;;  %5958 = vmatpush1.bf16.msra.mxu1 %v13690_v43 }
 0xd90   :  { %5918 = vmatprep.subr.bf16.mxu0 %v13698_v55  ;;  %5959 = vmatprep.subr.bf16.mxu1 %v13702_v52 }
 0xd93   :  { %5919 = vmatpush1.bf16.msra.mxu0 %v13696_v9  ;;  %5960 = vmatpush1.bf16.msra.mxu1 %v13700_v27 }
 0xd94   :  { %5920 = vmatprep.subr.bf16.mxu0 %v13704_v7  ;;  %5961 = vmatprep.subr.bf16.mxu1 %v13707_v49 }
 0xd97   :  { %5921 = vmatpush1.bf16.msra.mxu0 %v13712_v26  ;;  %5962 = vmatpush1.bf16.msra.mxu1 %v13714_v37 }
 0xd98   :  { %5922 = vmatprep.subr.bf16.mxu0 %v13718_v13  ;;  %5963 = vmatprep.subr.bf16.mxu1 %v13720_v48 }
 0xd9b   :  { %5923 = vmatpush1.bf16.msra.mxu0 %v13724_v23  ;;  %5964 = vmatpush1.bf16.msra.mxu1 %v13726_v45 }
 0xd9c   :  { %5924 = vmatprep.subr.bf16.mxu0 %v13730_v46  ;;  %5965 = vmatprep.subr.bf16.mxu1 %v13732_v20 }
 0xd9f   :  { %5925 = vmatpush1.bf16.msra.mxu0 %v13736_v47  ;;  %5966 = vmatpush1.bf16.msra.mxu1 %v13738_v18 }
 0xda0   :  { %5926 = vmatprep.subr.bf16.mxu0 %v13742_v12  ;;  %5967 = vmatprep.subr.bf16.mxu1 %v13744_v61 }
 0xda3   :  { %5927 = vmatpush1.bf16.msra.mxu0 %v13748_v58  ;;  %5968 = vmatpush1.bf16.msra.mxu1 %v13750_v10 }
 0xda4   :  { %5928 = vmatprep.subr.bf16.mxu0 %v13754_v6  ;;  %5969 = vmatprep.subr.bf16.mxu1 %v13756_v8 }
 0xda7   :  { %5929 = vmatpush1.bf16.msra.mxu0 %v13760_v56  ;;  %5970 = vmatpush1.bf16.msra.mxu1 %v13762_v14 }
 0xe4a   :  { %v5555_v32 = vpop.f32.mrf.mxu0  ;;  %v5596_v0 = vpop.f32.mrf.mxu1 }
 0xe4b   :  { %v5607_v5 = vrot.slane %v5555_v32, 3  ;;  %v5611_v17 = vrot.slane %v5555_v32, 4  ;;  %v5609_v12 = vrot.slane %v5596_v0, 3  ;;  %v5613_v61 = vrot.slane %v5596_v0, 4 }
 0xe4c   :  { %v5557_v62 = vpop.f32.mrf.mxu0  ;;  %v5598_v43 = vpop.f32.mrf.mxu1 }
 0xe4d   :  { %v5623_v9 = vadd.f32 %v5607_v5, %v15083_v19  ;;  %v5627_v55 = vadd.f32 %v5611_v17, %v15086_v57  ;;  %v5608_v27 = vrot.slane %v5557_v62, 3  ;;  %v5612_v52 = vrot.slane %v5557_v62, 4 }
 0xe4e   :  { %v5559_v7 = vpop.f32.mrf.mxu0  ;;  %v5600_v49 = vpop.f32.mrf.mxu1  ;;  %v5610_v47 = vrot.slane %v5598_v43, 3  ;;  %v5614_v18 = vrot.slane %v5598_v43, 4  ;;  %v5625_v6 = vadd.f32 %v5609_v12, %v15091_v31  ;;  %v5629_v8 = vadd.f32 %v5613_v61, %v15092_v36 }
 0xe4f   :  { %v10587_v26 = vmul.f32 -1.442695, %v5623_v9  ;;  %v10588_v37 = vmul.f32 -1.442695, %v5627_v55  ;;  %v5624_v13 = vadd.f32 %v5608_v27, %v13516_v4  ;;  %v5628_v48 = vadd.f32 %v5612_v52, %v13521_v30  ;;  %v5687_v7 = vld [vmem:[#allocation2 + $0x8] sm:$0x4] }
 0xe50   :  { %v5560_v23 = vpop.f32.mrf.mxu0  ;;  %v5601_v45 = vpop.f32.mrf.mxu1  ;;  %v5626_v58 = vadd.f32 %v5610_v47, %v13527_v28  ;;  %v5630_v10 = vadd.f32 %v5614_v18, %v13531_v29  ;;  %v5711_v18 = vld [vmem:[#allocation2 + $0x4] sm:$0x2] }
 0xe51   :  { %11777 = vpow2.f32 %v10587_v26  ;;  %v10589_v46 = vmul.f32 -1.442695, %v5624_v13  ;;  %v10590_v20 = vmul.f32 -1.442695, %v5628_v48  ;;  %v5690_v26 = vld [vmem:[#allocation2 + $0x18] sm:$0x4] }
 0xe52   :  { %11779 = vpow2.f32 %v10588_v37  ;;  %v10591_v56 = vmul.f32 -1.442695, %v5626_v58  ;;  %v10592_v14 = vmul.f32 -1.442695, %v5630_v10  ;;  %v5714_v10 = vld [vmem:[#allocation2 + $0x14] sm:$0x2] }
 0xe53   :  { %11781 = vpow2.f32 %v10589_v46 }
 0xe54   :  { %11783 = vpow2.f32 %v10590_v20 }
 0xe55   :  { %11785 = vtanh.f32 %v5625_v6 }
 0xe56   :  { %11787 = vtanh.f32 %v5629_v8 }
 0xe57   :  { %11789 = vpow2.f32 %v10591_v56  ;;  %v11165_v56 = vld [vmem:[#allocation3 + $0xe4] ss:$16 sps:$4 sm:$0xff]  }
 0xe58   :  { %11791 = vpow2.f32 %v10592_v14  ;;  %v11168_v14 = vld [vmem:[#allocation3 + $0xec] ss:$16 sps:$4 sm:$0xff]   ;;  %6307 = vmatprep.subr.bf16.mxu0 %v11165_v56 }
 0xe59   :  { %6348 = vmatprep.subr.bf16.mxu1 %v11168_v14 }
 0xe5e   :  { %v11778_v22 = vpop.eup %11777 }
 0xe5f   :  { %v11780_v35 = vpop.eup %11779  ;;  %v5637_v59 = vadd.f32 1.0, %v11778_v22  ;;  %v11163_v22 = vld [vmem:[#allocation3 + $0xe0] ss:$16 sps:$4 sm:$0xff]  }
 0xe60   :  { %v5638_v50 = vadd.f32 1.0, %v11780_v35  ;;  %v11782_v33 = vpop.eup %11781  ;;  %v11166_v35 = vld [vmem:[#allocation3 + $0xe8] ss:$16 sps:$4 sm:$0xff]  }
 0xe61   :  { %v11784_v51 = vpop.eup %11783  ;;  %11793 = vrcp.f32 %v5637_v59  ;;  %v5649_v44 = vadd.f32 1.0, %v11782_v33  ;;  %v11171_v59 = vld [vmem:[#allocation3 + $0xc4] ss:$16 sps:$4 sm:$0xff]   ;;  %v11169_v33 = vld [vmem:[#allocation3 + $0xc0] ss:$16 sps:$4 sm:$0xff]  }
 0xe62   :  { %11795 = vrcp.f32 %v5638_v50  ;;  %v5650_v54 = vadd.f32 1.0, %v11784_v51  ;;  %v11786_v39 = vpop.eup %11785  ;;  %v11174_v50 = vld [vmem:[#allocation3 + $0xcc] ss:$16 sps:$4 sm:$0xff]   ;;  %v11172_v51 = vld [vmem:[#allocation3 + $0xc8] ss:$16 sps:$4 sm:$0xff]  }
 0xe63   :  { %11797 = vrcp.f32 %v5649_v44  ;;  %v11788_v3 = vpop.eup %11787  ;;  %v11175_v44 = vld [vmem:[#allocation3 + $0xa0] ss:$16 sps:$4 sm:$0xff]  }
 0xe64   :  { %11799 = vrcp.f32 %v5650_v54  ;;  %v11790_v34 = vpop.eup %11789  ;;  %v11177_v54 = vld [vmem:[#allocation3 + $0xa4] ss:$16 sps:$4 sm:$0xff]  }
 0xe65   :  { %v11792_v11 = vpop.eup %11791  ;;  %v5663_v40 = vadd.f32 1.0, %v11790_v34  ;;  %v11183_v34 = vld [vmem:[#allocation3 + $0x84] ss:$16 sps:$4 sm:$0xff]  }
 0xe66   :  { %v5664_v16 = vadd.f32 1.0, %v11792_v11  ;;  %v11186_v11 = vld [vmem:[#allocation3 + $0x8c] ss:$16 sps:$4 sm:$0xff]  }
 0xe67   :  { %11801 = vrcp.f32 %v5663_v40  ;;  %v11192_v40 = vld [vmem:[#allocation3 + $0x6c] ss:$16 sps:$4 sm:$0xff]  }
 0xe68   :  { %11803 = vrcp.f32 %v5664_v16  ;;  %v11195_v16 = vld [vmem:[#allocation3 + $0x44] ss:$16 sps:$4 sm:$0xff]  }
 0xe6e   :  { %v11794_v24 = vpop.eup %11793 }
 0xe6f   :  { %v11796_v15 = vpop.eup %11795  ;;  %v5677_v21 = vmul.f32 %v11794_v24, %v11786_v39  ;;  %v11178_v39 = vld [vmem:[#allocation3 + $0xa8] ss:$16 sps:$4 sm:$0xff]   ;;  %v11181_v24 = vld [vmem:[#allocation3 + $0x80] ss:$16 sps:$4 sm:$0xff]  }
 0xe70   :  { %v11798_v60 = vpop.eup %11797  ;;  %v5678_v32 = vmul.f32 %v11796_v15, %v11788_v3  ;;  %v11180_v3 = vld [vmem:[#allocation3 + $0xac] ss:$16 sps:$4 sm:$0xff]   ;;  %v11184_v15 = vld [vmem:[#allocation3 + $0x88] ss:$16 sps:$4 sm:$0xff]  }
 0xe71   :  { %v11800_v1 = vpop.eup %11799  ;;  %v5675_v53 = vmul.f32 %v11798_v60, %v5671_v38  ;;  %v11189_v38 = vld [vmem:[#allocation3 + $0x64] ss:$16 sps:$4 sm:$0xff]   ;;  %v11187_v60 = vld [vmem:[#allocation3 + $0x60] ss:$16 sps:$4 sm:$0xff]  }
 0xe72   :  { %v5676_v0 = vmul.f32 %v11800_v1, %v5672_v25  ;;  %v11190_v25 = vld [vmem:[#allocation3 + $0x68] ss:$16 sps:$4 sm:$0xff]   ;;  %v11198_v1 = vld [vmem:[#allocation3 + $0x4c] ss:$16 sps:$4 sm:$0xff]  }
 0xe73   :  { %v13896_v5 = vadd.f32 %v5677_v21, %v5675_v53  ;;  %v11193_v21 = vld [vmem:[#allocation3 + $0x40] ss:$16 sps:$4 sm:$0xff]   ;;  %v11196_v53 = vld [vmem:[#allocation3 + $0x48] ss:$16 sps:$4 sm:$0xff]  }
 0xe74   :  { %v13898_v17 = vadd.f32 %v5678_v32, %v5676_v0  ;;  %v11802_v42 = vpop.eup %11801  ;;  %v11201_v32 = vld [vmem:[#allocation3 + $0x24] ss:$16 sps:$4 sm:$0xff]   ;;  %v11204_v0 = vld [vmem:[#allocation3 + $0x2c] ss:$16 sps:$4 sm:$0xff]  }
 0xe75   :  { %11805 = vtanh.f32 %v13896_v5  ;;  %v11804_v62 = vpop.eup %11803 }
 0xe76   :  { %11807 = vtanh.f32 %v13898_v17 }
 0xe82   :  { %v11806_v43 = vpop.eup %11805 }
 0xe83   :  { %v11808_v2 = vpop.eup %11807  ;;  %v5683_v9 = vmul.f32 %v11806_v43, %v11802_v42  ;;  %v11199_v42 = vld [vmem:[#allocation3 + $0x20] ss:$16 sps:$4 sm:$0xff]   ;;  %v11207_v43 = vld [vmem:[#allocation3 + $0x4] ss:$16 sps:$4 sm:$0xff]  }
 0xe84   :  { %v5684_v55 = vmul.f32 %v11808_v2, %v11804_v62  ;;  %v11202_v62 = vld [vmem:[#allocation3 + $0x28] ss:$16 sps:$4 sm:$0xff]   ;;  %v11210_v2 = vld [vmem:[#allocation3 + $0xc] ss:$16 sps:$4 sm:$0xff]  }
 0xe85   :  { %v5685_v27 = vpack.c.bf16 %v5683_v9, %v5683_v9  ;;  %v11205_v9 = vld [vmem:[#allocation3] ss:$16 sps:$4 sm:$0xff]  }
 0xe86   :  { %v5686_v52 = vpack.c.bf16 %v5684_v55, %v5684_v55  ;;  %v11208_v55 = vld [vmem:[#allocation3 + $0x8] ss:$16 sps:$4 sm:$0xff]  }
 0xe87   :  { %v5688_v49 = vsel %vm13037_vm0, %v5685_v27, %v5687_v7  ;;  %v5695_v37 = vunpack.c.l.b16 %v5685_v27  ;;  %v5700_v13 = vshrl.u32 %v5685_v27, 16 }
 0xe88   :  { %5689 = vst [vmem:[#allocation2 + $0x8] sm:$0x4] %v5688_v49  ;;  %v5691_v48 = vsel %vm13037_vm0, %v5686_v52, %v5690_v26  ;;  %v5696_v23 = vunpack.c.l.b16 %v5686_v52  ;;  %v5705_v45 = vshrl.u32 %v5686_v52, 16 }
 0xe89   :  { %5692 = vst [vmem:[#allocation2 + $0x18] sm:$0x4] %v5691_v48  ;;  %v10595_v46 = vrot.slane %v5700_v13, 9  ;;  %v5749_v20 = vrot.slane %v5695_v37, 5 }
 0xe8a   :  { %v10596_v47 = vrot.slane %v5705_v45, 9  ;;  %v5750_v12 = vrot.slane %v5696_v23, 4 }
 0xe8b   :  { %v5712_v58 = vsel %vm13028_vm13, %v10595_v46, %v5711_v18 }
 0xe8c   :  { %5713 = vst [vmem:[#allocation2 + $0x4] sm:$0x2] %v5712_v58  ;;  %v5715_v6 = vsel %vm13028_vm13, %v10596_v47, %v5714_v10  ;;  %v5751_v8 = vsel %vm656_vm7, %v5750_v12, %v5749_v20 }
 0xe8d   :  { %5716 = vst [vmem:[#allocation2 + $0x14] sm:$0x2] %v5715_v6  ;;  %v5752_v63 = vpack.c.b16 %v5751_v8, %v5751_v8 }
 0xe8f   :  { %5947 = vmatmul.mubr.bf16.vlgmr.msra.gmra.mxu0 %v5752_v63  ;;  %5988 = vmatmul.mubr.bf16.vlgmr.msra.gmra.mxu1 %v5752_v63 }
 0xe90   :  { %6339 = vmatprep.mubr.bf16.mxu0 %v15071_v41  ;;  %6380 = vmatprep.mubr.bf16.mxu1 %v15071_v41 }
 0xe91   :  { %6308 = vmatpush1.bf16.msra.mxu0 %v11163_v22  ;;  %6349 = vmatpush1.bf16.msra.mxu1 %v11166_v35 }
 0xe92   :  { %6309 = vmatprep.subr.bf16.mxu0 %v11171_v59  ;;  %6350 = vmatprep.subr.bf16.mxu1 %v11174_v50 }
 0xe95   :  { %6310 = vmatpush1.bf16.msra.mxu0 %v11169_v33  ;;  %6351 = vmatpush1.bf16.msra.mxu1 %v11172_v51 }
 0xe96   :  { %6311 = vmatprep.subr.bf16.mxu0 %v11177_v54  ;;  %6352 = vmatprep.subr.bf16.mxu1 %v11180_v3 }
 0xe99   :  { %6312 = vmatpush1.bf16.msra.mxu0 %v11175_v44  ;;  %6353 = vmatpush1.bf16.msra.mxu1 %v11178_v39 }
 0xe9a   :  { %6313 = vmatprep.subr.bf16.mxu0 %v11183_v34  ;;  %6354 = vmatprep.subr.bf16.mxu1 %v11186_v11 }
 0xe9d   :  { %6314 = vmatpush1.bf16.msra.mxu0 %v11181_v24  ;;  %6355 = vmatpush1.bf16.msra.mxu1 %v11184_v15 }
 0xe9e   :  { %6315 = vmatprep.subr.bf16.mxu0 %v11189_v38  ;;  %6356 = vmatprep.subr.bf16.mxu1 %v11192_v40 }
 0xea1   :  { %6316 = vmatpush1.bf16.msra.mxu0 %v11187_v60  ;;  %6357 = vmatpush1.bf16.msra.mxu1 %v11190_v25 }
 0xea2   :  { %6317 = vmatprep.subr.bf16.mxu0 %v11195_v16  ;;  %6358 = vmatprep.subr.bf16.mxu1 %v11198_v1 }
 0xea5   :  { %6318 = vmatpush1.bf16.msra.mxu0 %v11193_v21  ;;  %6359 = vmatpush1.bf16.msra.mxu1 %v11196_v53  ;;  %v6064_v53 = vrot.slane %v13896_v5, 7 }
 0xea6   :  { %6319 = vmatprep.subr.bf16.mxu0 %v11201_v32  ;;  %6360 = vmatprep.subr.bf16.mxu1 %v11204_v0 }
 0xea9   :  { %6320 = vmatpush1.bf16.msra.mxu0 %v11199_v42  ;;  %6361 = vmatpush1.bf16.msra.mxu1 %v11202_v62  ;;  %v6065_v42 = vrot.slane %v13898_v17, 7 }
 0xeaa   :  { %6321 = vmatprep.subr.bf16.mxu0 %v11207_v43  ;;  %6362 = vmatprep.subr.bf16.mxu1 %v11210_v2 }
 0xead   :  { %6322 = vmatpush1.bf16.msra.mxu0 %v11205_v9  ;;  %6363 = vmatpush1.bf16.msra.mxu1 %v11208_v55 }
 0xf4f   :  { %v5948_v27 = vpop.f32.mrf.mxu0  ;;  %v5989_v52 = vpop.f32.mrf.mxu1 }
 0xf50   :  { %v6000_v7 = vrot.slane %v5948_v27, 2  ;;  %v6004_v49 = vrot.slane %v5948_v27, 3  ;;  %v6002_v14 = vrot.slane %v5989_v52, 2  ;;  %v6006_v22 = vrot.slane %v5989_v52, 3 }
 0xf51   :  { %v5950_v26 = vpop.f32.mrf.mxu0  ;;  %v5991_v37 = vpop.f32.mrf.mxu1 }
 0xf52   :  { %v6016_v13 = vadd.f32 %v6000_v7, %v15083_v19  ;;  %v6020_v48 = vadd.f32 %v6004_v49, %v15086_v57  ;;  %v6001_v23 = vrot.slane %v5950_v26, 2  ;;  %v6005_v45 = vrot.slane %v5950_v26, 3 }
 0xf53   :  { %v5952_v46 = vpop.f32.mrf.mxu0  ;;  %v5993_v20 = vpop.f32.mrf.mxu1  ;;  %v6003_v63 = vrot.slane %v5991_v37, 2  ;;  %v6007_v56 = vrot.slane %v5991_v37, 3  ;;  %v6018_v50 = vadd.f32 %v6002_v14, %v15091_v31  ;;  %v6022_v33 = vadd.f32 %v6006_v22, %v15092_v36 }
 0xf54   :  { %v10629_v47 = vmul.f32 -1.442695, %v6016_v13  ;;  %v10630_v18 = vmul.f32 -1.442695, %v6020_v48  ;;  %v6017_v12 = vadd.f32 %v6001_v23, %v13516_v4  ;;  %v6021_v61 = vadd.f32 %v6005_v45, %v13521_v30  ;;  %v6080_v48 = vld [vmem:[#allocation2 + $0x8] sm:$0x8] }
 0xf55   :  { %v5953_v58 = vpop.f32.mrf.mxu0  ;;  %v5994_v10 = vpop.f32.mrf.mxu1  ;;  %v6019_v35 = vadd.f32 %v6003_v63, %v13527_v28  ;;  %v6023_v59 = vadd.f32 %v6007_v56, %v13531_v29  ;;  %v6083_v45 = vld [vmem:[#allocation2 + $0x18] sm:$0x8]  ;;  %v6107_v63 = vld [vmem:[#allocation2 + $0x14] sm:$0x1] }
 0xf56   :  { %11809 = vpow2.f32 %v10629_v47  ;;  %v10631_v6 = vmul.f32 -1.442695, %v6017_v12  ;;  %v10632_v8 = vmul.f32 -1.442695, %v6021_v61  ;;  %v11262_v20 = vld [vmem:[#allocation5 + $0x1e8] ss:$16 sps:$4 sm:$0xff]  }
 0xf57   :  { %11811 = vpow2.f32 %v10630_v18  ;;  %v10633_v51 = vmul.f32 -1.442695, %v6019_v35  ;;  %v10634_v44 = vmul.f32 -1.442695, %v6023_v59  ;;  %v11285_v35 = vld [vmem:[#allocation5 + $0x164] ss:$16 sps:$4 sm:$0xff]  }
 0xf58   :  { %11813 = vpow2.f32 %v10631_v6  ;;  %v6104_v6 = vld [vmem:[#allocation2 + $0x4] sm:$0x1] }
 0xf59   :  { %11815 = vpow2.f32 %v10632_v8 }
 0xf5a   :  { %11817 = vtanh.f32 %v6018_v50 }
 0xf5b   :  { %11819 = vtanh.f32 %v6022_v33 }
 0xf5c   :  { %11821 = vpow2.f32 %v10633_v51 }
 0xf5d   :  { %11823 = vpow2.f32 %v10634_v44  ;;  %v11213_v44 = vld [vmem:[#allocation5 + $0xe4] ss:$16 sps:$4 sm:$0xff]  }
 0xf5e   :  { %6933 = vmatprep.subr.bf16.mxu0 %v11213_v44  ;;  %v11294_v44 = vld [vmem:[#allocation5 + $0x14c] ss:$16 sps:$4 sm:$0xff]  }
 0xf63   :  { %v11810_v54 = vpop.eup %11809 }
 0xf64   :  { %v11812_v39 = vpop.eup %11811  ;;  %v6030_v3 = vadd.f32 1.0, %v11810_v54  ;;  %v11216_v54 = vld [vmem:[#allocation5 + $0xec] ss:$16 sps:$4 sm:$0xff]  }
 0xf65   :  { %v6031_v34 = vadd.f32 1.0, %v11812_v39  ;;  %v11814_v11 = vpop.eup %11813  ;;  %v11211_v39 = vld [vmem:[#allocation5 + $0xe0] ss:$16 sps:$4 sm:$0xff]   ;;  %6986 = vmatprep.subr.bf16.mxu1 %v11216_v54 }
 0xf66   :  { %v11816_v24 = vpop.eup %11815  ;;  %11825 = vrcp.f32 %v6030_v3  ;;  %v6042_v15 = vadd.f32 1.0, %v11814_v11  ;;  %v11214_v3 = vld [vmem:[#allocation5 + $0xe8] ss:$16 sps:$4 sm:$0xff]   ;;  %v11222_v11 = vld [vmem:[#allocation5 + $0xcc] ss:$16 sps:$4 sm:$0xff]  }
 0xf67   :  { %11827 = vrcp.f32 %v6031_v34  ;;  %v6043_v38 = vadd.f32 1.0, %v11816_v24  ;;  %v11818_v40 = vpop.eup %11817  ;;  %v11219_v34 = vld [vmem:[#allocation5 + $0xc4] ss:$16 sps:$4 sm:$0xff]   ;;  %v11217_v24 = vld [vmem:[#allocation5 + $0xc0] ss:$16 sps:$4 sm:$0xff]  }
 0xf68   :  { %11829 = vrcp.f32 %v6042_v15  ;;  %v11820_v60 = vpop.eup %11819  ;;  %v11220_v15 = vld [vmem:[#allocation5 + $0xc8] ss:$16 sps:$4 sm:$0xff]   ;;  %v11289_v54 = vld [vmem:[#allocation5 + $0x140] ss:$16 sps:$4 sm:$0xff]  }
 0xf69   :  { %11831 = vrcp.f32 %v6043_v38  ;;  %v11822_v25 = vpop.eup %11821  ;;  %v11225_v38 = vld [vmem:[#allocation5 + $0xa4] ss:$16 sps:$4 sm:$0xff]  }
 0xf6a   :  { %v11824_v16 = vpop.eup %11823  ;;  %v6056_v32 = vadd.f32 1.0, %v11822_v25  ;;  %v11226_v25 = vld [vmem:[#allocation5 + $0xa8] ss:$16 sps:$4 sm:$0xff]  }
 0xf6b   :  { %v6057_v62 = vadd.f32 1.0, %v11824_v16  ;;  %v11231_v16 = vld [vmem:[#allocation5 + $0x84] ss:$16 sps:$4 sm:$0xff]  }
 0xf6c   :  { %11833 = vrcp.f32 %v6056_v32  ;;  %v11237_v32 = vld [vmem:[#allocation5 + $0x64] ss:$16 sps:$4 sm:$0xff]  }
 0xf6d   :  { %11835 = vrcp.f32 %v6057_v62  ;;  %v11238_v62 = vld [vmem:[#allocation5 + $0x68] ss:$16 sps:$4 sm:$0xff]  }
 0xf73   :  { %v11826_v1 = vpop.eup %11825 }
 0xf74   :  { %v11828_v21 = vpop.eup %11827  ;;  %v6070_v2 = vmul.f32 %v11826_v1, %v11818_v40  ;;  %v11228_v40 = vld [vmem:[#allocation5 + $0xac] ss:$16 sps:$4 sm:$0xff]  }
 0xf75   :  { %v11830_v0 = vpop.eup %11829  ;;  %v6071_v55 = vmul.f32 %v11828_v21, %v11820_v60  ;;  %v11223_v60 = vld [vmem:[#allocation5 + $0xa0] ss:$16 sps:$4 sm:$0xff]   ;;  %v11234_v1 = vld [vmem:[#allocation5 + $0x8c] ss:$16 sps:$4 sm:$0xff]  }
 0xf76   :  { %v11832_v43 = vpop.eup %11831  ;;  %v6068_v9 = vmul.f32 %v11830_v0, %v6064_v53  ;;  %v11229_v21 = vld [vmem:[#allocation5 + $0x80] ss:$16 sps:$4 sm:$0xff]   ;;  %v11232_v53 = vld [vmem:[#allocation5 + $0x88] ss:$16 sps:$4 sm:$0xff]   ;;  %v11240_v0 = vld [vmem:[#allocation5 + $0x6c] ss:$16 sps:$4 sm:$0xff]  }
 0xf77   :  { %v6069_v27 = vmul.f32 %v11832_v43, %v6065_v42  ;;  %v11235_v42 = vld [vmem:[#allocation5 + $0x60] ss:$16 sps:$4 sm:$0xff]   ;;  %v11243_v43 = vld [vmem:[#allocation5 + $0x44] ss:$16 sps:$4 sm:$0xff]  }
 0xf78   :  { %v13923_v52 = vadd.f32 %v6070_v2, %v6068_v9  ;;  %v11246_v2 = vld [vmem:[#allocation5 + $0x4c] ss:$16 sps:$4 sm:$0xff]   ;;  %v11241_v9 = vld [vmem:[#allocation5 + $0x40] ss:$16 sps:$4 sm:$0xff]  }
 0xf79   :  { %v13925_v7 = vadd.f32 %v6071_v55, %v6069_v27  ;;  %v11834_v5 = vpop.eup %11833  ;;  %v11244_v55 = vld [vmem:[#allocation5 + $0x48] ss:$16 sps:$4 sm:$0xff]   ;;  %v11249_v27 = vld [vmem:[#allocation5 + $0x24] ss:$16 sps:$4 sm:$0xff]  }
 0xf7a   :  { %11837 = vtanh.f32 %v13923_v52  ;;  %v11836_v49 = vpop.eup %11835 }
 0xf7b   :  { %11839 = vtanh.f32 %v13925_v7 }
 0xf87   :  { %v11838_v26 = vpop.eup %11837 }
 0xf88   :  { %v11840_v17 = vpop.eup %11839  ;;  %v6076_v37 = vmul.f32 %v11838_v26, %v11834_v5  ;;  %v11252_v5 = vld [vmem:[#allocation5 + $0x2c] ss:$16 sps:$4 sm:$0xff]   ;;  %v11250_v26 = vld [vmem:[#allocation5 + $0x28] ss:$16 sps:$4 sm:$0xff]  }
 0xf89   :  { %v6077_v13 = vmul.f32 %v11840_v17, %v11836_v49  ;;  %v11247_v49 = vld [vmem:[#allocation5 + $0x20] ss:$16 sps:$4 sm:$0xff]   ;;  %v11255_v17 = vld [vmem:[#allocation5 + $0x4] ss:$16 sps:$4 sm:$0xff]  }
 0xf8a   :  { %v6078_v23 = vpack.c.bf16 %v6076_v37, %v6076_v37  ;;  %v11258_v37 = vld [vmem:[#allocation5 + $0xc] ss:$16 sps:$4 sm:$0xff]  }
 0xf8b   :  { %v6079_v46 = vpack.c.bf16 %v6077_v13, %v6077_v13  ;;  %v11253_v13 = vld [vmem:[#allocation5] ss:$16 sps:$4 sm:$0xff]  }
 0xf8c   :  { %v6081_v47 = vsel %vm12900_vm11, %v6078_v23, %v6080_v48  ;;  %v6088_v18 = vunpack.c.l.b16 %v6078_v23  ;;  %v6093_v12 = vshll.u32 %v6078_v23, 16  ;;  %v11256_v48 = vld [vmem:[#allocation5 + $0x8] ss:$16 sps:$4 sm:$0xff]   ;;  %v11261_v23 = vld [vmem:[#allocation5 + $0x1e4] ss:$16 sps:$4 sm:$0xff]  }
 0xf8d   :  { %6082 = vst [vmem:[#allocation2 + $0x8] sm:$0x8] %v6081_v47  ;;  %v6084_v61 = vsel %vm12900_vm11, %v6079_v46, %v6083_v45  ;;  %v6089_v58 = vunpack.c.l.b16 %v6079_v46  ;;  %v6098_v10 = vshll.u32 %v6079_v46, 16  ;;  %v11264_v45 = vld [vmem:[#allocation5 + $0x1ec] ss:$16 sps:$4 sm:$0xff]  }
 0xf8e   :  { %6085 = vst [vmem:[#allocation2 + $0x18] sm:$0x8] %v6084_v61  ;;  %v10637_v8 = vrot.slane %v6093_v12, 11  ;;  %v6142_v56 = vrot.slane %v6088_v18, 6  ;;  %v11259_v46 = vld [vmem:[#allocation5 + $0x1e0] ss:$16 sps:$4 sm:$0xff]  }
 0xf8f   :  { %v10638_v14 = vrot.slane %v6098_v10, 11  ;;  %v6143_v22 = vrot.slane %v6089_v58, 5  ;;  %v11267_v47 = vld [vmem:[#allocation5 + $0x1c4] ss:$16 sps:$4 sm:$0xff]   ;;  %v11270_v18 = vld [vmem:[#allocation5 + $0x1cc] ss:$16 sps:$4 sm:$0xff]  }
 0xf90   :  { %v6105_v59 = vsel %vm12893_vm9, %v10637_v8, %v6104_v6  ;;  %v11265_v12 = vld [vmem:[#allocation5 + $0x1c0] ss:$16 sps:$4 sm:$0xff]   ;;  %v11268_v61 = vld [vmem:[#allocation5 + $0x1c8] ss:$16 sps:$4 sm:$0xff]   ;;  %v11273_v58 = vld [vmem:[#allocation5 + $0x1a4] ss:$16 sps:$4 sm:$0xff]  }
 0xf91   :  { %6106 = vst [vmem:[#allocation2 + $0x4] sm:$0x1] %v6105_v59  ;;  %v6108_v50 = vsel %vm12893_vm9, %v10638_v14, %v6107_v63  ;;  %v6144_v33 = vsel %vm656_vm7, %v6143_v22, %v6142_v56  ;;  %v11276_v10 = vld [vmem:[#allocation5 + $0x1ac] ss:$16 sps:$4 sm:$0xff]   ;;  %v11271_v6 = vld [vmem:[#allocation5 + $0x1a0] ss:$16 sps:$4 sm:$0xff]  }
 0xf92   :  { %6109 = vst [vmem:[#allocation2 + $0x14] sm:$0x1] %v6108_v50  ;;  %v6145_v51 = vpack.c.b16 %v6144_v33, %v6144_v33  ;;  %v11274_v8 = vld [vmem:[#allocation5 + $0x1a8] ss:$16 sps:$4 sm:$0xff]   ;;  %v11279_v63 = vld [vmem:[#allocation5 + $0x184] ss:$16 sps:$4 sm:$0xff]  }
 0xf93   :  { %v11282_v56 = vld [vmem:[#allocation5 + $0x18c] ss:$16 sps:$4 sm:$0xff]   ;;  %v11277_v14 = vld [vmem:[#allocation5 + $0x180] ss:$16 sps:$4 sm:$0xff]   ;;  %v11280_v22 = vld [vmem:[#allocation5 + $0x188] ss:$16 sps:$4 sm:$0xff]  }
 0xf94   :  { %6340 = vmatmul.mubr.bf16.vlgmr.msra.gmra.mxu0 %v6145_v51  ;;  %6381 = vmatmul.mubr.bf16.vlgmr.msra.gmra.mxu1 %v6145_v51  ;;  %v11288_v59 = vld [vmem:[#allocation5 + $0x16c] ss:$16 sps:$4 sm:$0xff]   ;;  %v11283_v50 = vld [vmem:[#allocation5 + $0x160] ss:$16 sps:$4 sm:$0xff]   ;;  %v11286_v33 = vld [vmem:[#allocation5 + $0x168] ss:$16 sps:$4 sm:$0xff]  }
 0xf95   :  { %6934 = vmatpush1.bf16.msra.mxu0 %v11211_v39  ;;  %6987 = vmatpush1.bf16.msra.mxu1 %v11214_v3  ;;  %v11291_v51 = vld [vmem:[#allocation5 + $0x144] ss:$16 sps:$4 sm:$0xff]   ;;  %v11292_v39 = vld [vmem:[#allocation5 + $0x148] ss:$16 sps:$4 sm:$0xff]   ;;  %v11295_v3 = vld [vmem:[#allocation5 + $0x120] ss:$16 sps:$4 sm:$0xff]  }
 0xf96   :  { %6935 = vmatprep.subr.bf16.mxu0 %v11219_v34  ;;  %6988 = vmatprep.subr.bf16.mxu1 %v11222_v11  ;;  %v11297_v34 = vld [vmem:[#allocation5 + $0x124] ss:$16 sps:$4 sm:$0xff]   ;;  %v11298_v11 = vld [vmem:[#allocation5 + $0x128] ss:$16 sps:$4 sm:$0xff]  }
 0xf99   :  { %6936 = vmatpush1.bf16.msra.mxu0 %v11217_v24  ;;  %6989 = vmatpush1.bf16.msra.mxu1 %v11220_v15  ;;  %v11300_v24 = vld [vmem:[#allocation5 + $0x12c] ss:$16 sps:$4 sm:$0xff]   ;;  %v11303_v15 = vld [vmem:[#allocation5 + $0x104] ss:$16 sps:$4 sm:$0xff]  }
 0xf9a   :  { %6937 = vmatprep.subr.bf16.mxu0 %v11225_v38  ;;  %6990 = vmatprep.subr.bf16.mxu1 %v11228_v40  ;;  %v11306_v38 = vld [vmem:[#allocation5 + $0x10c] ss:$16 sps:$4 sm:$0xff]   ;;  %v11301_v40 = vld [vmem:[#allocation5 + $0x100] ss:$16 sps:$4 sm:$0xff]  }
 0xf9d   :  { %6938 = vmatpush1.bf16.msra.mxu0 %v11223_v60  ;;  %6991 = vmatpush1.bf16.msra.mxu1 %v11226_v25  ;;  %v11304_v60 = vld [vmem:[#allocation5 + $0x108] ss:$16 sps:$4 sm:$0xff]   ;;  %v13938_v25 = vld [vmem:[#allocation7 + $0xe4] ss:$16 sps:$4 sm:$0xff]  }
 0xf9e   :  { %6939 = vmatprep.subr.bf16.mxu0 %v11231_v16  ;;  %6992 = vmatprep.subr.bf16.mxu1 %v11234_v1  ;;  %v13940_v16 = vld [vmem:[#allocation7 + $0xec] ss:$16 sps:$4 sm:$0xff]  }
 0xfa1   :  { %6940 = vmatpush1.bf16.msra.mxu0 %v11229_v21  ;;  %6993 = vmatpush1.bf16.msra.mxu1 %v11232_v53 }
 0xfa2   :  { %6941 = vmatprep.subr.bf16.mxu0 %v11237_v32  ;;  %6994 = vmatprep.subr.bf16.mxu1 %v11240_v0 }
 0xfa5   :  { %6942 = vmatpush1.bf16.msra.mxu0 %v11235_v42  ;;  %6995 = vmatpush1.bf16.msra.mxu1 %v11238_v62 }
 0xfa6   :  { %6943 = vmatprep.subr.bf16.mxu0 %v11243_v43  ;;  %6996 = vmatprep.subr.bf16.mxu1 %v11246_v2 }
 0xfa9   :  { %6944 = vmatpush1.bf16.msra.mxu0 %v11241_v9  ;;  %6997 = vmatpush1.bf16.msra.mxu1 %v11244_v55 }
 0xfaa   :  { %6945 = vmatprep.subr.bf16.mxu0 %v11249_v27  ;;  %6998 = vmatprep.subr.bf16.mxu1 %v11252_v5 }
 0xfad   :  { %6946 = vmatpush1.bf16.msra.mxu0 %v11247_v49  ;;  %6999 = vmatpush1.bf16.msra.mxu1 %v11250_v26 }
 0xfae   :  { %6947 = vmatprep.subr.bf16.mxu0 %v11255_v17  ;;  %7000 = vmatprep.subr.bf16.mxu1 %v11258_v37 }
 0xfb1   :  { %6948 = vmatpush1.bf16.msra.mxu0 %v11253_v13  ;;  %7001 = vmatpush1.bf16.msra.mxu1 %v11256_v48 }
 0xfb2   :  { %6949 = vmatprep.subr.bf16.mxu0 %v11261_v23  ;;  %7002 = vmatprep.subr.bf16.mxu1 %v11264_v45 }
 0xfb5   :  { %6950 = vmatpush2.bf16.msra.mxu0 %v11259_v46  ;;  %7003 = vmatpush2.bf16.msra.mxu1 %v11262_v20 }
 0xfb6   :  { %6951 = vmatprep.subr.bf16.mxu0 %v11267_v47  ;;  %7004 = vmatprep.subr.bf16.mxu1 %v11270_v18 }
 0xfb9   :  { %6952 = vmatpush2.bf16.msra.mxu0 %v11265_v12  ;;  %7005 = vmatpush2.bf16.msra.mxu1 %v11268_v61 }
 0xfba   :  { %6953 = vmatprep.subr.bf16.mxu0 %v11273_v58  ;;  %7006 = vmatprep.subr.bf16.mxu1 %v11276_v10 }
 0xfbd   :  { %6954 = vmatpush2.bf16.msra.mxu0 %v11271_v6  ;;  %7007 = vmatpush2.bf16.msra.mxu1 %v11274_v8 }
 0xfbe   :  { %6955 = vmatprep.subr.bf16.mxu0 %v11279_v63  ;;  %7008 = vmatprep.subr.bf16.mxu1 %v11282_v56 }
 0xfc1   :  { %6956 = vmatpush2.bf16.msra.mxu0 %v11277_v14  ;;  %7009 = vmatpush2.bf16.msra.mxu1 %v11280_v22 }
 0xfc2   :  { %6957 = vmatprep.subr.bf16.mxu0 %v11285_v35  ;;  %7010 = vmatprep.subr.bf16.mxu1 %v11288_v59  ;;  %v6457_v59 = vrot.slane %v13923_v52, 7 }
 0xfc5   :  { %6958 = vmatpush2.bf16.msra.mxu0 %v11283_v50  ;;  %7011 = vmatpush2.bf16.msra.mxu1 %v11286_v33 }
 0xfc6   :  { %6959 = vmatprep.subr.bf16.mxu0 %v11291_v51  ;;  %7012 = vmatprep.subr.bf16.mxu1 %v11294_v44  ;;  %v6458_v51 = vrot.slane %v13925_v7, 7 }
 0xfc9   :  { %6960 = vmatpush2.bf16.msra.mxu0 %v11289_v54  ;;  %7013 = vmatpush2.bf16.msra.mxu1 %v11292_v39 }
 0xfca   :  { %6961 = vmatprep.subr.bf16.mxu0 %v11297_v34  ;;  %7014 = vmatprep.subr.bf16.mxu1 %v11300_v24 }
 0xfcd   :  { %6962 = vmatpush2.bf16.msra.mxu0 %v11295_v3  ;;  %7015 = vmatpush2.bf16.msra.mxu1 %v11298_v11 }
 0xfce   :  { %6963 = vmatprep.subr.bf16.mxu0 %v11303_v15  ;;  %7016 = vmatprep.subr.bf16.mxu1 %v11306_v38 }
 0xfd1   :  { %6964 = vmatpush2.bf16.msra.mxu0 %v11301_v40  ;;  %7017 = vmatpush2.bf16.msra.mxu1 %v11304_v60 }
 0xfd2   :  { %7231 = vmatprep.subr.bf16.mxu0 %v13938_v25  ;;  %7272 = vmatprep.subr.bf16.mxu1 %v13940_v16 }
0x1054   :  { %v6341_v1 = vpop.f32.mrf.mxu0  ;;  %v6382_v21 = vpop.f32.mrf.mxu1 }
0x1055   :  { %v6393_v53 = vrot.slane %v6341_v1, 1  ;;  %v6397_v32 = vrot.slane %v6341_v1, 2  ;;  %v6395_v45 = vrot.slane %v6382_v21, 1  ;;  %v6399_v46 = vrot.slane %v6382_v21, 2 }
0x1056   :  { %v6343_v0 = vpop.f32.mrf.mxu0  ;;  %v6384_v42 = vpop.f32.mrf.mxu1 }
0x1057   :  { %v6409_v62 = vadd.f32 %v6393_v53, %v15083_v19  ;;  %v6413_v43 = vadd.f32 %v6397_v32, %v15086_v57  ;;  %v6394_v2 = vrot.slane %v6343_v0, 1  ;;  %v6398_v9 = vrot.slane %v6343_v0, 2  ;;  %v6473_v32 = vld [vmem:[#allocation2 + $0x8] sm:$0x8] }
0x1058   :  { %v6345_v55 = vpop.f32.mrf.mxu0  ;;  %v6386_v27 = vpop.f32.mrf.mxu1  ;;  %v6396_v19 = vrot.slane %v6384_v42, 1  ;;  %v6400_v57 = vrot.slane %v6384_v42, 2 }
0x1059   :  { %v10671_v5 = vmul.f32 -1.442695, %v6409_v62  ;;  %v10672_v49 = vmul.f32 -1.442695, %v6413_v43  ;;  %v6410_v26 = vadd.f32 %v6394_v2, %v13516_v4  ;;  %v6414_v17 = vadd.f32 %v6398_v9, %v13521_v30  ;;  %v6476_v62 = vld [vmem:[#allocation2 + $0x18] sm:$0x8] }
0x105a   :  { %v6346_v37 = vpop.f32.mrf.mxu0  ;;  %v6387_v13 = vpop.f32.mrf.mxu1  ;;  %v6412_v20 = vadd.f32 %v6396_v19, %v13527_v28  ;;  %v6416_v47 = vadd.f32 %v6400_v57, %v13531_v29  ;;  %v6411_v4 = vadd.f32 %v6395_v45, %v15091_v31  ;;  %v6415_v30 = vadd.f32 %v6399_v46, %v15092_v36  ;;  %v13966_v57 = vld [vmem:[#allocation7 + $0xc4] ss:$16 sps:$4 sm:$0xff]   ;;  %v13968_v45 = vld [vmem:[#allocation7 + $0xcc] ss:$16 sps:$4 sm:$0xff]  }
0x105b   :  { %11841 = vpow2.f32 %v10671_v5  ;;  %v10673_v48 = vmul.f32 -1.442695, %v6410_v26  ;;  %v10674_v23 = vmul.f32 -1.442695, %v6414_v17  ;;  %v6497_v5 = vld [vmem:[#allocation2 + $0x4] sm:$0x1] }
0x105c   :  { %11843 = vpow2.f32 %v10672_v49  ;;  %v10675_v18 = vmul.f32 -1.442695, %v6412_v20  ;;  %v10676_v12 = vmul.f32 -1.442695, %v6416_v47  ;;  %v6500_v17 = vld [vmem:[#allocation2 + $0x14] sm:$0x1] }
0x105d   :  { %11845 = vpow2.f32 %v10673_v48  ;;  %v13962_v13 = vld [vmem:[#allocation7 + $0xe0] ss:$16 sps:$4 sm:$0xff]   ;;  %v13964_v48 = vld [vmem:[#allocation7 + $0xe8] ss:$16 sps:$4 sm:$0xff]  }
0x105e   :  { %11847 = vpow2.f32 %v10674_v23  ;;  %v13972_v20 = vld [vmem:[#allocation7 + $0xc0] ss:$16 sps:$4 sm:$0xff]   ;;  %v13974_v47 = vld [vmem:[#allocation7 + $0xc8] ss:$16 sps:$4 sm:$0xff]  }
0x105f   :  { %11849 = vtanh.f32 %v6411_v4  ;;  %v13976_v4 = vld [vmem:[#allocation7 + $0xa4] ss:$16 sps:$4 sm:$0xff]  }
0x1060   :  { %11851 = vtanh.f32 %v6415_v30  ;;  %v13978_v30 = vld [vmem:[#allocation7 + $0xac] ss:$16 sps:$4 sm:$0xff]  }
0x1061   :  { %11853 = vpow2.f32 %v10675_v18  ;;  %v13984_v18 = vld [vmem:[#allocation7 + $0xa0] ss:$16 sps:$4 sm:$0xff]  }
0x1062   :  { %11855 = vpow2.f32 %v10676_v12  ;;  %v13986_v12 = vld [vmem:[#allocation7 + $0xa8] ss:$16 sps:$4 sm:$0xff]  }
0x1068   :  { %v11842_v61 = vpop.eup %11841 }
0x1069   :  { %v11844_v58 = vpop.eup %11843  ;;  %v6423_v10 = vadd.f32 1.0, %v11842_v61 }
0x106a   :  { %v6424_v6 = vadd.f32 1.0, %v11844_v58  ;;  %v11846_v8 = vpop.eup %11845  ;;  %v13990_v58 = vld [vmem:[#allocation7 + $0x84] ss:$16 sps:$4 sm:$0xff]  }
0x106b   :  { %v11848_v63 = vpop.eup %11847  ;;  %11857 = vrcp.f32 %v6423_v10  ;;  %v6435_v28 = vadd.f32 1.0, %v11846_v8  ;;  %v13992_v10 = vld [vmem:[#allocation7 + $0x8c] ss:$16 sps:$4 sm:$0xff]   ;;  %v13998_v8 = vld [vmem:[#allocation7 + $0x88] ss:$16 sps:$4 sm:$0xff]  }
0x106c   :  { %11859 = vrcp.f32 %v6424_v6  ;;  %v6436_v29 = vadd.f32 1.0, %v11848_v63  ;;  %v11850_v31 = vpop.eup %11849  ;;  %v13996_v6 = vld [vmem:[#allocation7 + $0x80] ss:$16 sps:$4 sm:$0xff]   ;;  %v14002_v63 = vld [vmem:[#allocation7 + $0x64] ss:$16 sps:$4 sm:$0xff]  }
0x106d   :  { %11861 = vrcp.f32 %v6435_v28  ;;  %v11852_v36 = vpop.eup %11851  ;;  %v14004_v28 = vld [vmem:[#allocation7 + $0x6c] ss:$16 sps:$4 sm:$0xff]  }
0x106e   :  { %11863 = vrcp.f32 %v6436_v29  ;;  %v11854_v56 = vpop.eup %11853  ;;  %v14010_v29 = vld [vmem:[#allocation7 + $0x60] ss:$16 sps:$4 sm:$0xff]  }
0x106f   :  { %v11856_v14 = vpop.eup %11855  ;;  %v6449_v50 = vadd.f32 1.0, %v11854_v56  ;;  %v14018_v56 = vld [vmem:[#allocation7 + $0x4c] ss:$16 sps:$4 sm:$0xff]  }
0x1070   :  { %v6450_v44 = vadd.f32 1.0, %v11856_v14  ;;  %v14022_v14 = vld [vmem:[#allocation7 + $0x40] ss:$16 sps:$4 sm:$0xff]  }
0x1071   :  { %11865 = vrcp.f32 %v6449_v50  ;;  %v14034_v50 = vld [vmem:[#allocation7 + $0x20] ss:$16 sps:$4 sm:$0xff]  }
0x1072   :  { %11867 = vrcp.f32 %v6450_v44  ;;  %v14042_v44 = vld [vmem:[#allocation7 + $0xc] ss:$16 sps:$4 sm:$0xff]  }
0x1078   :  { %v11858_v22 = vpop.eup %11857 }
0x1079   :  { %v11860_v35 = vpop.eup %11859  ;;  %v6463_v39 = vmul.f32 %v11858_v22, %v11850_v31  ;;  %v14012_v31 = vld [vmem:[#allocation7 + $0x68] ss:$16 sps:$4 sm:$0xff]  }
0x107a   :  { %v11862_v33 = vpop.eup %11861  ;;  %v6464_v34 = vmul.f32 %v11860_v35, %v11852_v36  ;;  %v14016_v36 = vld [vmem:[#allocation7 + $0x44] ss:$16 sps:$4 sm:$0xff]   ;;  %v14024_v22 = vld [vmem:[#allocation7 + $0x48] ss:$16 sps:$4 sm:$0xff]  }
0x107b   :  { %v11864_v54 = vpop.eup %11863  ;;  %v6461_v3 = vmul.f32 %v11862_v33, %v6457_v59  ;;  %v14028_v35 = vld [vmem:[#allocation7 + $0x24] ss:$16 sps:$4 sm:$0xff]   ;;  %v14030_v59 = vld [vmem:[#allocation7 + $0x2c] ss:$16 sps:$4 sm:$0xff]   ;;  %v14036_v33 = vld [vmem:[#allocation7 + $0x28] ss:$16 sps:$4 sm:$0xff]  }
0x107c   :  { %v6462_v11 = vmul.f32 %v11864_v54, %v6458_v51  ;;  %v14040_v51 = vld [vmem:[#allocation7 + $0x4] ss:$16 sps:$4 sm:$0xff]   ;;  %v14046_v54 = vld [vmem:[#allocation7] ss:$16 sps:$4 sm:$0xff]  }
0x107d   :  { %v6465_v24 = vadd.f32 %v6463_v39, %v6461_v3  ;;  %v14048_v39 = vld [vmem:[#allocation7 + $0x8] ss:$16 sps:$4 sm:$0xff]   ;;  %v6571_v3 = vld [vmem:[%s14990_s6] sm:$0xf] }
0x107e   :  { %v6466_v15 = vadd.f32 %v6464_v34, %v6462_v11  ;;  %v11866_v38 = vpop.eup %11865 }
0x107f   :  { %11869 = vtanh.f32 %v6465_v24  ;;  %v11868_v40 = vpop.eup %11867 }
0x1080   :  { %11871 = vtanh.f32 %v6466_v15 }
0x108c   :  { %v11870_v60 = vpop.eup %11869 }
0x108d   :  { %v11872_v52 = vpop.eup %11871  ;;  %v6469_v1 = vmul.f32 %v11870_v60, %v11866_v38  ;;  %v15103_v38 = vld [vmem:[#allocation10_spill] sm:$0xff] }
0x108e   :  { %v6470_v21 = vmul.f32 %v11872_v52, %v11868_v40  ;;  %v15104_v40 = vsub.s32 0, %v15103_v38  ;;  %v15105_v52 = vsub.s32 2, %v15103_v38  ;;  %v15107_v0 = vsub.s32 3, %v15103_v38 }
0x108f   :  { %v6471_v53 = vpack.c.bf16 %v6469_v1, %v6469_v1 }
0x1090   :  { %v6472_v7 = vpack.c.bf16 %v6470_v21, %v6470_v21  ;;  %v6576_v60 = vrot.slane %v6571_v3, %v15104_v40  ;;  %v6584_v1 = vrot.slane %v6571_v3, %v15105_v52 }
0x1091   :  { %v6474_v42 = vsel %vm12848_vm6, %v6471_v53, %v6473_v32  ;;  %v6486_v43 = vshrl.u32 %v6471_v53, 16 }
0x1092   :  { %6475 = vst [vmem:[#allocation2 + $0x8] sm:$0x8] %v6474_v42  ;;  %v6477_v2 = vsel %vm12848_vm6, %v6472_v7, %v6476_v62  ;;  %v6491_v9 = vshrl.u32 %v6472_v7, 16  ;;  %v15106_v7 = vsub.s32 1, %v15103_v38  ;;  %v6588_v42 = vrot.slane %v6571_v3, %v15107_v0 }
0x1093   :  { %6478 = vst [vmem:[#allocation2 + $0x18] sm:$0x8] %v6477_v2  ;;  %v10679_v55 = vrot.slane %v6486_v43, 11 }
0x1094   :  { %v10680_v27 = vrot.slane %v6491_v9, 11  ;;  %v6580_v32 = vrot.slane %v6571_v3, %v15106_v7 }
0x1095   :  { %v6498_v26 = vsel %vm12839_vm3, %v10679_v55, %v6497_v5 }
0x1096   :  { %6499 = vst [vmem:[#allocation2 + $0x4] sm:$0x1] %v6498_v26  ;;  %v6501_v37 = vsel %vm12839_vm3, %v10680_v27, %v6500_v17  ;;  %vm10004_vm3 = vcmask 523264  }
0x1097   :  { %6502 = vst [vmem:[#allocation2 + $0x14] sm:$0x1] %v6501_v37 }
0x1099   :  { %v11307_v23 = vld [vmem:[#allocation2] ss:$8 sps:$4 sm:$0xff]  }
0x109a   :  { %v11328_v61 = vld [vmem:[#allocation2 + $0x10] ss:$8 sps:$4 sm:$0xff]  }
0x109d   :  { %v11309_v19 = vld [vmem:[#allocation2 + $0x4] ss:$8 sps:$4 sm:$0xff]  }
0x109e   :  { %6965 = vmatprep.mubr.bf16.mxu0 %v11309_v19  ;;  %7018 = vmatprep.mubr.bf16.mxu1 %v11309_v19  ;;  %v11316_v46 = vld [vmem:[#allocation2 + $0x14] ss:$8 sps:$4 sm:$0xff]  }
0x109f   :  { %6966 = vmatmul.mubr.bf16.vlgmr.msra.gmra.mxu0 %v11307_v23  ;;  %7019 = vmatmul.mubr.bf16.vlgmr.msra.gmra.mxu1 %v11307_v23 }
0x10a0   :  { %7232 = vmatpush1.bf16.msra.mxu0 %v13962_v13  ;;  %7273 = vmatpush1.bf16.msra.mxu1 %v13964_v48 }
0x10a1   :  { %6975 = vmatprep.mubr.bf16.mxu0 %v11316_v46  ;;  %7028 = vmatprep.mubr.bf16.mxu1 %v11316_v46 }
0x10a2   :  { %7233 = vmatprep.subr.bf16.mxu0 %v13966_v57  ;;  %7274 = vmatprep.subr.bf16.mxu1 %v13968_v45 }
0x10a4   :  { %7234 = vmatpush1.bf16.msra.mxu0 %v13972_v20  ;;  %7275 = vmatpush1.bf16.msra.mxu1 %v13974_v47 }
0x10a5   :  { %7235 = vmatprep.subr.bf16.mxu0 %v13976_v4  ;;  %7276 = vmatprep.subr.bf16.mxu1 %v13978_v30 }
0x10a7   :  { %6976 = vmatmul.mubr.bf16.gmra.mxu0 %v11328_v61  ;;  %7029 = vmatmul.mubr.bf16.gmra.mxu1 %v11328_v61 }
0x10a8   :  { %7236 = vmatpush1.bf16.msra.mxu0 %v13984_v18  ;;  %7277 = vmatpush1.bf16.msra.mxu1 %v13986_v12 }
0x10a9   :  { %7237 = vmatprep.subr.bf16.mxu0 %v13990_v58  ;;  %7278 = vmatprep.subr.bf16.mxu1 %v13992_v10 }
0x10aa   :  { %7263 = vmatprep.mubr.bf16.mxu0 %v15071_v41  ;;  %7304 = vmatprep.mubr.bf16.mxu1 %v15071_v41 }
0x10ac   :  { %7238 = vmatpush1.bf16.msra.mxu0 %v13996_v6  ;;  %7279 = vmatpush1.bf16.msra.mxu1 %v13998_v8 }
0x10ad   :  { %7239 = vmatprep.subr.bf16.mxu0 %v14002_v63  ;;  %7280 = vmatprep.subr.bf16.mxu1 %v14004_v28 }
0x10b0   :  { %7240 = vmatpush1.bf16.msra.mxu0 %v14010_v29  ;;  %7281 = vmatpush1.bf16.msra.mxu1 %v14012_v31 }
0x10b1   :  { %7241 = vmatprep.subr.bf16.mxu0 %v14016_v36  ;;  %7282 = vmatprep.subr.bf16.mxu1 %v14018_v56 }
0x10b4   :  { %7242 = vmatpush1.bf16.msra.mxu0 %v14022_v14  ;;  %7283 = vmatpush1.bf16.msra.mxu1 %v14024_v22 }
0x10b5   :  { %7243 = vmatprep.subr.bf16.mxu0 %v14028_v35  ;;  %7284 = vmatprep.subr.bf16.mxu1 %v14030_v59 }
0x10b8   :  { %7244 = vmatpush1.bf16.msra.mxu0 %v14034_v50  ;;  %7285 = vmatpush1.bf16.msra.mxu1 %v14036_v33 }
0x10b9   :  { %7245 = vmatprep.subr.bf16.mxu0 %v14040_v51  ;;  %7286 = vmatprep.subr.bf16.mxu1 %v14042_v44 }
0x10bc   :  { %7246 = vmatpush1.bf16.msra.mxu0 %v14046_v54  ;;  %7287 = vmatpush1.bf16.msra.mxu1 %v14048_v39 }
0x10bd   :  { %7395 = vmatprep.subr.bf16.mxu0 %v13938_v25  ;;  %7436 = vmatprep.subr.bf16.mxu1 %v13940_v16 }
0x10bf   :  { %7264 = vmatmul.mubr.bf16.vlgmr.msra.gmra.mxu0 %v15071_v41  ;;  %7305 = vmatmul.mubr.bf16.vlgmr.msra.gmra.mxu1 %v15071_v41 }
0x10c0   :  { %7396 = vmatpush1.bf16.msra.mxu0 %v13962_v13  ;;  %7437 = vmatpush1.bf16.msra.mxu1 %v13964_v48 }
0x10c1   :  { %7397 = vmatprep.subr.bf16.mxu0 %v13966_v57  ;;  %7438 = vmatprep.subr.bf16.mxu1 %v13968_v45 }
0x10c2   :  { %7427 = vmatprep.mubr.bf16.mxu0 %v15071_v41  ;;  %7468 = vmatprep.mubr.bf16.mxu1 %v15071_v41 }
0x10c4   :  { %7398 = vmatpush1.bf16.msra.mxu0 %v13972_v20  ;;  %7439 = vmatpush1.bf16.msra.mxu1 %v13974_v47 }
0x10c5   :  { %7399 = vmatprep.subr.bf16.mxu0 %v13976_v4  ;;  %7440 = vmatprep.subr.bf16.mxu1 %v13978_v30 }
0x10c8   :  { %7400 = vmatpush1.bf16.msra.mxu0 %v13984_v18  ;;  %7441 = vmatpush1.bf16.msra.mxu1 %v13986_v12 }
0x10c9   :  { %7401 = vmatprep.subr.bf16.mxu0 %v13990_v58  ;;  %7442 = vmatprep.subr.bf16.mxu1 %v13992_v10 }
0x10cc   :  { %7402 = vmatpush1.bf16.msra.mxu0 %v13996_v6  ;;  %7443 = vmatpush1.bf16.msra.mxu1 %v13998_v8 }
0x10cd   :  { %7403 = vmatprep.subr.bf16.mxu0 %v14002_v63  ;;  %7444 = vmatprep.subr.bf16.mxu1 %v14004_v28 }
0x10d0   :  { %7404 = vmatpush1.bf16.msra.mxu0 %v14010_v29  ;;  %7445 = vmatpush1.bf16.msra.mxu1 %v14012_v31 }
0x10d1   :  { %7405 = vmatprep.subr.bf16.mxu0 %v14016_v36  ;;  %7446 = vmatprep.subr.bf16.mxu1 %v14018_v56 }
0x10d4   :  { %7406 = vmatpush1.bf16.msra.mxu0 %v14022_v14  ;;  %7447 = vmatpush1.bf16.msra.mxu1 %v14024_v22 }
0x10d5   :  { %7407 = vmatprep.subr.bf16.mxu0 %v14028_v35  ;;  %7448 = vmatprep.subr.bf16.mxu1 %v14030_v59 }
0x10d8   :  { %7408 = vmatpush1.bf16.msra.mxu0 %v14034_v50  ;;  %7449 = vmatpush1.bf16.msra.mxu1 %v14036_v33 }
0x10d9   :  { %7409 = vmatprep.subr.bf16.mxu0 %v14040_v51  ;;  %7450 = vmatprep.subr.bf16.mxu1 %v14042_v44 }
0x10dc   :  { %7410 = vmatpush1.bf16.msra.mxu0 %v14046_v54  ;;  %7451 = vmatpush1.bf16.msra.mxu1 %v14048_v39 }
0x10dd   :  { %7565 = vmatprep.subr.bf16.mxu0 %v13938_v25  ;;  %7606 = vmatprep.subr.bf16.mxu1 %v13940_v16 }
0x115f   :  { %v6967_v34 = vpop.f32.mrf.mxu0  ;;  %v7020_v11 = vpop.f32.mrf.mxu1 }
0x1160   :  { %v14119_v52 = vadd.f32 %v6967_v34, %v6576_v60 }
0x1161   :  { %v6969_v24 = vpop.f32.mrf.mxu0  ;;  %v7022_v15 = vpop.f32.mrf.mxu1 }
0x1163   :  { %v6971_v21 = vpop.f32.mrf.mxu0  ;;  %v7024_v53 = vpop.f32.mrf.mxu1 }
0x1164   :  { %v14103_v62 = vadd.f32 %v6971_v21, %v6576_v60  ;;  %v14105_v43 = vadd.f32 %v7024_v53, %v6584_v1 }
0x1165   :  { %v6973_v2 = vpop.f32.mrf.mxu0  ;;  %v7026_v9 = vpop.f32.mrf.mxu1 }
0x1166   :  { %15108 = vst [vmem:[#allocation20_spill] sm:$0xff] %v14105_v43  ;;  %v14107_v55 = vadd.f32 %v6973_v2, %v6580_v32  ;;  %v14109_v27 = vadd.f32 %v7026_v9, %v6588_v42  ;;  %v14124_v9 = vadd.f32 %v6969_v24, %v6580_v32 }
0x1167   :  { %v6977_v5 = vpop.f32.mrf.mxu0  ;;  %v7030_v49 = vpop.f32.mrf.mxu1 }
0x1168   :  { %15109 = vst [vmem:[#allocation11_spill] sm:$0xff] %v14107_v55  ;;  %15110 = vst [vmem:[#allocation17_spill] sm:$0xff] %v14109_v27  ;;  %v14121_v7 = vadd.f32 %v6977_v5, %v6576_v60 }
0x1169   :  { %v6979_v26 = vpop.f32.mrf.mxu0  ;;  %v7032_v17 = vpop.f32.mrf.mxu1 }
0x116b   :  { %v6981_v37 = vpop.f32.mrf.mxu0  ;;  %v7034_v23 = vpop.f32.mrf.mxu1 }
0x116c   :  { %v14111_v19 = vadd.f32 %v6981_v37, %v6576_v60  ;;  %v14113_v46 = vadd.f32 %v7034_v23, %v6584_v1 }
0x116d   :  { %v6983_v61 = vpop.f32.mrf.mxu0  ;;  %v7036_v3 = vpop.f32.mrf.mxu1 }
0x116e   :  { %15111 = vst [vmem:[#allocation13_spill] sm:$0xff] %v14111_v19  ;;  %15112 = vst [vmem:[#allocation15_spill] sm:$0xff] %v14113_v46  ;;  %v14115_v38 = vadd.f32 %v6983_v61, %v6580_v32  ;;  %v14117_v40 = vadd.f32 %v7036_v3, %v6588_v42  ;;  %v14127_v61 = vadd.f32 %v6979_v26, %v6580_v32 }
0x116f   :  { %v14133_v32 = vadd.f32 %v7032_v17, %v6588_v42 }
0x1170   :  { %15113 = vst [vmem:[#allocation19_spill] sm:$0xff] %v14115_v38  ;;  %15114 = vst [vmem:[#allocation21_spill] sm:$0xff] %v14117_v40 }
0x117f   :  { %v7265_v21 = vpop.f32.mrf.mxu0  ;;  %v7306_v53 = vpop.f32.mrf.mxu1 }
0x1180   :  { %v7317_v0 = vrot.slane %v7265_v21, 1  ;;  %v7329_v2 = vadd.f32 %v7265_v21, %v14119_v52 }
0x1181   :  { %v7267_v37 = vpop.f32.mrf.mxu0  ;;  %v7308_v23 = vpop.f32.mrf.mxu1 }
0x1182   :  { %v7333_v46 = vadd.f32 %v7317_v0, %v14121_v7  ;;  %v10781_v43 = vmul.f32 -1.442695, %v7329_v2  ;;  %v7318_v3 = vrot.slane %v7267_v37, 1  ;;  %v7330_v34 = vadd.f32 %v7267_v37, %v14124_v9 }
0x1183   :  { %v7269_v40 = vpop.f32.mrf.mxu0  ;;  %v7310_v27 = vpop.f32.mrf.mxu1  ;;  %v7320_v19 = vrot.slane %v7308_v23, 1  ;;  %v14131_v0 = vadd.f32 %v7022_v15, %v6588_v42  ;;  %v7319_v2 = vrot.slane %v7306_v53, 1 }
0x1184   :  { %11873 = vpow2.f32 %v10781_v43  ;;  %v10782_v60 = vmul.f32 -1.442695, %v7333_v46  ;;  %v7334_v5 = vadd.f32 %v7318_v3, %v14127_v61  ;;  %v10783_v38 = vmul.f32 -1.442695, %v7330_v34 }
0x1185   :  { %v7270_v21 = vpop.f32.mrf.mxu0  ;;  %v7311_v24 = vpop.f32.mrf.mxu1  ;;  %v7332_v26 = vadd.f32 %v7308_v23, %v14131_v0  ;;  %v14136_v40 = vadd.f32 %v7020_v11, %v6584_v1  ;;  %v7336_v43 = vadd.f32 %v7320_v19, %v14133_v32 }
0x1186   :  { %11875 = vpow2.f32 %v10782_v60  ;;  %v10784_v55 = vmul.f32 -1.442695, %v7334_v5 }
0x1187   :  { %11877 = vpow2.f32 %v10783_v38  ;;  %v7331_v27 = vadd.f32 %v7306_v53, %v14136_v40  ;;  %v10785_v46 = vmul.f32 -1.442695, %v7332_v26  ;;  %v10786_v37 = vmul.f32 -1.442695, %v7336_v43 }
0x1188   :  { %11879 = vpow2.f32 %v10784_v55  ;;  %v14140_v38 = vadd.f32 %v7030_v49, %v6584_v1 }
0x1189   :  { %11881 = vtanh.f32 %v7331_v27 }
0x118a   :  { %11883 = vpow2.f32 %v10785_v46  ;;  %v7335_v17 = vadd.f32 %v7319_v2, %v14140_v38 }
0x118b   :  { %11885 = vpow2.f32 %v10786_v37 }
0x1191   :  { %v11874_v3 = vpop.eup %11873 }
0x1192   :  { %v7343_v34 = vadd.f32 1.0, %v11874_v3 }
0x1193   :  { %v11876_v15 = vpop.eup %11875 }
0x1194   :  { %v11878_v42 = vpop.eup %11877  ;;  %v7344_v55 = vadd.f32 1.0, %v11876_v15  ;;  %11887 = vrcp.f32 %v7343_v34 }
0x1195   :  { %v7355_v11 = vadd.f32 1.0, %v11878_v42  ;;  %v11880_v19 = vpop.eup %11879 }
0x1196   :  { %11889 = vrcp.f32 %v7344_v55  ;;  %v7356_v23 = vadd.f32 1.0, %v11880_v19  ;;  %v11882_v53 = vpop.eup %11881 }
0x1197   :  { %11891 = vrcp.f32 %v7355_v11  ;;  %v11884_v1 = vpop.eup %11883 }
0x1198   :  { %11893 = vtanh.f32 %v7335_v17  ;;  %v11886_v49 = vpop.eup %11885  ;;  %v7369_v24 = vadd.f32 1.0, %v11884_v1 }
0x1199   :  { %11895 = vrcp.f32 %v7356_v23  ;;  %v7370_v2 = vadd.f32 1.0, %v11886_v49 }
0x119a   :  { %11897 = vrcp.f32 %v7369_v24 }
0x11a1   :  { %v11888_v60 = vpop.eup %11887 }
0x11a2   :  { %v7377_v27 = vmul.f32 %v11888_v60, %v11882_v53 }
0x11a3   :  { %v11890_v5 = vpop.eup %11889 }
0x11a4   :  { %v11892_v21 = vpop.eup %11891 }
0x11a5   :  { %v11894_v26 = vpop.eup %11893  ;;  %v7375_v43 = vmul.f32 0.0, %v11892_v21 }
0x11a6   :  { %v11896_v46 = vpop.eup %11895  ;;  %v7378_v3 = vmul.f32 %v11894_v26, %v11890_v5 }
0x11a7   :  { %v7376_v37 = vmul.f32 0.0, %v11896_v46  ;;  %v14143_v34 = vadd.f32 %v7377_v27, %v7375_v43  ;;  %v11898_v42 = vpop.eup %11897 }
0x11a9   :  { %v14145_v15 = vadd.f32 %v7378_v3, %v7376_v37  ;;  %11899 = vtanh.f32 %v14143_v34 }
0x11aa   :  { %11901 = vrcp.f32 %v7370_v2 }
0x11ab   :  { %11903 = vtanh.f32 %v14145_v15 }
0x11b6   :  { %v11900_v55 = vpop.eup %11899 }
0x11b7   :  { %v11902_v17 = vpop.eup %11901  ;;  %v14149_v11 = vmul.f32 %v11900_v55, %v11898_v42 }
0x11b8   :  { %v11904_v19 = vpop.eup %11903 }
0x11b9   :  { %15115 = vst [vmem:[#allocation14_spill] sm:$0xff] %v14149_v11  ;;  %v14151_v23 = vmul.f32 %v11904_v19, %v11902_v17  ;;  %v7385_v53 = vpack.c.bf16 %v14149_v11, %v14149_v11 }
0x11bb   :  { %15116 = vst [vmem:[#allocation18_spill] sm:$0xff] %v14151_v23  ;;  %v7386_v1 = vpack.c.bf16 %v14151_v23, %v14151_v23  ;;  %v7389_v60 = vunpack.c.l.b16 %v7385_v53 }
0x11bd   :  { %v7390_v49 = vunpack.c.l.b16 %v7386_v1 }
0x11bf   :  { %v7391_v5 = vrot.slane %v7390_v49, 7 }
0x11c1   :  { %v7392_v21 = vsel %vm656_vm7, %v7391_v5, %v7389_v60 }
0x11c2   :  { %v7393_v24 = vpack.c.b16 %v7392_v21, %v7392_v21 }
0x11c4   :  { %7428 = vmatmul.mubr.bf16.vlgmr.msra.gmra.mxu0 %v7393_v24  ;;  %7469 = vmatmul.mubr.bf16.vlgmr.msra.gmra.mxu1 %v7393_v24 }
0x11c5   :  { %7566 = vmatpush1.bf16.msra.mxu0 %v13962_v13  ;;  %7607 = vmatpush1.bf16.msra.mxu1 %v13964_v48 }
0x11c6   :  { %7567 = vmatprep.subr.bf16.mxu0 %v13966_v57  ;;  %7608 = vmatprep.subr.bf16.mxu1 %v13968_v45 }
0x11c7   :  { %7597 = vmatprep.mubr.bf16.mxu0 %v15071_v41  ;;  %7638 = vmatprep.mubr.bf16.mxu1 %v15071_v41 }
0x11c9   :  { %7568 = vmatpush1.bf16.msra.mxu0 %v13972_v20  ;;  %7609 = vmatpush1.bf16.msra.mxu1 %v13974_v47 }
0x11ca   :  { %7569 = vmatprep.subr.bf16.mxu0 %v13976_v4  ;;  %7610 = vmatprep.subr.bf16.mxu1 %v13978_v30 }
0x11cd   :  { %7570 = vmatpush1.bf16.msra.mxu0 %v13984_v18  ;;  %7611 = vmatpush1.bf16.msra.mxu1 %v13986_v12 }
0x11ce   :  { %7571 = vmatprep.subr.bf16.mxu0 %v13990_v58  ;;  %7612 = vmatprep.subr.bf16.mxu1 %v13992_v10 }
0x11d1   :  { %7572 = vmatpush1.bf16.msra.mxu0 %v13996_v6  ;;  %7613 = vmatpush1.bf16.msra.mxu1 %v13998_v8 }
0x11d2   :  { %7573 = vmatprep.subr.bf16.mxu0 %v14002_v63  ;;  %7614 = vmatprep.subr.bf16.mxu1 %v14004_v28 }
0x11d5   :  { %7574 = vmatpush1.bf16.msra.mxu0 %v14010_v29  ;;  %7615 = vmatpush1.bf16.msra.mxu1 %v14012_v31 }
0x11d6   :  { %7575 = vmatprep.subr.bf16.mxu0 %v14016_v36  ;;  %7616 = vmatprep.subr.bf16.mxu1 %v14018_v56 }
0x11d9   :  { %7576 = vmatpush1.bf16.msra.mxu0 %v14022_v14  ;;  %7617 = vmatpush1.bf16.msra.mxu1 %v14024_v22 }
0x11da   :  { %7577 = vmatprep.subr.bf16.mxu0 %v14028_v35  ;;  %7618 = vmatprep.subr.bf16.mxu1 %v14030_v59 }
0x11dd   :  { %7578 = vmatpush1.bf16.msra.mxu0 %v14034_v50  ;;  %7619 = vmatpush1.bf16.msra.mxu1 %v14036_v33 }
0x11de   :  { %7579 = vmatprep.subr.bf16.mxu0 %v14040_v51  ;;  %7620 = vmatprep.subr.bf16.mxu1 %v14042_v44 }
0x11e1   :  { %7580 = vmatpush1.bf16.msra.mxu0 %v14046_v54  ;;  %7621 = vmatpush1.bf16.msra.mxu1 %v14048_v39 }
0x11e2   :  { %7740 = vmatprep.subr.bf16.mxu0 %v13938_v25  ;;  %7781 = vmatprep.subr.bf16.mxu1 %v13940_v16 }
0x1284   :  { %v7429_v26 = vpop.f32.mrf.mxu0  ;;  %v7470_v43 = vpop.f32.mrf.mxu1 }
0x1285   :  { %v7481_v27 = vrot.slane %v7429_v26, 7  ;;  %v7497_v46 = vadd.f32 %v7429_v26, %v14121_v7 }
0x1286   :  { %v7431_v2 = vpop.f32.mrf.mxu0  ;;  %v7472_v37 = vpop.f32.mrf.mxu1 }
0x1287   :  { %v7493_v3 = vadd.f32 %v7481_v27, %v14119_v52  ;;  %v10788_v42 = vmul.f32 -1.442695, %v7497_v46  ;;  %v7482_v55 = vrot.slane %v7431_v2, 7  ;;  %v7498_v17 = vadd.f32 %v7431_v2, %v14127_v61 }
0x1288   :  { %v7433_v19 = vpop.f32.mrf.mxu0  ;;  %v7474_v53 = vpop.f32.mrf.mxu1  ;;  %v7484_v26 = vrot.slane %v7472_v37, 7  ;;  %v7500_v27 = vadd.f32 %v7472_v37, %v14133_v32  ;;  %v7499_v2 = vadd.f32 %v7470_v43, %v14140_v38 }
0x1289   :  { %v10787_v1 = vmul.f32 -1.442695, %v7493_v3  ;;  %11905 = vpow2.f32 %v10788_v42  ;;  %v7494_v49 = vadd.f32 %v7482_v55, %v14124_v9  ;;  %v10790_v60 = vmul.f32 -1.442695, %v7498_v17 }
0x128a   :  { %v7434_v5 = vpop.f32.mrf.mxu0  ;;  %v7475_v21 = vpop.f32.mrf.mxu1  ;;  %v7496_v46 = vadd.f32 %v7484_v26, %v14131_v0  ;;  %v10792_v19 = vmul.f32 -1.442695, %v7500_v27  ;;  %v7483_v53 = vrot.slane %v7470_v43, 7 }
0x128b   :  { %11907 = vpow2.f32 %v10787_v1  ;;  %v10789_v24 = vmul.f32 -1.442695, %v7494_v49 }
0x128c   :  { %11909 = vpow2.f32 %v10790_v60  ;;  %v10791_v3 = vmul.f32 -1.442695, %v7496_v46  ;;  %v7495_v49 = vadd.f32 %v7483_v53, %v14136_v40  ;;  %v7542_v46 = vrot.slane %v14145_v15, 7 }
0x128d   :  { %11911 = vpow2.f32 %v10789_v24  ;;  %v7541_v53 = vrot.slane %v14143_v34, 7 }
0x128e   :  { %11913 = vtanh.f32 %v7499_v2 }
0x128f   :  { %11915 = vpow2.f32 %v10792_v19 }
0x1290   :  { %11917 = vpow2.f32 %v10791_v3 }
0x1296   :  { %v11906_v42 = vpop.eup %11905 }
0x1297   :  { %v7508_v23 = vadd.f32 1.0, %v11906_v42 }
0x1298   :  { %v11908_v55 = vpop.eup %11907 }
0x1299   :  { %v11910_v17 = vpop.eup %11909  ;;  %v7507_v1 = vadd.f32 1.0, %v11908_v55  ;;  %11919 = vrcp.f32 %v7508_v23 }
0x129a   :  { %v7520_v60 = vadd.f32 1.0, %v11910_v17  ;;  %v11912_v37 = vpop.eup %11911 }
0x129b   :  { %11921 = vrcp.f32 %v7507_v1  ;;  %v7519_v5 = vadd.f32 1.0, %v11912_v37  ;;  %v11914_v43 = vpop.eup %11913 }
0x129c   :  { %11923 = vrcp.f32 %v7520_v60  ;;  %v11916_v21 = vpop.eup %11915 }
0x129d   :  { %11925 = vtanh.f32 %v7495_v49  ;;  %v11918_v24 = vpop.eup %11917  ;;  %v7534_v19 = vadd.f32 1.0, %v11916_v21 }
0x129e   :  { %11927 = vrcp.f32 %v7519_v5  ;;  %v7533_v17 = vadd.f32 1.0, %v11918_v24 }
0x129f   :  { %11929 = vrcp.f32 %v7534_v19 }
0x12a6   :  { %v11920_v26 = vpop.eup %11919 }
0x12a7   :  { %v7548_v23 = vmul.f32 %v11920_v26, %v11914_v43 }
0x12a8   :  { %v11922_v27 = vpop.eup %11921 }
0x12a9   :  { %v11924_v2 = vpop.eup %11923 }
0x12aa   :  { %v11926_v42 = vpop.eup %11925  ;;  %v7546_v3 = vmul.f32 %v11924_v2, %v7542_v46 }
0x12ab   :  { %v11928_v55 = vpop.eup %11927  ;;  %v7547_v1 = vmul.f32 %v11926_v42, %v11922_v27 }
0x12ac   :  { %v7545_v60 = vmul.f32 %v11928_v55, %v7541_v53  ;;  %v14202_v49 = vadd.f32 %v7548_v23, %v7546_v3  ;;  %v11930_v15 = vpop.eup %11929 }
0x12ae   :  { %v14204_v37 = vadd.f32 %v7547_v1, %v7545_v60  ;;  %11931 = vtanh.f32 %v14202_v49 }
0x12af   :  { %11933 = vrcp.f32 %v7533_v17 }
0x12b0   :  { %11935 = vtanh.f32 %v14204_v37 }
0x12bb   :  { %v11932_v5 = vpop.eup %11931 }
0x12bc   :  { %v11934_v21 = vpop.eup %11933  ;;  %v7554_v34 = vmul.f32 %v11932_v5, %v11930_v15 }
0x12bd   :  { %v11936_v43 = vpop.eup %11935 }
0x12be   :  { %v7553_v26 = vmul.f32 %v11936_v43, %v11934_v21  ;;  %v7556_v24 = vpack.c.bf16 %v7554_v34, %v7554_v34 }
0x12c0   :  { %v7555_v46 = vpack.c.bf16 %v7553_v26, %v7553_v26  ;;  %v7560_v2 = vunpack.c.l.b16 %v7556_v24 }
0x12c2   :  { %v7559_v27 = vunpack.c.l.b16 %v7555_v46 }
0x12c4   :  { %v7561_v42 = vrot.slane %v7559_v27, 1 }
0x12c6   :  { %v7562_v19 = vsel %vm656_vm7, %v7560_v2, %v7561_v42 }
0x12c7   :  { %v7563_v53 = vpack.c.b16 %v7562_v19, %v7562_v19 }
0x12c9   :  { %7598 = vmatmul.mubr.bf16.vlgmr.msra.gmra.mxu0 %v7563_v53  ;;  %7639 = vmatmul.mubr.bf16.vlgmr.msra.gmra.mxu1 %v7563_v53 }
0x12ca   :  { %7741 = vmatpush1.bf16.msra.mxu0 %v13962_v13  ;;  %7782 = vmatpush1.bf16.msra.mxu1 %v13964_v48 }
0x12cb   :  { %7742 = vmatprep.subr.bf16.mxu0 %v13966_v57  ;;  %7783 = vmatprep.subr.bf16.mxu1 %v13968_v45 }
0x12cc   :  { %7772 = vmatprep.mubr.bf16.mxu0 %v15071_v41  ;;  %7813 = vmatprep.mubr.bf16.mxu1 %v15071_v41 }
0x12ce   :  { %7743 = vmatpush1.bf16.msra.mxu0 %v13972_v20  ;;  %7784 = vmatpush1.bf16.msra.mxu1 %v13974_v47 }
0x12cf   :  { %7744 = vmatprep.subr.bf16.mxu0 %v13976_v4  ;;  %7785 = vmatprep.subr.bf16.mxu1 %v13978_v30 }
0x12d2   :  { %7745 = vmatpush1.bf16.msra.mxu0 %v13984_v18  ;;  %7786 = vmatpush1.bf16.msra.mxu1 %v13986_v12 }
0x12d3   :  { %7746 = vmatprep.subr.bf16.mxu0 %v13990_v58  ;;  %7787 = vmatprep.subr.bf16.mxu1 %v13992_v10 }
0x12d6   :  { %7747 = vmatpush1.bf16.msra.mxu0 %v13996_v6  ;;  %7788 = vmatpush1.bf16.msra.mxu1 %v13998_v8 }
0x12d7   :  { %7748 = vmatprep.subr.bf16.mxu0 %v14002_v63  ;;  %7789 = vmatprep.subr.bf16.mxu1 %v14004_v28 }
0x12da   :  { %7749 = vmatpush1.bf16.msra.mxu0 %v14010_v29  ;;  %7790 = vmatpush1.bf16.msra.mxu1 %v14012_v31 }
0x12db   :  { %7750 = vmatprep.subr.bf16.mxu0 %v14016_v36  ;;  %7791 = vmatprep.subr.bf16.mxu1 %v14018_v56 }
0x12de   :  { %7751 = vmatpush1.bf16.msra.mxu0 %v14022_v14  ;;  %7792 = vmatpush1.bf16.msra.mxu1 %v14024_v22 }
0x12df   :  { %7752 = vmatprep.subr.bf16.mxu0 %v14028_v35  ;;  %7793 = vmatprep.subr.bf16.mxu1 %v14030_v59 }
0x12e2   :  { %7753 = vmatpush1.bf16.msra.mxu0 %v14034_v50  ;;  %7794 = vmatpush1.bf16.msra.mxu1 %v14036_v33 }
0x12e3   :  { %7754 = vmatprep.subr.bf16.mxu0 %v14040_v51  ;;  %7795 = vmatprep.subr.bf16.mxu1 %v14042_v44 }
0x12e6   :  { %7755 = vmatpush1.bf16.msra.mxu0 %v14046_v54  ;;  %7796 = vmatpush1.bf16.msra.mxu1 %v14048_v39 }
0x12e7   :  { %7915 = vmatprep.subr.bf16.mxu0 %v13938_v25  ;;  %7956 = vmatprep.subr.bf16.mxu1 %v13940_v16 }
0x1389   :  { %v7599_v23 = vpop.f32.mrf.mxu0  ;;  %v7640_v3 = vpop.f32.mrf.mxu1 }
0x138a   :  { %v7651_v55 = vrot.slane %v7599_v23, 6  ;;  %v7655_v17 = vrot.slane %v7599_v23, 7 }
0x138b   :  { %v7601_v1 = vpop.f32.mrf.mxu0  ;;  %v7642_v60 = vpop.f32.mrf.mxu1 }
0x138c   :  { %v7667_v15 = vadd.f32 %v7651_v55, %v14119_v52  ;;  %v7671_v5 = vadd.f32 %v7655_v17, %v14121_v7  ;;  %v7652_v21 = vrot.slane %v7601_v1, 6  ;;  %v7656_v34 = vrot.slane %v7601_v1, 7 }
0x138d   :  { %v7603_v43 = vpop.f32.mrf.mxu0  ;;  %v7644_v26 = vpop.f32.mrf.mxu1  ;;  %v7654_v53 = vrot.slane %v7642_v60, 6  ;;  %v7658_v23 = vrot.slane %v7642_v60, 7  ;;  %v7653_v55 = vrot.slane %v7640_v3, 6  ;;  %v7657_v17 = vrot.slane %v7640_v3, 7 }
0x138e   :  { %v10793_v46 = vmul.f32 -1.442695, %v7667_v15  ;;  %v10794_v24 = vmul.f32 -1.442695, %v7671_v5  ;;  %v7668_v25 = vadd.f32 %v7652_v21, %v14124_v9  ;;  %v7672_v16 = vadd.f32 %v7656_v34, %v14127_v61 }
0x138f   :  { %v7604_v27 = vpop.f32.mrf.mxu0  ;;  %v7645_v2 = vpop.f32.mrf.mxu1  ;;  %v7670_v1 = vadd.f32 %v7654_v53, %v14131_v0  ;;  %v7674_v15 = vadd.f32 %v7658_v23, %v14133_v32  ;;  %v7669_v5 = vadd.f32 %v7653_v55, %v14136_v40  ;;  %v7673_v21 = vadd.f32 %v7657_v17, %v14140_v38 }
0x1390   :  { %11937 = vpow2.f32 %v10793_v46  ;;  %v10795_v42 = vmul.f32 -1.442695, %v7668_v25  ;;  %v10796_v19 = vmul.f32 -1.442695, %v7672_v16  ;;  %v7715_v17 = vrot.slane %v14204_v37, 7 }
0x1391   :  { %11939 = vpow2.f32 %v10794_v24  ;;  %v10797_v34 = vmul.f32 -1.442695, %v7670_v1  ;;  %v10798_v43 = vmul.f32 -1.442695, %v7674_v15 }
0x1392   :  { %11941 = vpow2.f32 %v10795_v42 }
0x1393   :  { %11943 = vpow2.f32 %v10796_v19 }
0x1394   :  { %11945 = vtanh.f32 %v7669_v5  ;;  %v7716_v5 = vrot.slane %v14202_v49, 7 }
0x1395   :  { %11947 = vtanh.f32 %v7673_v21 }
0x1396   :  { %11949 = vpow2.f32 %v10797_v34 }
0x1397   :  { %11951 = vpow2.f32 %v10798_v43 }
0x139d   :  { %v11938_v26 = vpop.eup %11937 }
0x139e   :  { %v11940_v46 = vpop.eup %11939  ;;  %v7681_v24 = vadd.f32 1.0, %v11938_v26 }
0x139f   :  { %v7682_v25 = vadd.f32 1.0, %v11940_v46  ;;  %v11942_v60 = vpop.eup %11941 }
0x13a0   :  { %v11944_v3 = vpop.eup %11943  ;;  %11953 = vrcp.f32 %v7681_v24  ;;  %v7693_v16 = vadd.f32 1.0, %v11942_v60 }
0x13a1   :  { %11955 = vrcp.f32 %v7682_v25  ;;  %v7694_v27 = vadd.f32 1.0, %v11944_v3  ;;  %v11946_v2 = vpop.eup %11945 }
0x13a2   :  { %11957 = vrcp.f32 %v7693_v16  ;;  %v11948_v42 = vpop.eup %11947 }
0x13a3   :  { %11959 = vrcp.f32 %v7694_v27  ;;  %v11950_v19 = vpop.eup %11949 }
0x13a4   :  { %v11952_v53 = vpop.eup %11951  ;;  %v7707_v1 = vadd.f32 1.0, %v11950_v19 }
0x13a5   :  { %v7708_v21 = vadd.f32 1.0, %v11952_v53 }
0x13a6   :  { %11961 = vrcp.f32 %v7707_v1 }
0x13a7   :  { %11963 = vrcp.f32 %v7708_v21 }
0x13ad   :  { %v11954_v23 = vpop.eup %11953 }
0x13ae   :  { %v11956_v55 = vpop.eup %11955  ;;  %v7721_v43 = vmul.f32 %v11954_v23, %v11946_v2 }
0x13af   :  { %v11958_v15 = vpop.eup %11957  ;;  %v7722_v46 = vmul.f32 %v11956_v55, %v11948_v42 }
0x13b0   :  { %v11960_v34 = vpop.eup %11959  ;;  %v7719_v26 = vmul.f32 %v11958_v15, %v7715_v17 }
0x13b1   :  { %v7720_v24 = vmul.f32 %v11960_v34, %v7716_v5 }
0x13b2   :  { %v14253_v25 = vadd.f32 %v7721_v43, %v7719_v26 }
0x13b3   :  { %v14255_v60 = vadd.f32 %v7722_v46, %v7720_v24  ;;  %v11962_v37 = vpop.eup %11961 }
0x13b4   :  { %11965 = vtanh.f32 %v14253_v25  ;;  %v11964_v3 = vpop.eup %11963 }
0x13b5   :  { %11967 = vtanh.f32 %v14255_v60 }
0x13c1   :  { %v11966_v16 = vpop.eup %11965 }
0x13c2   :  { %v11968_v49 = vpop.eup %11967  ;;  %v7727_v27 = vmul.f32 %v11966_v16, %v11962_v37 }
0x13c3   :  { %v7728_v19 = vmul.f32 %v11968_v49, %v11964_v3 }
0x13c4   :  { %v7729_v2 = vpack.c.bf16 %v7727_v27, %v7727_v27 }
0x13c5   :  { %v7730_v53 = vpack.c.bf16 %v7728_v19, %v7728_v19 }
0x13c6   :  { %v7733_v42 = vunpack.c.l.b16 %v7729_v2 }
0x13c7   :  { %v7734_v23 = vunpack.c.l.b16 %v7730_v53 }
0x13c8   :  { %v7735_v55 = vrot.slane %v7733_v42, 2 }
0x13c9   :  { %v7736_v17 = vrot.slane %v7734_v23, 1  ;;  %v7890_v23 = vrot.slane %v14253_v25, 7 }
0x13cb   :  { %v7737_v1 = vsel %vm656_vm7, %v7736_v17, %v7735_v55 }
0x13cc   :  { %v7738_v15 = vpack.c.b16 %v7737_v1, %v7737_v1  ;;  %v7891_v1 = vrot.slane %v14255_v60, 7 }
0x13ce   :  { %7773 = vmatmul.mubr.bf16.vlgmr.msra.gmra.mxu0 %v7738_v15  ;;  %7814 = vmatmul.mubr.bf16.vlgmr.msra.gmra.mxu1 %v7738_v15 }
0x13cf   :  { %7916 = vmatpush1.bf16.msra.mxu0 %v13962_v13  ;;  %7957 = vmatpush1.bf16.msra.mxu1 %v13964_v48  ;;  %v14292_v13 = vld [vmem:[#allocation7 + $0xe4] ss:$16 sps:$4 sm:$0xff]   ;;  %v14295_v48 = vld [vmem:[#allocation7 + $0xec] ss:$16 sps:$4 sm:$0xff]  }
0x13d0   :  { %7917 = vmatprep.subr.bf16.mxu0 %v13966_v57  ;;  %7958 = vmatprep.subr.bf16.mxu1 %v13968_v45 }
0x13d1   :  { %7947 = vmatprep.mubr.bf16.mxu0 %v15071_v41  ;;  %7988 = vmatprep.mubr.bf16.mxu1 %v15071_v41 }
0x13d3   :  { %7918 = vmatpush1.bf16.msra.mxu0 %v13972_v20  ;;  %7959 = vmatpush1.bf16.msra.mxu1 %v13974_v47 }
0x13d4   :  { %7919 = vmatprep.subr.bf16.mxu0 %v13976_v4  ;;  %7960 = vmatprep.subr.bf16.mxu1 %v13978_v30 }
0x13d7   :  { %7920 = vmatpush1.bf16.msra.mxu0 %v13984_v18  ;;  %7961 = vmatpush1.bf16.msra.mxu1 %v13986_v12 }
0x13d8   :  { %7921 = vmatprep.subr.bf16.mxu0 %v13990_v58  ;;  %7962 = vmatprep.subr.bf16.mxu1 %v13992_v10 }
0x13db   :  { %7922 = vmatpush1.bf16.msra.mxu0 %v13996_v6  ;;  %7963 = vmatpush1.bf16.msra.mxu1 %v13998_v8 }
0x13dc   :  { %7923 = vmatprep.subr.bf16.mxu0 %v14002_v63  ;;  %7964 = vmatprep.subr.bf16.mxu1 %v14004_v28 }
0x13df   :  { %7924 = vmatpush1.bf16.msra.mxu0 %v14010_v29  ;;  %7965 = vmatpush1.bf16.msra.mxu1 %v14012_v31 }
0x13e0   :  { %7925 = vmatprep.subr.bf16.mxu0 %v14016_v36  ;;  %7966 = vmatprep.subr.bf16.mxu1 %v14018_v56 }
0x13e3   :  { %7926 = vmatpush1.bf16.msra.mxu0 %v14022_v14  ;;  %7967 = vmatpush1.bf16.msra.mxu1 %v14024_v22 }
0x13e4   :  { %7927 = vmatprep.subr.bf16.mxu0 %v14028_v35  ;;  %7968 = vmatprep.subr.bf16.mxu1 %v14030_v59 }
0x13e7   :  { %7928 = vmatpush1.bf16.msra.mxu0 %v14034_v50  ;;  %7969 = vmatpush1.bf16.msra.mxu1 %v14036_v33 }
0x13e8   :  { %7929 = vmatprep.subr.bf16.mxu0 %v14040_v51  ;;  %7970 = vmatprep.subr.bf16.mxu1 %v14042_v44 }
0x13eb   :  { %7930 = vmatpush1.bf16.msra.mxu0 %v14046_v54  ;;  %7971 = vmatpush1.bf16.msra.mxu1 %v14048_v39 }
0x13ec   :  { %8090 = vmatprep.subr.bf16.mxu0 %v14292_v13  ;;  %8131 = vmatprep.subr.bf16.mxu1 %v14295_v48 }
0x148e   :  { %v7774_v57 = vpop.f32.mrf.mxu0  ;;  %v7815_v45 = vpop.f32.mrf.mxu1 }
0x148f   :  { %v7826_v20 = vrot.slane %v7774_v57, 5  ;;  %v7830_v47 = vrot.slane %v7774_v57, 6  ;;  %v7828_v50 = vrot.slane %v7815_v45, 5  ;;  %v7832_v33 = vrot.slane %v7815_v45, 6 }
0x1490   :  { %v7776_v4 = vpop.f32.mrf.mxu0  ;;  %v7817_v30 = vpop.f32.mrf.mxu1 }
0x1491   :  { %v7842_v18 = vadd.f32 %v7826_v20, %v14119_v52  ;;  %v7846_v12 = vadd.f32 %v7830_v47, %v14121_v7  ;;  %v7827_v58 = vrot.slane %v7776_v4, 5  ;;  %v7831_v10 = vrot.slane %v7776_v4, 6 }
0x1492   :  { %v7778_v6 = vpop.f32.mrf.mxu0  ;;  %v7819_v8 = vpop.f32.mrf.mxu1  ;;  %v7829_v35 = vrot.slane %v7817_v30, 5  ;;  %v7833_v59 = vrot.slane %v7817_v30, 6  ;;  %v7844_v54 = vadd.f32 %v7828_v50, %v14136_v40  ;;  %v7848_v39 = vadd.f32 %v7832_v33, %v14140_v38  ;;  %v14324_v50 = vld [vmem:[#allocation7 + $0xcc] ss:$16 sps:$4 sm:$0xff]   ;;  %v14329_v33 = vld [vmem:[#allocation7 + $0xc0] ss:$16 sps:$4 sm:$0xff]  }
0x1493   :  { %v10799_v63 = vmul.f32 -1.442695, %v7842_v18  ;;  %v10800_v28 = vmul.f32 -1.442695, %v7846_v12  ;;  %v7843_v29 = vadd.f32 %v7827_v58, %v14124_v9  ;;  %v7847_v31 = vadd.f32 %v7831_v10, %v14127_v61 }
0x1494   :  { %v7779_v36 = vpop.f32.mrf.mxu0  ;;  %v7820_v56 = vpop.f32.mrf.mxu1  ;;  %v7845_v51 = vadd.f32 %v7829_v35, %v14131_v0  ;;  %v7849_v44 = vadd.f32 %v7833_v59, %v14133_v32  ;;  %v14318_v35 = vld [vmem:[#allocation7 + $0xe8] ss:$16 sps:$4 sm:$0xff]   ;;  %v14321_v59 = vld [vmem:[#allocation7 + $0xc4] ss:$16 sps:$4 sm:$0xff]  }
0x1495   :  { %11969 = vpow2.f32 %v10799_v63  ;;  %v10801_v14 = vmul.f32 -1.442695, %v7843_v29  ;;  %v10802_v22 = vmul.f32 -1.442695, %v7847_v31 }
0x1496   :  { %11971 = vpow2.f32 %v10800_v28  ;;  %v10803_v5 = vmul.f32 -1.442695, %v7845_v51  ;;  %v10804_v21 = vmul.f32 -1.442695, %v7849_v44  ;;  %v14332_v51 = vld [vmem:[#allocation7 + $0xc8] ss:$16 sps:$4 sm:$0xff]  }
0x1497   :  { %11973 = vpow2.f32 %v10801_v14  ;;  %v14335_v44 = vld [vmem:[#allocation7 + $0xa4] ss:$16 sps:$4 sm:$0xff]  }
0x1498   :  { %11975 = vpow2.f32 %v10802_v22  ;;  %v14315_v22 = vld [vmem:[#allocation7 + $0xe0] ss:$16 sps:$4 sm:$0xff]  }
0x1499   :  { %11977 = vtanh.f32 %v7844_v54  ;;  %v14338_v54 = vld [vmem:[#allocation7 + $0xac] ss:$16 sps:$4 sm:$0xff]  }
0x149a   :  { %11979 = vtanh.f32 %v7848_v39  ;;  %v14341_v39 = vld [vmem:[#allocation7 + $0xa0] ss:$16 sps:$4 sm:$0xff]  }
0x149b   :  { %11981 = vpow2.f32 %v10803_v5  ;;  %v14344_v5 = vld [vmem:[#allocation7 + $0xa8] ss:$16 sps:$4 sm:$0xff]  }
0x149c   :  { %11983 = vpow2.f32 %v10804_v21  ;;  %v14347_v21 = vld [vmem:[#allocation7 + $0x84] ss:$16 sps:$4 sm:$0xff]  }
0x14a2   :  { %v11970_v34 = vpop.eup %11969 }
0x14a3   :  { %v11972_v43 = vpop.eup %11971  ;;  %v7856_v26 = vadd.f32 1.0, %v11970_v34  ;;  %v14350_v34 = vld [vmem:[#allocation7 + $0x8c] ss:$16 sps:$4 sm:$0xff]  }
0x14a4   :  { %v7857_v46 = vadd.f32 1.0, %v11972_v43  ;;  %v11974_v24 = vpop.eup %11973  ;;  %v14353_v43 = vld [vmem:[#allocation7 + $0x80] ss:$16 sps:$4 sm:$0xff]  }
0x14a5   :  { %v11976_v37 = vpop.eup %11975  ;;  %11985 = vrcp.f32 %v7856_v26  ;;  %v7868_v3 = vadd.f32 1.0, %v11974_v24  ;;  %v14356_v26 = vld [vmem:[#allocation7 + $0x88] ss:$16 sps:$4 sm:$0xff]   ;;  %v14362_v24 = vld [vmem:[#allocation7 + $0x6c] ss:$16 sps:$4 sm:$0xff]  }
0x14a6   :  { %11987 = vrcp.f32 %v7857_v46  ;;  %v7869_v16 = vadd.f32 1.0, %v11976_v37  ;;  %v11978_v49 = vpop.eup %11977  ;;  %v14359_v46 = vld [vmem:[#allocation7 + $0x64] ss:$16 sps:$4 sm:$0xff]   ;;  %v14365_v37 = vld [vmem:[#allocation7 + $0x60] ss:$16 sps:$4 sm:$0xff]  }
0x14a7   :  { %11989 = vrcp.f32 %v7868_v3  ;;  %v11980_v27 = vpop.eup %11979  ;;  %v14368_v3 = vld [vmem:[#allocation7 + $0x68] ss:$16 sps:$4 sm:$0xff]  }
0x14a8   :  { %11991 = vrcp.f32 %v7869_v16  ;;  %v11982_v19 = vpop.eup %11981  ;;  %v14371_v16 = vld [vmem:[#allocation7 + $0x44] ss:$16 sps:$4 sm:$0xff]  }
0x14a9   :  { %v11984_v2 = vpop.eup %11983  ;;  %v7882_v55 = vadd.f32 1.0, %v11982_v19  ;;  %v14380_v19 = vld [vmem:[#allocation7 + $0x48] ss:$16 sps:$4 sm:$0xff]  }
0x14aa   :  { %v7883_v15 = vadd.f32 1.0, %v11984_v2  ;;  %v14383_v2 = vld [vmem:[#allocation7 + $0x24] ss:$16 sps:$4 sm:$0xff]  }
0x14ab   :  { %11993 = vrcp.f32 %v7882_v55  ;;  %v14395_v55 = vld [vmem:[#allocation7 + $0x4] ss:$16 sps:$4 sm:$0xff]  }
0x14ac   :  { %11995 = vrcp.f32 %v7883_v15  ;;  %v14404_v15 = vld [vmem:[#allocation7 + $0x8] ss:$16 sps:$4 sm:$0xff]  }
0x14b2   :  { %v11986_v53 = vpop.eup %11985 }
0x14b3   :  { %v11988_v42 = vpop.eup %11987  ;;  %v7896_v45 = vmul.f32 %v11986_v53, %v11978_v49  ;;  %v14374_v49 = vld [vmem:[#allocation7 + $0x4c] ss:$16 sps:$4 sm:$0xff]  }
0x14b4   :  { %v11990_v17 = vpop.eup %11989  ;;  %v7897_v47 = vmul.f32 %v11988_v42, %v11980_v27  ;;  %v14377_v27 = vld [vmem:[#allocation7 + $0x40] ss:$16 sps:$4 sm:$0xff]   ;;  %v14386_v53 = vld [vmem:[#allocation7 + $0x2c] ss:$16 sps:$4 sm:$0xff]  }
0x14b5   :  { %v11992_v57 = vpop.eup %11991  ;;  %v7894_v20 = vmul.f32 %v11990_v17, %v7890_v23  ;;  %v14389_v42 = vld [vmem:[#allocation7 + $0x20] ss:$16 sps:$4 sm:$0xff]   ;;  %v14392_v23 = vld [vmem:[#allocation7 + $0x28] ss:$16 sps:$4 sm:$0xff]   ;;  %v14398_v17 = vld [vmem:[#allocation7 + $0xc] ss:$16 sps:$4 sm:$0xff]  }
0x14b6   :  { %v7895_v4 = vmul.f32 %v11992_v57, %v7891_v1  ;;  %v14401_v1 = vld [vmem:[#allocation7] ss:$16 sps:$4 sm:$0xff]  }
0x14b7   :  { %v14308_v30 = vadd.f32 %v7896_v45, %v7894_v20 }
0x14b8   :  { %v14310_v18 = vadd.f32 %v7897_v47, %v7895_v4  ;;  %v11994_v25 = vpop.eup %11993 }
0x14b9   :  { %11997 = vtanh.f32 %v14308_v30  ;;  %v11996_v12 = vpop.eup %11995 }
0x14ba   :  { %11999 = vtanh.f32 %v14310_v18 }
0x14c6   :  { %v11998_v58 = vpop.eup %11997 }
0x14c7   :  { %v12000_v60 = vpop.eup %11999  ;;  %v7902_v10 = vmul.f32 %v11998_v58, %v11994_v25 }
0x14c8   :  { %v7903_v6 = vmul.f32 %v12000_v60, %v11996_v12 }
0x14c9   :  { %v7904_v8 = vpack.c.bf16 %v7902_v10, %v7902_v10 }
0x14ca   :  { %v7905_v63 = vpack.c.bf16 %v7903_v6, %v7903_v6 }
0x14cb   :  { %v7908_v28 = vunpack.c.l.b16 %v7904_v8 }
0x14cc   :  { %v7909_v29 = vunpack.c.l.b16 %v7905_v63 }
0x14cd   :  { %v7910_v31 = vrot.slane %v7908_v28, 3 }
0x14ce   :  { %v7911_v36 = vrot.slane %v7909_v29, 2 }
0x14d0   :  { %v7912_v56 = vsel %vm656_vm7, %v7911_v36, %v7910_v31 }
0x14d1   :  { %v7913_v14 = vpack.c.b16 %v7912_v56, %v7912_v56 }
0x14d3   :  { %7948 = vmatmul.mubr.bf16.vlgmr.msra.gmra.mxu0 %v7913_v14  ;;  %7989 = vmatmul.mubr.bf16.vlgmr.msra.gmra.mxu1 %v7913_v14 }
0x14d4   :  { %8091 = vmatpush1.bf16.msra.mxu0 %v14315_v22  ;;  %8132 = vmatpush1.bf16.msra.mxu1 %v14318_v35 }
0x14d5   :  { %8092 = vmatprep.subr.bf16.mxu0 %v14321_v59  ;;  %8133 = vmatprep.subr.bf16.mxu1 %v14324_v50 }
0x14d6   :  { %8122 = vmatprep.mubr.bf16.mxu0 %v15071_v41  ;;  %8163 = vmatprep.mubr.bf16.mxu1 %v15071_v41 }
0x14d8   :  { %8093 = vmatpush1.bf16.msra.mxu0 %v14329_v33  ;;  %8134 = vmatpush1.bf16.msra.mxu1 %v14332_v51 }
0x14d9   :  { %8094 = vmatprep.subr.bf16.mxu0 %v14335_v44  ;;  %8135 = vmatprep.subr.bf16.mxu1 %v14338_v54 }
0x14dc   :  { %8095 = vmatpush1.bf16.msra.mxu0 %v14341_v39  ;;  %8136 = vmatpush1.bf16.msra.mxu1 %v14344_v5 }
0x14dd   :  { %8096 = vmatprep.subr.bf16.mxu0 %v14347_v21  ;;  %8137 = vmatprep.subr.bf16.mxu1 %v14350_v34 }
0x14e0   :  { %8097 = vmatpush1.bf16.msra.mxu0 %v14353_v43  ;;  %8138 = vmatpush1.bf16.msra.mxu1 %v14356_v26 }
0x14e1   :  { %8098 = vmatprep.subr.bf16.mxu0 %v14359_v46  ;;  %8139 = vmatprep.subr.bf16.mxu1 %v14362_v24 }
0x14e4   :  { %8099 = vmatpush1.bf16.msra.mxu0 %v14365_v37  ;;  %8140 = vmatpush1.bf16.msra.mxu1 %v14368_v3 }
0x14e5   :  { %8100 = vmatprep.subr.bf16.mxu0 %v14371_v16  ;;  %8141 = vmatprep.subr.bf16.mxu1 %v14374_v49 }
0x14e8   :  { %8101 = vmatpush1.bf16.msra.mxu0 %v14377_v27  ;;  %8142 = vmatpush1.bf16.msra.mxu1 %v14380_v19 }
0x14e9   :  { %8102 = vmatprep.subr.bf16.mxu0 %v14383_v2  ;;  %8143 = vmatprep.subr.bf16.mxu1 %v14386_v53 }
0x14ec   :  { %8103 = vmatpush1.bf16.msra.mxu0 %v14389_v42  ;;  %8144 = vmatpush1.bf16.msra.mxu1 %v14392_v23 }
0x14ed   :  { %8104 = vmatprep.subr.bf16.mxu0 %v14395_v55  ;;  %8145 = vmatprep.subr.bf16.mxu1 %v14398_v17 }
0x14f0   :  { %8105 = vmatpush1.bf16.msra.mxu0 %v14401_v1  ;;  %8146 = vmatpush1.bf16.msra.mxu1 %v14404_v15 }
0x14f1   :  { %8265 = vmatprep.subr.bf16.mxu0 %v14292_v13  ;;  %8306 = vmatprep.subr.bf16.mxu1 %v14295_v48 }
0x1593   :  { %v7949_v57 = vpop.f32.mrf.mxu0  ;;  %v7990_v45 = vpop.f32.mrf.mxu1 }
0x1594   :  { %v8001_v20 = vrot.slane %v7949_v57, 4  ;;  %v8005_v47 = vrot.slane %v7949_v57, 5  ;;  %v8003_v11 = vrot.slane %v7990_v45, 4 }
0x1595   :  { %v7951_v4 = vpop.f32.mrf.mxu0  ;;  %v7992_v25 = vpop.f32.mrf.mxu1 }
0x1596   :  { %v8017_v12 = vadd.f32 %v8001_v20, %v14119_v52  ;;  %v8021_v58 = vadd.f32 %v8005_v47, %v14121_v7  ;;  %v8002_v60 = vrot.slane %v7951_v4, 4  ;;  %v8006_v10 = vrot.slane %v7951_v4, 5 }
0x1597   :  { %v7953_v6 = vpop.f32.mrf.mxu0  ;;  %v7994_v8 = vpop.f32.mrf.mxu1  ;;  %v8004_v20 = vrot.slane %v7992_v25, 4  ;;  %v8008_v47 = vrot.slane %v7992_v25, 5  ;;  %v8007_v4 = vrot.slane %v7990_v45, 5 }
0x1598   :  { %v10805_v63 = vmul.f32 -1.442695, %v8017_v12  ;;  %v10806_v28 = vmul.f32 -1.442695, %v8021_v58  ;;  %v8018_v29 = vadd.f32 %v8002_v60, %v14124_v9  ;;  %v8022_v31 = vadd.f32 %v8006_v10, %v14127_v61 }
0x1599   :  { %v7954_v36 = vpop.f32.mrf.mxu0  ;;  %v7995_v56 = vpop.f32.mrf.mxu1  ;;  %v8020_v6 = vadd.f32 %v8004_v20, %v14131_v0  ;;  %v8024_v12 = vadd.f32 %v8008_v47, %v14133_v32  ;;  %v8019_v58 = vadd.f32 %v8003_v11, %v14136_v40  ;;  %v8023_v60 = vadd.f32 %v8007_v4, %v14140_v38 }
0x159a   :  { %12001 = vpow2.f32 %v10805_v63  ;;  %v10807_v14 = vmul.f32 -1.442695, %v8018_v29  ;;  %v10808_v57 = vmul.f32 -1.442695, %v8022_v31 }
0x159b   :  { %12003 = vpow2.f32 %v10806_v28  ;;  %v10809_v10 = vmul.f32 -1.442695, %v8020_v6  ;;  %v10810_v8 = vmul.f32 -1.442695, %v8024_v12  ;;  %v8065_v6 = vrot.slane %v14308_v30, 7 }
0x159c   :  { %12005 = vpow2.f32 %v10807_v14 }
0x159d   :  { %12007 = vpow2.f32 %v10808_v57 }
0x159e   :  { %12009 = vtanh.f32 %v8019_v58 }
0x159f   :  { %12011 = vtanh.f32 %v8023_v60  ;;  %v8066_v60 = vrot.slane %v14310_v18, 7 }
0x15a0   :  { %12013 = vpow2.f32 %v10809_v10 }
0x15a1   :  { %12015 = vpow2.f32 %v10810_v8 }
0x15a7   :  { %v12002_v63 = vpop.eup %12001 }
0x15a8   :  { %v12004_v28 = vpop.eup %12003  ;;  %v8031_v29 = vadd.f32 1.0, %v12002_v63 }
0x15a9   :  { %v8032_v31 = vadd.f32 1.0, %v12004_v28  ;;  %v12006_v25 = vpop.eup %12005 }
0x15aa   :  { %v12008_v45 = vpop.eup %12007  ;;  %12017 = vrcp.f32 %v8031_v29  ;;  %v8043_v36 = vadd.f32 1.0, %v12006_v25 }
0x15ab   :  { %12019 = vrcp.f32 %v8032_v31  ;;  %v8044_v56 = vadd.f32 1.0, %v12008_v45  ;;  %v12010_v11 = vpop.eup %12009 }
0x15ac   :  { %12021 = vrcp.f32 %v8043_v36  ;;  %v12012_v14 = vpop.eup %12011 }
0x15ad   :  { %12023 = vrcp.f32 %v8044_v56  ;;  %v12014_v57 = vpop.eup %12013 }
0x15ae   :  { %v12016_v20 = vpop.eup %12015  ;;  %v8057_v12 = vadd.f32 1.0, %v12014_v57 }
0x15af   :  { %v8058_v10 = vadd.f32 1.0, %v12016_v20 }
0x15b0   :  { %12025 = vrcp.f32 %v8057_v12 }
0x15b1   :  { %12027 = vrcp.f32 %v8058_v10 }
0x15b7   :  { %v12018_v47 = vpop.eup %12017 }
0x15b8   :  { %v12020_v4 = vpop.eup %12019  ;;  %v8071_v63 = vmul.f32 %v12018_v47, %v12010_v11 }
0x15b9   :  { %v12022_v58 = vpop.eup %12021  ;;  %v8072_v29 = vmul.f32 %v12020_v4, %v12012_v14 }
0x15ba   :  { %v12024_v8 = vpop.eup %12023  ;;  %v8069_v28 = vmul.f32 %v12022_v58, %v8065_v6 }
0x15bb   :  { %v8070_v31 = vmul.f32 %v12024_v8, %v8066_v60 }
0x15bc   :  { %v14419_v25 = vadd.f32 %v8071_v63, %v8069_v28 }
0x15bd   :  { %v14421_v45 = vadd.f32 %v8072_v29, %v8070_v31  ;;  %v12026_v30 = vpop.eup %12025 }
0x15be   :  { %12029 = vtanh.f32 %v14419_v25  ;;  %v12028_v36 = vpop.eup %12027 }
0x15bf   :  { %12031 = vtanh.f32 %v14421_v45 }
0x15cb   :  { %v12030_v56 = vpop.eup %12029 }
0x15cc   :  { %v12032_v18 = vpop.eup %12031  ;;  %v8077_v57 = vmul.f32 %v12030_v56, %v12026_v30 }
0x15cd   :  { %v8078_v20 = vmul.f32 %v12032_v18, %v12028_v36 }
0x15ce   :  { %v8079_v11 = vpack.c.bf16 %v8077_v57, %v8077_v57 }
0x15cf   :  { %v8080_v47 = vpack.c.bf16 %v8078_v20, %v8078_v20 }
0x15d0   :  { %v8083_v14 = vunpack.c.l.b16 %v8079_v11 }
0x15d1   :  { %v8084_v4 = vunpack.c.l.b16 %v8080_v47 }
0x15d2   :  { %v8085_v6 = vrot.slane %v8083_v14, 4 }
0x15d3   :  { %v8086_v58 = vrot.slane %v8084_v4, 3 }
0x15d5   :  { %v8087_v12 = vsel %vm656_vm7, %v8086_v58, %v8085_v6 }
0x15d6   :  { %v8088_v60 = vpack.c.b16 %v8087_v12, %v8087_v12 }
0x15d8   :  { %8123 = vmatmul.mubr.bf16.vlgmr.msra.gmra.mxu0 %v8088_v60  ;;  %8164 = vmatmul.mubr.bf16.vlgmr.msra.gmra.mxu1 %v8088_v60 }
0x15d9   :  { %8266 = vmatpush1.bf16.msra.mxu0 %v14315_v22  ;;  %8307 = vmatpush1.bf16.msra.mxu1 %v14318_v35 }
0x15da   :  { %8267 = vmatprep.subr.bf16.mxu0 %v14321_v59  ;;  %8308 = vmatprep.subr.bf16.mxu1 %v14324_v50 }
0x15db   :  { %8297 = vmatprep.mubr.bf16.mxu0 %v15071_v41  ;;  %8338 = vmatprep.mubr.bf16.mxu1 %v15071_v41 }
0x15dd   :  { %8268 = vmatpush1.bf16.msra.mxu0 %v14329_v33  ;;  %8309 = vmatpush1.bf16.msra.mxu1 %v14332_v51 }
0x15de   :  { %8269 = vmatprep.subr.bf16.mxu0 %v14335_v44  ;;  %8310 = vmatprep.subr.bf16.mxu1 %v14338_v54 }
0x15e1   :  { %8270 = vmatpush1.bf16.msra.mxu0 %v14341_v39  ;;  %8311 = vmatpush1.bf16.msra.mxu1 %v14344_v5 }
0x15e2   :  { %8271 = vmatprep.subr.bf16.mxu0 %v14347_v21  ;;  %8312 = vmatprep.subr.bf16.mxu1 %v14350_v34 }
0x15e5   :  { %8272 = vmatpush1.bf16.msra.mxu0 %v14353_v43  ;;  %8313 = vmatpush1.bf16.msra.mxu1 %v14356_v26 }
0x15e6   :  { %8273 = vmatprep.subr.bf16.mxu0 %v14359_v46  ;;  %8314 = vmatprep.subr.bf16.mxu1 %v14362_v24 }
0x15e9   :  { %8274 = vmatpush1.bf16.msra.mxu0 %v14365_v37  ;;  %8315 = vmatpush1.bf16.msra.mxu1 %v14368_v3 }
0x15ea   :  { %8275 = vmatprep.subr.bf16.mxu0 %v14371_v16  ;;  %8316 = vmatprep.subr.bf16.mxu1 %v14374_v49 }
0x15ed   :  { %8276 = vmatpush1.bf16.msra.mxu0 %v14377_v27  ;;  %8317 = vmatpush1.bf16.msra.mxu1 %v14380_v19 }
0x15ee   :  { %8277 = vmatprep.subr.bf16.mxu0 %v14383_v2  ;;  %8318 = vmatprep.subr.bf16.mxu1 %v14386_v53 }
0x15f1   :  { %8278 = vmatpush1.bf16.msra.mxu0 %v14389_v42  ;;  %8319 = vmatpush1.bf16.msra.mxu1 %v14392_v23 }
0x15f2   :  { %8279 = vmatprep.subr.bf16.mxu0 %v14395_v55  ;;  %8320 = vmatprep.subr.bf16.mxu1 %v14398_v17 }
0x15f5   :  { %8280 = vmatpush1.bf16.msra.mxu0 %v14401_v1  ;;  %8321 = vmatpush1.bf16.msra.mxu1 %v14404_v15 }
0x15f6   :  { %8440 = vmatprep.subr.bf16.mxu0 %v14292_v13  ;;  %8481 = vmatprep.subr.bf16.mxu1 %v14295_v48 }
0x1698   :  { %v8124_v10 = vpop.f32.mrf.mxu0  ;;  %v8165_v8 = vpop.f32.mrf.mxu1 }
0x1699   :  { %v8176_v63 = vrot.slane %v8124_v10, 3  ;;  %v8180_v28 = vrot.slane %v8124_v10, 4 }
0x169a   :  { %v8126_v29 = vpop.f32.mrf.mxu0  ;;  %v8167_v31 = vpop.f32.mrf.mxu1 }
0x169b   :  { %v8192_v30 = vadd.f32 %v8176_v63, %v14119_v52  ;;  %v8196_v36 = vadd.f32 %v8180_v28, %v14121_v7  ;;  %v8177_v56 = vrot.slane %v8126_v29, 3  ;;  %v8181_v18 = vrot.slane %v8126_v29, 4 }
0x169c   :  { %v8128_v57 = vpop.f32.mrf.mxu0  ;;  %v8169_v20 = vpop.f32.mrf.mxu1  ;;  %v8179_v10 = vrot.slane %v8167_v31, 3  ;;  %v8183_v63 = vrot.slane %v8167_v31, 4  ;;  %v8178_v28 = vrot.slane %v8165_v8, 3  ;;  %v8182_v29 = vrot.slane %v8165_v8, 4 }
0x169d   :  { %v10811_v11 = vmul.f32 -1.442695, %v8192_v30  ;;  %v10812_v47 = vmul.f32 -1.442695, %v8196_v36  ;;  %v8193_v14 = vadd.f32 %v8177_v56, %v14124_v9  ;;  %v8197_v4 = vadd.f32 %v8181_v18, %v14127_v61 }
0x169e   :  { %v8129_v6 = vpop.f32.mrf.mxu0  ;;  %v8170_v58 = vpop.f32.mrf.mxu1  ;;  %v8195_v57 = vadd.f32 %v8179_v10, %v14131_v0  ;;  %v8199_v30 = vadd.f32 %v8183_v63, %v14133_v32  ;;  %v8194_v36 = vadd.f32 %v8178_v28, %v14136_v40  ;;  %v8198_v56 = vadd.f32 %v8182_v29, %v14140_v38 }
0x169f   :  { %12033 = vpow2.f32 %v10811_v11  ;;  %v10813_v12 = vmul.f32 -1.442695, %v8193_v14  ;;  %v10814_v60 = vmul.f32 -1.442695, %v8197_v4 }
0x16a0   :  { %12035 = vpow2.f32 %v10812_v47  ;;  %v10815_v18 = vmul.f32 -1.442695, %v8195_v57  ;;  %v10816_v20 = vmul.f32 -1.442695, %v8199_v30  ;;  %v8240_v57 = vrot.slane %v14419_v25, 7 }
0x16a1   :  { %12037 = vpow2.f32 %v10813_v12 }
0x16a2   :  { %12039 = vpow2.f32 %v10814_v60 }
0x16a3   :  { %12041 = vtanh.f32 %v8194_v36 }
0x16a4   :  { %12043 = vtanh.f32 %v8198_v56  ;;  %v8241_v56 = vrot.slane %v14421_v45, 7 }
0x16a5   :  { %12045 = vpow2.f32 %v10815_v18 }
0x16a6   :  { %12047 = vpow2.f32 %v10816_v20 }
0x16ac   :  { %v12034_v11 = vpop.eup %12033 }
0x16ad   :  { %v12036_v47 = vpop.eup %12035  ;;  %v8206_v14 = vadd.f32 1.0, %v12034_v11 }
0x16ae   :  { %v8207_v4 = vadd.f32 1.0, %v12036_v47  ;;  %v12038_v31 = vpop.eup %12037 }
0x16af   :  { %v12040_v8 = vpop.eup %12039  ;;  %12049 = vrcp.f32 %v8206_v14  ;;  %v8218_v6 = vadd.f32 1.0, %v12038_v31 }
0x16b0   :  { %12051 = vrcp.f32 %v8207_v4  ;;  %v8219_v58 = vadd.f32 1.0, %v12040_v8  ;;  %v12042_v12 = vpop.eup %12041 }
0x16b1   :  { %12053 = vrcp.f32 %v8218_v6  ;;  %v12044_v60 = vpop.eup %12043 }
0x16b2   :  { %12055 = vrcp.f32 %v8219_v58  ;;  %v12046_v10 = vpop.eup %12045 }
0x16b3   :  { %v12048_v63 = vpop.eup %12047  ;;  %v8232_v30 = vadd.f32 1.0, %v12046_v10 }
0x16b4   :  { %v8233_v18 = vadd.f32 1.0, %v12048_v63 }
0x16b5   :  { %12057 = vrcp.f32 %v8232_v30 }
0x16b6   :  { %12059 = vrcp.f32 %v8233_v18 }
0x16bc   :  { %v12050_v28 = vpop.eup %12049 }
0x16bd   :  { %v12052_v29 = vpop.eup %12051  ;;  %v8246_v11 = vmul.f32 %v12050_v28, %v12042_v12 }
0x16be   :  { %v12054_v36 = vpop.eup %12053  ;;  %v8247_v14 = vmul.f32 %v12052_v29, %v12044_v60 }
0x16bf   :  { %v12056_v20 = vpop.eup %12055  ;;  %v8244_v47 = vmul.f32 %v12054_v36, %v8240_v57 }
0x16c0   :  { %v8245_v4 = vmul.f32 %v12056_v20, %v8241_v56 }
0x16c1   :  { %v14470_v31 = vadd.f32 %v8246_v11, %v8244_v47 }
0x16c2   :  { %v14472_v8 = vadd.f32 %v8247_v14, %v8245_v4  ;;  %v12058_v25 = vpop.eup %12057 }
0x16c3   :  { %12061 = vtanh.f32 %v14470_v31  ;;  %v12060_v6 = vpop.eup %12059 }
0x16c4   :  { %12063 = vtanh.f32 %v14472_v8 }
0x16d0   :  { %v12062_v58 = vpop.eup %12061 }
0x16d1   :  { %v12064_v45 = vpop.eup %12063  ;;  %v8252_v10 = vmul.f32 %v12062_v58, %v12058_v25 }
0x16d2   :  { %v8253_v63 = vmul.f32 %v12064_v45, %v12060_v6 }
0x16d3   :  { %v8254_v12 = vpack.c.bf16 %v8252_v10, %v8252_v10 }
0x16d4   :  { %v8255_v28 = vpack.c.bf16 %v8253_v63, %v8253_v63 }
0x16d5   :  { %v8258_v60 = vunpack.c.l.b16 %v8254_v12 }
0x16d6   :  { %v8259_v29 = vunpack.c.l.b16 %v8255_v28 }
0x16d7   :  { %v8260_v57 = vrot.slane %v8258_v60, 5 }
0x16d8   :  { %v8261_v36 = vrot.slane %v8259_v29, 4 }
0x16da   :  { %v8262_v30 = vsel %vm656_vm7, %v8261_v36, %v8260_v57 }
0x16db   :  { %v8263_v56 = vpack.c.b16 %v8262_v30, %v8262_v30 }
0x16dd   :  { %8298 = vmatmul.mubr.bf16.vlgmr.msra.gmra.mxu0 %v8263_v56  ;;  %8339 = vmatmul.mubr.bf16.vlgmr.msra.gmra.mxu1 %v8263_v56 }
0x16de   :  { %8441 = vmatpush1.bf16.msra.mxu0 %v14315_v22  ;;  %8482 = vmatpush1.bf16.msra.mxu1 %v14318_v35 }
0x16df   :  { %8442 = vmatprep.subr.bf16.mxu0 %v14321_v59  ;;  %8483 = vmatprep.subr.bf16.mxu1 %v14324_v50 }
0x16e0   :  { %8472 = vmatprep.mubr.bf16.mxu0 %v15071_v41  ;;  %8513 = vmatprep.mubr.bf16.mxu1 %v15071_v41 }
0x16e2   :  { %8443 = vmatpush1.bf16.msra.mxu0 %v14329_v33  ;;  %8484 = vmatpush1.bf16.msra.mxu1 %v14332_v51 }
0x16e3   :  { %8444 = vmatprep.subr.bf16.mxu0 %v14335_v44  ;;  %8485 = vmatprep.subr.bf16.mxu1 %v14338_v54 }
0x16e6   :  { %8445 = vmatpush1.bf16.msra.mxu0 %v14341_v39  ;;  %8486 = vmatpush1.bf16.msra.mxu1 %v14344_v5 }
0x16e7   :  { %8446 = vmatprep.subr.bf16.mxu0 %v14347_v21  ;;  %8487 = vmatprep.subr.bf16.mxu1 %v14350_v34 }
0x16ea   :  { %8447 = vmatpush1.bf16.msra.mxu0 %v14353_v43  ;;  %8488 = vmatpush1.bf16.msra.mxu1 %v14356_v26 }
0x16eb   :  { %8448 = vmatprep.subr.bf16.mxu0 %v14359_v46  ;;  %8489 = vmatprep.subr.bf16.mxu1 %v14362_v24 }
0x16ee   :  { %8449 = vmatpush1.bf16.msra.mxu0 %v14365_v37  ;;  %8490 = vmatpush1.bf16.msra.mxu1 %v14368_v3 }
0x16ef   :  { %8450 = vmatprep.subr.bf16.mxu0 %v14371_v16  ;;  %8491 = vmatprep.subr.bf16.mxu1 %v14374_v49 }
0x16f2   :  { %8451 = vmatpush1.bf16.msra.mxu0 %v14377_v27  ;;  %8492 = vmatpush1.bf16.msra.mxu1 %v14380_v19 }
0x16f3   :  { %8452 = vmatprep.subr.bf16.mxu0 %v14383_v2  ;;  %8493 = vmatprep.subr.bf16.mxu1 %v14386_v53 }
0x16f6   :  { %8453 = vmatpush1.bf16.msra.mxu0 %v14389_v42  ;;  %8494 = vmatpush1.bf16.msra.mxu1 %v14392_v23 }
0x16f7   :  { %8454 = vmatprep.subr.bf16.mxu0 %v14395_v55  ;;  %8495 = vmatprep.subr.bf16.mxu1 %v14398_v17 }
0x16fa   :  { %8455 = vmatpush1.bf16.msra.mxu0 %v14401_v1  ;;  %8496 = vmatpush1.bf16.msra.mxu1 %v14404_v15 }
0x16fb   :  { %8615 = vmatprep.subr.bf16.mxu0 %v14292_v13  ;;  %8656 = vmatprep.subr.bf16.mxu1 %v14295_v48 }
0x179d   :  { %v8299_v18 = vpop.f32.mrf.mxu0  ;;  %v8340_v20 = vpop.f32.mrf.mxu1 }
0x179e   :  { %v8351_v11 = vrot.slane %v8299_v18, 2  ;;  %v8355_v47 = vrot.slane %v8299_v18, 3 }
0x179f   :  { %v8301_v14 = vpop.f32.mrf.mxu0  ;;  %v8342_v4 = vpop.f32.mrf.mxu1 }
0x17a0   :  { %v8367_v25 = vadd.f32 %v8351_v11, %v14119_v52  ;;  %v8371_v6 = vadd.f32 %v8355_v47, %v14121_v7  ;;  %v8352_v58 = vrot.slane %v8301_v14, 2  ;;  %v8356_v45 = vrot.slane %v8301_v14, 3 }
0x17a1   :  { %v8303_v10 = vpop.f32.mrf.mxu0  ;;  %v8344_v63 = vpop.f32.mrf.mxu1  ;;  %v8354_v18 = vrot.slane %v8342_v4, 2  ;;  %v8358_v11 = vrot.slane %v8342_v4, 3  ;;  %v8353_v47 = vrot.slane %v8340_v20, 2  ;;  %v8357_v14 = vrot.slane %v8340_v20, 3 }
0x17a2   :  { %v10817_v12 = vmul.f32 -1.442695, %v8367_v25  ;;  %v10818_v28 = vmul.f32 -1.442695, %v8371_v6  ;;  %v8368_v60 = vadd.f32 %v8352_v58, %v14124_v9  ;;  %v8372_v29 = vadd.f32 %v8356_v45, %v14127_v61 }
0x17a3   :  { %v8304_v57 = vpop.f32.mrf.mxu0  ;;  %v8345_v36 = vpop.f32.mrf.mxu1  ;;  %v8370_v10 = vadd.f32 %v8354_v18, %v14131_v0  ;;  %v8374_v25 = vadd.f32 %v8358_v11, %v14133_v32  ;;  %v8369_v6 = vadd.f32 %v8353_v47, %v14136_v40  ;;  %v8373_v58 = vadd.f32 %v8357_v14, %v14140_v38 }
0x17a4   :  { %12065 = vpow2.f32 %v10817_v12  ;;  %v10819_v30 = vmul.f32 -1.442695, %v8368_v60  ;;  %v10820_v56 = vmul.f32 -1.442695, %v8372_v29 }
0x17a5   :  { %12067 = vpow2.f32 %v10818_v28  ;;  %v10821_v45 = vmul.f32 -1.442695, %v8370_v10  ;;  %v10822_v63 = vmul.f32 -1.442695, %v8374_v25  ;;  %v8415_v10 = vrot.slane %v14470_v31, 7 }
0x17a6   :  { %12069 = vpow2.f32 %v10819_v30 }
0x17a7   :  { %12071 = vpow2.f32 %v10820_v56 }
0x17a8   :  { %12073 = vtanh.f32 %v8369_v6 }
0x17a9   :  { %12075 = vtanh.f32 %v8373_v58  ;;  %v8416_v58 = vrot.slane %v14472_v8, 7 }
0x17aa   :  { %12077 = vpow2.f32 %v10821_v45 }
0x17ab   :  { %12079 = vpow2.f32 %v10822_v63 }
0x17b1   :  { %v12066_v12 = vpop.eup %12065 }
0x17b2   :  { %v12068_v28 = vpop.eup %12067  ;;  %v8381_v60 = vadd.f32 1.0, %v12066_v12 }
0x17b3   :  { %v8382_v29 = vadd.f32 1.0, %v12068_v28  ;;  %v12070_v4 = vpop.eup %12069 }
0x17b4   :  { %v12072_v20 = vpop.eup %12071  ;;  %12081 = vrcp.f32 %v8381_v60  ;;  %v8393_v57 = vadd.f32 1.0, %v12070_v4 }
0x17b5   :  { %12083 = vrcp.f32 %v8382_v29  ;;  %v8394_v36 = vadd.f32 1.0, %v12072_v20  ;;  %v12074_v30 = vpop.eup %12073 }
0x17b6   :  { %12085 = vrcp.f32 %v8393_v57  ;;  %v12076_v56 = vpop.eup %12075 }
0x17b7   :  { %12087 = vrcp.f32 %v8394_v36  ;;  %v12078_v18 = vpop.eup %12077 }
0x17b8   :  { %v12080_v11 = vpop.eup %12079  ;;  %v8407_v25 = vadd.f32 1.0, %v12078_v18 }
0x17b9   :  { %v8408_v45 = vadd.f32 1.0, %v12080_v11 }
0x17ba   :  { %12089 = vrcp.f32 %v8407_v25 }
0x17bb   :  { %12091 = vrcp.f32 %v8408_v45 }
0x17c1   :  { %v12082_v47 = vpop.eup %12081 }
0x17c2   :  { %v12084_v14 = vpop.eup %12083  ;;  %v8421_v12 = vmul.f32 %v12082_v47, %v12074_v30 }
0x17c3   :  { %v12086_v6 = vpop.eup %12085  ;;  %v8422_v60 = vmul.f32 %v12084_v14, %v12076_v56 }
0x17c4   :  { %v12088_v63 = vpop.eup %12087  ;;  %v8419_v28 = vmul.f32 %v12086_v6, %v8415_v10 }
0x17c5   :  { %v8420_v29 = vmul.f32 %v12088_v63, %v8416_v58 }
0x17c6   :  { %v14521_v4 = vadd.f32 %v8421_v12, %v8419_v28 }
0x17c7   :  { %v14523_v20 = vadd.f32 %v8422_v60, %v8420_v29  ;;  %v12090_v31 = vpop.eup %12089 }
0x17c8   :  { %12093 = vtanh.f32 %v14521_v4  ;;  %v12092_v57 = vpop.eup %12091 }
0x17c9   :  { %12095 = vtanh.f32 %v14523_v20 }
0x17d5   :  { %v12094_v36 = vpop.eup %12093 }
0x17d6   :  { %v12096_v8 = vpop.eup %12095  ;;  %v8427_v18 = vmul.f32 %v12094_v36, %v12090_v31 }
0x17d7   :  { %v8428_v11 = vmul.f32 %v12096_v8, %v12092_v57 }
0x17d8   :  { %v8429_v30 = vpack.c.bf16 %v8427_v18, %v8427_v18 }
0x17d9   :  { %v8430_v47 = vpack.c.bf16 %v8428_v11, %v8428_v11 }
0x17da   :  { %v8433_v56 = vunpack.c.l.b16 %v8429_v30 }
0x17db   :  { %v8434_v14 = vunpack.c.l.b16 %v8430_v47 }
0x17dc   :  { %v8435_v10 = vrot.slane %v8433_v56, 6 }
0x17dd   :  { %v8436_v6 = vrot.slane %v8434_v14, 5 }
0x17df   :  { %v8437_v25 = vsel %vm656_vm7, %v8436_v6, %v8435_v10 }
0x17e0   :  { %v8438_v58 = vpack.c.b16 %v8437_v25, %v8437_v25 }
0x17e2   :  { %8473 = vmatmul.mubr.bf16.vlgmr.msra.gmra.mxu0 %v8438_v58  ;;  %8514 = vmatmul.mubr.bf16.vlgmr.msra.gmra.mxu1 %v8438_v58 }
0x17e3   :  { %8616 = vmatpush1.bf16.msra.mxu0 %v14315_v22  ;;  %8657 = vmatpush1.bf16.msra.mxu1 %v14318_v35 }
0x17e4   :  { %8617 = vmatprep.subr.bf16.mxu0 %v14321_v59  ;;  %8658 = vmatprep.subr.bf16.mxu1 %v14324_v50 }
0x17e5   :  { %8647 = vmatprep.mubr.bf16.mxu0 %v15071_v41  ;;  %8688 = vmatprep.mubr.bf16.mxu1 %v15071_v41 }
0x17e7   :  { %8618 = vmatpush1.bf16.msra.mxu0 %v14329_v33  ;;  %8659 = vmatpush1.bf16.msra.mxu1 %v14332_v51 }
0x17e8   :  { %8619 = vmatprep.subr.bf16.mxu0 %v14335_v44  ;;  %8660 = vmatprep.subr.bf16.mxu1 %v14338_v54 }
0x17eb   :  { %8620 = vmatpush1.bf16.msra.mxu0 %v14341_v39  ;;  %8661 = vmatpush1.bf16.msra.mxu1 %v14344_v5 }
0x17ec   :  { %8621 = vmatprep.subr.bf16.mxu0 %v14347_v21  ;;  %8662 = vmatprep.subr.bf16.mxu1 %v14350_v34 }
0x17ef   :  { %8622 = vmatpush1.bf16.msra.mxu0 %v14353_v43  ;;  %8663 = vmatpush1.bf16.msra.mxu1 %v14356_v26 }
0x17f0   :  { %8623 = vmatprep.subr.bf16.mxu0 %v14359_v46  ;;  %8664 = vmatprep.subr.bf16.mxu1 %v14362_v24 }
0x17f3   :  { %8624 = vmatpush1.bf16.msra.mxu0 %v14365_v37  ;;  %8665 = vmatpush1.bf16.msra.mxu1 %v14368_v3 }
0x17f4   :  { %8625 = vmatprep.subr.bf16.mxu0 %v14371_v16  ;;  %8666 = vmatprep.subr.bf16.mxu1 %v14374_v49 }
0x17f7   :  { %8626 = vmatpush1.bf16.msra.mxu0 %v14377_v27  ;;  %8667 = vmatpush1.bf16.msra.mxu1 %v14380_v19 }
0x17f8   :  { %8627 = vmatprep.subr.bf16.mxu0 %v14383_v2  ;;  %8668 = vmatprep.subr.bf16.mxu1 %v14386_v53 }
0x17fb   :  { %8628 = vmatpush1.bf16.msra.mxu0 %v14389_v42  ;;  %8669 = vmatpush1.bf16.msra.mxu1 %v14392_v23 }
0x17fc   :  { %8629 = vmatprep.subr.bf16.mxu0 %v14395_v55  ;;  %8670 = vmatprep.subr.bf16.mxu1 %v14398_v17 }
0x17ff   :  { %8630 = vmatpush1.bf16.msra.mxu0 %v14401_v1  ;;  %8671 = vmatpush1.bf16.msra.mxu1 %v14404_v15 }
0x1800   :  { %8785 = vmatprep.subr.bf16.mxu0 %v14292_v13  ;;  %8826 = vmatprep.subr.bf16.mxu1 %v14295_v48 }
0x18a2   :  { %v8474_v45 = vpop.f32.mrf.mxu0  ;;  %v8515_v63 = vpop.f32.mrf.mxu1 }
0x18a3   :  { %v8526_v12 = vrot.slane %v8474_v45, 1  ;;  %v8530_v28 = vrot.slane %v8474_v45, 2  ;;  %v8528_v25 = vrot.slane %v8515_v63, 1  ;;  %v8532_v58 = vrot.slane %v8515_v63, 2 }
0x18a4   :  { %v8476_v60 = vpop.f32.mrf.mxu0  ;;  %v8517_v29 = vpop.f32.mrf.mxu1 }
0x18a5   :  { %v8542_v31 = vadd.f32 %v8526_v12, %v14119_v52  ;;  %v8546_v57 = vadd.f32 %v8530_v28, %v14121_v7  ;;  %v8527_v36 = vrot.slane %v8476_v60, 1  ;;  %v8531_v8 = vrot.slane %v8476_v60, 2 }
0x18a6   :  { %v8478_v18 = vpop.f32.mrf.mxu0  ;;  %v8519_v11 = vpop.f32.mrf.mxu1  ;;  %v8529_v52 = vrot.slane %v8517_v29, 1  ;;  %v8533_v7 = vrot.slane %v8517_v29, 2 }
0x18a7   :  { %v10823_v30 = vmul.f32 -1.442695, %v8542_v31  ;;  %v10824_v47 = vmul.f32 -1.442695, %v8546_v57  ;;  %v8543_v13 = vadd.f32 %v8527_v36, %v14124_v9  ;;  %v8547_v48 = vadd.f32 %v8531_v8, %v14127_v61 }
0x18a8   :  { %v8479_v56 = vpop.f32.mrf.mxu0  ;;  %v8520_v14 = vpop.f32.mrf.mxu1  ;;  %v8545_v45 = vadd.f32 %v8529_v52, %v14131_v0  ;;  %v8549_v12 = vadd.f32 %v8533_v7, %v14133_v32  ;;  %v8544_v9 = vadd.f32 %v8528_v25, %v14136_v40  ;;  %v8548_v61 = vadd.f32 %v8532_v58, %v14140_v38 }
0x18a9   :  { %12097 = vpow2.f32 %v10823_v30  ;;  %v10825_v10 = vmul.f32 -1.442695, %v8543_v13  ;;  %v10826_v6 = vmul.f32 -1.442695, %v8547_v48  ;;  %v8590_v13 = vrot.slane %v14521_v4, 7 }
0x18aa   :  { %12099 = vpow2.f32 %v10824_v47  ;;  %v10827_v28 = vmul.f32 -1.442695, %v8545_v45  ;;  %v10828_v60 = vmul.f32 -1.442695, %v8549_v12  ;;  %v8591_v14 = vrot.slane %v14523_v20, 7 }
0x18ab   :  { %12101 = vpow2.f32 %v10825_v10 }
0x18ac   :  { %12103 = vpow2.f32 %v10826_v6 }
0x18ad   :  { %12105 = vtanh.f32 %v8544_v9 }
0x18ae   :  { %12107 = vtanh.f32 %v8548_v61 }
0x18af   :  { %12109 = vpow2.f32 %v10827_v28 }
0x18b0   :  { %12111 = vpow2.f32 %v10828_v60 }
0x18b6   :  { %v12098_v31 = vpop.eup %12097 }
0x18b7   :  { %v12100_v57 = vpop.eup %12099  ;;  %v8556_v36 = vadd.f32 1.0, %v12098_v31 }
0x18b8   :  { %v8557_v8 = vadd.f32 1.0, %v12100_v57  ;;  %v12102_v29 = vpop.eup %12101 }
0x18b9   :  { %v12104_v63 = vpop.eup %12103  ;;  %12113 = vrcp.f32 %v8556_v36  ;;  %v8568_v0 = vadd.f32 1.0, %v12102_v29 }
0x18ba   :  { %12115 = vrcp.f32 %v8557_v8  ;;  %v8569_v32 = vadd.f32 1.0, %v12104_v63  ;;  %v12106_v40 = vpop.eup %12105 }
0x18bb   :  { %12117 = vrcp.f32 %v8568_v0  ;;  %v12108_v38 = vpop.eup %12107 }
0x18bc   :  { %12119 = vrcp.f32 %v8569_v32  ;;  %v12110_v18 = vpop.eup %12109 }
0x18bd   :  { %v12112_v11 = vpop.eup %12111  ;;  %v8582_v48 = vadd.f32 1.0, %v12110_v18 }
0x18be   :  { %v8583_v10 = vadd.f32 1.0, %v12112_v11 }
0x18bf   :  { %12121 = vrcp.f32 %v8582_v48 }
0x18c0   :  { %12123 = vrcp.f32 %v8583_v10 }
0x18c6   :  { %v12114_v30 = vpop.eup %12113 }
0x18c7   :  { %v12116_v47 = vpop.eup %12115  ;;  %v8596_v52 = vmul.f32 %v12114_v30, %v12106_v40 }
0x18c8   :  { %v12118_v56 = vpop.eup %12117  ;;  %v8597_v25 = vmul.f32 %v12116_v47, %v12108_v38 }
0x18c9   :  { %v12120_v6 = vpop.eup %12119  ;;  %v8594_v7 = vmul.f32 %v12118_v56, %v8590_v13  ;;  %v15123_v56 = vld [vmem:[#allocation15_spill] sm:$0xff] }
0x18ca   :  { %v8595_v58 = vmul.f32 %v12120_v6, %v8591_v14 }
0x18cb   :  { %v14572_v45 = vadd.f32 %v8596_v52, %v8594_v7 }
0x18cc   :  { %v14574_v12 = vadd.f32 %v8597_v25, %v8595_v58  ;;  %v12122_v4 = vpop.eup %12121 }
0x18cd   :  { %12125 = vtanh.f32 %v14572_v45  ;;  %v12124_v9 = vpop.eup %12123 }
0x18ce   :  { %12127 = vtanh.f32 %v14574_v12 }
0x18da   :  { %v12126_v61 = vpop.eup %12125 }
0x18db   :  { %v12128_v20 = vpop.eup %12127  ;;  %v8602_v28 = vmul.f32 %v12126_v61, %v12122_v4  ;;  %v8761_v61 = vrot.slane %v14572_v45, 7 }
0x18dc   :  { %v8603_v60 = vmul.f32 %v12128_v20, %v12124_v9 }
0x18dd   :  { %v8604_v31 = vpack.c.bf16 %v8602_v28, %v8602_v28 }
0x18de   :  { %v8605_v57 = vpack.c.bf16 %v8603_v60, %v8603_v60 }
0x18df   :  { %v8608_v36 = vunpack.c.l.b16 %v8604_v31 }
0x18e0   :  { %v8609_v8 = vunpack.c.l.b16 %v8605_v57  ;;  %v8762_v57 = vrot.slane %v14574_v12, 7 }
0x18e1   :  { %v8610_v29 = vrot.slane %v8608_v36, 7 }
0x18e2   :  { %v8611_v63 = vrot.slane %v8609_v8, 6 }
0x18e4   :  { %v8612_v0 = vsel %vm656_vm7, %v8611_v63, %v8610_v29 }
0x18e5   :  { %v8613_v32 = vpack.c.b16 %v8612_v0, %v8612_v0 }
0x18e7   :  { %8648 = vmatmul.mubr.bf16.vlgmr.msra.gmra.mxu0 %v8613_v32  ;;  %8689 = vmatmul.mubr.bf16.vlgmr.msra.gmra.mxu1 %v8613_v32 }
0x18e8   :  { %8786 = vmatpush1.bf16.msra.mxu0 %v14315_v22  ;;  %8827 = vmatpush1.bf16.msra.mxu1 %v14318_v35  ;;  %v14611_v22 = vld [vmem:[#allocation7 + $0xe4] ss:$16 sps:$4 sm:$0xff]   ;;  %v14614_v35 = vld [vmem:[#allocation7 + $0xec] ss:$16 sps:$4 sm:$0xff]  }
0x18e9   :  { %8787 = vmatprep.subr.bf16.mxu0 %v14321_v59  ;;  %8828 = vmatprep.subr.bf16.mxu1 %v14324_v50 }
0x18ea   :  { %8817 = vmatprep.mubr.bf16.mxu0 %v15071_v41  ;;  %8858 = vmatprep.mubr.bf16.mxu1 %v15071_v41 }
0x18ec   :  { %8788 = vmatpush1.bf16.msra.mxu0 %v14329_v33  ;;  %8829 = vmatpush1.bf16.msra.mxu1 %v14332_v51 }
0x18ed   :  { %8789 = vmatprep.subr.bf16.mxu0 %v14335_v44  ;;  %8830 = vmatprep.subr.bf16.mxu1 %v14338_v54 }
0x18f0   :  { %8790 = vmatpush1.bf16.msra.mxu0 %v14341_v39  ;;  %8831 = vmatpush1.bf16.msra.mxu1 %v14344_v5  ;;  %v15117_v39 = vld [vmem:[#allocation13_spill] sm:$0xff] }
0x18f1   :  { %8791 = vmatprep.subr.bf16.mxu0 %v14347_v21  ;;  %8832 = vmatprep.subr.bf16.mxu1 %v14350_v34 }
0x18f4   :  { %8792 = vmatpush1.bf16.msra.mxu0 %v14353_v43  ;;  %8833 = vmatpush1.bf16.msra.mxu1 %v14356_v26  ;;  %v15118_v43 = vld [vmem:[#allocation11_spill] sm:$0xff] }
0x18f5   :  { %8793 = vmatprep.subr.bf16.mxu0 %v14359_v46  ;;  %8834 = vmatprep.subr.bf16.mxu1 %v14362_v24 }
0x18f8   :  { %8794 = vmatpush1.bf16.msra.mxu0 %v14365_v37  ;;  %8835 = vmatpush1.bf16.msra.mxu1 %v14368_v3  ;;  %v15119_v3 = vld [vmem:[#allocation19_spill] sm:$0xff] }
0x18f9   :  { %8795 = vmatprep.subr.bf16.mxu0 %v14371_v16  ;;  %8836 = vmatprep.subr.bf16.mxu1 %v14374_v49 }
0x18fc   :  { %8796 = vmatpush1.bf16.msra.mxu0 %v14377_v27  ;;  %8837 = vmatpush1.bf16.msra.mxu1 %v14380_v19 }
0x18fd   :  { %8797 = vmatprep.subr.bf16.mxu0 %v14383_v2  ;;  %8838 = vmatprep.subr.bf16.mxu1 %v14386_v53 }
0x1900   :  { %8798 = vmatpush1.bf16.msra.mxu0 %v14389_v42  ;;  %8839 = vmatpush1.bf16.msra.mxu1 %v14392_v23  ;;  %v15120_v42 = vld [vmem:[#allocation17_spill] sm:$0xff] }
0x1901   :  { %8799 = vmatprep.subr.bf16.mxu0 %v14395_v55  ;;  %8840 = vmatprep.subr.bf16.mxu1 %v14398_v17  ;;  %v15121_v55 = vld [vmem:[#allocation21_spill] sm:$0xff] }
0x1904   :  { %8800 = vmatpush1.bf16.msra.mxu0 %v14401_v1  ;;  %8841 = vmatpush1.bf16.msra.mxu1 %v14404_v15  ;;  %v15122_v1 = vld [vmem:[#allocation20_spill] sm:$0xff] }
0x1905   :  { %8955 = vmatprep.subr.bf16.mxu0 %v14611_v22  ;;  %8996 = vmatprep.subr.bf16.mxu1 %v14614_v35 }
0x19a7   :  { %v8649_v59 = vpop.f32.mrf.mxu0  ;;  %v8690_v50 = vpop.f32.mrf.mxu1 }
0x19a8   :  { %v8701_v33 = vrot.slane %v8649_v59, 1  ;;  %v8713_v51 = vadd.f32 %v8649_v59, %v14103_v62  ;;  %v8715_v15 = vadd.f32 %v8690_v50, %v15122_v1  ;;  %v8703_v38 = vrot.slane %v8690_v50, 1 }
0x19a9   :  { %v8651_v44 = vpop.f32.mrf.mxu0  ;;  %v8692_v54 = vpop.f32.mrf.mxu1 }
0x19aa   :  { %v8717_v5 = vadd.f32 %v8701_v33, %v15117_v39  ;;  %v10829_v21 = vmul.f32 -1.442695, %v8713_v51  ;;  %v8702_v34 = vrot.slane %v8651_v44, 1  ;;  %v8714_v26 = vadd.f32 %v8651_v44, %v15118_v43 }
0x19ab   :  { %v8653_v46 = vpop.f32.mrf.mxu0  ;;  %v8694_v24 = vpop.f32.mrf.mxu1  ;;  %v8704_v53 = vrot.slane %v8692_v54, 1  ;;  %v8716_v23 = vadd.f32 %v8692_v54, %v15120_v42  ;;  %v8719_v14 = vadd.f32 %v8703_v38, %v15123_v56  ;;  %v14669_v38 = vld [vmem:[#allocation7 + $0x8c] ss:$16 sps:$4 sm:$0xff]  }
0x19ac   :  { %12129 = vpow2.f32 %v10829_v21  ;;  %v10830_v37 = vmul.f32 -1.442695, %v8717_v5  ;;  %v8718_v16 = vadd.f32 %v8702_v34, %v15119_v3  ;;  %v10831_v49 = vmul.f32 -1.442695, %v8714_v26 }
0x19ad   :  { %v8654_v27 = vpop.f32.mrf.mxu0  ;;  %v8695_v19 = vpop.f32.mrf.mxu1  ;;  %v8720_v17 = vadd.f32 %v8704_v53, %v15121_v55  ;;  %v10833_v40 = vmul.f32 -1.442695, %v8716_v23  ;;  %v14654_v53 = vld [vmem:[#allocation7 + $0xa4] ss:$16 sps:$4 sm:$0xff]   ;;  %v14657_v23 = vld [vmem:[#allocation7 + $0xac] ss:$16 sps:$4 sm:$0xff]  }
0x19ae   :  { %12131 = vpow2.f32 %v10830_v37  ;;  %v10832_v2 = vmul.f32 -1.442695, %v8718_v16  ;;  %v14634_v37 = vld [vmem:[#allocation7 + $0xe0] ss:$16 sps:$4 sm:$0xff]   ;;  %v14637_v16 = vld [vmem:[#allocation7 + $0xe8] ss:$16 sps:$4 sm:$0xff]  }
0x19af   :  { %12133 = vpow2.f32 %v10831_v49  ;;  %v10834_v18 = vmul.f32 -1.442695, %v8720_v17  ;;  %v14640_v49 = vld [vmem:[#allocation7 + $0xc4] ss:$16 sps:$4 sm:$0xff]   ;;  %v14643_v27 = vld [vmem:[#allocation7 + $0xcc] ss:$16 sps:$4 sm:$0xff]  }
0x19b0   :  { %12135 = vpow2.f32 %v10832_v2  ;;  %v14648_v19 = vld [vmem:[#allocation7 + $0xc0] ss:$16 sps:$4 sm:$0xff]   ;;  %v14651_v2 = vld [vmem:[#allocation7 + $0xc8] ss:$16 sps:$4 sm:$0xff]  }
0x19b1   :  { %12137 = vtanh.f32 %v8715_v15  ;;  %v14660_v17 = vld [vmem:[#allocation7 + $0xa0] ss:$16 sps:$4 sm:$0xff]   ;;  %v14663_v15 = vld [vmem:[#allocation7 + $0xa8] ss:$16 sps:$4 sm:$0xff]  }
0x19b2   :  { %12139 = vpow2.f32 %v10833_v40  ;;  %v14666_v40 = vld [vmem:[#allocation7 + $0x84] ss:$16 sps:$4 sm:$0xff]  }
0x19b3   :  { %12141 = vpow2.f32 %v10834_v18  ;;  %v14672_v18 = vld [vmem:[#allocation7 + $0x80] ss:$16 sps:$4 sm:$0xff]  }
0x19b9   :  { %v12130_v11 = vpop.eup %12129 }
0x19ba   :  { %v8727_v30 = vadd.f32 1.0, %v12130_v11  ;;  %v14675_v11 = vld [vmem:[#allocation7 + $0x88] ss:$16 sps:$4 sm:$0xff]  }
0x19bb   :  { %v12132_v47 = vpop.eup %12131 }
0x19bc   :  { %v12134_v13 = vpop.eup %12133  ;;  %v8728_v48 = vadd.f32 1.0, %v12132_v47  ;;  %12143 = vrcp.f32 %v8727_v30  ;;  %v14678_v30 = vld [vmem:[#allocation7 + $0x64] ss:$16 sps:$4 sm:$0xff]   ;;  %v14681_v47 = vld [vmem:[#allocation7 + $0x6c] ss:$16 sps:$4 sm:$0xff]  }
0x19bd   :  { %v8739_v10 = vadd.f32 1.0, %v12134_v13  ;;  %v12136_v6 = vpop.eup %12135  ;;  %v14684_v13 = vld [vmem:[#allocation7 + $0x60] ss:$16 sps:$4 sm:$0xff]  }
0x19be   :  { %12145 = vrcp.f32 %v8728_v48  ;;  %v8740_v52 = vadd.f32 1.0, %v12136_v6  ;;  %v12138_v7 = vpop.eup %12137  ;;  %v14687_v48 = vld [vmem:[#allocation7 + $0x68] ss:$16 sps:$4 sm:$0xff]   ;;  %v14696_v6 = vld [vmem:[#allocation7 + $0x40] ss:$16 sps:$4 sm:$0xff]  }
0x19bf   :  { %12147 = vrcp.f32 %v8739_v10  ;;  %v12140_v25 = vpop.eup %12139  ;;  %v14693_v10 = vld [vmem:[#allocation7 + $0x4c] ss:$16 sps:$4 sm:$0xff]  }
0x19c0   :  { %12149 = vtanh.f32 %v8719_v14  ;;  %v12142_v58 = vpop.eup %12141  ;;  %v8753_v28 = vadd.f32 1.0, %v12140_v25  ;;  %v14690_v14 = vld [vmem:[#allocation7 + $0x44] ss:$16 sps:$4 sm:$0xff]   ;;  %v14705_v25 = vld [vmem:[#allocation7 + $0x2c] ss:$16 sps:$4 sm:$0xff]  }
0x19c1   :  { %12151 = vrcp.f32 %v8740_v52  ;;  %v8754_v29 = vadd.f32 1.0, %v12142_v58  ;;  %v14699_v52 = vld [vmem:[#allocation7 + $0x48] ss:$16 sps:$4 sm:$0xff]   ;;  %v14708_v58 = vld [vmem:[#allocation7 + $0x20] ss:$16 sps:$4 sm:$0xff]  }
0x19c2   :  { %12153 = vrcp.f32 %v8753_v28  ;;  %v14723_v28 = vld [vmem:[#allocation7 + $0x8] ss:$16 sps:$4 sm:$0xff]  }
0x19c9   :  { %v12144_v4 = vpop.eup %12143 }
0x19ca   :  { %v8767_v31 = vmul.f32 %v12144_v4, %v12138_v7  ;;  %v14702_v7 = vld [vmem:[#allocation7 + $0x24] ss:$16 sps:$4 sm:$0xff]   ;;  %v14711_v4 = vld [vmem:[#allocation7 + $0x28] ss:$16 sps:$4 sm:$0xff]  }
0x19cb   :  { %v12146_v9 = vpop.eup %12145 }
0x19cc   :  { %v12148_v20 = vpop.eup %12147 }
0x19cd   :  { %v12150_v60 = vpop.eup %12149  ;;  %v8765_v36 = vmul.f32 %v12148_v20, %v8761_v61  ;;  %v14717_v61 = vld [vmem:[#allocation7 + $0xc] ss:$16 sps:$4 sm:$0xff]   ;;  %v14720_v20 = vld [vmem:[#allocation7] ss:$16 sps:$4 sm:$0xff]  }
0x19ce   :  { %v12152_v8 = vpop.eup %12151  ;;  %v8768_v63 = vmul.f32 %v12150_v60, %v12146_v9  ;;  %v14714_v9 = vld [vmem:[#allocation7 + $0x4] ss:$16 sps:$4 sm:$0xff]  }
0x19cf   :  { %v8766_v0 = vmul.f32 %v12152_v8, %v8762_v57  ;;  %v14627_v32 = vadd.f32 %v8767_v31, %v8765_v36  ;;  %v12154_v45 = vpop.eup %12153 }
0x19d1   :  { %v14629_v59 = vadd.f32 %v8768_v63, %v8766_v0  ;;  %12155 = vtanh.f32 %v14627_v32 }
0x19d2   :  { %12157 = vrcp.f32 %v8754_v29 }
0x19d3   :  { %12159 = vtanh.f32 %v14629_v59 }
0x19de   :  { %v12156_v50 = vpop.eup %12155 }
0x19df   :  { %v12158_v33 = vpop.eup %12157  ;;  %v8773_v51 = vmul.f32 %v12156_v50, %v12154_v45 }
0x19e0   :  { %v12160_v12 = vpop.eup %12159 }
0x19e1   :  { %v8774_v44 = vmul.f32 %v12160_v12, %v12158_v33  ;;  %v8775_v54 = vpack.c.bf16 %v8773_v51, %v8773_v51 }
0x19e3   :  { %v8776_v5 = vpack.c.bf16 %v8774_v44, %v8774_v44  ;;  %v8779_v34 = vunpack.c.l.b16 %v8775_v54 }
0x19e5   :  { %v8780_v21 = vunpack.c.l.b16 %v8776_v5 }
0x19e7   :  { %v8781_v26 = vrot.slane %v8780_v21, 7 }
0x19e9   :  { %v8782_v46 = vsel %vm656_vm7, %v8781_v26, %v8779_v34 }
0x19ea   :  { %v8783_v24 = vpack.c.b16 %v8782_v46, %v8782_v46 }
0x19ec   :  { %8818 = vmatmul.mubr.bf16.vlgmr.msra.gmra.mxu0 %v8783_v24  ;;  %8859 = vmatmul.mubr.bf16.vlgmr.msra.gmra.mxu1 %v8783_v24 }
0x19ed   :  { %8956 = vmatpush1.bf16.msra.mxu0 %v14634_v37  ;;  %8997 = vmatpush1.bf16.msra.mxu1 %v14637_v16 }
0x19ee   :  { %8957 = vmatprep.subr.bf16.mxu0 %v14640_v49  ;;  %8998 = vmatprep.subr.bf16.mxu1 %v14643_v27 }
0x19ef   :  { %8987 = vmatprep.mubr.bf16.mxu0 %v15071_v41  ;;  %9028 = vmatprep.mubr.bf16.mxu1 %v15071_v41 }
0x19f1   :  { %8958 = vmatpush1.bf16.msra.mxu0 %v14648_v19  ;;  %8999 = vmatpush1.bf16.msra.mxu1 %v14651_v2 }
0x19f2   :  { %8959 = vmatprep.subr.bf16.mxu0 %v14654_v53  ;;  %9000 = vmatprep.subr.bf16.mxu1 %v14657_v23 }
0x19f5   :  { %8960 = vmatpush1.bf16.msra.mxu0 %v14660_v17  ;;  %9001 = vmatpush1.bf16.msra.mxu1 %v14663_v15 }
0x19f6   :  { %8961 = vmatprep.subr.bf16.mxu0 %v14666_v40  ;;  %9002 = vmatprep.subr.bf16.mxu1 %v14669_v38 }
0x19f9   :  { %8962 = vmatpush1.bf16.msra.mxu0 %v14672_v18  ;;  %9003 = vmatpush1.bf16.msra.mxu1 %v14675_v11 }
0x19fa   :  { %8963 = vmatprep.subr.bf16.mxu0 %v14678_v30  ;;  %9004 = vmatprep.subr.bf16.mxu1 %v14681_v47 }
0x19fd   :  { %8964 = vmatpush1.bf16.msra.mxu0 %v14684_v13  ;;  %9005 = vmatpush1.bf16.msra.mxu1 %v14687_v48 }
0x19fe   :  { %8965 = vmatprep.subr.bf16.mxu0 %v14690_v14  ;;  %9006 = vmatprep.subr.bf16.mxu1 %v14693_v10 }
0x1a01   :  { %8966 = vmatpush1.bf16.msra.mxu0 %v14696_v6  ;;  %9007 = vmatpush1.bf16.msra.mxu1 %v14699_v52 }
0x1a02   :  { %8967 = vmatprep.subr.bf16.mxu0 %v14702_v7  ;;  %9008 = vmatprep.subr.bf16.mxu1 %v14705_v25 }
0x1a05   :  { %8968 = vmatpush1.bf16.msra.mxu0 %v14708_v58  ;;  %9009 = vmatpush1.bf16.msra.mxu1 %v14711_v4 }
0x1a06   :  { %8969 = vmatprep.subr.bf16.mxu0 %v14714_v9  ;;  %9010 = vmatprep.subr.bf16.mxu1 %v14717_v61 }
0x1a09   :  { %8970 = vmatpush1.bf16.msra.mxu0 %v14720_v20  ;;  %9011 = vmatpush1.bf16.msra.mxu1 %v14723_v28 }
0x1a0a   :  { %9130 = vmatprep.subr.bf16.mxu0 %v14611_v22  ;;  %9171 = vmatprep.subr.bf16.mxu1 %v14614_v35 }
0x1aac   :  { %v8819_v60 = vpop.f32.mrf.mxu0  ;;  %v8860_v31 = vpop.f32.mrf.mxu1 }
0x1aad   :  { %v8871_v57 = vrot.slane %v8819_v60, 7  ;;  %v8887_v36 = vadd.f32 %v8819_v60, %v15117_v39  ;;  %v8889_v60 = vadd.f32 %v8860_v31, %v15123_v56 }
0x1aae   :  { %v8821_v8 = vpop.f32.mrf.mxu0  ;;  %v8862_v29 = vpop.f32.mrf.mxu1 }
0x1aaf   :  { %v8883_v63 = vadd.f32 %v8871_v57, %v14103_v62  ;;  %v10836_v0 = vmul.f32 -1.442695, %v8887_v36  ;;  %v8872_v45 = vrot.slane %v8821_v8, 7  ;;  %v8888_v50 = vadd.f32 %v8821_v8, %v15119_v3 }
0x1ab0   :  { %v8823_v33 = vpop.f32.mrf.mxu0  ;;  %v8864_v51 = vpop.f32.mrf.mxu1  ;;  %v8874_v26 = vrot.slane %v8862_v29, 7  ;;  %v8890_v46 = vadd.f32 %v8862_v29, %v15121_v55  ;;  %v8873_v36 = vrot.slane %v8860_v31, 7 }
0x1ab1   :  { %v10835_v12 = vmul.f32 -1.442695, %v8883_v63  ;;  %12161 = vpow2.f32 %v10836_v0  ;;  %v8884_v44 = vadd.f32 %v8872_v45, %v15118_v43  ;;  %v10838_v54 = vmul.f32 -1.442695, %v8888_v50 }
0x1ab2   :  { %v8824_v5 = vpop.f32.mrf.mxu0  ;;  %v8865_v21 = vpop.f32.mrf.mxu1  ;;  %v8886_v24 = vadd.f32 %v8874_v26, %v15120_v42  ;;  %v10840_v57 = vmul.f32 -1.442695, %v8890_v46  ;;  %v8885_v51 = vadd.f32 %v8873_v36, %v15122_v1  ;;  %v8932_v26 = vrot.slane %v14629_v59, 7 }
0x1ab3   :  { %12163 = vpow2.f32 %v10835_v12  ;;  %v10837_v34 = vmul.f32 -1.442695, %v8884_v44  ;;  %v8931_v36 = vrot.slane %v14627_v32, 7 }
0x1ab4   :  { %12165 = vpow2.f32 %v10838_v54  ;;  %v10839_v8 = vmul.f32 -1.442695, %v8886_v24 }
0x1ab5   :  { %12167 = vpow2.f32 %v10837_v34 }
0x1ab6   :  { %12169 = vtanh.f32 %v8889_v60 }
0x1ab7   :  { %12171 = vpow2.f32 %v10840_v57 }
0x1ab8   :  { %12173 = vpow2.f32 %v10839_v8 }
0x1abe   :  { %v12162_v63 = vpop.eup %12161 }
0x1abf   :  { %v8898_v0 = vadd.f32 1.0, %v12162_v63 }
0x1ac0   :  { %v12164_v45 = vpop.eup %12163 }
0x1ac1   :  { %v12166_v50 = vpop.eup %12165  ;;  %v8897_v33 = vadd.f32 1.0, %v12164_v45  ;;  %12175 = vrcp.f32 %v8898_v0 }
0x1ac2   :  { %v8910_v12 = vadd.f32 1.0, %v12166_v50  ;;  %v12168_v29 = vpop.eup %12167 }
0x1ac3   :  { %12177 = vrcp.f32 %v8897_v33  ;;  %v8909_v44 = vadd.f32 1.0, %v12168_v29  ;;  %v12170_v31 = vpop.eup %12169 }
0x1ac4   :  { %12179 = vrcp.f32 %v8910_v12  ;;  %v12172_v54 = vpop.eup %12171 }
0x1ac5   :  { %12181 = vtanh.f32 %v8885_v51  ;;  %v12174_v5 = vpop.eup %12173  ;;  %v8924_v24 = vadd.f32 1.0, %v12172_v54 }
0x1ac6   :  { %12183 = vrcp.f32 %v8909_v44  ;;  %v8923_v0 = vadd.f32 1.0, %v12174_v5 }
0x1ac7   :  { %12185 = vrcp.f32 %v8924_v24 }
0x1ace   :  { %v12176_v21 = vpop.eup %12175 }
0x1acf   :  { %v8938_v57 = vmul.f32 %v12176_v21, %v12170_v31 }
0x1ad0   :  { %v12178_v34 = vpop.eup %12177 }
0x1ad1   :  { %v12180_v46 = vpop.eup %12179 }
0x1ad2   :  { %v12182_v60 = vpop.eup %12181  ;;  %v8936_v8 = vmul.f32 %v12180_v46, %v8932_v26 }
0x1ad3   :  { %v12184_v63 = vpop.eup %12183  ;;  %v8937_v45 = vmul.f32 %v12182_v60, %v12178_v34 }
0x1ad4   :  { %v8935_v50 = vmul.f32 %v12184_v63, %v8931_v36  ;;  %v14738_v33 = vadd.f32 %v8938_v57, %v8936_v8  ;;  %v12186_v59 = vpop.eup %12185 }
0x1ad6   :  { %v14740_v51 = vadd.f32 %v8937_v45, %v8935_v50  ;;  %12187 = vtanh.f32 %v14738_v33 }
0x1ad7   :  { %12189 = vrcp.f32 %v8923_v0 }
0x1ad8   :  { %12191 = vtanh.f32 %v14740_v51 }
0x1ae3   :  { %v12188_v12 = vpop.eup %12187 }
0x1ae4   :  { %v12190_v29 = vpop.eup %12189  ;;  %v8944_v44 = vmul.f32 %v12188_v12, %v12186_v59 }
0x1ae5   :  { %v12192_v32 = vpop.eup %12191 }
0x1ae6   :  { %v8943_v31 = vmul.f32 %v12192_v32, %v12190_v29  ;;  %v8946_v5 = vpack.c.bf16 %v8944_v44, %v8944_v44 }
0x1ae8   :  { %v8945_v54 = vpack.c.bf16 %v8943_v31, %v8943_v31  ;;  %v8950_v34 = vunpack.c.l.b16 %v8946_v5 }
0x1aea   :  { %v8949_v21 = vunpack.c.l.b16 %v8945_v54 }
0x1aec   :  { %v8951_v26 = vrot.slane %v8949_v21, 1 }
0x1aee   :  { %v8952_v46 = vsel %vm656_vm7, %v8950_v34, %v8951_v26 }
0x1aef   :  { %v8953_v24 = vpack.c.b16 %v8952_v46, %v8952_v46 }
0x1af1   :  { %8988 = vmatmul.mubr.bf16.vlgmr.msra.gmra.mxu0 %v8953_v24  ;;  %9029 = vmatmul.mubr.bf16.vlgmr.msra.gmra.mxu1 %v8953_v24 }
0x1af2   :  { %9131 = vmatpush1.bf16.msra.mxu0 %v14634_v37  ;;  %9172 = vmatpush1.bf16.msra.mxu1 %v14637_v16 }
0x1af3   :  { %9132 = vmatprep.subr.bf16.mxu0 %v14640_v49  ;;  %9173 = vmatprep.subr.bf16.mxu1 %v14643_v27 }
0x1af4   :  { %9162 = vmatprep.mubr.bf16.mxu0 %v15071_v41  ;;  %9203 = vmatprep.mubr.bf16.mxu1 %v15071_v41 }
0x1af6   :  { %9133 = vmatpush1.bf16.msra.mxu0 %v14648_v19  ;;  %9174 = vmatpush1.bf16.msra.mxu1 %v14651_v2 }
0x1af7   :  { %9134 = vmatprep.subr.bf16.mxu0 %v14654_v53  ;;  %9175 = vmatprep.subr.bf16.mxu1 %v14657_v23 }
0x1afa   :  { %9135 = vmatpush1.bf16.msra.mxu0 %v14660_v17  ;;  %9176 = vmatpush1.bf16.msra.mxu1 %v14663_v15 }
0x1afb   :  { %9136 = vmatprep.subr.bf16.mxu0 %v14666_v40  ;;  %9177 = vmatprep.subr.bf16.mxu1 %v14669_v38 }
0x1afe   :  { %9137 = vmatpush1.bf16.msra.mxu0 %v14672_v18  ;;  %9178 = vmatpush1.bf16.msra.mxu1 %v14675_v11 }
0x1aff   :  { %9138 = vmatprep.subr.bf16.mxu0 %v14678_v30  ;;  %9179 = vmatprep.subr.bf16.mxu1 %v14681_v47 }
0x1b02   :  { %9139 = vmatpush1.bf16.msra.mxu0 %v14684_v13  ;;  %9180 = vmatpush1.bf16.msra.mxu1 %v14687_v48 }
0x1b03   :  { %9140 = vmatprep.subr.bf16.mxu0 %v14690_v14  ;;  %9181 = vmatprep.subr.bf16.mxu1 %v14693_v10 }
0x1b06   :  { %9141 = vmatpush1.bf16.msra.mxu0 %v14696_v6  ;;  %9182 = vmatpush1.bf16.msra.mxu1 %v14699_v52 }
0x1b07   :  { %9142 = vmatprep.subr.bf16.mxu0 %v14702_v7  ;;  %9183 = vmatprep.subr.bf16.mxu1 %v14705_v25 }
0x1b0a   :  { %9143 = vmatpush1.bf16.msra.mxu0 %v14708_v58  ;;  %9184 = vmatpush1.bf16.msra.mxu1 %v14711_v4 }
0x1b0b   :  { %9144 = vmatprep.subr.bf16.mxu0 %v14714_v9  ;;  %9185 = vmatprep.subr.bf16.mxu1 %v14717_v61 }
0x1b0e   :  { %9145 = vmatpush1.bf16.msra.mxu0 %v14720_v20  ;;  %9186 = vmatpush1.bf16.msra.mxu1 %v14723_v28 }
0x1b0f   :  { %9305 = vmatprep.subr.bf16.mxu0 %v14611_v22  ;;  %9346 = vmatprep.subr.bf16.mxu1 %v14614_v35 }
0x1bb1   :  { %v8989_v60 = vpop.f32.mrf.mxu0  ;;  %v9030_v57 = vpop.f32.mrf.mxu1 }
0x1bb2   :  { %v9041_v36 = vrot.slane %v8989_v60, 6  ;;  %v9045_v8 = vrot.slane %v8989_v60, 7 }
0x1bb3   :  { %v8991_v63 = vpop.f32.mrf.mxu0  ;;  %v9032_v0 = vpop.f32.mrf.mxu1 }
0x1bb4   :  { %v9057_v45 = vadd.f32 %v9041_v36, %v14103_v62  ;;  %v9061_v50 = vadd.f32 %v9045_v8, %v15117_v39  ;;  %v9042_v59 = vrot.slane %v8991_v63, 6  ;;  %v9046_v12 = vrot.slane %v8991_v63, 7 }
0x1bb5   :  { %v8993_v29 = vpop.f32.mrf.mxu0  ;;  %v9034_v44 = vpop.f32.mrf.mxu1  ;;  %v9044_v24 = vrot.slane %v9032_v0, 6  ;;  %v9048_v60 = vrot.slane %v9032_v0, 7  ;;  %v9043_v36 = vrot.slane %v9030_v57, 6  ;;  %v9047_v8 = vrot.slane %v9030_v57, 7 }
0x1bb6   :  { %v10841_v32 = vmul.f32 -1.442695, %v9057_v45  ;;  %v10842_v31 = vmul.f32 -1.442695, %v9061_v50  ;;  %v9058_v54 = vadd.f32 %v9042_v59, %v15118_v43  ;;  %v9062_v5 = vadd.f32 %v9046_v12, %v15119_v3 }
0x1bb7   :  { %v8994_v21 = vpop.f32.mrf.mxu0  ;;  %v9035_v34 = vpop.f32.mrf.mxu1  ;;  %v9060_v63 = vadd.f32 %v9044_v24, %v15120_v42  ;;  %v9064_v45 = vadd.f32 %v9048_v60, %v15121_v55  ;;  %v9059_v50 = vadd.f32 %v9043_v36, %v15122_v1  ;;  %v9063_v59 = vadd.f32 %v9047_v8, %v15123_v56 }
0x1bb8   :  { %12193 = vpow2.f32 %v10841_v32  ;;  %v10843_v26 = vmul.f32 -1.442695, %v9058_v54  ;;  %v10844_v46 = vmul.f32 -1.442695, %v9062_v5  ;;  %v9105_v8 = vrot.slane %v14740_v51, 7 }
0x1bb9   :  { %12195 = vpow2.f32 %v10842_v31  ;;  %v10845_v12 = vmul.f32 -1.442695, %v9060_v63  ;;  %v10846_v29 = vmul.f32 -1.442695, %v9064_v45 }
0x1bba   :  { %12197 = vpow2.f32 %v10843_v26 }
0x1bbb   :  { %12199 = vpow2.f32 %v10844_v46 }
0x1bbc   :  { %12201 = vtanh.f32 %v9059_v50  ;;  %v9106_v50 = vrot.slane %v14738_v33, 7 }
0x1bbd   :  { %12203 = vtanh.f32 %v9063_v59 }
0x1bbe   :  { %12205 = vpow2.f32 %v10845_v12 }
0x1bbf   :  { %12207 = vpow2.f32 %v10846_v29 }
0x1bc5   :  { %v12194_v44 = vpop.eup %12193 }
0x1bc6   :  { %v12196_v32 = vpop.eup %12195  ;;  %v9071_v31 = vadd.f32 1.0, %v12194_v44 }
0x1bc7   :  { %v9072_v54 = vadd.f32 1.0, %v12196_v32  ;;  %v12198_v0 = vpop.eup %12197 }
0x1bc8   :  { %v12200_v57 = vpop.eup %12199  ;;  %12209 = vrcp.f32 %v9071_v31  ;;  %v9083_v5 = vadd.f32 1.0, %v12198_v0 }
0x1bc9   :  { %12211 = vrcp.f32 %v9072_v54  ;;  %v9084_v21 = vadd.f32 1.0, %v12200_v57  ;;  %v12202_v34 = vpop.eup %12201 }
0x1bca   :  { %12213 = vrcp.f32 %v9083_v5  ;;  %v12204_v26 = vpop.eup %12203 }
0x1bcb   :  { %12215 = vrcp.f32 %v9084_v21  ;;  %v12206_v46 = vpop.eup %12205 }
0x1bcc   :  { %v12208_v24 = vpop.eup %12207  ;;  %v9097_v63 = vadd.f32 1.0, %v12206_v46 }
0x1bcd   :  { %v9098_v59 = vadd.f32 1.0, %v12208_v24 }
0x1bce   :  { %12217 = vrcp.f32 %v9097_v63 }
0x1bcf   :  { %12219 = vrcp.f32 %v9098_v59 }
0x1bd5   :  { %v12210_v60 = vpop.eup %12209 }
0x1bd6   :  { %v12212_v36 = vpop.eup %12211  ;;  %v9111_v29 = vmul.f32 %v12210_v60, %v12202_v34 }
0x1bd7   :  { %v12214_v45 = vpop.eup %12213  ;;  %v9112_v32 = vmul.f32 %v12212_v36, %v12204_v26 }
0x1bd8   :  { %v12216_v12 = vpop.eup %12215  ;;  %v9109_v44 = vmul.f32 %v12214_v45, %v9105_v8 }
0x1bd9   :  { %v9110_v31 = vmul.f32 %v12216_v12, %v9106_v50 }
0x1bda   :  { %v14789_v54 = vadd.f32 %v9111_v29, %v9109_v44 }
0x1bdb   :  { %v14791_v0 = vadd.f32 %v9112_v32, %v9110_v31  ;;  %v12218_v51 = vpop.eup %12217 }
0x1bdc   :  { %12221 = vtanh.f32 %v14789_v54  ;;  %v12220_v57 = vpop.eup %12219 }
0x1bdd   :  { %12223 = vtanh.f32 %v14791_v0 }
0x1be9   :  { %v12222_v5 = vpop.eup %12221 }
0x1bea   :  { %v12224_v33 = vpop.eup %12223  ;;  %v9117_v21 = vmul.f32 %v12222_v5, %v12218_v51 }
0x1beb   :  { %v9118_v46 = vmul.f32 %v12224_v33, %v12220_v57 }
0x1bec   :  { %v9119_v34 = vpack.c.bf16 %v9117_v21, %v9117_v21 }
0x1bed   :  { %v9120_v24 = vpack.c.bf16 %v9118_v46, %v9118_v46 }
0x1bee   :  { %v9123_v26 = vunpack.c.l.b16 %v9119_v34 }
0x1bef   :  { %v9124_v60 = vunpack.c.l.b16 %v9120_v24 }
0x1bf0   :  { %v9125_v36 = vrot.slane %v9123_v26, 2 }
0x1bf1   :  { %v9126_v8 = vrot.slane %v9124_v60, 1 }
0x1bf3   :  { %v9127_v63 = vsel %vm656_vm7, %v9126_v8, %v9125_v36 }
0x1bf4   :  { %v9128_v45 = vpack.c.b16 %v9127_v63, %v9127_v63 }
0x1bf6   :  { %9163 = vmatmul.mubr.bf16.vlgmr.msra.gmra.mxu0 %v9128_v45  ;;  %9204 = vmatmul.mubr.bf16.vlgmr.msra.gmra.mxu1 %v9128_v45 }
0x1bf7   :  { %9306 = vmatpush1.bf16.msra.mxu0 %v14634_v37  ;;  %9347 = vmatpush1.bf16.msra.mxu1 %v14637_v16 }
0x1bf8   :  { %9307 = vmatprep.subr.bf16.mxu0 %v14640_v49  ;;  %9348 = vmatprep.subr.bf16.mxu1 %v14643_v27 }
0x1bf9   :  { %9337 = vmatprep.mubr.bf16.mxu0 %v15071_v41  ;;  %9378 = vmatprep.mubr.bf16.mxu1 %v15071_v41 }
0x1bfb   :  { %9308 = vmatpush1.bf16.msra.mxu0 %v14648_v19  ;;  %9349 = vmatpush1.bf16.msra.mxu1 %v14651_v2 }
0x1bfc   :  { %9309 = vmatprep.subr.bf16.mxu0 %v14654_v53  ;;  %9350 = vmatprep.subr.bf16.mxu1 %v14657_v23 }
0x1bff   :  { %9310 = vmatpush1.bf16.msra.mxu0 %v14660_v17  ;;  %9351 = vmatpush1.bf16.msra.mxu1 %v14663_v15 }
0x1c00   :  { %9311 = vmatprep.subr.bf16.mxu0 %v14666_v40  ;;  %9352 = vmatprep.subr.bf16.mxu1 %v14669_v38 }
0x1c03   :  { %9312 = vmatpush1.bf16.msra.mxu0 %v14672_v18  ;;  %9353 = vmatpush1.bf16.msra.mxu1 %v14675_v11 }
0x1c04   :  { %9313 = vmatprep.subr.bf16.mxu0 %v14678_v30  ;;  %9354 = vmatprep.subr.bf16.mxu1 %v14681_v47 }
0x1c07   :  { %9314 = vmatpush1.bf16.msra.mxu0 %v14684_v13  ;;  %9355 = vmatpush1.bf16.msra.mxu1 %v14687_v48 }
0x1c08   :  { %9315 = vmatprep.subr.bf16.mxu0 %v14690_v14  ;;  %9356 = vmatprep.subr.bf16.mxu1 %v14693_v10 }
0x1c0b   :  { %9316 = vmatpush1.bf16.msra.mxu0 %v14696_v6  ;;  %9357 = vmatpush1.bf16.msra.mxu1 %v14699_v52 }
0x1c0c   :  { %9317 = vmatprep.subr.bf16.mxu0 %v14702_v7  ;;  %9358 = vmatprep.subr.bf16.mxu1 %v14705_v25 }
0x1c0f   :  { %9318 = vmatpush1.bf16.msra.mxu0 %v14708_v58  ;;  %9359 = vmatpush1.bf16.msra.mxu1 %v14711_v4 }
0x1c10   :  { %9319 = vmatprep.subr.bf16.mxu0 %v14714_v9  ;;  %9360 = vmatprep.subr.bf16.mxu1 %v14717_v61 }
0x1c13   :  { %9320 = vmatpush1.bf16.msra.mxu0 %v14720_v20  ;;  %9361 = vmatpush1.bf16.msra.mxu1 %v14723_v28 }
0x1c14   :  { %9480 = vmatprep.subr.bf16.mxu0 %v14611_v22  ;;  %9521 = vmatprep.subr.bf16.mxu1 %v14614_v35 }
0x1cb6   :  { %v9164_v50 = vpop.f32.mrf.mxu0  ;;  %v9205_v59 = vpop.f32.mrf.mxu1 }
0x1cb7   :  { %v9216_v12 = vrot.slane %v9164_v50, 5  ;;  %v9220_v29 = vrot.slane %v9164_v50, 6 }
0x1cb8   :  { %v9166_v44 = vpop.f32.mrf.mxu0  ;;  %v9207_v32 = vpop.f32.mrf.mxu1 }
0x1cb9   :  { %v9232_v31 = vadd.f32 %v9216_v12, %v14103_v62  ;;  %v9236_v51 = vadd.f32 %v9220_v29, %v15117_v39  ;;  %v9217_v57 = vrot.slane %v9166_v44, 5  ;;  %v9221_v5 = vrot.slane %v9166_v44, 6 }
0x1cba   :  { %v9168_v33 = vpop.f32.mrf.mxu0  ;;  %v9209_v21 = vpop.f32.mrf.mxu1  ;;  %v9219_v45 = vrot.slane %v9207_v32, 5  ;;  %v9223_v50 = vrot.slane %v9207_v32, 6  ;;  %v9218_v12 = vrot.slane %v9205_v59, 5  ;;  %v9222_v29 = vrot.slane %v9205_v59, 6 }
0x1cbb   :  { %v10847_v46 = vmul.f32 -1.442695, %v9232_v31  ;;  %v10848_v34 = vmul.f32 -1.442695, %v9236_v51  ;;  %v9233_v24 = vadd.f32 %v9217_v57, %v15118_v43  ;;  %v9237_v26 = vadd.f32 %v9221_v5, %v15119_v3 }
0x1cbc   :  { %v9169_v60 = vpop.f32.mrf.mxu0  ;;  %v9210_v36 = vpop.f32.mrf.mxu1  ;;  %v9235_v44 = vadd.f32 %v9219_v45, %v15120_v42  ;;  %v9239_v31 = vadd.f32 %v9223_v50, %v15121_v55  ;;  %v9234_v51 = vadd.f32 %v9218_v12, %v15122_v1  ;;  %v9238_v57 = vadd.f32 %v9222_v29, %v15123_v56 }
0x1cbd   :  { %12225 = vpow2.f32 %v10847_v46  ;;  %v10849_v8 = vmul.f32 -1.442695, %v9233_v24  ;;  %v10850_v63 = vmul.f32 -1.442695, %v9237_v26  ;;  %v9280_v29 = vrot.slane %v14789_v54, 7 }
0x1cbe   :  { %12227 = vpow2.f32 %v10848_v34  ;;  %v10851_v5 = vmul.f32 -1.442695, %v9235_v44  ;;  %v10852_v33 = vmul.f32 -1.442695, %v9239_v31 }
0x1cbf   :  { %12229 = vpow2.f32 %v10849_v8 }
0x1cc0   :  { %12231 = vpow2.f32 %v10850_v63 }
0x1cc1   :  { %12233 = vtanh.f32 %v9234_v51  ;;  %v9281_v51 = vrot.slane %v14791_v0, 7 }
0x1cc2   :  { %12235 = vtanh.f32 %v9238_v57 }
0x1cc3   :  { %12237 = vpow2.f32 %v10851_v5 }
0x1cc4   :  { %12239 = vpow2.f32 %v10852_v33 }
0x1cca   :  { %v12226_v21 = vpop.eup %12225 }
0x1ccb   :  { %v12228_v46 = vpop.eup %12227  ;;  %v9246_v34 = vadd.f32 1.0, %v12226_v21 }
0x1ccc   :  { %v9247_v24 = vadd.f32 1.0, %v12228_v46  ;;  %v12230_v32 = vpop.eup %12229 }
0x1ccd   :  { %v12232_v59 = vpop.eup %12231  ;;  %12241 = vrcp.f32 %v9246_v34  ;;  %v9258_v26 = vadd.f32 1.0, %v12230_v32 }
0x1cce   :  { %12243 = vrcp.f32 %v9247_v24  ;;  %v9259_v60 = vadd.f32 1.0, %v12232_v59  ;;  %v12234_v36 = vpop.eup %12233 }
0x1ccf   :  { %12245 = vrcp.f32 %v9258_v26  ;;  %v12236_v8 = vpop.eup %12235 }
0x1cd0   :  { %12247 = vrcp.f32 %v9259_v60  ;;  %v12238_v63 = vpop.eup %12237 }
0x1cd1   :  { %v12240_v45 = vpop.eup %12239  ;;  %v9272_v44 = vadd.f32 1.0, %v12238_v63 }
0x1cd2   :  { %v9273_v57 = vadd.f32 1.0, %v12240_v45 }
0x1cd3   :  { %12249 = vrcp.f32 %v9272_v44 }
0x1cd4   :  { %12251 = vrcp.f32 %v9273_v57 }
0x1cda   :  { %v12242_v50 = vpop.eup %12241 }
0x1cdb   :  { %v12244_v12 = vpop.eup %12243  ;;  %v9286_v33 = vmul.f32 %v12242_v50, %v12234_v36 }
0x1cdc   :  { %v12246_v31 = vpop.eup %12245  ;;  %v9287_v46 = vmul.f32 %v12244_v12, %v12236_v8 }
0x1cdd   :  { %v12248_v5 = vpop.eup %12247  ;;  %v9284_v21 = vmul.f32 %v12246_v31, %v9280_v29 }
0x1cde   :  { %v9285_v34 = vmul.f32 %v12248_v5, %v9281_v51 }
0x1cdf   :  { %v14840_v24 = vadd.f32 %v9286_v33, %v9284_v21 }
0x1ce0   :  { %v14842_v32 = vadd.f32 %v9287_v46, %v9285_v34  ;;  %v12250_v54 = vpop.eup %12249 }
0x1ce1   :  { %12253 = vtanh.f32 %v14840_v24  ;;  %v12252_v59 = vpop.eup %12251 }
0x1ce2   :  { %12255 = vtanh.f32 %v14842_v32 }
0x1cee   :  { %v12254_v26 = vpop.eup %12253 }
0x1cef   :  { %v12256_v0 = vpop.eup %12255  ;;  %v9292_v60 = vmul.f32 %v12254_v26, %v12250_v54 }
0x1cf0   :  { %v9293_v63 = vmul.f32 %v12256_v0, %v12252_v59 }
0x1cf1   :  { %v9294_v36 = vpack.c.bf16 %v9292_v60, %v9292_v60 }
0x1cf2   :  { %v9295_v45 = vpack.c.bf16 %v9293_v63, %v9293_v63 }
0x1cf3   :  { %v9298_v8 = vunpack.c.l.b16 %v9294_v36 }
0x1cf4   :  { %v9299_v50 = vunpack.c.l.b16 %v9295_v45 }
0x1cf5   :  { %v9300_v12 = vrot.slane %v9298_v8, 3 }
0x1cf6   :  { %v9301_v29 = vrot.slane %v9299_v50, 2 }
0x1cf8   :  { %v9302_v44 = vsel %vm656_vm7, %v9301_v29, %v9300_v12 }
0x1cf9   :  { %v9303_v31 = vpack.c.b16 %v9302_v44, %v9302_v44 }
0x1cfb   :  { %9338 = vmatmul.mubr.bf16.vlgmr.msra.gmra.mxu0 %v9303_v31  ;;  %9379 = vmatmul.mubr.bf16.vlgmr.msra.gmra.mxu1 %v9303_v31 }
0x1cfc   :  { %9481 = vmatpush1.bf16.msra.mxu0 %v14634_v37  ;;  %9522 = vmatpush1.bf16.msra.mxu1 %v14637_v16 }
0x1cfd   :  { %9482 = vmatprep.subr.bf16.mxu0 %v14640_v49  ;;  %9523 = vmatprep.subr.bf16.mxu1 %v14643_v27 }
0x1cfe   :  { %9512 = vmatprep.mubr.bf16.mxu0 %v15071_v41  ;;  %9553 = vmatprep.mubr.bf16.mxu1 %v15071_v41 }
0x1d00   :  { %9483 = vmatpush1.bf16.msra.mxu0 %v14648_v19  ;;  %9524 = vmatpush1.bf16.msra.mxu1 %v14651_v2 }
0x1d01   :  { %9484 = vmatprep.subr.bf16.mxu0 %v14654_v53  ;;  %9525 = vmatprep.subr.bf16.mxu1 %v14657_v23 }
0x1d04   :  { %9485 = vmatpush1.bf16.msra.mxu0 %v14660_v17  ;;  %9526 = vmatpush1.bf16.msra.mxu1 %v14663_v15 }
0x1d05   :  { %9486 = vmatprep.subr.bf16.mxu0 %v14666_v40  ;;  %9527 = vmatprep.subr.bf16.mxu1 %v14669_v38 }
0x1d08   :  { %9487 = vmatpush1.bf16.msra.mxu0 %v14672_v18  ;;  %9528 = vmatpush1.bf16.msra.mxu1 %v14675_v11 }
0x1d09   :  { %9488 = vmatprep.subr.bf16.mxu0 %v14678_v30  ;;  %9529 = vmatprep.subr.bf16.mxu1 %v14681_v47 }
0x1d0c   :  { %9489 = vmatpush1.bf16.msra.mxu0 %v14684_v13  ;;  %9530 = vmatpush1.bf16.msra.mxu1 %v14687_v48 }
0x1d0d   :  { %9490 = vmatprep.subr.bf16.mxu0 %v14690_v14  ;;  %9531 = vmatprep.subr.bf16.mxu1 %v14693_v10 }
0x1d10   :  { %9491 = vmatpush1.bf16.msra.mxu0 %v14696_v6  ;;  %9532 = vmatpush1.bf16.msra.mxu1 %v14699_v52 }
0x1d11   :  { %9492 = vmatprep.subr.bf16.mxu0 %v14702_v7  ;;  %9533 = vmatprep.subr.bf16.mxu1 %v14705_v25 }
0x1d14   :  { %9493 = vmatpush1.bf16.msra.mxu0 %v14708_v58  ;;  %9534 = vmatpush1.bf16.msra.mxu1 %v14711_v4 }
0x1d15   :  { %9494 = vmatprep.subr.bf16.mxu0 %v14714_v9  ;;  %9535 = vmatprep.subr.bf16.mxu1 %v14717_v61 }
0x1d18   :  { %9495 = vmatpush1.bf16.msra.mxu0 %v14720_v20  ;;  %9536 = vmatpush1.bf16.msra.mxu1 %v14723_v28 }
0x1d19   :  { %9655 = vmatprep.subr.bf16.mxu0 %v14611_v22  ;;  %9696 = vmatprep.subr.bf16.mxu1 %v14614_v35 }
0x1dbb   :  { %v9339_v51 = vpop.f32.mrf.mxu0  ;;  %v9380_v57 = vpop.f32.mrf.mxu1 }
0x1dbc   :  { %v9391_v5 = vrot.slane %v9339_v51, 4  ;;  %v9395_v33 = vrot.slane %v9339_v51, 5  ;;  %v9393_v31 = vrot.slane %v9380_v57, 4  ;;  %v9397_v51 = vrot.slane %v9380_v57, 5 }
0x1dbd   :  { %v9341_v21 = vpop.f32.mrf.mxu0  ;;  %v9382_v46 = vpop.f32.mrf.mxu1 }
0x1dbe   :  { %v9407_v34 = vadd.f32 %v9391_v5, %v14103_v62  ;;  %v9411_v54 = vadd.f32 %v9395_v33, %v15117_v39  ;;  %v9392_v59 = vrot.slane %v9341_v21, 4  ;;  %v9396_v26 = vrot.slane %v9341_v21, 5 }
0x1dbf   :  { %v9343_v0 = vpop.f32.mrf.mxu0  ;;  %v9384_v60 = vpop.f32.mrf.mxu1  ;;  %v9394_v29 = vrot.slane %v9382_v46, 4  ;;  %v9398_v44 = vrot.slane %v9382_v46, 5  ;;  %v9409_v21 = vadd.f32 %v9393_v31, %v15122_v1 }
0x1dc0   :  { %v10853_v63 = vmul.f32 -1.442695, %v9407_v34  ;;  %v10854_v36 = vmul.f32 -1.442695, %v9411_v54  ;;  %v9408_v22 = vadd.f32 %v9392_v59, %v15118_v43  ;;  %v9412_v35 = vadd.f32 %v9396_v26, %v15119_v3 }
0x1dc1   :  { %v9344_v45 = vpop.f32.mrf.mxu0  ;;  %v9385_v8 = vpop.f32.mrf.mxu1  ;;  %v9410_v5 = vadd.f32 %v9394_v29, %v15120_v42  ;;  %v9414_v33 = vadd.f32 %v9398_v44, %v15121_v55  ;;  %v9413_v34 = vadd.f32 %v9397_v51, %v15123_v56  ;;  %v9455_v44 = vrot.slane %v14840_v24, 7 }
0x1dc2   :  { %12257 = vpow2.f32 %v10853_v63  ;;  %v10855_v50 = vmul.f32 -1.442695, %v9408_v22  ;;  %v10856_v12 = vmul.f32 -1.442695, %v9412_v35 }
0x1dc3   :  { %12259 = vpow2.f32 %v10854_v36  ;;  %v10857_v54 = vmul.f32 -1.442695, %v9410_v5  ;;  %v10858_v59 = vmul.f32 -1.442695, %v9414_v33  ;;  %v9456_v5 = vrot.slane %v14842_v32, 7 }
0x1dc4   :  { %12261 = vpow2.f32 %v10855_v50 }
0x1dc5   :  { %12263 = vpow2.f32 %v10856_v12 }
0x1dc6   :  { %12265 = vtanh.f32 %v9409_v21 }
0x1dc7   :  { %12267 = vtanh.f32 %v9413_v34 }
0x1dc8   :  { %12269 = vpow2.f32 %v10857_v54 }
0x1dc9   :  { %12271 = vpow2.f32 %v10858_v59 }
0x1dcf   :  { %v12258_v26 = vpop.eup %12257 }
0x1dd0   :  { %v12260_v0 = vpop.eup %12259  ;;  %v9421_v60 = vadd.f32 1.0, %v12258_v26 }
0x1dd1   :  { %v9422_v63 = vadd.f32 1.0, %v12260_v0  ;;  %v12262_v46 = vpop.eup %12261 }
0x1dd2   :  { %v12264_v57 = vpop.eup %12263  ;;  %12273 = vrcp.f32 %v9421_v60  ;;  %v9433_v36 = vadd.f32 1.0, %v12262_v46 }
0x1dd3   :  { %12275 = vrcp.f32 %v9422_v63  ;;  %v9434_v22 = vadd.f32 1.0, %v12264_v57  ;;  %v12266_v35 = vpop.eup %12265 }
0x1dd4   :  { %12277 = vrcp.f32 %v9433_v36  ;;  %v12268_v45 = vpop.eup %12267 }
0x1dd5   :  { %12279 = vrcp.f32 %v9434_v22  ;;  %v12270_v8 = vpop.eup %12269 }
0x1dd6   :  { %v12272_v50 = vpop.eup %12271  ;;  %v9447_v31 = vadd.f32 1.0, %v12270_v8 }
0x1dd7   :  { %v9448_v33 = vadd.f32 1.0, %v12272_v50 }
0x1dd8   :  { %12281 = vrcp.f32 %v9447_v31 }
0x1dd9   :  { %12283 = vrcp.f32 %v9448_v33 }
0x1ddf   :  { %v12274_v12 = vpop.eup %12273 }
0x1de0   :  { %v12276_v29 = vpop.eup %12275  ;;  %v9461_v34 = vmul.f32 %v12274_v12, %v12266_v35 }
0x1de1   :  { %v12278_v51 = vpop.eup %12277  ;;  %v9462_v59 = vmul.f32 %v12276_v29, %v12268_v45 }
0x1de2   :  { %v12280_v21 = vpop.eup %12279  ;;  %v9459_v54 = vmul.f32 %v12278_v51, %v9455_v44 }
0x1de3   :  { %v9460_v26 = vmul.f32 %v12280_v21, %v9456_v5 }
0x1de4   :  { %v14891_v0 = vadd.f32 %v9461_v34, %v9459_v54 }
0x1de5   :  { %v14893_v60 = vadd.f32 %v9462_v59, %v9460_v26  ;;  %v12282_v24 = vpop.eup %12281 }
0x1de6   :  { %12285 = vtanh.f32 %v14891_v0  ;;  %v12284_v63 = vpop.eup %12283 }
0x1de7   :  { %12287 = vtanh.f32 %v14893_v60 }
0x1df3   :  { %v12286_v46 = vpop.eup %12285 }
0x1df4   :  { %v12288_v32 = vpop.eup %12287  ;;  %v9467_v57 = vmul.f32 %v12286_v46, %v12282_v24 }
0x1df5   :  { %v9468_v36 = vmul.f32 %v12288_v32, %v12284_v63 }
0x1df6   :  { %v9469_v22 = vpack.c.bf16 %v9467_v57, %v9467_v57 }
0x1df7   :  { %v9470_v35 = vpack.c.bf16 %v9468_v36, %v9468_v36 }
0x1df8   :  { %v9473_v45 = vunpack.c.l.b16 %v9469_v22 }
0x1df9   :  { %v9474_v8 = vunpack.c.l.b16 %v9470_v35  ;;  %v9630_v35 = vrot.slane %v14891_v0, 7 }
0x1dfa   :  { %v9475_v50 = vrot.slane %v9473_v45, 4 }
0x1dfb   :  { %v9476_v12 = vrot.slane %v9474_v8, 3 }
0x1dfd   :  { %v9477_v29 = vsel %vm656_vm7, %v9476_v12, %v9475_v50  ;;  %v9631_v50 = vrot.slane %v14893_v60, 7 }
0x1dfe   :  { %v9478_v44 = vpack.c.b16 %v9477_v29, %v9477_v29 }
0x1e00   :  { %9513 = vmatmul.mubr.bf16.vlgmr.msra.gmra.mxu0 %v9478_v44  ;;  %9554 = vmatmul.mubr.bf16.vlgmr.msra.gmra.mxu1 %v9478_v44 }
0x1e01   :  { %9656 = vmatpush1.bf16.msra.mxu0 %v14634_v37  ;;  %9697 = vmatpush1.bf16.msra.mxu1 %v14637_v16  ;;  %v12462_v37 = vld [vmem:[#allocation7 + $0xe4] ss:$16 sps:$4 sm:$0xff]   ;;  %v12463_v16 = vld [vmem:[#allocation7 + $0xec] ss:$16 sps:$4 sm:$0xff]  }
0x1e02   :  { %9657 = vmatprep.subr.bf16.mxu0 %v14640_v49  ;;  %9698 = vmatprep.subr.bf16.mxu1 %v14643_v27 }
0x1e03   :  { %9687 = vmatprep.mubr.bf16.mxu0 %v15071_v41  ;;  %9728 = vmatprep.mubr.bf16.mxu1 %v15071_v41 }
0x1e05   :  { %9658 = vmatpush1.bf16.msra.mxu0 %v14648_v19  ;;  %9699 = vmatpush1.bf16.msra.mxu1 %v14651_v2 }
0x1e06   :  { %9659 = vmatprep.subr.bf16.mxu0 %v14654_v53  ;;  %9700 = vmatprep.subr.bf16.mxu1 %v14657_v23 }
0x1e09   :  { %9660 = vmatpush1.bf16.msra.mxu0 %v14660_v17  ;;  %9701 = vmatpush1.bf16.msra.mxu1 %v14663_v15 }
0x1e0a   :  { %9661 = vmatprep.subr.bf16.mxu0 %v14666_v40  ;;  %9702 = vmatprep.subr.bf16.mxu1 %v14669_v38 }
0x1e0d   :  { %9662 = vmatpush1.bf16.msra.mxu0 %v14672_v18  ;;  %9703 = vmatpush1.bf16.msra.mxu1 %v14675_v11 }
0x1e0e   :  { %9663 = vmatprep.subr.bf16.mxu0 %v14678_v30  ;;  %9704 = vmatprep.subr.bf16.mxu1 %v14681_v47 }
0x1e11   :  { %9664 = vmatpush1.bf16.msra.mxu0 %v14684_v13  ;;  %9705 = vmatpush1.bf16.msra.mxu1 %v14687_v48 }
0x1e12   :  { %9665 = vmatprep.subr.bf16.mxu0 %v14690_v14  ;;  %9706 = vmatprep.subr.bf16.mxu1 %v14693_v10 }
0x1e15   :  { %9666 = vmatpush1.bf16.msra.mxu0 %v14696_v6  ;;  %9707 = vmatpush1.bf16.msra.mxu1 %v14699_v52 }
0x1e16   :  { %9667 = vmatprep.subr.bf16.mxu0 %v14702_v7  ;;  %9708 = vmatprep.subr.bf16.mxu1 %v14705_v25 }
0x1e19   :  { %9668 = vmatpush1.bf16.msra.mxu0 %v14708_v58  ;;  %9709 = vmatpush1.bf16.msra.mxu1 %v14711_v4 }
0x1e1a   :  { %9669 = vmatprep.subr.bf16.mxu0 %v14714_v9  ;;  %9710 = vmatprep.subr.bf16.mxu1 %v14717_v61 }
0x1e1d   :  { %9670 = vmatpush1.bf16.msra.mxu0 %v14720_v20  ;;  %9711 = vmatpush1.bf16.msra.mxu1 %v14723_v28 }
0x1e1e   :  { %9830 = vmatprep.subr.bf16.mxu0 %v12462_v37  ;;  %9871 = vmatprep.subr.bf16.mxu1 %v12463_v16 }
0x1ec0   :  { %v9514_v49 = vpop.f32.mrf.mxu0  ;;  %v9555_v27 = vpop.f32.mrf.mxu1 }
0x1ec1   :  { %v9566_v19 = vrot.slane %v9514_v49, 3  ;;  %v9570_v2 = vrot.slane %v9514_v49, 4  ;;  %v9568_v58 = vrot.slane %v9555_v27, 3  ;;  %v9572_v4 = vrot.slane %v9555_v27, 4 }
0x1ec2   :  { %v9516_v53 = vpop.f32.mrf.mxu0  ;;  %v9557_v23 = vpop.f32.mrf.mxu1 }
0x1ec3   :  { %v9582_v17 = vadd.f32 %v9566_v19, %v14103_v62  ;;  %v9586_v15 = vadd.f32 %v9570_v2, %v15117_v39  ;;  %v9567_v40 = vrot.slane %v9516_v53, 3  ;;  %v9571_v38 = vrot.slane %v9516_v53, 4 }
0x1ec4   :  { %v9518_v18 = vpop.f32.mrf.mxu0  ;;  %v9559_v11 = vpop.f32.mrf.mxu1  ;;  %v9569_v7 = vrot.slane %v9557_v23, 3  ;;  %v9573_v25 = vrot.slane %v9557_v23, 4  ;;  %v9584_v20 = vadd.f32 %v9568_v58, %v15122_v1  ;;  %v9588_v28 = vadd.f32 %v9572_v4, %v15123_v56  ;;  %v12471_v58 = vld [vmem:[#allocation7 + $0xac] ss:$16 sps:$4 sm:$0xff]   ;;  %v12472_v4 = vld [vmem:[#allocation7 + $0xa0] ss:$16 sps:$4 sm:$0xff]  }
0x1ec5   :  { %v10859_v30 = vmul.f32 -1.442695, %v9582_v17  ;;  %v10860_v47 = vmul.f32 -1.442695, %v9586_v15  ;;  %v9583_v13 = vadd.f32 %v9567_v40, %v15118_v43  ;;  %v9587_v48 = vadd.f32 %v9571_v38, %v15119_v3 }
0x1ec6   :  { %v9519_v14 = vpop.f32.mrf.mxu0  ;;  %v9560_v10 = vpop.f32.mrf.mxu1  ;;  %v9585_v9 = vadd.f32 %v9569_v7, %v15120_v42  ;;  %v9589_v61 = vadd.f32 %v9573_v25, %v15121_v55  ;;  %v12469_v7 = vld [vmem:[#allocation7 + $0xc8] ss:$16 sps:$4 sm:$0xff]   ;;  %v12470_v25 = vld [vmem:[#allocation7 + $0xa4] ss:$16 sps:$4 sm:$0xff]  }
0x1ec7   :  { %12289 = vpow2.f32 %v10859_v30  ;;  %v10861_v6 = vmul.f32 -1.442695, %v9583_v13  ;;  %v10862_v52 = vmul.f32 -1.442695, %v9587_v48  ;;  %v12464_v48 = vld [vmem:[#allocation7 + $0xe0] ss:$16 sps:$4 sm:$0xff]  }
0x1ec8   :  { %12291 = vpow2.f32 %v10860_v47  ;;  %v10863_v31 = vmul.f32 -1.442695, %v9585_v9  ;;  %v10864_v51 = vmul.f32 -1.442695, %v9589_v61  ;;  %v12465_v14 = vld [vmem:[#allocation7 + $0xe8] ss:$16 sps:$4 sm:$0xff]  }
0x1ec9   :  { %12293 = vpow2.f32 %v10861_v6  ;;  %v12466_v10 = vld [vmem:[#allocation7 + $0xc4] ss:$16 sps:$4 sm:$0xff]   ;;  %v12467_v6 = vld [vmem:[#allocation7 + $0xcc] ss:$16 sps:$4 sm:$0xff]   ;;  %v12473_v9 = vld [vmem:[#allocation7 + $0xa8] ss:$16 sps:$4 sm:$0xff]  }
0x1eca   :  { %12295 = vpow2.f32 %v10862_v52  ;;  %v12468_v52 = vld [vmem:[#allocation7 + $0xc0] ss:$16 sps:$4 sm:$0xff]   ;;  %v12474_v61 = vld [vmem:[#allocation7 + $0x84] ss:$16 sps:$4 sm:$0xff]  }
0x1ecb   :  { %12297 = vtanh.f32 %v9584_v20  ;;  %v12475_v20 = vld [vmem:[#allocation7 + $0x8c] ss:$16 sps:$4 sm:$0xff]  }
0x1ecc   :  { %12299 = vtanh.f32 %v9588_v28  ;;  %v12476_v28 = vld [vmem:[#allocation7 + $0x80] ss:$16 sps:$4 sm:$0xff]  }
0x1ecd   :  { %12301 = vpow2.f32 %v10863_v31  ;;  %v12477_v31 = vld [vmem:[#allocation7 + $0x88] ss:$16 sps:$4 sm:$0xff]  }
0x1ece   :  { %12303 = vpow2.f32 %v10864_v51  ;;  %v12479_v51 = vld [vmem:[#allocation7 + $0x6c] ss:$16 sps:$4 sm:$0xff]  }
0x1ed4   :  { %v12290_v5 = vpop.eup %12289 }
0x1ed5   :  { %v12292_v33 = vpop.eup %12291  ;;  %v9596_v21 = vadd.f32 1.0, %v12290_v5  ;;  %v12480_v5 = vld [vmem:[#allocation7 + $0x60] ss:$16 sps:$4 sm:$0xff]  }
0x1ed6   :  { %v9597_v34 = vadd.f32 1.0, %v12292_v33  ;;  %v12294_v54 = vpop.eup %12293  ;;  %v12481_v33 = vld [vmem:[#allocation7 + $0x68] ss:$16 sps:$4 sm:$0xff]  }
0x1ed7   :  { %v12296_v59 = vpop.eup %12295  ;;  %12305 = vrcp.f32 %v9596_v21  ;;  %v9608_v26 = vadd.f32 1.0, %v12294_v54  ;;  %v12482_v21 = vld [vmem:[#allocation7 + $0x44] ss:$16 sps:$4 sm:$0xff]   ;;  %v12484_v54 = vld [vmem:[#allocation7 + $0x40] ss:$16 sps:$4 sm:$0xff]  }
0x1ed8   :  { %12307 = vrcp.f32 %v9597_v34  ;;  %v9609_v24 = vadd.f32 1.0, %v12296_v59  ;;  %v12298_v63 = vpop.eup %12297  ;;  %v12483_v34 = vld [vmem:[#allocation7 + $0x4c] ss:$16 sps:$4 sm:$0xff]   ;;  %v12485_v59 = vld [vmem:[#allocation7 + $0x48] ss:$16 sps:$4 sm:$0xff]  }
0x1ed9   :  { %12309 = vrcp.f32 %v9608_v26  ;;  %v12300_v46 = vpop.eup %12299  ;;  %v12486_v26 = vld [vmem:[#allocation7 + $0x24] ss:$16 sps:$4 sm:$0xff]  }
0x1eda   :  { %12311 = vrcp.f32 %v9609_v24  ;;  %v12302_v32 = vpop.eup %12301  ;;  %v12487_v24 = vld [vmem:[#allocation7 + $0x2c] ss:$16 sps:$4 sm:$0xff]  }
0x1edb   :  { %v12304_v57 = vpop.eup %12303  ;;  %v9622_v45 = vadd.f32 1.0, %v12302_v32  ;;  %v12490_v32 = vld [vmem:[#allocation7 + $0x4] ss:$16 sps:$4 sm:$0xff]  }
0x1edc   :  { %v9623_v12 = vadd.f32 1.0, %v12304_v57  ;;  %v12491_v57 = vld [vmem:[#allocation7 + $0xc] ss:$16 sps:$4 sm:$0xff]  }
0x1edd   :  { %12313 = vrcp.f32 %v9622_v45 }
0x1ede   :  { %12315 = vrcp.f32 %v9623_v12 }
0x1ee4   :  { %v12306_v36 = vpop.eup %12305 }
0x1ee5   :  { %v12308_v22 = vpop.eup %12307  ;;  %v9636_v44 = vmul.f32 %v12306_v36, %v12298_v63  ;;  %v12488_v63 = vld [vmem:[#allocation7 + $0x20] ss:$16 sps:$4 sm:$0xff]  }
0x1ee6   :  { %v12310_v8 = vpop.eup %12309  ;;  %v9637_v16 = vmul.f32 %v12308_v22, %v12300_v46  ;;  %v12489_v46 = vld [vmem:[#allocation7 + $0x28] ss:$16 sps:$4 sm:$0xff]   ;;  %v12492_v36 = vld [vmem:[#allocation7] ss:$16 sps:$4 sm:$0xff]  }
0x1ee7   :  { %v12312_v29 = vpop.eup %12311  ;;  %v9634_v37 = vmul.f32 %v12310_v8, %v9630_v35  ;;  %v12493_v22 = vld [vmem:[#allocation7 + $0x8] ss:$16 sps:$4 sm:$0xff]  }
0x1ee8   :  { %v9635_v49 = vmul.f32 %v12312_v29, %v9631_v50 }
0x1ee9   :  { %v14940_v27 = vadd.f32 %v9636_v44, %v9634_v37 }
0x1eea   :  { %v14942_v19 = vadd.f32 %v9637_v16, %v9635_v49  ;;  %v12314_v0 = vpop.eup %12313 }
0x1eeb   :  { %12317 = vtanh.f32 %v14940_v27  ;;  %v12316_v2 = vpop.eup %12315 }
0x1eec   :  { %12319 = vtanh.f32 %v14942_v19 }
0x1ef8   :  { %v12318_v53 = vpop.eup %12317 }
0x1ef9   :  { %v12320_v60 = vpop.eup %12319  ;;  %v9642_v23 = vmul.f32 %v12318_v53, %v12314_v0 }
0x1efa   :  { %v9643_v17 = vmul.f32 %v12320_v60, %v12316_v2 }
0x1efb   :  { %v9644_v15 = vpack.c.bf16 %v9642_v23, %v9642_v23 }
0x1efc   :  { %v9645_v40 = vpack.c.bf16 %v9643_v17, %v9643_v17 }
0x1efd   :  { %v9648_v38 = vunpack.c.l.b16 %v9644_v15 }
0x1efe   :  { %v9649_v18 = vunpack.c.l.b16 %v9645_v40 }
0x1eff   :  { %v9650_v11 = vrot.slane %v9648_v38, 5 }
0x1f00   :  { %v9651_v30 = vrot.slane %v9649_v18, 4 }
0x1f02   :  { %v9652_v47 = vsel %vm656_vm7, %v9651_v30, %v9650_v11 }
0x1f03   :  { %v9653_v13 = vpack.c.b16 %v9652_v47, %v9652_v47 }
0x1f05   :  { %9688 = vmatmul.mubr.bf16.vlgmr.msra.gmra.mxu0 %v9653_v13  ;;  %9729 = vmatmul.mubr.bf16.vlgmr.msra.gmra.mxu1 %v9653_v13 }
0x1f06   :  { %9831 = vmatpush1.bf16.msra.mxu0 %v12464_v48  ;;  %9872 = vmatpush1.bf16.msra.mxu1 %v12465_v14 }
0x1f07   :  { %9832 = vmatprep.subr.bf16.mxu0 %v12466_v10  ;;  %9873 = vmatprep.subr.bf16.mxu1 %v12467_v6 }
0x1f08   :  { %9862 = vmatprep.mubr.bf16.mxu0 %v15071_v41  ;;  %9903 = vmatprep.mubr.bf16.mxu1 %v15071_v41  ;;  %v12478_v41 = vld [vmem:[#allocation7 + $0x64] ss:$16 sps:$4 sm:$0xff]  }
0x1f0a   :  { %9833 = vmatpush1.bf16.msra.mxu0 %v12468_v52  ;;  %9874 = vmatpush1.bf16.msra.mxu1 %v12469_v7 }
0x1f0b   :  { %9834 = vmatprep.subr.bf16.mxu0 %v12470_v25  ;;  %9875 = vmatprep.subr.bf16.mxu1 %v12471_v58 }
0x1f0e   :  { %9835 = vmatpush1.bf16.msra.mxu0 %v12472_v4  ;;  %9876 = vmatpush1.bf16.msra.mxu1 %v12473_v9 }
0x1f0f   :  { %9836 = vmatprep.subr.bf16.mxu0 %v12474_v61  ;;  %9877 = vmatprep.subr.bf16.mxu1 %v12475_v20 }
0x1f12   :  { %9837 = vmatpush1.bf16.msra.mxu0 %v12476_v28  ;;  %9878 = vmatpush1.bf16.msra.mxu1 %v12477_v31 }
0x1f13   :  { %9838 = vmatprep.subr.bf16.mxu0 %v12478_v41  ;;  %9879 = vmatprep.subr.bf16.mxu1 %v12479_v51 }
0x1f16   :  { %9839 = vmatpush1.bf16.msra.mxu0 %v12480_v5  ;;  %9880 = vmatpush1.bf16.msra.mxu1 %v12481_v33 }
0x1f17   :  { %9840 = vmatprep.subr.bf16.mxu0 %v12482_v21  ;;  %9881 = vmatprep.subr.bf16.mxu1 %v12483_v34 }
0x1f1a   :  { %9841 = vmatpush1.bf16.msra.mxu0 %v12484_v54  ;;  %9882 = vmatpush1.bf16.msra.mxu1 %v12485_v59  ;;  %v9805_v54 = vrot.slane %v14940_v27, 7 }
0x1f1b   :  { %9842 = vmatprep.subr.bf16.mxu0 %v12486_v26  ;;  %9883 = vmatprep.subr.bf16.mxu1 %v12487_v24  ;;  %v9806_v24 = vrot.slane %v14942_v19, 7 }
0x1f1e   :  { %9843 = vmatpush1.bf16.msra.mxu0 %v12488_v63  ;;  %9884 = vmatpush1.bf16.msra.mxu1 %v12489_v46 }
0x1f1f   :  { %9844 = vmatprep.subr.bf16.mxu0 %v12490_v32  ;;  %9885 = vmatprep.subr.bf16.mxu1 %v12491_v57 }
0x1f22   :  { %9845 = vmatpush1.bf16.msra.mxu0 %v12492_v36  ;;  %9886 = vmatpush1.bf16.msra.mxu1 %v12493_v22 }
0x1fc5   :  { %v9689_v35 = vpop.f32.mrf.mxu0  ;;  %v9730_v45 = vpop.f32.mrf.mxu1 }
0x1fc6   :  { %v9741_v8 = vrot.slane %v9689_v35, 2  ;;  %v9745_v50 = vrot.slane %v9689_v35, 3  ;;  %v9743_v47 = vrot.slane %v9730_v45, 2  ;;  %v9747_v13 = vrot.slane %v9730_v45, 3 }
0x1fc7   :  { %v9691_v12 = vpop.f32.mrf.mxu0  ;;  %v9732_v29 = vpop.f32.mrf.mxu1 }
0x1fc8   :  { %v9757_v44 = vadd.f32 %v9741_v8, %v14103_v62  ;;  %v9761_v37 = vadd.f32 %v9745_v50, %v15117_v39  ;;  %v9742_v16 = vrot.slane %v9691_v12, 2  ;;  %v9746_v49 = vrot.slane %v9691_v12, 3 }
0x1fc9   :  { %v9693_v0 = vpop.f32.mrf.mxu0  ;;  %v9734_v2 = vpop.f32.mrf.mxu1  ;;  %v9744_v11 = vrot.slane %v9732_v29, 2  ;;  %v9748_v30 = vrot.slane %v9732_v29, 3  ;;  %v9759_v10 = vadd.f32 %v9743_v47, %v15122_v1  ;;  %v9763_v6 = vadd.f32 %v9747_v13, %v15123_v56 }
0x1fca   :  { %v10865_v53 = vmul.f32 -1.442695, %v9757_v44  ;;  %v10866_v60 = vmul.f32 -1.442695, %v9761_v37  ;;  %v9758_v23 = vadd.f32 %v9742_v16, %v15118_v43  ;;  %v9762_v17 = vadd.f32 %v9746_v49, %v15119_v3 }
0x1fcb   :  { %v9694_v15 = vpop.f32.mrf.mxu0  ;;  %v9735_v40 = vpop.f32.mrf.mxu1  ;;  %v9760_v48 = vadd.f32 %v9744_v11, %v15120_v42  ;;  %v9764_v14 = vadd.f32 %v9748_v30, %v15121_v55 }
0x1fcc   :  { %12321 = vpow2.f32 %v10865_v53  ;;  %v10867_v38 = vmul.f32 -1.442695, %v9758_v23  ;;  %v10868_v18 = vmul.f32 -1.442695, %v9762_v17 }
0x1fcd   :  { %12323 = vpow2.f32 %v10866_v60  ;;  %v10869_v52 = vmul.f32 -1.442695, %v9760_v48  ;;  %v10870_v7 = vmul.f32 -1.442695, %v9764_v14 }
0x1fce   :  { %12325 = vpow2.f32 %v10867_v38 }
0x1fcf   :  { %12327 = vpow2.f32 %v10868_v18 }
0x1fd0   :  { %12329 = vtanh.f32 %v9759_v10 }
0x1fd1   :  { %12331 = vtanh.f32 %v9763_v6 }
0x1fd2   :  { %12333 = vpow2.f32 %v10869_v52 }
0x1fd3   :  { %12335 = vpow2.f32 %v10870_v7 }
0x1fd9   :  { %v12322_v25 = vpop.eup %12321 }
0x1fda   :  { %v12324_v58 = vpop.eup %12323  ;;  %v9771_v4 = vadd.f32 1.0, %v12322_v25 }
0x1fdb   :  { %v9772_v9 = vadd.f32 1.0, %v12324_v58  ;;  %v12326_v61 = vpop.eup %12325 }
0x1fdc   :  { %v12328_v20 = vpop.eup %12327  ;;  %12337 = vrcp.f32 %v9771_v4  ;;  %v9783_v28 = vadd.f32 1.0, %v12326_v61 }
0x1fdd   :  { %12339 = vrcp.f32 %v9772_v9  ;;  %v9784_v31 = vadd.f32 1.0, %v12328_v20  ;;  %v12330_v41 = vpop.eup %12329 }
0x1fde   :  { %12341 = vrcp.f32 %v9783_v28  ;;  %v12332_v51 = vpop.eup %12331 }
0x1fdf   :  { %12343 = vrcp.f32 %v9784_v31  ;;  %v12334_v5 = vpop.eup %12333 }
0x1fe0   :  { %v12336_v33 = vpop.eup %12335  ;;  %v9797_v59 = vadd.f32 1.0, %v12334_v5 }
0x1fe1   :  { %v9798_v63 = vadd.f32 1.0, %v12336_v33 }
0x1fe2   :  { %12345 = vrcp.f32 %v9797_v59 }
0x1fe3   :  { %12347 = vrcp.f32 %v9798_v63 }
0x1fe9   :  { %v12338_v21 = vpop.eup %12337 }
0x1fea   :  { %v12340_v34 = vpop.eup %12339  ;;  %v9811_v32 = vmul.f32 %v12338_v21, %v12330_v41 }
0x1feb   :  { %v12342_v26 = vpop.eup %12341  ;;  %v9812_v36 = vmul.f32 %v12340_v34, %v12332_v51 }
0x1fec   :  { %v12344_v46 = vpop.eup %12343  ;;  %v9809_v57 = vmul.f32 %v12342_v26, %v9805_v54 }
0x1fed   :  { %v9810_v22 = vmul.f32 %v12344_v46, %v9806_v24 }
0x1fee   :  { %v14959_v35 = vadd.f32 %v9811_v32, %v9809_v57 }
0x1fef   :  { %v14961_v45 = vadd.f32 %v9812_v36, %v9810_v22  ;;  %v12346_v27 = vpop.eup %12345 }
0x1ff0   :  { %12349 = vtanh.f32 %v14959_v35  ;;  %v12348_v8 = vpop.eup %12347  ;;  %v9980_v32 = vrot.slane %v14959_v35, 7 }
0x1ff1   :  { %12351 = vtanh.f32 %v14961_v45  ;;  %v9981_v22 = vrot.slane %v14961_v45, 7 }
0x1ffd   :  { %v12350_v50 = vpop.eup %12349 }
0x1ffe   :  { %v12352_v19 = vpop.eup %12351  ;;  %v9817_v12 = vmul.f32 %v12350_v50, %v12346_v27 }
0x1fff   :  { %v9818_v29 = vmul.f32 %v12352_v19, %v12348_v8 }
0x2000   :  { %v9819_v44 = vpack.c.bf16 %v9817_v12, %v9817_v12 }
0x2001   :  { %v9820_v37 = vpack.c.bf16 %v9818_v29, %v9818_v29 }
0x2002   :  { %v9823_v16 = vunpack.c.l.b16 %v9819_v44 }
0x2003   :  { %v9824_v49 = vunpack.c.l.b16 %v9820_v37 }
0x2004   :  { %v9825_v0 = vrot.slane %v9823_v16, 6 }
0x2005   :  { %v9826_v2 = vrot.slane %v9824_v49, 5 }
0x2007   :  { %v9827_v53 = vsel %vm656_vm7, %v9826_v2, %v9825_v0  ;;  %v15124_v2 = vld [vmem:[#allocation14_spill] sm:$0xff] }
0x2008   :  { %v9828_v60 = vpack.c.b16 %v9827_v53, %v9827_v53  ;;  %v10001_v53 = vrot.slane %v15124_v2, 1 }
0x200a   :  { %9863 = vmatmul.mubr.bf16.vlgmr.msra.gmra.mxu0 %v9828_v60  ;;  %9904 = vmatmul.mubr.bf16.vlgmr.msra.gmra.mxu1 %v9828_v60 }
0x20ca   :  { %v9864_v23 = vpop.f32.mrf.mxu0  ;;  %v9905_v17 = vpop.f32.mrf.mxu1 }
0x20cb   :  { %v9916_v15 = vrot.slane %v9864_v23, 1  ;;  %v9920_v40 = vrot.slane %v9864_v23, 2  ;;  %v9918_v61 = vrot.slane %v9905_v17, 1  ;;  %v9922_v20 = vrot.slane %v9905_v17, 2 }
0x20cc   :  { %v9866_v38 = vpop.f32.mrf.mxu0  ;;  %v9907_v18 = vpop.f32.mrf.mxu1 }
0x20cd   :  { %v9932_v11 = vadd.f32 %v9916_v15, %v14103_v62  ;;  %v9936_v30 = vadd.f32 %v9920_v40, %v15117_v39  ;;  %v9917_v47 = vrot.slane %v9866_v38, 1  ;;  %v9921_v13 = vrot.slane %v9866_v38, 2  ;;  %v15125_v15 = vld [vmem:[#allocation18_spill] sm:$0xff] }
0x20ce   :  { %v9868_v48 = vpop.f32.mrf.mxu0  ;;  %v9909_v14 = vpop.f32.mrf.mxu1  ;;  %v9919_v62 = vrot.slane %v9907_v18, 1  ;;  %v9923_v39 = vrot.slane %v9907_v18, 2 }
0x20cf   :  { %v10871_v10 = vmul.f32 -1.442695, %v9932_v11  ;;  %v10872_v6 = vmul.f32 -1.442695, %v9936_v30  ;;  %v9933_v52 = vadd.f32 %v9917_v47, %v15118_v43  ;;  %v9937_v7 = vadd.f32 %v9921_v13, %v15119_v3 }
0x20d0   :  { %v9869_v25 = vpop.f32.mrf.mxu0  ;;  %v9910_v58 = vpop.f32.mrf.mxu1  ;;  %v9935_v28 = vadd.f32 %v9919_v62, %v15120_v42  ;;  %v9939_v31 = vadd.f32 %v9923_v39, %v15121_v55  ;;  %v9934_v43 = vadd.f32 %v9918_v61, %v15122_v1  ;;  %v9938_v3 = vadd.f32 %v9922_v20, %v15123_v56 }
0x20d1   :  { %12353 = vpow2.f32 %v10871_v10  ;;  %v10873_v4 = vmul.f32 -1.442695, %v9933_v52  ;;  %v10874_v9 = vmul.f32 -1.442695, %v9937_v7 }
0x20d2   :  { %12355 = vpow2.f32 %v10872_v6  ;;  %v10875_v41 = vmul.f32 -1.442695, %v9935_v28  ;;  %v10876_v51 = vmul.f32 -1.442695, %v9939_v31 }
0x20d3   :  { %12357 = vpow2.f32 %v10873_v4 }
0x20d4   :  { %12359 = vpow2.f32 %v10874_v9 }
0x20d5   :  { %12361 = vtanh.f32 %v9934_v43 }
0x20d6   :  { %12363 = vtanh.f32 %v9938_v3 }
0x20d7   :  { %12365 = vpow2.f32 %v10875_v41 }
0x20d8   :  { %12367 = vpow2.f32 %v10876_v51 }
0x20de   :  { %v12354_v5 = vpop.eup %12353 }
0x20df   :  { %v12356_v33 = vpop.eup %12355  ;;  %v9946_v21 = vadd.f32 1.0, %v12354_v5 }
0x20e0   :  { %v9947_v34 = vadd.f32 1.0, %v12356_v33  ;;  %v12358_v54 = vpop.eup %12357 }
0x20e1   :  { %v12360_v59 = vpop.eup %12359  ;;  %12369 = vrcp.f32 %v9946_v21  ;;  %v9958_v42 = vadd.f32 1.0, %v12358_v54 }
0x20e2   :  { %12371 = vrcp.f32 %v9947_v34  ;;  %v9959_v55 = vadd.f32 1.0, %v12360_v59  ;;  %v12362_v1 = vpop.eup %12361 }
0x20e3   :  { %12373 = vrcp.f32 %v9958_v42  ;;  %v12364_v56 = vpop.eup %12363 }
0x20e4   :  { %12375 = vrcp.f32 %v9959_v55  ;;  %v12366_v26 = vpop.eup %12365 }
0x20e5   :  { %v12368_v24 = vpop.eup %12367  ;;  %v9972_v57 = vadd.f32 1.0, %v12366_v26 }
0x20e6   :  { %v9973_v27 = vadd.f32 1.0, %v12368_v24 }
0x20e7   :  { %12377 = vrcp.f32 %v9972_v57 }
0x20e8   :  { %12379 = vrcp.f32 %v9973_v27 }
0x20ee   :  { %v12370_v63 = vpop.eup %12369 }
0x20ef   :  { %v12372_v46 = vpop.eup %12371  ;;  %v9986_v50 = vmul.f32 %v12370_v63, %v12362_v1 }
0x20f0   :  { %v12374_v36 = vpop.eup %12373  ;;  %v9987_v12 = vmul.f32 %v12372_v46, %v12364_v56 }
0x20f1   :  { %v12376_v8 = vpop.eup %12375  ;;  %v9984_v19 = vmul.f32 %v12374_v36, %v9980_v32 }
0x20f2   :  { %v9985_v29 = vmul.f32 %v12376_v8, %v9981_v22 }
0x20f3   :  { %v9988_v44 = vadd.f32 %v9986_v50, %v9984_v19 }
0x20f4   :  { %v9989_v37 = vadd.f32 %v9987_v12, %v9985_v29  ;;  %v12378_v16 = vpop.eup %12377 }
0x20f5   :  { %12381 = vtanh.f32 %v9988_v44  ;;  %v12380_v49 = vpop.eup %12379 }
0x20f6   :  { %12383 = vtanh.f32 %v9989_v37 }
0x2102   :  { %v12382_v0 = vpop.eup %12381 }
0x2103   :  { %v12384_v35 = vpop.eup %12383  ;;  %v9992_v45 = vmul.f32 %v12382_v0, %v12378_v16 }
0x2104   :  { %v9993_v60 = vmul.f32 %v12384_v35, %v12380_v49 }
0x2105   :  { %v10005_v23 = vsel %vm10004_vm3, %v9992_v45, %v10001_v53 }
0x2106   :  { %v9996_v17 = vrot.slane %v9993_v60, 7  ;;  %10007 = vst [vmem:[%s14991_s7 - $0x7] sm:$0x80] %v10005_v23 }
0x2108   :  { %v10006_v40 = vsel %vm10004_vm3, %v9996_v17, %v15125_v15 }
0x2109   :  { %10008 = vst [vmem:[%s14991_s7 + $0x1] sm:$0x1] %v10006_v40 }
0x210a   :  { %10013 = vsyncpa [#allocation4], 1 }
0x210b   :  { %10014 = vsyncpa [#allocation6], 1 }

</bundles_post_ra>
